<compile_context>
chip_gen: v5e
topology: v5e:2x2
jax: 0.10.0
libtpu: 0.0.40
codegen_flags: <defaults>
</compile_context>

<pallas_src>
import math

import jax
import jax.numpy as jnp
from jax import lax
from jax.experimental import pallas as pl
from jax.experimental.pallas import tpu as pltpu

D_MODEL = 512
N_HEADS = 4
D_HEAD = D_MODEL // N_HEADS      # 128
D_FF = 2048
FF_CHUNK = 512                   # MLP processed in 4 chunks of 512 FF columns
N_FF_CHUNKS = D_FF // FF_CHUNK
EPS = 1e-6
ATTN_SCALE = 1.0 / math.sqrt(D_HEAD)
VMEM_LIMIT = 48 * 1024 * 1024    # fits v7x 64 MiB; well above v5e 16 MiB default


def _layernorm(x, gamma, beta):
    mu = jnp.mean(x, axis=-1, keepdims=True)
    var = jnp.mean(jnp.square(x - mu), axis=-1, keepdims=True)
    return (x - mu) * lax.rsqrt(var + EPS) * gamma + beta


# --------------------------- kernel 1: LN1 + QKV ------------------------------
def qkv_kernel(x_ref, ln1_g_ref, ln1_b_ref, wqkv_ref, bqkv_ref, q_ref, kv_ref):
    x = x_ref[0]                                                     # (TS, 512) f32
    xn = _layernorm(x, ln1_g_ref[...], ln1_b_ref[...]).astype(jnp.bfloat16)
    qkv = jnp.dot(xn, wqkv_ref[...],
                  preferred_element_type=jnp.float32) + bqkv_ref[...]  # (TS, 1536)
    # Fold the 1/sqrt(d_head) softmax scale into q once.
    q_ref[0] = (qkv[:, :D_MODEL] * ATTN_SCALE).astype(jnp.bfloat16)
    kv_ref[0] = qkv[:, D_MODEL:].astype(jnp.bfloat16)


# --------------------- kernel 2: attention + MLP + residuals ------------------
def attn_mlp_kernel(xq_ref, q_ref, kv_ref,
                    wo_ref, bo_ref,
                    ln2_g_ref, ln2_b_ref,
                    w1_ref, b1_ref, w2_ref, b2_ref,
                    o_ref,
                    ctx_ref):
    xq = xq_ref[0]                       # (TQ, 512) f32  (residual stream)
    q = q_ref[0]                         # (TQ, 512) bf16 (scale already folded)
    kv = kv_ref[0]                       # (S, 1024) bf16 (K | V)

    # ---- per-head softmax attention; heads write 128-aligned ctx columns ----
    for hd in range(N_HEADS):            # static 4-way unroll
        lo = hd * D_HEAD
        qh = q[:, lo:lo + D_HEAD]                                    # (TQ,128) bf16
        kh = kv[:, lo:lo + D_HEAD]                                   # (S, 128) bf16
        vh = kv[:, D_MODEL + lo:D_MODEL + lo + D_HEAD]               # (S, 128) bf16
        s = lax.dot_general(qh, kh, (((1,), (1,)), ((), ())),
                            preferred_element_type=jnp.float32)      # (TQ, S) f32
        s = s - jnp.max(s, axis=-1, keepdims=True)
        p = jnp.exp(s)                                               # unnormalized, <= 1
        inv = pl.reciprocal(jnp.sum(p, axis=-1, keepdims=True), approx=True)
        ctx_h = jnp.dot(p.astype(jnp.bfloat16), vh,
                        preferred_element_type=jnp.float32)          # (TQ, 128) f32
        # normalize after the matmul: TQ x 128 mults instead of TQ x S
        ctx_ref[:, lo:lo + D_HEAD] = (ctx_h * inv).astype(jnp.bfloat16)

    attn = jnp.dot(ctx_ref[...], wo_ref[...],
                   preferred_element_type=jnp.float32) + bo_ref[...]
    x1 = attn + xq                       # residual 1 (f32)

    # ---- ffn_norm + MLP: fc1 -> GELU -> (dropout=id) -> fc2, FF-chunked ----
    xn2 = _layernorm(x1, ln2_g_ref[...], ln2_b_ref[...]).astype(jnp.bfloat16)
    out = jnp.zeros_like(x1)
    for c in range(N_FF_CHUNKS):         # static 4-way unroll over FF columns
        c0 = c * FF_CHUNK
        hid = jnp.dot(xn2, w1_ref[:, c0:c0 + FF_CHUNK],
                      preferred_element_type=jnp.float32) + b1_ref[:, c0:c0 + FF_CHUNK]
        # tanh-approx GELU (EUP tanh; ~1e-3 deviation from exact erf GELU)
        hid = 0.5 * hid * (1.0 + jnp.tanh(
            0.7978845608028654 * (hid + 0.044715 * hid * hid * hid)))
        out = out + jnp.dot(hid.astype(jnp.bfloat16), w2_ref[c0:c0 + FF_CHUNK, :],
                            preferred_element_type=jnp.float32)
    o_ref[0] = (out + b2_ref[...] + x1).astype(o_ref.dtype)   # residual 2


# ------------------------------- host wrapper ---------------------------------
def pack_params(p):
    """One-time weight packing (transpose to (in,out), fuse QKV, cast bf16)."""
    bf = lambda w: w.astype(jnp.bfloat16)
    row = lambda v: v.reshape(1, -1).astype(jnp.float32)
    wqkv = jnp.concatenate([p["wq"].T, p["wk"].T, p["wv"].T], axis=1)   # (512, 1536)
    bqkv = jnp.concatenate([p["bq"], p["bk"], p["bv"]]).reshape(1, -1).astype(jnp.float32)
    return {
        "ln1_g": row(p["ln1_g"]), "ln1_b": row(p["ln1_b"]),
        "wqkv": bf(wqkv), "bqkv": bqkv,
        "wo": bf(p["wo"].T), "bo": row(p["bo"]),
        "ln2_g": row(p["ln2_g"]), "ln2_b": row(p["ln2_b"]),
        "w1": bf(p["w1"].T), "b1": row(p["b1"]),
        "w2": bf(p["w2"].T), "b2": row(p["b2"]),
    }


def _row_tile(s):
    for t in (512, 256, 128):
        if s >= t and s % t == 0:
            return t
    return s


def _const_spec(a, single_buffer):
    nd = a.ndim
    idx = lambda b, i, _nd=nd: (0,) * _nd
    if single_buffer:
        # grid-invariant operand -> one VMEM buffer is enough (saves ~6 MiB)
        return pl.BlockSpec(a.shape, idx, pipeline_mode=pl.Buffered(1))
    return pl.BlockSpec(a.shape, idx)


def block_forward(x, pp, *, single_buffer_weights=True):
    B, S, D = x.shape
    assert D == D_MODEL
    cparams = pltpu.CompilerParams(
        dimension_semantics=("parallel", "parallel"),
        vmem_limit_bytes=VMEM_LIMIT,
    )

    # ---- pass 1: LayerNorm1 + fused QKV projection (once per row) ----
    TS = _row_tile(S)
    consts1 = (pp["ln1_g"], pp["ln1_b"], pp["wqkv"], pp["bqkv"])
    q, kv = pl.pallas_call(
        qkv_kernel,
        out_shape=(jax.ShapeDtypeStruct((B, S, D_MODEL), jnp.bfloat16),
                   jax.ShapeDtypeStruct((B, S, 2 * D_MODEL), jnp.bfloat16)),
        grid=(B, S // TS),
        in_specs=[pl.BlockSpec((1, TS, D_MODEL), lambda b, si: (b, si, 0))]
                 + [_const_spec(a, single_buffer_weights) for a in consts1],
        out_specs=(pl.BlockSpec((1, TS, D_MODEL), lambda b, si: (b, si, 0)),
                   pl.BlockSpec((1, TS, 2 * D_MODEL), lambda b, si: (b, si, 0))),
        compiler_params=cparams,
    )(x, *consts1)

    # ---- pass 2: attention + out-proj + residual + LN2 + MLP + residual ----
    TQ = _row_tile(S)
    consts2 = (pp["wo"], pp["bo"], pp["ln2_g"], pp["ln2_b"],
               pp["w1"], pp["b1"], pp["w2"], pp["b2"])
    in_specs2 = [
        pl.BlockSpec((1, TQ, D_MODEL), lambda b, qi: (b, qi, 0)),        # x (residual)
        pl.BlockSpec((1, TQ, D_MODEL), lambda b, qi: (b, qi, 0)),        # q tile (bf16)
        pl.BlockSpec((1, S, 2 * D_MODEL), lambda b, qi: (b, 0, 0)),      # full K|V (bf16)
    ] + [_const_spec(a, single_buffer_weights) for a in consts2]

    return pl.pallas_call(
        attn_mlp_kernel,
        out_shape=jax.ShapeDtypeStruct((B, S, D_MODEL), x.dtype),
        grid=(B, S // TQ),
        in_specs=in_specs2,
        out_specs=pl.BlockSpec((1, TQ, D_MODEL), lambda b, qi: (b, qi, 0)),
        scratch_shapes=[pltpu.VMEM((TQ, D_MODEL), jnp.bfloat16)],        # per-head ctx
        compiler_params=cparams,
    )(x, q, kv, *consts2)


# ---------------- plain-JAX reference (f32, exact GELU, for checking) ---------
def block_reference(x, p):
    def ln(v, g, b):
        mu = jnp.mean(v, -1, keepdims=True)
        var = jnp.mean(jnp.square(v - mu), -1, keepdims=True)
        return (v - mu) / jnp.sqrt(var + EPS) * g + b

    h = x
    xn = ln(x, p["ln1_g"], p["ln1_b"])
    q = xn @ p["wq"].T + p["bq"]
    k = xn @ p["wk"].T + p["bk"]
    v = xn @ p["wv"].T + p["bv"]
    B, S, _ = x.shape
    qh = q.reshape(B, S, N_HEADS, D_HEAD).transpose(0, 2, 1, 3)
    kh = k.reshape(B, S, N_HEADS, D_HEAD).transpose(0, 2, 1, 3)
    vh = v.reshape(B, S, N_HEADS, D_HEAD).transpose(0, 2, 1, 3)
    s = jnp.einsum("bhqd,bhkd->bhqk", qh, kh) / math.sqrt(D_HEAD)
    pattn = jax.nn.softmax(s, axis=-1)
    o = jnp.einsum("bhqk,bhkd->bhqd", pattn, vh).transpose(0, 2, 1, 3).reshape(B, S, D_MODEL)
    o = o @ p["wo"].T + p["bo"]
    x1 = o + h
    xn2 = ln(x1, p["ln2_g"], p["ln2_b"])
    hid = xn2 @ p["w1"].T + p["b1"]
    hid = jax.nn.gelu(hid, approximate=False)
    out = hid @ p["w2"].T + p["b2"]
    return out + x1


# -------------------------- deterministic init --------------------------------
def make_params(key):
    ks = jax.random.split(key, 12)

    def xavier(k, out_f, in_f):
        bound = math.sqrt(6.0 / (in_f + out_f))
        return jax.random.uniform(k, (out_f, in_f), jnp.float32, -bound, bound)

    return {
        "ln1_g": jnp.ones((D_MODEL,), jnp.float32),
        "ln1_b": jnp.zeros((D_MODEL,), jnp.float32),
        "ln2_g": jnp.ones((D_MODEL,), jnp.float32),
        "ln2_b": jnp.zeros((D_MODEL,), jnp.float32),
        "wq": xavier(ks[0], D_MODEL, D_MODEL), "bq": jnp.zeros((D_MODEL,), jnp.float32),
        "wk": xavier(ks[1], D_MODEL, D_MODEL), "bk": jnp.zeros((D_MODEL,), jnp.float32),
        "wv": xavier(ks[2], D_MODEL, D_MODEL), "bv": jnp.zeros((D_MODEL,), jnp.float32),
        "wo": xavier(ks[3], D_MODEL, D_MODEL), "bo": jnp.zeros((D_MODEL,), jnp.float32),
        "w1": xavier(ks[4], D_FF, D_MODEL),
        "b1": 1e-6 * jax.random.normal(ks[5], (D_FF,), jnp.float32),
        "w2": xavier(ks[6], D_MODEL, D_FF),
        "b2": 1e-6 * jax.random.normal(ks[7], (D_MODEL,), jnp.float32),
    }


if __name__ == "__main__":
    key = jax.random.PRNGKey(0)
    k_par, k_x1, k_x2 = jax.random.split(key, 3)
    params = make_params(k_par)
    packed = pack_params(params)           # one-time weight packing (off the hot path)

    def run(x):
        try:
            return block_forward(x, packed, single_buffer_weights=True)
        except Exception:
            # Fallback for JAX builds that reject pipeline_mode=pl.Buffered(1)
            # on grid-invariant operands (perf-only difference).
            return block_forward(x, packed, single_buffer_weights=False)

    # Small smoke test (required small shapes).
    x_small = jax.random.normal(k_x1, (2, 8, D_MODEL), jnp.float32)
    y_small = run(x_small)
    jax.block_until_ready(y_small)
    ref_small = block_reference(x_small, params)
    assert y_small.shape == x_small.shape
    # bf16 matmul inputs (f32 accumulation) + tanh-GELU vs exact-GELU f32 ref.
    assert jnp.allclose(y_small, ref_small, atol=6e-2, rtol=6e-2), (
        float(jnp.max(jnp.abs(y_small - ref_small))))

    # Larger sequence exercises the TQ=512 tiling branch and the
    # softmax-over-many-keys path (per review's correctness concern).
    x_big = jax.random.normal(k_x2, (1, 512, D_MODEL), jnp.float32)
    y_big = run(x_big)
    jax.block_until_ready(y_big)
    ref_big = block_reference(x_big, params)
    assert jnp.allclose(y_big, ref_big, atol=6e-2, rtol=6e-2), (
        float(jnp.max(jnp.abs(y_big - ref_big))))

    print("KERNEL_OK")
</pallas_src>

<mosaic_0001>
module attributes {stable_mosaic.version = 11 : i64} {
  func.func @qkv_kernel(%arg0: i32, %arg1: i32, %arg2: memref<1x8x512xf32, #tpu.memory_space<vmem>>, %arg3: memref<1x512xf32, #tpu.memory_space<vmem>>, %arg4: memref<1x512xf32, #tpu.memory_space<vmem>>, %arg5: memref<512x1536xbf16, #tpu.memory_space<vmem>>, %arg6: memref<1x1536xf32, #tpu.memory_space<vmem>>, %arg7: memref<1x8x512xbf16, #tpu.memory_space<vmem>>, %arg8: memref<1x8x1024xbf16, #tpu.memory_space<vmem>>) attributes {dimension_semantics = [#tpu.dimension_semantics<parallel>, #tpu.dimension_semantics<parallel>], iteration_bounds = array<i64: 2, 1>, scalar_prefetch = 0 : i64, scratch_operands = 0 : i64, tpu.core_type = #tpu.core_type<tc>, window_params = [{transform_indices = @transform_0, window_bounds = array<i64: 1, 8, 512>}, {pipeline_mode = #tpu.pipeline_mode<synchronous>, transform_indices = @transform_1, window_bounds = array<i64: 1, 512>}, {pipeline_mode = #tpu.pipeline_mode<synchronous>, transform_indices = @transform_2, window_bounds = array<i64: 1, 512>}, {pipeline_mode = #tpu.pipeline_mode<synchronous>, transform_indices = @transform_3, window_bounds = array<i64: 512, 1536>}, {pipeline_mode = #tpu.pipeline_mode<synchronous>, transform_indices = @transform_4, window_bounds = array<i64: 1, 1536>}, {transform_indices = @transform_5, window_bounds = array<i64: 1, 8, 512>}, {transform_indices = @transform_6, window_bounds = array<i64: 1, 8, 1024>}]} {
    %c0 = arith.constant 0 : index
    %c0_0 = arith.constant 0 : index
    %c0_1 = arith.constant 0 : index
    %0 = vector.load %arg2[%c0, %c0_0, %c0_1] : memref<1x8x512xf32, #tpu.memory_space<vmem>>, vector<1x8x512xf32>
    %1 = vector.shape_cast %0 : vector<1x8x512xf32> to vector<8x512xf32>
    %c0_2 = arith.constant 0 : index
    %c0_3 = arith.constant 0 : index
    %2 = vector.load %arg3[%c0_2, %c0_3] : memref<1x512xf32, #tpu.memory_space<vmem>>, vector<1x512xf32>
    %c0_4 = arith.constant 0 : index
    %c0_5 = arith.constant 0 : index
    %3 = vector.load %arg4[%c0_4, %c0_5] : memref<1x512xf32, #tpu.memory_space<vmem>>, vector<1x512xf32>
    %cst = arith.constant dense<0.000000e+00> : vector<8xf32>
    %4 = vector.multi_reduction <add>, %1, %cst [1] : vector<8x512xf32> to vector<8xf32>
    %5 = vector.shape_cast %4 : vector<8xf32> to vector<8x1xf32>
    %cst_6 = arith.constant 5.120000e+02 : f32
    %6 = vector.broadcast %cst_6 : f32 to vector<8x1xf32>
    %7 = arith.divf %5, %6 : vector<8x1xf32>
    %8 = vector.broadcast %7 : vector<8x1xf32> to vector<8x512xf32>
    %9 = arith.subf %1, %8 : vector<8x512xf32>
    %10 = arith.mulf %9, %9 : vector<8x512xf32>
    %cst_7 = arith.constant dense<0.000000e+00> : vector<8xf32>
    %11 = vector.multi_reduction <add>, %10, %cst_7 [1] : vector<8x512xf32> to vector<8xf32>
    %12 = vector.shape_cast %11 : vector<8xf32> to vector<8x1xf32>
    %cst_8 = arith.constant 5.120000e+02 : f32
    %13 = vector.broadcast %cst_8 : f32 to vector<8x1xf32>
    %14 = arith.divf %12, %13 : vector<8x1xf32>
    %15 = vector.broadcast %7 : vector<8x1xf32> to vector<8x512xf32>
    %16 = arith.subf %1, %15 : vector<8x512xf32>
    %cst_9 = arith.constant 9.99999997E-7 : f32
    %17 = vector.broadcast %cst_9 : f32 to vector<8x1xf32>
    %18 = arith.addf %14, %17 : vector<8x1xf32>
    %19 = math.rsqrt %18 : vector<8x1xf32>
    %20 = vector.broadcast %19 : vector<8x1xf32> to vector<8x512xf32>
    %21 = arith.mulf %16, %20 : vector<8x512xf32>
    %22 = vector.broadcast %2 : vector<1x512xf32> to vector<8x512xf32>
    %23 = arith.mulf %21, %22 : vector<8x512xf32>
    %24 = vector.broadcast %3 : vector<1x512xf32> to vector<8x512xf32>
    %25 = arith.addf %23, %24 : vector<8x512xf32>
    %26 = arith.truncf %25 : vector<8x512xf32> to vector<8x512xbf16>
    %c0_10 = arith.constant 0 : index
    %c0_11 = arith.constant 0 : index
    %27 = vector.load %arg5[%c0_10, %c0_11] : memref<512x1536xbf16, #tpu.memory_space<vmem>>, vector<512x1536xbf16>
    %cst_12 = arith.constant dense<0.000000e+00> : vector<8x1536xf32>
    %28 = tpu.matmul %26, %27, %cst_12 {dimension_numbers = #tpu.dot_dimension_numbers<[1], [0], [0], [1], [0, 0, 1, 1], [], []>} : vector<8x512xbf16>, vector<512x1536xbf16>, vector<8x1536xf32> -> vector<8x1536xf32>
    %c0_13 = arith.constant 0 : index
    %c0_14 = arith.constant 0 : index
    %29 = vector.load %arg6[%c0_13, %c0_14] : memref<1x1536xf32, #tpu.memory_space<vmem>>, vector<1x1536xf32>
    %30 = vector.broadcast %29 : vector<1x1536xf32> to vector<8x1536xf32>
    %31 = arith.addf %28, %30 : vector<8x1536xf32>
    %32 = vector.extract_strided_slice %31 {offsets = [0, 0], sizes = [8, 512], strides = [1, 1]} : vector<8x1536xf32> to vector<8x512xf32>
    %cst_15 = arith.constant 0.0883883461 : f32
    %33 = vector.broadcast %cst_15 : f32 to vector<8x512xf32>
    %34 = arith.mulf %32, %33 : vector<8x512xf32>
    %35 = arith.truncf %34 : vector<8x512xf32> to vector<8x512xbf16>
    %c0_16 = arith.constant 0 : index
    %c0_17 = arith.constant 0 : index
    %c0_18 = arith.constant 0 : index
    %36 = vector.load %arg7[%c0_16, %c0_17, %c0_18] : memref<1x8x512xbf16, #tpu.memory_space<vmem>>, vector<1x8x512xbf16>
    %37 = vector.shape_cast %36 : vector<1x8x512xbf16> to vector<8x512xbf16>
    %38 = vector.shape_cast %35 : vector<8x512xbf16> to vector<1x8x512xbf16>
    tpu.vector_store %arg7[%c0_16, %c0_17, %c0_18], %38 {strides = array<i32>} : memref<1x8x512xbf16, #tpu.memory_space<vmem>>, vector<1x8x512xbf16>,
    %39 = vector.extract_strided_slice %31 {offsets = [0, 512], sizes = [8, 1024], strides = [1, 1]} : vector<8x1536xf32> to vector<8x1024xf32>
    %40 = arith.truncf %39 : vector<8x1024xf32> to vector<8x1024xbf16>
    %c0_19 = arith.constant 0 : index
    %c0_20 = arith.constant 0 : index
    %c0_21 = arith.constant 0 : index
    %41 = vector.load %arg8[%c0_19, %c0_20, %c0_21] : memref<1x8x1024xbf16, #tpu.memory_space<vmem>>, vector<1x8x1024xbf16>
    %42 = vector.shape_cast %41 : vector<1x8x1024xbf16> to vector<8x1024xbf16>
    %43 = vector.shape_cast %40 : vector<8x1024xbf16> to vector<1x8x1024xbf16>
    tpu.vector_store %arg8[%c0_19, %c0_20, %c0_21], %43 {strides = array<i32>} : memref<1x8x1024xbf16, #tpu.memory_space<vmem>>, vector<1x8x1024xbf16>,
    return
  }
  func.func @transform_0(%arg0: i32, %arg1: i32) -> (i32, i32, i32) {
    %c0_i32 = arith.constant 0 : i32
    %c0_i32_0 = arith.constant 0 : i32
    return %arg0, %arg1, %c0_i32 : i32, i32, i32
  }
  func.func @transform_1(%arg0: i32, %arg1: i32) -> (i32, i32) {
    %c0_i32 = arith.constant 0 : i32
    %c0_i32_0 = arith.constant 0 : i32
    %c0_i32_1 = arith.constant 0 : i32
    return %c0_i32, %c0_i32_0 : i32, i32
  }
  func.func @transform_2(%arg0: i32, %arg1: i32) -> (i32, i32) {
    %c0_i32 = arith.constant 0 : i32
    %c0_i32_0 = arith.constant 0 : i32
    %c0_i32_1 = arith.constant 0 : i32
    return %c0_i32, %c0_i32_0 : i32, i32
  }
  func.func @transform_3(%arg0: i32, %arg1: i32) -> (i32, i32) {
    %c0_i32 = arith.constant 0 : i32
    %c0_i32_0 = arith.constant 0 : i32
    %c0_i32_1 = arith.constant 0 : i32
    return %c0_i32, %c0_i32_0 : i32, i32
  }
  func.func @transform_4(%arg0: i32, %arg1: i32) -> (i32, i32) {
    %c0_i32 = arith.constant 0 : i32
    %c0_i32_0 = arith.constant 0 : i32
    %c0_i32_1 = arith.constant 0 : i32
    return %c0_i32, %c0_i32_0 : i32, i32
  }
  func.func @transform_5(%arg0: i32, %arg1: i32) -> (i32, i32, i32) {
    %c0_i32 = arith.constant 0 : i32
    %c0_i32_0 = arith.constant 0 : i32
    return %arg0, %arg1, %c0_i32 : i32, i32, i32
  }
  func.func @transform_6(%arg0: i32, %arg1: i32) -> (i32, i32, i32) {
    %c0_i32 = arith.constant 0 : i32
    %c0_i32_0 = arith.constant 0 : i32
    return %arg0, %arg1, %c0_i32 : i32, i32, i32
  }
}

module attributes {stable_mosaic.version = 11 : i64} {
  func.func @qkv_kernel(%arg0: i32, %arg1: i32, %arg2: memref<1x8x512xf32, #tpu.memory_space<vmem>>, %arg3: memref<1x512xf32, #tpu.memory_space<vmem>>, %arg4: memref<1x512xf32, #tpu.memory_space<vmem>>, %arg5: memref<512x1536xbf16, #tpu.memory_space<vmem>>, %arg6: memref<1x1536xf32, #tpu.memory_space<vmem>>, %arg7: memref<1x8x512xbf16, #tpu.memory_space<vmem>>, %arg8: memref<1x8x1024xbf16, #tpu.memory_space<vmem>>) attributes {dimension_semantics = [#tpu.dimension_semantics<parallel>, #tpu.dimension_semantics<parallel>], iteration_bounds = array<i64: 2, 1>, scalar_prefetch = 0 : i64, scratch_operands = 0 : i64, tpu.core_type = #tpu.core_type<tc>, window_params = [{transform_indices = @transform_0, window_bounds = array<i64: 1, 8, 512>}, {pipeline_mode = #tpu.pipeline_mode<synchronous>, transform_indices = @transform_1, window_bounds = array<i64: 1, 512>}, {pipeline_mode = #tpu.pipeline_mode<synchronous>, transform_indices = @transform_2, window_bounds = array<i64: 1, 512>}, {pipeline_mode = #tpu.pipeline_mode<synchronous>, transform_indices = @transform_3, window_bounds = array<i64: 512, 1536>}, {pipeline_mode = #tpu.pipeline_mode<synchronous>, transform_indices = @transform_4, window_bounds = array<i64: 1, 1536>}, {transform_indices = @transform_5, window_bounds = array<i64: 1, 8, 512>}, {transform_indices = @transform_6, window_bounds = array<i64: 1, 8, 1024>}]} {
    %c0 = arith.constant 0 : index
    %c0_0 = arith.constant 0 : index
    %c0_1 = arith.constant 0 : index
    %0 = vector.load %arg2[%c0, %c0_0, %c0_1] : memref<1x8x512xf32, #tpu.memory_space<vmem>>, vector<1x8x512xf32>
    %1 = vector.shape_cast %0 : vector<1x8x512xf32> to vector<8x512xf32>
    %c0_2 = arith.constant 0 : index
    %c0_3 = arith.constant 0 : index
    %2 = vector.load %arg3[%c0_2, %c0_3] : memref<1x512xf32, #tpu.memory_space<vmem>>, vector<1x512xf32>
    %c0_4 = arith.constant 0 : index
    %c0_5 = arith.constant 0 : index
    %3 = vector.load %arg4[%c0_4, %c0_5] : memref<1x512xf32, #tpu.memory_space<vmem>>, vector<1x512xf32>
    %cst = arith.constant dense<0.000000e+00> : vector<8xf32>
    %4 = vector.multi_reduction <add>, %1, %cst [1] : vector<8x512xf32> to vector<8xf32>
    %5 = vector.shape_cast %4 : vector<8xf32> to vector<8x1xf32>
    %cst_6 = arith.constant 5.120000e+02 : f32
    %6 = vector.broadcast %cst_6 : f32 to vector<8x1xf32>
    %7 = arith.divf %5, %6 : vector<8x1xf32>
    %8 = vector.broadcast %7 : vector<8x1xf32> to vector<8x512xf32>
    %9 = arith.subf %1, %8 : vector<8x512xf32>
    %10 = arith.mulf %9, %9 : vector<8x512xf32>
    %cst_7 = arith.constant dense<0.000000e+00> : vector<8xf32>
    %11 = vector.multi_reduction <add>, %10, %cst_7 [1] : vector<8x512xf32> to vector<8xf32>
    %12 = vector.shape_cast %11 : vector<8xf32> to vector<8x1xf32>
    %cst_8 = arith.constant 5.120000e+02 : f32
    %13 = vector.broadcast %cst_8 : f32 to vector<8x1xf32>
    %14 = arith.divf %12, %13 : vector<8x1xf32>
    %15 = vector.broadcast %7 : vector<8x1xf32> to vector<8x512xf32>
    %16 = arith.subf %1, %15 : vector<8x512xf32>
    %cst_9 = arith.constant 9.99999997E-7 : f32
    %17 = vector.broadcast %cst_9 : f32 to vector<8x1xf32>
    %18 = arith.addf %14, %17 : vector<8x1xf32>
    %19 = math.rsqrt %18 : vector<8x1xf32>
    %20 = vector.broadcast %19 : vector<8x1xf32> to vector<8x512xf32>
    %21 = arith.mulf %16, %20 : vector<8x512xf32>
    %22 = vector.broadcast %2 : vector<1x512xf32> to vector<8x512xf32>
    %23 = arith.mulf %21, %22 : vector<8x512xf32>
    %24 = vector.broadcast %3 : vector<1x512xf32> to vector<8x512xf32>
    %25 = arith.addf %23, %24 : vector<8x512xf32>
    %26 = arith.truncf %25 : vector<8x512xf32> to vector<8x512xbf16>
    %c0_10 = arith.constant 0 : index
    %c0_11 = arith.constant 0 : index
    %27 = vector.load %arg5[%c0_10, %c0_11] : memref<512x1536xbf16, #tpu.memory_space<vmem>>, vector<512x1536xbf16>
    %cst_12 = arith.constant dense<0.000000e+00> : vector<8x1536xf32>
    %28 = tpu.matmul %26, %27, %cst_12 {dimension_numbers = #tpu.dot_dimension_numbers<[1], [0], [0], [1], [0, 0, 1, 1], [], []>} : vector<8x512xbf16>, vector<512x1536xbf16>, vector<8x1536xf32> -> vector<8x1536xf32>
    %c0_13 = arith.constant 0 : index
    %c0_14 = arith.constant 0 : index
    %29 = vector.load %arg6[%c0_13, %c0_14] : memref<1x1536xf32, #tpu.memory_space<vmem>>, vector<1x1536xf32>
    %30 = vector.broadcast %29 : vector<1x1536xf32> to vector<8x1536xf32>
    %31 = arith.addf %28, %30 : vector<8x1536xf32>
    %32 = vector.extract_strided_slice %31 {offsets = [0, 0], sizes = [8, 512], strides = [1, 1]} : vector<8x1536xf32> to vector<8x512xf32>
    %cst_15 = arith.constant 0.0883883461 : f32
    %33 = vector.broadcast %cst_15 : f32 to vector<8x512xf32>
    %34 = arith.mulf %32, %33 : vector<8x512xf32>
    %35 = arith.truncf %34 : vector<8x512xf32> to vector<8x512xbf16>
    %c0_16 = arith.constant 0 : index
    %c0_17 = arith.constant 0 : index
    %c0_18 = arith.constant 0 : index
    %36 = vector.load %arg7[%c0_16, %c0_17, %c0_18] : memref<1x8x512xbf16, #tpu.memory_space<vmem>>, vector<1x8x512xbf16>
    %37 = vector.shape_cast %36 : vector<1x8x512xbf16> to vector<8x512xbf16>
    %38 = vector.shape_cast %35 : vector<8x512xbf16> to vector<1x8x512xbf16>
    tpu.vector_store %arg7[%c0_16, %c0_17, %c0_18], %38 {strides = array<i32>} : memref<1x8x512xbf16, #tpu.memory_space<vmem>>, vector<1x8x512xbf16>,
    %39 = vector.extract_strided_slice %31 {offsets = [0, 512], sizes = [8, 1024], strides = [1, 1]} : vector<8x1536xf32> to vector<8x1024xf32>
    %40 = arith.truncf %39 : vector<8x1024xf32> to vector<8x1024xbf16>
    %c0_19 = arith.constant 0 : index
    %c0_20 = arith.constant 0 : index
    %c0_21 = arith.constant 0 : index
    %41 = vector.load %arg8[%c0_19, %c0_20, %c0_21] : memref<1x8x1024xbf16, #tpu.memory_space<vmem>>, vector<1x8x1024xbf16>
    %42 = vector.shape_cast %41 : vector<1x8x1024xbf16> to vector<8x1024xbf16>
    %43 = vector.shape_cast %40 : vector<8x1024xbf16> to vector<1x8x1024xbf16>
    tpu.vector_store %arg8[%c0_19, %c0_20, %c0_21], %43 {strides = array<i32>} : memref<1x8x1024xbf16, #tpu.memory_space<vmem>>, vector<1x8x1024xbf16>,
    return
  }
  func.func @transform_0(%arg0: i32, %arg1: i32) -> (i32, i32, i32) {
    %c0_i32 = arith.constant 0 : i32
    %c0_i32_0 = arith.constant 0 : i32
    return %arg0, %arg1, %c0_i32 : i32, i32, i32
  }
  func.func @transform_1(%arg0: i32, %arg1: i32) -> (i32, i32) {
    %c0_i32 = arith.constant 0 : i32
    %c0_i32_0 = arith.constant 0 : i32
    %c0_i32_1 = arith.constant 0 : i32
    return %c0_i32, %c0_i32_0 : i32, i32
  }
  func.func @transform_2(%arg0: i32, %arg1: i32) -> (i32, i32) {
    %c0_i32 = arith.constant 0 : i32
    %c0_i32_0 = arith.constant 0 : i32
    %c0_i32_1 = arith.constant 0 : i32
    return %c0_i32, %c0_i32_0 : i32, i32
  }
  func.func @transform_3(%arg0: i32, %arg1: i32) -> (i32, i32) {
    %c0_i32 = arith.constant 0 : i32
    %c0_i32_0 = arith.constant 0 : i32
    %c0_i32_1 = arith.constant 0 : i32
    return %c0_i32, %c0_i32_0 : i32, i32
  }
  func.func @transform_4(%arg0: i32, %arg1: i32) -> (i32, i32) {
    %c0_i32 = arith.constant 0 : i32
    %c0_i32_0 = arith.constant 0 : i32
    %c0_i32_1 = arith.constant 0 : i32
    return %c0_i32, %c0_i32_0 : i32, i32
  }
  func.func @transform_5(%arg0: i32, %arg1: i32) -> (i32, i32, i32) {
    %c0_i32 = arith.constant 0 : i32
    %c0_i32_0 = arith.constant 0 : i32
    return %arg0, %arg1, %c0_i32 : i32, i32, i32
  }
  func.func @transform_6(%arg0: i32, %arg1: i32) -> (i32, i32, i32) {
    %c0_i32 = arith.constant 0 : i32
    %c0_i32_0 = arith.constant 0 : i32
    return %arg0, %arg1, %c0_i32 : i32, i32, i32
  }
}

</mosaic_0001>

<bundles_post_ra>
// kernel: tpu_custom_call.1
= control target key start
LH: loop header
LB: loop body
LE: loop exit
PB: predicated region body
PF: predicated region fallthrough
CT: control target
= control target key end

     0   :  { %12 = vsyncpa [#allocation3], 0  ;;  %s6355_s0 = inlined_call_operand.hbm [shape: f32[2,8,512], index: 0, kind: input, shape index: {}]   ;;  %s6356_s1 = inlined_call_operand.hbm [shape: f32[1,512], index: 1, kind: input, shape index: {}]   ;;  %s6357_s2 = inlined_call_operand.hbm [shape: f32[1,512], index: 2, kind: input, shape index: {}]   ;;  %s6358_s3 = inlined_call_operand.hbm [shape: bf16[512,1536], index: 3, kind: input, shape index: {}]   ;;  %s6359_s4 = inlined_call_operand.hbm [shape: f32[1,1536], index: 4, kind: input, shape index: {}]   ;;  %s6360_s5 = inlined_call_operand.hbm [shape: bf16[2,8,512], index: 5, kind: output, shape index: {0}]   ;;  %s6361_s6 = inlined_call_operand.hbm [shape: bf16[2,8,1024], index: 6, kind: output, shape index: {1}]  }
   0x1   :  { %14 = vsyncpa [#allocation3 + $0x1], 0 }
   0x2   :  { %15 = vsyncpa [#allocation6], 0 }
   0x3   :  { %16 = vsyncpa [#allocation9], 0 }
   0x4   :  { %17 = vsyncpa [#allocation4], 0 }
   0x5   :  { %19 = vsyncpa [#allocation4 + $0x1], 0 }
   0x6   :  { %20 = vsyncpa [#allocation13], 0 }
   0x7   :  { %22 = vsyncpa [#allocation13 + $0x1], 0  ;;  %s5992_s21 = smov 0   ;;  %s5994_s22 = smov 0  }
   0x8   :  { %s5996_s23 = smov 0   ;;  %s5998_s24 = smov 0  }
   0x9   :  { %s6000_s25 = smov 0   ;;  %s6002_s26 = smov 0  }
   0xa LB: > { %s3610_s27 = sadd.s32 4294967295, %s5948_s26   ;;  %p3612_p0 = scmp.ge.s32.totalorder %s5948_s26, 1  ;;  %s5948_s26 = sphi %s6002_s26, %s28_s26   ;;  %s5944_s25 = sphi %s6000_s25, %s6372_s25   ;;  %s5940_s24 = sphi %s5998_s24, %s6371_s24   ;;  %s5936_s23 = sphi %s5996_s23, %s6370_s23   ;;  %s5932_s22 = sphi %s5994_s22, %s6369_s22   ;;  %s5928_s21 = sphi %s5992_s21, %s6368_s21  }
   0xb   : > { %p6026_p1 = scmp.eq.s32.totalorder %s3610_s27, 0  ;;  %p213_p2 = scmp.lt.s32.totalorder %s5948_s26, 3 }
   0xc   : > { %s225_s7 = sshll.u32 %s6356_s1, 4  ;;  %p3617_p4 = scmp.ge.s32.totalorder %s5948_s26, 2  ;;  %s226_s7 = int_to_ptr.hbm [resolvable:$true] %s225_s7 }
   0xd   : > { %p6034_p3 = pnand %p3612_p0, %p213_p2  ;;  %s5950_s9 = smov [#allocation5]  }
   0xe   : > { %s227_s10 = sshll.u32 %s5950_s9, 4  ;;  %s248_s13 = sshll.u32 %s6358_s3, 4  ;;  %s228_s10 = int_to_ptr.vmem [resolvable:$true] %s227_s10  ;;  %s249_s13 = int_to_ptr.hbm [resolvable:$true] %s248_s13 }
   0xf   : > { %p5582_p5 = pneg %p6034_p3  ;;  %s5951_s15 = smov [#allocation8]  }
  0x10   : > { %s250_s16 = sshll.u32 %s5951_s15, 4  ;;  %s5952_s17 = smov 768   ;;  %s251_s16 = int_to_ptr.vmem [resolvable:$true] %s250_s16 }
  0x11   : > { %p6046_p6 = pnand %p5582_p5, %p6026_p1  ;;  %s5953_s18 = smov 48  }
  0x12   : > { %s237_s29 = sshll.u32 %s6357_s2, 4  ;;  %s5954_s30 = smov [#allocation7]   ;;  %s238_s29 = int_to_ptr.hbm [resolvable:$true] %s237_s29 }
  0x13   : > { %5585 = dma.hbm_to_vmem [thread:$0]  (!%p6046_p6), %s226_s7, 64, %s228_s10, [#allocation6]  }
  0x14   : > { %5591 = dma.hbm_to_vmem [thread:$0]  (!%p6046_p6), %s249_s13, 49152, %s251_s16, [#allocation9], %s5952_s17, %s5952_s17, %s5953_s18  }
  0x15   : > { %s239_s9 = sshll.u32 %s5954_s30, 4  ;;  %s263_s11 = sshll.u32 %s6359_s4, 4  ;;  %s240_s9 = int_to_ptr.vmem [resolvable:$true] %s239_s9  ;;  %s264_s11 = int_to_ptr.hbm [resolvable:$true] %s263_s11 }
  0x16   : > { %5588 = dma.hbm_to_vmem [thread:$0]  (!%p6046_p6), %s238_s29, 64, %s240_s9, [#allocation6]  }
  0x17   : > { %s5955_s12 = smov [#allocation10]   ;;  %s40_s15 = sadd.s32 1, %s5944_s25 }
  0x18   : > { %s265_s13 = sshll.u32 %s5955_s12, 4  ;;  %s3611_s16 = sadd.s32 4294967294, %s5948_s26   ;;  %s266_s13 = int_to_ptr.vmem [resolvable:$true] %s265_s13 }
  0x19   : > { %5594 = dma.hbm_to_vmem [thread:$0]  (!%p6046_p6), %s264_s11, 192, %s266_s13, [#allocation9]  }
  0x1a   : > { %p42_p7 = scmp.ge.s32.totalorder %s40_s15, 2  ;;  %s49_s17 = sadd.s32 1, %s5936_s23 }
  0x1b   : > { %p56_p8 = scmp.ne.s32.totalorder %s5936_s23, %s5932_s22  ;;  %p57_p9 = scmp.eq.s32.totalorder %s5948_s26, 0 }
  0x1c   : > { %s6374_s15 = smov (%p42_p7, %s40_s15), 0  ;;  %p62_p10 = scmp.ne.s32.totalorder %s5932_s22, %s5928_s21 }
  0x1d   : > { %s44_s18 = ssub.s32 %s5944_s25, %s6374_s15  ;;  %p172_p11 = scmp.eq.s32.totalorder %s3610_s27, 1 }
  0x1e   : > { %p47_p12 = scmp.eq.s32.totalorder %s44_s18, 0  ;;  %p6080_p13 = por %p6026_p1, %p62_p10 }
  0x1f   : > { %p6084_p0 = por %p172_p11, %p56_p8  ;;  %p178_p2 = scmp.eq.s32.totalorder %s3611_s16, 1 }
  0x20   : > { %s6089_s20 = scalar_select %p47_p12, %s5936_s23, %s49_s17  }
  0x21   : > { %p58_p5 = por %p57_p9, %p56_p8  ;;  %p6091_p6 = por %p178_p2, %p62_p10 }
  0x22   : > { %s276_s30 = sand.u32 1, %s5936_s23   ;;  %s5173_s27 = sshll.u32 %s5944_s25, 5 }
  0x23   : > { %p5610_p7 = scmp.lt.s32.totalorder %s5948_s26, 2  ;;  %s3618_s9 = sshll.u32 %s276_s30, 5 }
  0x24   : > { %s287_s11 = scalar_lea.hbm %s6355_s0, %s5173_s27  ;;  %s280_s13 = scalar_lea.vmem [#allocation2], %s3618_s9 }
  0x25   : > { %s289_s12 = sshll.u32 %s287_s11, 4  ;;  %s291_s18 = sshll.u32 %s280_s13, 4  ;;  %s290_s12 = int_to_ptr.hbm [resolvable:$true] %s289_s12  ;;  %s292_s18 = int_to_ptr.vmem [resolvable:$true] %s291_s18 }
  0x26   : > { %p5596_p11 = pnand %p5610_p7, %p58_p5  ;;  %s277_s16 = scalar_lea.sflag [#allocation3], %s276_s30 }
  0x27   : > { %300 = sbr.rel (%p6034_p3) target bundleno = 794 (0x31a), region = 40  ;;  %s6104_s17 = sand.u32 (!%p6034_p3), 1, %s5932_s22  }
  0x28   : > { %5598 = dma.hbm_to_vmem [thread:$0]  (!%p5596_p11), %s290_s12, 512, %s292_s18, %s277_s16  }
  0x29   : > { %s3622_s7 = sshll.u32 (!%p6034_p3), %s6104_s17, 5  ;;  %s303_s27 = scalar_lea.sflag (!%p6034_p3), [#allocation3], %s6104_s17 }
  0x2a   : > { %s306_s9 = scalar_lea.vmem (!%p6034_p3), [#allocation2], %s3622_s7 }
  0x2c   : > { %5907 = dma.done.wait (%p6080_p13), %s303_s27, 512  }
  0x2d   : > { %5909 = vsyncadd (%p6080_p13), %s303_s27, 4294966784 }
  0x2e   : > { %5911 = dma.done.wait (%p6026_p1), [#allocation6], 128  }
  0x2f   : > { %5913 = vsyncadd (%p6026_p1), [#allocation6], 4294967168 }
  0x30   : > { %5915 = dma.done.wait (%p6026_p1), [#allocation9], 49344  }
  0x31   : > { %5917 = vsyncadd (%p6026_p1), [#allocation9], 4294917952  ;;  %v6122_v0 = vld [vmem:[%s306_s9] sm:$0xff]  ;;  %v6124_v1 = vld [vmem:[%s306_s9 + $0x8] sm:$0xff]  ;;  %v5956_v7 = vmov 512.0   ;;  %s3627_s28 = sshll.u32 %s6104_s17, 4 }
  0x32   : > { %v6126_v2 = vld [vmem:[%s306_s9 + $0x10] sm:$0xff]  ;;  %v367_v3 = vadd.f32 %v6124_v1, %v6122_v0  ;;  %v6130_v4 = vld [vmem:[%s306_s9 + $0x18] sm:$0xff]  ;;  %5671 = vrcp.f32 %v5956_v7  ;;  %v3967_v11 = vld [vmem:[#allocation8 + $0x2a0] sm:$0xf]  ;;  %s6224_s8 = scalar_lea.vmem [#allocation11], %s3627_s28  ;;  %s6272_s14 = scalar_lea.vmem [#allocation12], %s3622_s7 }
  0x33   : > { %v5264_v12 = vld [vmem:[#allocation8 + $0x2cc] sm:$0xf0]  ;;  %v4351_v13 = vld [vmem:[#allocation8 + $0x5a0] sm:$0xf]  ;;  %s5558_s30 = sshll.u32 %s5940_s24, 4  ;;  %s3432_s13 = sshll.u32 %s6224_s8, 4  ;;  %s3433_s13 = int_to_ptr.vmem [resolvable:$true] %s3432_s13 }
  0x34   : > { %v368_v5 = vadd.f32 %v367_v3, %v6126_v2  ;;  %v3968_v14 = vor.u32 %v5264_v12, %v3967_v11  ;;  %v5360_v15 = vld [vmem:[#allocation8 + $0x5cc] sm:$0xf0]  ;;  %v4735_v16 = vld [vmem:[#allocation8 + $0x8a0] sm:$0xf]  ;;  %s3430_s12 = scalar_lea.hbm %s6360_s5, %s5558_s30  ;;  %s3412_s16 = scalar_lea.sflag [#allocation4], %s6104_s17 }
  0x35   : > { %v5456_v17 = vld [vmem:[#allocation8 + $0x8cc] sm:$0xf0]  ;;  %v4352_v18 = vor.u32 %v5360_v15, %v4351_v13  ;;  %v5119_v20 = vld [vmem:[#allocation8 + $0xba0] sm:$0xf]  ;;  %s3434_s18 = sshll.u32 %s3430_s12, 4  ;;  %s3435_s18 = int_to_ptr.hbm [resolvable:$true] %s3434_s18 }
  0x36   : > { %v369_v6 = vadd.f32 %v368_v5, %v6130_v4  ;;  %v4736_v19 = vor.u32 %v5456_v17, %v4735_v16  ;;  %v5552_v21 = vld [vmem:[#allocation8 + $0xbcc] sm:$0xf0]  ;;  %v3919_v22 = vld [vmem:[#allocation8 + $0x240] sm:$0xf]  ;;  %2771 = vmatpush.bf16.msra.mxu0 %v3968_v14  ;;  %s5840_s7 = sshra.s32 %s3435_s18, 4  ;;  %s5841_s7 = int_to_ptr.hbm [resolvable:$true] %s5840_s7 }
  0x37   : > { %v5120_v23 = vor.u32 %v5552_v21, %v5119_v20  ;;  %v5252_v24 = vld [vmem:[#allocation8 + $0x26c] sm:$0xf0]  ;;  %v4303_v25 = vld [vmem:[#allocation8 + $0x540] sm:$0xf]  ;;  %2784 = vmatpush.bf16.msra.mxu1 %v4352_v18  ;;  %s5842_s27 = scalar_lea.hbm %s5841_s7, 16  ;;  %p5847_p9 = scmp.lt.s32.totalorder %s5841_s7, %s6360_s5 }
  0x38   : > { %370 = vadd.xlane.f32.xlu0 %v369_v6  ;;  %v6134_v8 = vpop.eup %5671  ;;  %v5348_v26 = vld [vmem:[#allocation8 + $0x56c] sm:$0xf0]  ;;  %2797 = vmatpush.bf16.msra.mxu2 %v4736_v19  ;;  %v3920_v27 = vor.u32 %v5252_v24, %v3919_v22  ;;  %v4687_v29 = vld [vmem:[#allocation8 + $0x840] sm:$0xf]  ;;  %p5843_p1 = scmp.ne.s32.totalorder %s5841_s7, %s5842_s27 }
  0x39   : > { %v373_v9 = vmul.f32 512.0, %v6134_v8  ;;  %v4304_v28 = vor.u32 %v5348_v26, %v4303_v25  ;;  %v5444_v30 = vld [vmem:[#allocation8 + $0x86c] sm:$0xf0]  ;;  %v5071_v31 = vld [vmem:[#allocation8 + $0xb40] sm:$0xf]  ;;  %2810 = vmatpush.bf16.msra.mxu3 %v5120_v23  ;;  %vm377_vm0 = vweird.f32 %v6134_v8 }
  0x3a   : > { %v4688_v32 = vor.u32 %v5444_v30, %v4687_v29  ;;  %v5540_v33 = vld [vmem:[#allocation8 + $0xb6c] sm:$0xf0]  ;;  %v3871_v34 = vld [vmem:[#allocation8 + $0x1e0] sm:$0xf]  ;;  %2772 = vmatpush.bf16.msra.mxu0 %v3920_v27  ;;  %p5844_p3 = pnand %p5843_p1, %p6084_p0 }
  0x3b   : > { %v374_v10 = vsub.f32 1.0, %v373_v9  ;;  %v5240_v35 = vld [vmem:[#allocation8 + $0x20c] sm:$0xf0]  ;;  %v5072_v36 = vor.u32 %v5540_v33, %v5071_v31  ;;  %v4255_v37 = vld [vmem:[#allocation8 + $0x4e0] sm:$0xf]  ;;  %2785 = vmatpush.bf16.msra.mxu1 %v4304_v28 }
  0x3c   : > { %v5336_v38 = vld [vmem:[#allocation8 + $0x50c] sm:$0xf0]  ;;  %v4639_v39 = vld [vmem:[#allocation8 + $0x7e0] sm:$0xf]  ;;  %v3872_v40 = vor.u32 %v5240_v35, %v3871_v34  ;;  %2798 = vmatpush.bf16.msra.mxu2 %v4688_v32  ;;  %p5845_p8 = pneg %p5844_p3 }
  0x3d   : > { %v5432_v41 = vld [vmem:[#allocation8 + $0x80c] sm:$0xf0]  ;;  %v5023_v42 = vld [vmem:[#allocation8 + $0xae0] sm:$0xf]  ;;  %v4256_v44 = vor.u32 %v5336_v38, %v4255_v37  ;;  %v375_v49 = vmul.f32 %v6134_v8, %v374_v10  ;;  %2811 = vmatpush.bf16.msra.mxu3 %v5072_v36 }
  0x3e   : > { %v5528_v43 = vld [vmem:[#allocation8 + $0xb0c] sm:$0xf0]  ;;  %v4640_v45 = vor.u32 %v5432_v41, %v4639_v39  ;;  %v3823_v46 = vld [vmem:[#allocation8 + $0x180] sm:$0xf]  ;;  %2773 = vmatpush.bf16.msra.mxu0 %v3872_v40 }
  0x3f   : > { %v5228_v47 = vld [vmem:[#allocation8 + $0x1ac] sm:$0xf0]  ;;  %v4207_v48 = vld [vmem:[#allocation8 + $0x480] sm:$0xf]  ;;  %v5024_v50 = vor.u32 %v5528_v43, %v5023_v42  ;;  %2786 = vmatpush.bf16.msra.mxu1 %v4256_v44  ;;  %v376_v62 = vadd.f32 %v6134_v8, %v375_v49 }
  0x40   : > { %v5324_v51 = vld [vmem:[#allocation8 + $0x4ac] sm:$0xf0]  ;;  %v4591_v52 = vld [vmem:[#allocation8 + $0x780] sm:$0xf]  ;;  %v3824_v56 = vor.u32 %v5228_v47, %v3823_v46  ;;  %2799 = vmatpush.bf16.msra.mxu2 %v4640_v45 }
  0x41   : > { %v5420_v53 = vld [vmem:[#allocation8 + $0x7ac] sm:$0xf0]  ;;  %v4975_v54 = vld [vmem:[#allocation8 + $0xa80] sm:$0xf]  ;;  %v4208_v57 = vor.u32 %v5324_v51, %v4207_v48  ;;  %2812 = vmatpush.bf16.msra.mxu3 %v5024_v50  ;;  %v6141_v15 = vsel %vm377_vm0, %v6134_v8, %v376_v62  ;;  %v4353_v62 = vld [vmem:[#allocation8 + $0x5d0] sm:$0xf0] }
  0x42   : > { %v5516_v55 = vld [vmem:[#allocation8 + $0xaac] sm:$0xf0]  ;;  %v4592_v58 = vor.u32 %v5420_v53, %v4591_v52  ;;  %v3775_v59 = vld [vmem:[#allocation8 + $0x120] sm:$0xf]  ;;  %2774 = vmatpush.bf16.msra.mxu0 %v3824_v56 }
  0x43   : > { %v5216_v60 = vld [vmem:[#allocation8 + $0x14c] sm:$0xf0]  ;;  %v4159_v61 = vld [vmem:[#allocation8 + $0x420] sm:$0xf]  ;;  %v4976_v63 = vor.u32 %v5516_v55, %v4975_v54  ;;  %2787 = vmatpush.bf16.msra.mxu1 %v4208_v57 }
  0x44   : > { %v5312_v3 = vld [vmem:[#allocation8 + $0x44c] sm:$0xf0]  ;;  %v4543_v5 = vld [vmem:[#allocation8 + $0x720] sm:$0xf]  ;;  %v3776_v10 = vor.u32 %v5216_v60, %v3775_v59  ;;  %2800 = vmatpush.bf16.msra.mxu2 %v4592_v58  ;;  %v5258_v58 = vld [vmem:[#allocation8 + $0x2a4] sm:$0xf] }
  0x45   : > { %v5408_v6 = vld [vmem:[#allocation8 + $0x74c] sm:$0xf0]  ;;  %v4927_v7 = vld [vmem:[#allocation8 + $0xa20] sm:$0xf]  ;;  %v4160_v11 = vor.u32 %v5312_v3, %v4159_v61  ;;  %2813 = vmatpush.bf16.msra.mxu3 %v4976_v63  ;;  %v3969_v60 = vld [vmem:[#allocation8 + $0x2d0] sm:$0xf0] }
  0x46   : > { %v5504_v9 = vld [vmem:[#allocation8 + $0xa4c] sm:$0xf0]  ;;  %v4544_v12 = vor.u32 %v5408_v6, %v4543_v5  ;;  %v3727_v13 = vld [vmem:[#allocation8 + $0xc0] sm:$0xf]  ;;  %2775 = vmatpush.bf16.msra.mxu0 %v3776_v10  ;;  %v5354_v61 = vld [vmem:[#allocation8 + $0x5a4] sm:$0xf]  ;;  %v3972_v63 = vor.u32 %v5258_v58, %v3969_v60 }
  0x47   : > { %v5204_v14 = vld [vmem:[#allocation8 + $0xec] sm:$0xf0]  ;;  %v4928_v16 = vor.u32 %v5504_v9, %v4927_v7  ;;  %v4111_v17 = vld [vmem:[#allocation8 + $0x3c0] sm:$0xf]  ;;  %2788 = vmatpush.bf16.msra.mxu1 %v4160_v11  ;;  %v4356_v3 = vor.u32 %v5354_v61, %v4353_v62  ;;  %v5450_v5 = vld [vmem:[#allocation8 + $0x8a4] sm:$0xf] }
  0x48   : > { %v5300_v18 = vld [vmem:[#allocation8 + $0x3ec] sm:$0xf0]  ;;  %v4495_v19 = vld [vmem:[#allocation8 + $0x6c0] sm:$0xf]  ;;  %v3728_v24 = vor.u32 %v5204_v14, %v3727_v13  ;;  %2801 = vmatpush.bf16.msra.mxu2 %v4544_v12  ;;  %v4737_v6 = vld [vmem:[#allocation8 + $0x8d0] sm:$0xf0] }
  0x49   : > { %v5396_v20 = vld [vmem:[#allocation8 + $0x6ec] sm:$0xf0]  ;;  %v4879_v21 = vld [vmem:[#allocation8 + $0x9c0] sm:$0xf]  ;;  %v4112_v26 = vor.u32 %v5300_v18, %v4111_v17  ;;  %2814 = vmatpush.bf16.msra.mxu3 %v4928_v16  ;;  %v5546_v7 = vld [vmem:[#allocation8 + $0xba4] sm:$0xf]  ;;  %v4740_v9 = vor.u32 %v5450_v5, %v4737_v6 }
  0x4a   : > { %v5492_v22 = vld [vmem:[#allocation8 + $0x9ec] sm:$0xf0]  ;;  %v3679_v27 = vld [vmem:[#allocation8 + $0x60] sm:$0xf]  ;;  %v4496_v8 = vor.u32 %v5396_v20, %v4495_v19  ;;  %2776 = vmatpush.bf16.msra.mxu0 %v3728_v24  ;;  %v5121_v10 = vld [vmem:[#allocation8 + $0xbd0] sm:$0xf0] }
  0x4b   : > { %v5192_v28 = vld [vmem:[#allocation8 + $0x8c] sm:$0xf0]  ;;  %v4880_v29 = vor.u32 %v5492_v22, %v4879_v21  ;;  %v4063_v30 = vld [vmem:[#allocation8 + $0x360] sm:$0xf]  ;;  %2789 = vmatpush.bf16.msra.mxu1 %v4112_v26  ;;  %v5246_v11 = vld [vmem:[#allocation8 + $0x244] sm:$0xf]  ;;  %v5124_v13 = vor.u32 %v5546_v7, %v5121_v10 }
  0x4c   : > { %v5288_v31 = vld [vmem:[#allocation8 + $0x38c] sm:$0xf0]  ;;  %v4447_v32 = vld [vmem:[#allocation8 + $0x660] sm:$0xf]  ;;  %v3680_v39 = vor.u32 %v5192_v28, %v3679_v27  ;;  %2802 = vmatpush.bf16.msra.mxu2 %v4496_v8  ;;  %v3921_v12 = vld [vmem:[#allocation8 + $0x270] sm:$0xf0] }
  0x4d   : > { %v5384_v36 = vld [vmem:[#allocation8 + $0x68c] sm:$0xf0]  ;;  %v4831_v37 = vld [vmem:[#allocation8 + $0x960] sm:$0xf]  ;;  %2815 = vmatpush.bf16.msra.mxu3 %v4880_v29  ;;  %v3924_v14 = vor.u32 %v5246_v11, %v3921_v12  ;;  %v5342_v16 = vld [vmem:[#allocation8 + $0x544] sm:$0xf] }
  0x4e   : > { %v5480_v38 = vld [vmem:[#allocation8 + $0x98c] sm:$0xf0]  ;;  %2777 = vmatpush.bf16.msra.mxu0 %v3680_v39  ;;  %v3631_v47 = vld [vmem:[#allocation8] sm:$0xf]  ;;  %v4305_v17 = vld [vmem:[#allocation8 + $0x570] sm:$0xf0] }
  0x4f   : > { %v4832_v42 = vor.u32 %v5480_v38, %v4831_v37  ;;  %v5180_v48 = vld [vmem:[#allocation8 + $0x2c] sm:$0xf0]  ;;  %v4015_v49 = vld [vmem:[#allocation8 + $0x300] sm:$0xf]  ;;  %v5438_v18 = vld [vmem:[#allocation8 + $0x844] sm:$0xf]  ;;  %v4308_v19 = vor.u32 %v5342_v16, %v4305_v17 }
  0x50   : > { %v3632_v50 = vor.u32 %v5180_v48, %v3631_v47  ;;  %v5276_v51 = vld [vmem:[#allocation8 + $0x32c] sm:$0xf0]  ;;  %v4399_v52 = vld [vmem:[#allocation8 + $0x600] sm:$0xf]  ;;  %v4689_v20 = vld [vmem:[#allocation8 + $0x870] sm:$0xf0] }
  0x51   : > { %2816 = vmatpush.bf16.msra.mxu3 %v4832_v42  ;;  %v5372_v53 = vld [vmem:[#allocation8 + $0x62c] sm:$0xf0]  ;;  %v4016_v54 = vor.u32 %v5276_v51, %v4015_v49  ;;  %v4783_v56 = vld [vmem:[#allocation8 + $0x900] sm:$0xf]  ;;  %v5534_v21 = vld [vmem:[#allocation8 + $0xb44] sm:$0xf] }
  0x52   : > { %v4400_v55 = vor.u32 %v5372_v53, %v4399_v52  ;;  %v5468_v57 = vld [vmem:[#allocation8 + $0x92c] sm:$0xf0]  ;;  %2778 = vmatpush.bf16.msra.mxu0 %v3632_v50  ;;  %v5073_v22 = vld [vmem:[#allocation8 + $0xb70] sm:$0xf0]  ;;  %v5330_v27 = vld [vmem:[#allocation8 + $0x4e4] sm:$0xf] }
  0x53   : > { %v4784_v59 = vor.u32 %v5468_v57, %v4783_v56  ;;  %v5076_v24 = vor.u32 %v5534_v21, %v5073_v22  ;;  %v3873_v26 = vld [vmem:[#allocation8 + $0x210] sm:$0xf0]  ;;  %v5426_v29 = vld [vmem:[#allocation8 + $0x7e4] sm:$0xf] }
  0x54   : > { %v4257_v8 = vld [vmem:[#allocation8 + $0x510] sm:$0xf0]  ;;  %v5222_v39 = vld [vmem:[#allocation8 + $0x184] sm:$0xf] }
  0x55   : > { %2817 = vmatpush.bf16.msra.mxu3 %v4784_v59  ;;  %v5025_v37 = vld [vmem:[#allocation8 + $0xb10] sm:$0xf0]  ;;  %v5414_v42 = vld [vmem:[#allocation8 + $0x784] sm:$0xf] }
  0x56   : > { %2823 = vmatpush.bf16.msrb.mxu0 %v3972_v63  ;;  %v5210_v48 = vld [vmem:[#allocation8 + $0x124] sm:$0xf]  ;;  %v3777_v49 = vld [vmem:[#allocation8 + $0x150] sm:$0xf0] }
  0x57   : > { %v5306_v50 = vld [vmem:[#allocation8 + $0x424] sm:$0xf]  ;;  %v3780_v51 = vor.u32 %v5210_v48, %v3777_v49  ;;  %v4161_v52 = vld [vmem:[#allocation8 + $0x450] sm:$0xf0] }
  0x58   : > { %v5402_v53 = vld [vmem:[#allocation8 + $0x724] sm:$0xf]  ;;  %v4929_v58 = vld [vmem:[#allocation8 + $0xa50] sm:$0xf0] }
  0x59   : > { %2862 = vmatpush.bf16.msrb.mxu3 %v5124_v13  ;;  %v5498_v57 = vld [vmem:[#allocation8 + $0xa24] sm:$0xf]  ;;  %v3729_v61 = vld [vmem:[#allocation8 + $0xf0] sm:$0xf0] }
  0x5a   : > { %2824 = vmatpush.bf16.msrb.mxu0 %v3924_v14  ;;  %v4932_v59 = vor.u32 %v5498_v57, %v4929_v58  ;;  %v5198_v60 = vld [vmem:[#allocation8 + $0xc4] sm:$0xf]  ;;  %v4497_v6 = vld [vmem:[#allocation8 + $0x6f0] sm:$0xf0] }
  0x5b   : > { %v5294_v62 = vld [vmem:[#allocation8 + $0x3c4] sm:$0xf]  ;;  %v3732_v63 = vor.u32 %v5198_v60, %v3729_v61  ;;  %v4881_v11 = vld [vmem:[#allocation8 + $0x9f0] sm:$0xf0]  ;;  %v3975_v60 = vld [vmem:[#allocation8 + $0x2a8] sm:$0xf] }
  0x5c   : > { %v5390_v5 = vld [vmem:[#allocation8 + $0x6c4] sm:$0xf]  ;;  %v3681_v14 = vld [vmem:[#allocation8 + $0x90] sm:$0xf0] }
  0x5d   : > { %2863 = vmatpush.bf16.msrb.mxu3 %v5076_v24  ;;  %v5486_v10 = vld [vmem:[#allocation8 + $0x9c4] sm:$0xf]  ;;  %v4833_v24 = vld [vmem:[#allocation8 + $0x990] sm:$0xf0] }
  0x5e   : > { %v4884_v12 = vor.u32 %v5486_v10, %v4881_v11  ;;  %v5186_v13 = vld [vmem:[#allocation8 + $0x64] sm:$0xf] }
  0x5f   : > { %v5282_v16 = vld [vmem:[#allocation8 + $0x364] sm:$0xf]  ;;  %v3684_v17 = vor.u32 %v5186_v13, %v3681_v14  ;;  %v5127_v14 = vld [vmem:[#allocation8 + $0xba8] sm:$0xf] }
  0xab   : > { %v371_v23 = vpop.xlane.xlu0 %370 }
  0xac   : > { %v379_v25 = vmul.f32 %v6141_v15, %v371_v23  ;;  %v4692_v23 = vor.u32 %v5438_v18, %v4689_v20  ;;  %v4065_v18 = vld [vmem:[#allocation8 + $0x390] sm:$0xf0] }
  0xad   : > { %v4449_v20 = vld [vmem:[#allocation8 + $0x690] sm:$0xf0]  ;;  %v4068_v21 = vor.u32 %v5282_v16, %v4065_v18 }
  0xae   : > { %v6145_v33 = vsub.f32 %v6122_v0, %v379_v25  ;;  %v6148_v34 = vsub.f32 %v6124_v1, %v379_v25  ;;  %v6151_v35 = vsub.f32 %v6126_v2, %v379_v25  ;;  %v6154_v40 = vsub.f32 %v6130_v4, %v379_v25  ;;  %v5234_v25 = vld [vmem:[#allocation8 + $0x1e4] sm:$0xf] }
  0xaf   : > { %v4064_v1 = vor.u32 %v5288_v31, %v4063_v30  ;;  %v4448_v2 = vor.u32 %v5384_v36, %v4447_v32  ;;  %v3876_v28 = vor.u32 %v5234_v25, %v3873_v26  ;;  %v4641_v30 = vld [vmem:[#allocation8 + $0x810] sm:$0xf0]  ;;  %v4260_v31 = vor.u32 %v5330_v27, %v4257_v8  ;;  %v5522_v36 = vld [vmem:[#allocation8 + $0xae4] sm:$0xf] }
  0xb0   : > { %v384_v41 = vmul.f32 %v6145_v33, %v6145_v33  ;;  %v385_v0 = vmul.f32 %v6148_v34, %v6148_v34  ;;  %v386_v43 = vmul.f32 %v6151_v35, %v6151_v35  ;;  %v387_v4 = vmul.f32 %v6154_v40, %v6154_v40  ;;  %v5174_v26 = vld [vmem:[#allocation8 + $0x4] sm:$0xf]  ;;  %v3633_v27 = vld [vmem:[#allocation8 + $0x30] sm:$0xf0] }
  0xb1   : > { %2790 = vmatpush.bf16.msra.mxu1 %v4064_v1  ;;  %2803 = vmatpush.bf16.msra.mxu2 %v4448_v2  ;;  %v4644_v32 = vor.u32 %v5426_v29, %v4641_v30  ;;  %v5028_v38 = vor.u32 %v5522_v36, %v5025_v37  ;;  %v4209_v2 = vld [vmem:[#allocation8 + $0x4b0] sm:$0xf0]  ;;  %v3636_v8 = vor.u32 %v5174_v26, %v3633_v27  ;;  %v5366_v30 = vld [vmem:[#allocation8 + $0x604] sm:$0xf]  ;;  %v4695_v26 = vld [vmem:[#allocation8 + $0x848] sm:$0xf] }
  0xb2   : > { %v388_v44 = vadd.f32 %v385_v0, %v384_v41  ;;  %v3825_v41 = vld [vmem:[#allocation8 + $0x1b0] sm:$0xf0]  ;;  %v5318_v0 = vld [vmem:[#allocation8 + $0x484] sm:$0xf]  ;;  %2825 = vmatpush.bf16.msrb.mxu0 %v3876_v28  ;;  %v5445_v27 = vld [vmem:[#allocation8 + $0x874] sm:$0xf0] }
  0xb3   : > { %v3828_v1 = vor.u32 %v5222_v39, %v3825_v41  ;;  %2864 = vmatpush.bf16.msrb.mxu3 %v5028_v38  ;;  %v5270_v28 = vld [vmem:[#allocation8 + $0x304] sm:$0xf]  ;;  %v4017_v29 = vld [vmem:[#allocation8 + $0x330] sm:$0xf0] }
  0xb4   : > { %v389_v45 = vadd.f32 %v388_v44, %v386_v43  ;;  %v4593_v43 = vld [vmem:[#allocation8 + $0x7b0] sm:$0xf0]  ;;  %v4212_v44 = vor.u32 %v5318_v0, %v4209_v2  ;;  %v5462_v37 = vld [vmem:[#allocation8 + $0x904] sm:$0xf] }
  0xb5   : > { %2791 = vmatpush.bf16.msra.mxu1 %v4016_v54  ;;  %2804 = vmatpush.bf16.msra.mxu2 %v4400_v55  ;;  %v4545_v54 = vld [vmem:[#allocation8 + $0x750] sm:$0xf0]  ;;  %v4164_v55 = vor.u32 %v5306_v50, %v4161_v52 }
  0xb6   : > { %v390_v46 = vadd.f32 %v389_v45, %v387_v4  ;;  %v4596_v4 = vor.u32 %v5414_v42, %v4593_v43  ;;  %v5510_v45 = vld [vmem:[#allocation8 + $0xa84] sm:$0xf]  ;;  %2826 = vmatpush.bf16.msrb.mxu0 %v3828_v1  ;;  %v4548_v56 = vor.u32 %v5402_v53, %v4545_v54  ;;  %v4785_v38 = vld [vmem:[#allocation8 + $0x930] sm:$0xf0] }
  0xb7   : > { %v4788_v39 = vor.u32 %v5462_v37, %v4785_v38  ;;  %v4263_v38 = vld [vmem:[#allocation8 + $0x4e8] sm:$0xf] }
  0xb8   : > { %391 = vadd.xlane.f32.xlu0 %v390_v46  ;;  %v4977_v46 = vld [vmem:[#allocation8 + $0xab0] sm:$0xf0] }
  0xb9   : > { %2836 = vmatpush.bf16.msrb.mxu1 %v4356_v3  ;;  %2849 = vmatpush.bf16.msrb.mxu2 %v4740_v9  ;;  %v4980_v47 = vor.u32 %v5510_v45, %v4977_v46  ;;  %v4113_v3 = vld [vmem:[#allocation8 + $0x3f0] sm:$0xf0]  ;;  %v4500_v9 = vor.u32 %v5390_v5, %v4497_v6  ;;  %v366_v45 = vld [vmem:[#allocation7] sm:$0xf]  ;;  %v5265_v5 = vld [vmem:[#allocation8 + $0x2d4] sm:$0xf0] }
  0xba   : > { %2827 = vmatpush.bf16.msrb.mxu0 %v3780_v51  ;;  %v4116_v7 = vor.u32 %v5294_v62, %v4113_v3  ;;  %v423_v52 = vperm.slane %v366_v45, 0  ;;  %v425_v53 = vperm.slane %v366_v45, 2  ;;  %v426_v54 = vperm.slane %v366_v45, 3  ;;  %v4359_v6 = vld [vmem:[#allocation8 + $0x5a8] sm:$0xf] }
  0xbb   : > { %2865 = vmatpush.bf16.msrb.mxu3 %v4980_v47  ;;  %v3976_v16 = vor.u32 %v5265_v5, %v3975_v60  ;;  %v4551_v60 = vld [vmem:[#allocation8 + $0x728] sm:$0xf] }
  0xbd   : > { %2837 = vmatpush.bf16.msrb.mxu1 %v4308_v19  ;;  %2850 = vmatpush.bf16.msrb.mxu2 %v4692_v23  ;;  %v5378_v19 = vld [vmem:[#allocation8 + $0x664] sm:$0xf] }
  0xbe   : > { %2828 = vmatpush.bf16.msrb.mxu0 %v3732_v63  ;;  %v4452_v22 = vor.u32 %v5378_v19, %v4449_v20  ;;  %v5474_v23 = vld [vmem:[#allocation8 + $0x964] sm:$0xf]  ;;  %v3927_v20 = vld [vmem:[#allocation8 + $0x248] sm:$0xf] }
  0xbf   : > { %2866 = vmatpush.bf16.msrb.mxu3 %v4932_v59  ;;  %v4836_v25 = vor.u32 %v5474_v23, %v4833_v24  ;;  %v4311_v24 = vld [vmem:[#allocation8 + $0x548] sm:$0xf] }
  0xc1   : > { %2838 = vmatpush.bf16.msrb.mxu1 %v4260_v31  ;;  %2851 = vmatpush.bf16.msrb.mxu2 %v4644_v32  ;;  %v4401_v31 = vld [vmem:[#allocation8 + $0x630] sm:$0xf0]  ;;  %v4020_v32 = vor.u32 %v5270_v28, %v4017_v29  ;;  %v5079_v28 = vld [vmem:[#allocation8 + $0xb48] sm:$0xf] }
  0xc2   : > { %2829 = vmatpush.bf16.msrb.mxu0 %v3684_v17  ;;  %v4404_v36 = vor.u32 %v5366_v30, %v4401_v31  ;;  %v3879_v31 = vld [vmem:[#allocation8 + $0x1e8] sm:$0xf] }
  0xc3   : > { %2867 = vmatpush.bf16.msrb.mxu3 %v4884_v12 }
  0xc5   : > { %2839 = vmatpush.bf16.msrb.mxu1 %v4212_v44  ;;  %2852 = vmatpush.bf16.msrb.mxu2 %v4596_v4  ;;  %v365_v4 = vld [vmem:[#allocation5] sm:$0xf] }
  0xc6   : > { %2830 = vmatpush.bf16.msrb.mxu0 %v3636_v8  ;;  %v410_v47 = vperm.slane %v365_v4, 0  ;;  %v411_v49 = vperm.slane %v365_v4, 1  ;;  %v412_v50 = vperm.slane %v365_v4, 2  ;;  %v413_v51 = vperm.slane %v365_v4, 3  ;;  %v5541_v8 = vld [vmem:[#allocation8 + $0xb74] sm:$0xf0] }
  0xc7   : > { %2868 = vmatpush.bf16.msrb.mxu3 %v4836_v25  ;;  %v5349_v25 = vld [vmem:[#allocation8 + $0x574] sm:$0xf0]  ;;  %v5080_v37 = vor.u32 %v5541_v8, %v5079_v28  ;;  %v4839_v28 = vld [vmem:[#allocation8 + $0x968] sm:$0xf] }
  0xc8   : > { %v4312_v30 = vor.u32 %v5349_v25, %v4311_v24  ;;  %v5229_v4 = vld [vmem:[#allocation8 + $0x1b4] sm:$0xf0]  ;;  %v4071_v24 = vld [vmem:[#allocation8 + $0x368] sm:$0xf] }
  0xc9   : > { %2840 = vmatpush.bf16.msrb.mxu1 %v4164_v55  ;;  %2853 = vmatpush.bf16.msrb.mxu2 %v4548_v56  ;;  %v5289_v25 = vld [vmem:[#allocation8 + $0x394] sm:$0xf0] }
  0xca   : > { %v5481_v8 = vld [vmem:[#allocation8 + $0x994] sm:$0xf0] }
  0xcb   : > { %2869 = vmatpush.bf16.msrb.mxu3 %v4788_v39  ;;  %v5337_v39 = vld [vmem:[#allocation8 + $0x514] sm:$0xf0] }
  0xcd   : > { %2841 = vmatpush.bf16.msrb.mxu1 %v4116_v7  ;;  %2854 = vmatpush.bf16.msrb.mxu2 %v4500_v9  ;;  %v5361_v7 = vld [vmem:[#allocation8 + $0x5d4] sm:$0xf0]  ;;  %v4743_v9 = vld [vmem:[#allocation8 + $0x8a8] sm:$0xf] }
  0xd1   : > { %2842 = vmatpush.bf16.msrb.mxu1 %v4068_v21  ;;  %2855 = vmatpush.bf16.msrb.mxu2 %v4452_v22  ;;  %v5253_v21 = vld [vmem:[#allocation8 + $0x274] sm:$0xf0] }
  0xd2   : > { %v3928_v29 = vor.u32 %v5253_v21, %v3927_v20  ;;  %v3687_v20 = vld [vmem:[#allocation8 + $0x68] sm:$0xf]  ;;  %v5193_v21 = vld [vmem:[#allocation8 + $0x94] sm:$0xf0] }
  0xd5   : > { %2843 = vmatpush.bf16.msrb.mxu1 %v4020_v32  ;;  %2856 = vmatpush.bf16.msrb.mxu2 %v4404_v36  ;;  %v5241_v32 = vld [vmem:[#allocation8 + $0x214] sm:$0xf0]  ;;  %v4696_v36 = vor.u32 %v5445_v27, %v4695_v26  ;;  %v4455_v26 = vld [vmem:[#allocation8 + $0x668] sm:$0xf] }
  0xd6   : > { %v5385_v27 = vld [vmem:[#allocation8 + $0x694] sm:$0xf0] }
 0x12b   : > { %v392_v41 = vpop.xlane.xlu0 %391 }
 0x12c   : > { %v393_v0 = vmul.f32 %v392_v41, %v6141_v15  ;;  %v424_v15 = vperm.slane %v366_v45, 1  ;;  %v4647_v41 = vld [vmem:[#allocation8 + $0x7e8] sm:$0xf] }
 0x12e   : > { %v394_v1 = vadd.f32 1e-06, %v393_v0  ;;  %v5433_v0 = vld [vmem:[#allocation8 + $0x814] sm:$0xf0] }
 0x12f   : > { %v4648_v45 = vor.u32 %v5433_v0, %v4647_v41  ;;  %v4407_v41 = vld [vmem:[#allocation8 + $0x608] sm:$0xf]  ;;  %v5373_v0 = vld [vmem:[#allocation8 + $0x634] sm:$0xf0] }
 0x130   : > { %5673 = vrsqrt.f32 %v394_v1  ;;  %vm401_vm2 = vweird.f32 %v394_v1 }
 0x136   : > { %v5674_v2 = vpop.eup %5673 }
 0x137   : > { %v396_v42 = vmul.f32 %v5674_v2, %v394_v1  ;;  %vm402_vm1 = vweird.f32 %v5674_v2  ;;  %v5031_v1 = vld [vmem:[#allocation8 + $0xae8] sm:$0xf] }
 0x138   : > { %vm403_vm3 = vmor %vm401_vm2, %vm402_vm1 }
 0x139   : > { %v397_v43 = vmul.f32 %v5674_v2, %v396_v42  ;;  %v3880_v42 = vor.u32 %v5241_v32, %v3879_v31  ;;  %v4072_v31 = vor.u32 %v5289_v25, %v4071_v24  ;;  %v5181_v32 = vld [vmem:[#allocation8 + $0x34] sm:$0xf0]  ;;  %v5319_v24 = vld [vmem:[#allocation8 + $0x48c] sm:$0xf]  ;;  %v4217_v25 = vld [vmem:[#allocation8 + $0x4b8] sm:$0xf0] }
 0x13b   : > { %v398_v44 = vmul.f32 0.5, %v397_v43  ;;  %v4264_v43 = vor.u32 %v5337_v39, %v4263_v38  ;;  %v4456_v38 = vor.u32 %v5385_v27, %v4455_v26  ;;  %v4840_v39 = vor.u32 %v5481_v8, %v4839_v28  ;;  %v5415_v26 = vld [vmem:[#allocation8 + $0x78c] sm:$0xf]  ;;  %v4601_v27 = vld [vmem:[#allocation8 + $0x7b8] sm:$0xf0] }
 0x13c   : > { %v5511_v28 = vld [vmem:[#allocation8 + $0xa8c] sm:$0xf]  ;;  %v4985_v8 = vld [vmem:[#allocation8 + $0xab8] sm:$0xf0] }
 0x13d   : > { %v399_v46 = vsub.f32 1.5, %v398_v44  ;;  %v3831_v44 = vld [vmem:[#allocation8 + $0x188] sm:$0xf] }
 0x13f   : > { %v400_v48 = vmul.f32 %v5674_v2, %v399_v46 }
 0x141   : > { %v404_v55 = vsel %vm403_vm3, %v5674_v2, %v400_v48  ;;  %v5529_v2 = vld [vmem:[#allocation8 + $0xb14] sm:$0xf0] }
 0x142   : > { %v405_v56 = vmul.f32 %v404_v55, %v6145_v33  ;;  %v406_v57 = vmul.f32 %v404_v55, %v6148_v34  ;;  %v407_v58 = vmul.f32 %v404_v55, %v6151_v35  ;;  %v408_v59 = vmul.f32 %v404_v55, %v6154_v40  ;;  %v5457_v33 = vld [vmem:[#allocation8 + $0x8d4] sm:$0xf0] }
 0x143   : > { %v5553_v34 = vld [vmem:[#allocation8 + $0xbd4] sm:$0xf0]  ;;  %v4360_v35 = vor.u32 %v5361_v7, %v4359_v6  ;;  %v4744_v22 = vor.u32 %v5457_v33, %v4743_v9  ;;  %v5032_v46 = vor.u32 %v5529_v2, %v5031_v1  ;;  %v3735_v6 = vld [vmem:[#allocation8 + $0xc8] sm:$0xf] }
 0x144   : > { %v418_v61 = vmul.f32 %v410_v47, %v405_v56  ;;  %v419_v62 = vmul.f32 %v411_v49, %v406_v57  ;;  %v420_v63 = vmul.f32 %v412_v50, %v407_v58  ;;  %v421_v3 = vmul.f32 %v413_v51, %v408_v59  ;;  %v4215_v47 = vld [vmem:[#allocation8 + $0x488] sm:$0xf]  ;;  %v5325_v48 = vld [vmem:[#allocation8 + $0x4b4] sm:$0xf0] }
 0x145   : > { %v5128_v23 = vor.u32 %v5553_v34, %v5127_v14  ;;  %v4599_v49 = vld [vmem:[#allocation8 + $0x788] sm:$0xf]  ;;  %v5421_v50 = vld [vmem:[#allocation8 + $0x7b4] sm:$0xf0] }
 0x146   : > { %v431_v10 = vadd.f32 %v423_v52, %v418_v61  ;;  %v432_v11 = vadd.f32 %v424_v15, %v419_v62  ;;  %v433_v12 = vadd.f32 %v425_v53, %v420_v63  ;;  %v434_v13 = vadd.f32 %v426_v54, %v421_v3  ;;  %v4983_v51 = vld [vmem:[#allocation8 + $0xa88] sm:$0xf]  ;;  %v5517_v52 = vld [vmem:[#allocation8 + $0xab4] sm:$0xf0] }
 0x147   : > { %v3832_v15 = vor.u32 %v5229_v4, %v3831_v44  ;;  %v4216_v53 = vor.u32 %v5325_v48, %v4215_v47  ;;  %v3783_v54 = vld [vmem:[#allocation8 + $0x128] sm:$0xf]  ;;  %v5217_v55 = vld [vmem:[#allocation8 + $0x154] sm:$0xf0]  ;;  %v4600_v56 = vor.u32 %v5421_v50, %v4599_v49  ;;  %v4984_v57 = vor.u32 %v5517_v52, %v4983_v51  ;;  %v5355_v44 = vld [vmem:[#allocation8 + $0x5ac] sm:$0xf] }
 0x148   : > { %v6169_v17 = vpack.c.bf16 %v431_v10, %v431_v10  ;;  %v6171_v40 = vpack.c.bf16 %v432_v11, %v432_v11  ;;  %v6173_v18 = vpack.c.bf16 %v433_v12, %v433_v12  ;;  %v6175_v19 = vpack.c.bf16 %v434_v13, %v434_v13  ;;  %v4167_v58 = vld [vmem:[#allocation8 + $0x428] sm:$0xf]  ;;  %v5313_v59 = vld [vmem:[#allocation8 + $0x454] sm:$0xf0]  ;;  %v4361_v4 = vld [vmem:[#allocation8 + $0x5d8] sm:$0xf0] }
 0x149   : > { %v5409_v61 = vld [vmem:[#allocation8 + $0x754] sm:$0xf0]  ;;  %v4935_v62 = vld [vmem:[#allocation8 + $0xa28] sm:$0xf]  ;;  %v3784_v3 = vor.u32 %v5217_v55, %v3783_v54  ;;  %v4168_v5 = vor.u32 %v5313_v59, %v4167_v58  ;;  %v4745_v48 = vld [vmem:[#allocation8 + $0x8d8] sm:$0xf0]  ;;  %v4408_v51 = vor.u32 %v5373_v0, %v4407_v41 }
 0x14a   : > { %2779 = vmatmul.bf16.vlgmr.msra.gmra.mxu0 %v6169_v17  ;;  %2792 = vmatmul.bf16.vlgmr.msra.gmra.mxu1 %v6171_v40  ;;  %v5505_v63 = vld [vmem:[#allocation8 + $0xa54] sm:$0xf0]  ;;  %v4552_v9 = vor.u32 %v5409_v61, %v4551_v60  ;;  %v4119_v11 = vld [vmem:[#allocation8 + $0x3c8] sm:$0xf]  ;;  %v5547_v49 = vld [vmem:[#allocation8 + $0xbac] sm:$0xf] }
 0x14b   : > { %2805 = vmatmul.bf16.vlgmr.msra.gmra.mxu2 %v6173_v18  ;;  %2818 = vmatmul.bf16.vlgmr.msra.gmra.mxu3 %v6175_v19  ;;  %v5205_v7 = vld [vmem:[#allocation8 + $0xf4] sm:$0xf0]  ;;  %v4936_v10 = vor.u32 %v5505_v63, %v4935_v62  ;;  %v4503_v13 = vld [vmem:[#allocation8 + $0x6c8] sm:$0xf]  ;;  %v5129_v50 = vld [vmem:[#allocation8 + $0xbd8] sm:$0xf0] }
 0x14c   : > { %2875 = vmatpush.bf16.msra.mxu0 %v3976_v16  ;;  %2888 = vmatpush.bf16.msra.mxu1 %v4360_v35  ;;  %v5301_v12 = vld [vmem:[#allocation8 + $0x3f4] sm:$0xf0]  ;;  %v4887_v14 = vld [vmem:[#allocation8 + $0x9c8] sm:$0xf]  ;;  %v3736_v16 = vor.u32 %v5205_v7, %v3735_v6  ;;  %v5247_v54 = vld [vmem:[#allocation8 + $0x24c] sm:$0xf] }
 0x14d   : > { %2901 = vmatpush.bf16.msra.mxu2 %v4744_v22  ;;  %2914 = vmatpush.bf16.msra.mxu3 %v5128_v23  ;;  %v5397_v33 = vld [vmem:[#allocation8 + $0x6f4] sm:$0xf0]  ;;  %v4120_v35 = vor.u32 %v5301_v12, %v4119_v11  ;;  %v4791_v1 = vld [vmem:[#allocation8 + $0x908] sm:$0xf]  ;;  %v3929_v55 = vld [vmem:[#allocation8 + $0x278] sm:$0xf0] }
 0x14e   : > { %v5493_v34 = vld [vmem:[#allocation8 + $0x9f4] sm:$0xf0]  ;;  %v4504_v22 = vor.u32 %v5397_v33, %v4503_v13  ;;  %v5343_v58 = vld [vmem:[#allocation8 + $0x54c] sm:$0xf]  ;;  %v4313_v59 = vld [vmem:[#allocation8 + $0x578] sm:$0xf0] }
 0x14f   : > { %v4888_v23 = vor.u32 %v5493_v34, %v4887_v14  ;;  %v5469_v2 = vld [vmem:[#allocation8 + $0x934] sm:$0xf0]  ;;  %v5439_v60 = vld [vmem:[#allocation8 + $0x84c] sm:$0xf]  ;;  %v4697_v61 = vld [vmem:[#allocation8 + $0x878] sm:$0xf0] }
 0x150   : > { %2876 = vmatpush.bf16.msra.mxu0 %v3928_v29  ;;  %2889 = vmatpush.bf16.msra.mxu1 %v4312_v30  ;;  %v3639_v29 = vld [vmem:[#allocation8 + $0x8] sm:$0xf]  ;;  %v3688_v30 = vor.u32 %v5193_v21, %v3687_v20  ;;  %v4792_v52 = vor.u32 %v5469_v2, %v4791_v1  ;;  %v5535_v62 = vld [vmem:[#allocation8 + $0xb4c] sm:$0xf]  ;;  %v5081_v63 = vld [vmem:[#allocation8 + $0xb78] sm:$0xf0] }
 0x151   : > { %2902 = vmatpush.bf16.msra.mxu2 %v4696_v36  ;;  %2915 = vmatpush.bf16.msra.mxu3 %v5080_v37  ;;  %v4023_v36 = vld [vmem:[#allocation8 + $0x308] sm:$0xf]  ;;  %v5277_v37 = vld [vmem:[#allocation8 + $0x334] sm:$0xf0]  ;;  %v5235_v6 = vld [vmem:[#allocation8 + $0x1ec] sm:$0xf] }
 0x152   : > { %v4024_v47 = vor.u32 %v5277_v37, %v4023_v36  ;;  %v3881_v7 = vld [vmem:[#allocation8 + $0x218] sm:$0xf0]  ;;  %v5331_v11 = vld [vmem:[#allocation8 + $0x4ec] sm:$0xf]  ;;  %v4604_v36 = vor.u32 %v5415_v26, %v4601_v27  ;;  %v4988_v37 = vor.u32 %v5511_v28, %v4985_v8  ;;  %v5135_v26 = vld [vmem:[#allocation8 + $0xbb0] sm:$0xf] }
 0x153   : > { %v4265_v12 = vld [vmem:[#allocation8 + $0x518] sm:$0xf0]  ;;  %v5427_v13 = vld [vmem:[#allocation8 + $0x7ec] sm:$0xf]  ;;  %v5554_v27 = vld [vmem:[#allocation8 + $0xbdc] sm:$0xf0] }
 0x154   : > { %2877 = vmatpush.bf16.msra.mxu0 %v3880_v42  ;;  %2890 = vmatpush.bf16.msra.mxu1 %v4264_v43  ;;  %v5259_v42 = vld [vmem:[#allocation8 + $0x2ac] sm:$0xf]  ;;  %v3977_v43 = vld [vmem:[#allocation8 + $0x2d8] sm:$0xf0] }
 0x155   : > { %2903 = vmatpush.bf16.msra.mxu2 %v4648_v45  ;;  %2916 = vmatpush.bf16.msra.mxu3 %v5032_v46  ;;  %v5451_v45 = vld [vmem:[#allocation8 + $0x8ac] sm:$0xf]  ;;  %v3640_v46 = vor.u32 %v5181_v32, %v3639_v29  ;;  %v4649_v33 = vld [vmem:[#allocation8 + $0x818] sm:$0xf0] }
 0x156   : > { %v5523_v14 = vld [vmem:[#allocation8 + $0xaec] sm:$0xf]  ;;  %v5033_v34 = vld [vmem:[#allocation8 + $0xb18] sm:$0xf0] }
 0x157   : > { %v5223_v20 = vld [vmem:[#allocation8 + $0x18c] sm:$0xf]  ;;  %v3833_v21 = vld [vmem:[#allocation8 + $0x1b8] sm:$0xf0] }
 0x158   : > { %2878 = vmatpush.bf16.msra.mxu0 %v3832_v15  ;;  %2891 = vmatpush.bf16.msra.mxu1 %v4216_v53  ;;  %v3980_v15 = vor.u32 %v5259_v42, %v3977_v43  ;;  %v4364_v53 = vor.u32 %v5355_v44, %v4361_v4  ;;  %v3836_v29 = vor.u32 %v5223_v20, %v3833_v21  ;;  %v3785_v32 = vld [vmem:[#allocation8 + $0x158] sm:$0xf0]  ;;  %v5403_v41 = vld [vmem:[#allocation8 + $0x72c] sm:$0xf]  ;;  %v4367_v20 = vld [vmem:[#allocation8 + $0x5b0] sm:$0xf] }
 0x159   : > { %2904 = vmatpush.bf16.msra.mxu2 %v4600_v56  ;;  %2917 = vmatpush.bf16.msra.mxu3 %v4984_v57  ;;  %v4748_v56 = vor.u32 %v5451_v45, %v4745_v48  ;;  %v5132_v57 = vor.u32 %v5547_v49, %v5129_v50  ;;  %v4553_v0 = vld [vmem:[#allocation8 + $0x758] sm:$0xf0]  ;;  %v5499_v1 = vld [vmem:[#allocation8 + $0xa2c] sm:$0xf]  ;;  %v5362_v21 = vld [vmem:[#allocation8 + $0x5dc] sm:$0xf0] }
 0x15a   : > { %2831 = vmatmul.bf16.vlgmr.msrb.gmra.mxu0 %v6169_v17  ;;  %2844 = vmatmul.bf16.vlgmr.msrb.gmra.mxu1 %v6171_v40  ;;  %v4937_v2 = vld [vmem:[#allocation8 + $0xa58] sm:$0xf0]  ;;  %v5199_v44 = vld [vmem:[#allocation8 + $0xcc] sm:$0xf]  ;;  %v4556_v45 = vor.u32 %v5403_v41, %v4553_v0  ;;  %v4703_v41 = vld [vmem:[#allocation8 + $0x850] sm:$0xf] }
 0x15b   : > { %2857 = vmatmul.bf16.vlgmr.msrb.gmra.mxu2 %v6173_v18  ;;  %2870 = vmatmul.bf16.vlgmr.msrb.gmra.mxu3 %v6175_v19  ;;  %v3737_v4 = vld [vmem:[#allocation8 + $0xf8] sm:$0xf0]  ;;  %v5391_v49 = vld [vmem:[#allocation8 + $0x6cc] sm:$0xf]  ;;  %v5446_v0 = vld [vmem:[#allocation8 + $0x87c] sm:$0xf0] }
 0x15c   : > { %2879 = vmatpush.bf16.msra.mxu0 %v3784_v3  ;;  %2892 = vmatpush.bf16.msra.mxu1 %v4168_v5  ;;  %v3932_v3 = vor.u32 %v5247_v54, %v3929_v55  ;;  %v4316_v5 = vor.u32 %v5343_v58, %v4313_v59  ;;  %v4121_v48 = vld [vmem:[#allocation8 + $0x3f8] sm:$0xf0]  ;;  %v5187_v54 = vld [vmem:[#allocation8 + $0x6c] sm:$0xf] }
 0x15d   : > { %2905 = vmatpush.bf16.msra.mxu2 %v4552_v9  ;;  %2918 = vmatpush.bf16.msra.mxu3 %v4936_v10  ;;  %v4700_v9 = vor.u32 %v5439_v60, %v4697_v61  ;;  %v5084_v10 = vor.u32 %v5535_v62, %v5081_v63  ;;  %v4505_v50 = vld [vmem:[#allocation8 + $0x6f8] sm:$0xf0]  ;;  %v5283_v58 = vld [vmem:[#allocation8 + $0x36c] sm:$0xf] }
 0x15e   : > { %v3689_v55 = vld [vmem:[#allocation8 + $0x98] sm:$0xf0]  ;;  %v5379_v60 = vld [vmem:[#allocation8 + $0x66c] sm:$0xf] }
 0x15f   : > { %v4073_v59 = vld [vmem:[#allocation8 + $0x398] sm:$0xf0]  ;;  %v5475_v62 = vld [vmem:[#allocation8 + $0x96c] sm:$0xf] }
 0x160   : > { %2880 = vmatpush.bf16.msra.mxu0 %v3736_v16  ;;  %2893 = vmatpush.bf16.msra.mxu1 %v4120_v35  ;;  %v3884_v16 = vor.u32 %v5235_v6, %v3881_v7  ;;  %v4268_v35 = vor.u32 %v5331_v11, %v4265_v12  ;;  %v4457_v61 = vld [vmem:[#allocation8 + $0x698] sm:$0xf0]  ;;  %v4076_v6 = vor.u32 %v5283_v58, %v4073_v59  ;;  %v4223_v58 = vld [vmem:[#allocation8 + $0x490] sm:$0xf]  ;;  %v5326_v59 = vld [vmem:[#allocation8 + $0x4bc] sm:$0xf0] }
 0x161   : > { %2906 = vmatpush.bf16.msra.mxu2 %v4504_v22  ;;  %2919 = vmatpush.bf16.msra.mxu3 %v4888_v23  ;;  %v4652_v22 = vor.u32 %v5427_v13, %v4649_v33  ;;  %v5036_v23 = vor.u32 %v5523_v14, %v5033_v34  ;;  %v4841_v63 = vld [vmem:[#allocation8 + $0x998] sm:$0xf0]  ;;  %v4460_v11 = vor.u32 %v5379_v60, %v4457_v61  ;;  %v5367_v13 = vld [vmem:[#allocation8 + $0x60c] sm:$0xf]  ;;  %v4607_v60 = vld [vmem:[#allocation8 + $0x790] sm:$0xf] }
 0x162   : > { %v3641_v7 = vld [vmem:[#allocation8 + $0x38] sm:$0xf0]  ;;  %v4844_v12 = vor.u32 %v5475_v62, %v4841_v63  ;;  %v5463_v14 = vld [vmem:[#allocation8 + $0x90c] sm:$0xf]  ;;  %v5422_v61 = vld [vmem:[#allocation8 + $0x7bc] sm:$0xf0] }
 0x163   : > { %v4409_v33 = vld [vmem:[#allocation8 + $0x638] sm:$0xf0]  ;;  %v4991_v62 = vld [vmem:[#allocation8 + $0xa90] sm:$0xf]  ;;  %v5518_v63 = vld [vmem:[#allocation8 + $0xabc] sm:$0xf0] }
 0x164   : > { %2881 = vmatpush.bf16.msra.mxu0 %v3688_v30  ;;  %2894 = vmatpush.bf16.msra.mxu1 %v4072_v31  ;;  %v4220_v30 = vor.u32 %v5319_v24, %v4217_v25  ;;  %v5211_v31 = vld [vmem:[#allocation8 + $0x12c] sm:$0xf]  ;;  %v4793_v34 = vld [vmem:[#allocation8 + $0x938] sm:$0xf0]  ;;  %v5458_v25 = vld [vmem:[#allocation8 + $0x8dc] sm:$0xf0]  ;;  %v4412_v28 = vor.u32 %v5367_v13, %v4409_v33 }
 0x165   : > { %2907 = vmatpush.bf16.msra.mxu2 %v4456_v38  ;;  %2920 = vmatpush.bf16.msra.mxu3 %v4840_v39  ;;  %v5307_v38 = vld [vmem:[#allocation8 + $0x42c] sm:$0xf]  ;;  %v4169_v39 = vld [vmem:[#allocation8 + $0x458] sm:$0xf0]  ;;  %v3788_v42 = vor.u32 %v5211_v31, %v3785_v32  ;;  %v4796_v8 = vor.u32 %v5463_v14, %v4793_v34  ;;  %v3935_v31 = vld [vmem:[#allocation8 + $0x250] sm:$0xf] }
 0x166   : > { %v4172_v43 = vor.u32 %v5307_v38, %v4169_v39  ;;  %v5254_v32 = vld [vmem:[#allocation8 + $0x27c] sm:$0xf0]  ;;  %v4319_v38 = vld [vmem:[#allocation8 + $0x550] sm:$0xf] }
 0x167   : > { %v5350_v39 = vld [vmem:[#allocation8 + $0x57c] sm:$0xf0]  ;;  %v4559_v13 = vld [vmem:[#allocation8 + $0x730] sm:$0xf] }
 0x168   : > { %2882 = vmatpush.bf16.msra.mxu0 %v3640_v46  ;;  %2895 = vmatpush.bf16.msra.mxu1 %v4024_v47  ;;  %v4940_v46 = vor.u32 %v5499_v1, %v4937_v2  ;;  %v5295_v47 = vld [vmem:[#allocation8 + $0x3cc] sm:$0xf]  ;;  %v5087_v1 = vld [vmem:[#allocation8 + $0xb50] sm:$0xf]  ;;  %v5542_v2 = vld [vmem:[#allocation8 + $0xb7c] sm:$0xf0] }
 0x169   : > { %2908 = vmatpush.bf16.msra.mxu2 %v4408_v51  ;;  %2921 = vmatpush.bf16.msra.mxu3 %v4792_v52  ;;  %v5487_v51 = vld [vmem:[#allocation8 + $0x9cc] sm:$0xf]  ;;  %v4889_v52 = vld [vmem:[#allocation8 + $0x9f8] sm:$0xf0]  ;;  %v5410_v33 = vld [vmem:[#allocation8 + $0x75c] sm:$0xf0] }
 0x16a   : > { %v4943_v14 = vld [vmem:[#allocation8 + $0xa30] sm:$0xf]  ;;  %v5506_v34 = vld [vmem:[#allocation8 + $0xa5c] sm:$0xf0] }
 0x16b   : > { %2883 = vmatmul.bf16.vlgmr.msra.gmra.mxu0 %v6169_v17  ;;  %2896 = vmatmul.bf16.vlgmr.msra.gmra.mxu1 %v6171_v40 }
 0x16c   : > { %2927 = vmatpush.bf16.msrb.mxu0 %v3980_v15  ;;  %2940 = vmatpush.bf16.msrb.mxu1 %v4364_v53  ;;  %v3740_v15 = vor.u32 %v5199_v44, %v3737_v4  ;;  %v4124_v53 = vor.u32 %v5295_v47, %v4121_v48  ;;  %v3887_v44 = vld [vmem:[#allocation8 + $0x1f0] sm:$0xf]  ;;  %v5242_v4 = vld [vmem:[#allocation8 + $0x21c] sm:$0xf0] }
 0x16d   : > { %2953 = vmatpush.bf16.msrb.mxu2 %v4748_v56  ;;  %2966 = vmatpush.bf16.msrb.mxu3 %v5132_v57  ;;  %v4508_v56 = vor.u32 %v5391_v49, %v4505_v50  ;;  %v4892_v57 = vor.u32 %v5487_v51, %v4889_v52  ;;  %v4271_v47 = vld [vmem:[#allocation8 + $0x4f0] sm:$0xf]  ;;  %v5338_v48 = vld [vmem:[#allocation8 + $0x51c] sm:$0xf0] }
 0x16e   : > { %2909 = vmatmul.bf16.vlgmr.msra.gmra.mxu2 %v6173_v18  ;;  %2922 = vmatmul.bf16.vlgmr.msra.gmra.mxu3 %v6175_v19  ;;  %v4655_v49 = vld [vmem:[#allocation8 + $0x7f0] sm:$0xf]  ;;  %v5434_v50 = vld [vmem:[#allocation8 + $0x81c] sm:$0xf0] }
 0x16f   : > { %v5039_v51 = vld [vmem:[#allocation8 + $0xaf0] sm:$0xf]  ;;  %v5530_v52 = vld [vmem:[#allocation8 + $0xb1c] sm:$0xf0] }
 0x170   : > { %2928 = vmatpush.bf16.msrb.mxu0 %v3932_v3  ;;  %2941 = vmatpush.bf16.msrb.mxu1 %v4316_v5  ;;  %v5175_v3 = vld [vmem:[#allocation8 + $0xc] sm:$0xf]  ;;  %v3692_v5 = vor.u32 %v5187_v54, %v3689_v55  ;;  %v3839_v54 = vld [vmem:[#allocation8 + $0x190] sm:$0xf]  ;;  %v5230_v55 = vld [vmem:[#allocation8 + $0x1bc] sm:$0xf0] }
 0x171   : > { %2954 = vmatpush.bf16.msrb.mxu2 %v4700_v9  ;;  %2967 = vmatpush.bf16.msrb.mxu3 %v5084_v10  ;;  %v5271_v9 = vld [vmem:[#allocation8 + $0x30c] sm:$0xf]  ;;  %v4025_v10 = vld [vmem:[#allocation8 + $0x338] sm:$0xf0] }
 0x172   : > { %v4028_v24 = vor.u32 %v5271_v9, %v4025_v10  ;;  %v4608_v9 = vor.u32 %v5422_v61, %v4607_v60  ;;  %v4992_v10 = vor.u32 %v5518_v63, %v4991_v62  ;;  %v5548_v60 = vld [vmem:[#allocation8 + $0xbb4] sm:$0xf]  ;;  %v5137_v61 = vld [vmem:[#allocation8 + $0xbe0] sm:$0xf0] }
 0x174   : > { %2929 = vmatpush.bf16.msrb.mxu0 %v3884_v16  ;;  %2942 = vmatpush.bf16.msrb.mxu1 %v4268_v35  ;;  %v3983_v16 = vld [vmem:[#allocation8 + $0x2b0] sm:$0xf]  ;;  %v5266_v35 = vld [vmem:[#allocation8 + $0x2dc] sm:$0xf0] }
 0x175   : > { %2955 = vmatpush.bf16.msrb.mxu2 %v4652_v22  ;;  %2968 = vmatpush.bf16.msrb.mxu3 %v5036_v23  ;;  %v4751_v22 = vld [vmem:[#allocation8 + $0x8b0] sm:$0xf]  ;;  %v3644_v23 = vor.u32 %v5175_v3, %v3641_v7  ;;  %v3840_v3 = vor.u32 %v5230_v55, %v3839_v54  ;;  %v5218_v7 = vld [vmem:[#allocation8 + $0x15c] sm:$0xf0]  ;;  %v5356_v54 = vld [vmem:[#allocation8 + $0x5b4] sm:$0xf] }
 0x176   : > { %v4369_v55 = vld [vmem:[#allocation8 + $0x5e0] sm:$0xf0] }
 0x178   : > { %2930 = vmatpush.bf16.msrb.mxu0 %v3836_v29  ;;  %2943 = vmatpush.bf16.msrb.mxu1 %v4220_v30  ;;  %v3984_v29 = vor.u32 %v5266_v35, %v3983_v16  ;;  %v4368_v30 = vor.u32 %v5362_v21, %v4367_v20  ;;  %v3743_v20 = vld [vmem:[#allocation8 + $0xd0] sm:$0xf]  ;;  %v5206_v21 = vld [vmem:[#allocation8 + $0xfc] sm:$0xf0] }
 0x179   : > { %2956 = vmatpush.bf16.msrb.mxu2 %v4604_v36  ;;  %2969 = vmatpush.bf16.msrb.mxu3 %v4988_v37  ;;  %v4752_v36 = vor.u32 %v5458_v25, %v4751_v22  ;;  %v5136_v37 = vor.u32 %v5554_v27, %v5135_v26  ;;  %v4560_v22 = vor.u32 %v5410_v33, %v4559_v13  ;;  %v5302_v25 = vld [vmem:[#allocation8 + $0x3fc] sm:$0xf0]  ;;  %v4511_v26 = vld [vmem:[#allocation8 + $0x6d0] sm:$0xf]  ;;  %v5440_v13 = vld [vmem:[#allocation8 + $0x854] sm:$0xf] }
 0x17a   : > { %v5398_v27 = vld [vmem:[#allocation8 + $0x6fc] sm:$0xf0]  ;;  %v4705_v33 = vld [vmem:[#allocation8 + $0x880] sm:$0xf0] }
 0x17c   : > { %2931 = vmatpush.bf16.msrb.mxu0 %v3788_v42  ;;  %2944 = vmatpush.bf16.msrb.mxu1 %v4172_v43  ;;  %v3936_v42 = vor.u32 %v5254_v32, %v3935_v31  ;;  %v4320_v43 = vor.u32 %v5350_v39, %v4319_v38  ;;  %v3695_v31 = vld [vmem:[#allocation8 + $0x70] sm:$0xf]  ;;  %v5194_v32 = vld [vmem:[#allocation8 + $0x9c] sm:$0xf0] }
 0x17d   : > { %2957 = vmatpush.bf16.msrb.mxu2 %v4556_v45  ;;  %2970 = vmatpush.bf16.msrb.mxu3 %v4940_v46  ;;  %v4704_v45 = vor.u32 %v5446_v0, %v4703_v41  ;;  %v5088_v46 = vor.u32 %v5542_v2, %v5087_v1  ;;  %v4079_v38 = vld [vmem:[#allocation8 + $0x370] sm:$0xf]  ;;  %v5290_v39 = vld [vmem:[#allocation8 + $0x39c] sm:$0xf0] }
 0x17e   : > { %v4463_v41 = vld [vmem:[#allocation8 + $0x670] sm:$0xf]  ;;  %v5386_v0 = vld [vmem:[#allocation8 + $0x69c] sm:$0xf0] }
 0x17f   : > { %v4847_v1 = vld [vmem:[#allocation8 + $0x970] sm:$0xf]  ;;  %v5482_v2 = vld [vmem:[#allocation8 + $0x99c] sm:$0xf0] }
 0x180   : > { %2932 = vmatpush.bf16.msrb.mxu0 %v3740_v15  ;;  %2945 = vmatpush.bf16.msrb.mxu1 %v4124_v53  ;;  %v3888_v15 = vor.u32 %v5242_v4, %v3887_v44  ;;  %v4272_v53 = vor.u32 %v5338_v48, %v4271_v47  ;;  %v4080_v44 = vor.u32 %v5290_v39, %v4079_v38  ;;  %v5182_v4 = vld [vmem:[#allocation8 + $0x3c] sm:$0xf0]  ;;  %v5320_v38 = vld [vmem:[#allocation8 + $0x494] sm:$0xf]  ;;  %v4225_v39 = vld [vmem:[#allocation8 + $0x4c0] sm:$0xf0] }
 0x181   : > { %2958 = vmatpush.bf16.msrb.mxu2 %v4508_v56  ;;  %2971 = vmatpush.bf16.msrb.mxu3 %v4892_v57  ;;  %v4656_v56 = vor.u32 %v5434_v50, %v4655_v49  ;;  %v5040_v57 = vor.u32 %v5530_v52, %v5039_v51  ;;  %v4464_v47 = vor.u32 %v5386_v0, %v4463_v41  ;;  %v4415_v49 = vld [vmem:[#allocation8 + $0x610] sm:$0xf]  ;;  %v5374_v50 = vld [vmem:[#allocation8 + $0x63c] sm:$0xf0]  ;;  %v5416_v41 = vld [vmem:[#allocation8 + $0x794] sm:$0xf] }
 0x182   : > { %v4848_v48 = vor.u32 %v5482_v2, %v4847_v1  ;;  %v4799_v51 = vld [vmem:[#allocation8 + $0x910] sm:$0xf]  ;;  %v5470_v52 = vld [vmem:[#allocation8 + $0x93c] sm:$0xf0]  ;;  %v4416_v62 = vor.u32 %v5374_v50, %v4415_v49  ;;  %v4609_v0 = vld [vmem:[#allocation8 + $0x7c0] sm:$0xf0] }
 0x183   : > { %v4800_v63 = vor.u32 %v5470_v52, %v4799_v51  ;;  %v5512_v1 = vld [vmem:[#allocation8 + $0xa94] sm:$0xf]  ;;  %v4993_v2 = vld [vmem:[#allocation8 + $0xac0] sm:$0xf0] }
 0x184   : > { %2933 = vmatpush.bf16.msrb.mxu0 %v3692_v5  ;;  %2946 = vmatpush.bf16.msrb.mxu1 %v4076_v6  ;;  %v4224_v5 = vor.u32 %v5326_v59, %v4223_v58  ;;  %v3791_v6 = vld [vmem:[#allocation8 + $0x130] sm:$0xf]  ;;  %v4753_v59 = vld [vmem:[#allocation8 + $0x8e0] sm:$0xf0]  ;;  %v5404_v49 = vld [vmem:[#allocation8 + $0x734] sm:$0xf] }
 0x185   : > { %2959 = vmatpush.bf16.msrb.mxu2 %v4460_v11  ;;  %2972 = vmatpush.bf16.msrb.mxu3 %v4844_v12  ;;  %v4175_v11 = vld [vmem:[#allocation8 + $0x430] sm:$0xf]  ;;  %v5314_v12 = vld [vmem:[#allocation8 + $0x45c] sm:$0xf0]  ;;  %v3792_v16 = vor.u32 %v5218_v7, %v3791_v6  ;;  %v5248_v6 = vld [vmem:[#allocation8 + $0x254] sm:$0xf] }
 0x186   : > { %v4176_v35 = vor.u32 %v5314_v12, %v4175_v11  ;;  %v3937_v7 = vld [vmem:[#allocation8 + $0x280] sm:$0xf0]  ;;  %v5344_v11 = vld [vmem:[#allocation8 + $0x554] sm:$0xf] }
 0x187   : > { %v4321_v12 = vld [vmem:[#allocation8 + $0x580] sm:$0xf0]  ;;  %v5500_v51 = vld [vmem:[#allocation8 + $0xa34] sm:$0xf] }
 0x188   : > { %2934 = vmatpush.bf16.msrb.mxu0 %v3644_v23  ;;  %2947 = vmatpush.bf16.msrb.mxu1 %v4028_v24  ;;  %v4944_v23 = vor.u32 %v5506_v34, %v4943_v14  ;;  %v4127_v24 = vld [vmem:[#allocation8 + $0x3d0] sm:$0xf]  ;;  %v5536_v14 = vld [vmem:[#allocation8 + $0xb54] sm:$0xf]  ;;  %v5089_v34 = vld [vmem:[#allocation8 + $0xb80] sm:$0xf0] }
 0x189   : > { %2960 = vmatpush.bf16.msrb.mxu2 %v4412_v28  ;;  %2973 = vmatpush.bf16.msrb.mxu3 %v4796_v8  ;;  %v4895_v28 = vld [vmem:[#allocation8 + $0x9d0] sm:$0xf]  ;;  %v5494_v8 = vld [vmem:[#allocation8 + $0x9fc] sm:$0xf0]  ;;  %v4561_v50 = vld [vmem:[#allocation8 + $0x760] sm:$0xf0] }
 0x18a   : > { %v4945_v52 = vld [vmem:[#allocation8 + $0xa60] sm:$0xf0] }
 0x18b   : > { %2935 = vmatmul.bf16.vlgmr.msrb.gmra.mxu0 %v6169_v17  ;;  %2948 = vmatmul.bf16.vlgmr.msrb.gmra.mxu1 %v6171_v40 }
 0x18c   : > { %2979 = vmatpush.bf16.msra.mxu0 %v3984_v29  ;;  %2992 = vmatpush.bf16.msra.mxu1 %v4368_v30  ;;  %v3744_v29 = vor.u32 %v5206_v21, %v3743_v20  ;;  %v4128_v30 = vor.u32 %v5302_v25, %v4127_v24  ;;  %v5236_v20 = vld [vmem:[#allocation8 + $0x1f4] sm:$0xf]  ;;  %v3889_v21 = vld [vmem:[#allocation8 + $0x220] sm:$0xf0] }
 0x18d   : > { %3005 = vmatpush.bf16.msra.mxu2 %v4752_v36  ;;  %3018 = vmatpush.bf16.msra.mxu3 %v5136_v37  ;;  %v4512_v36 = vor.u32 %v5398_v27, %v4511_v26  ;;  %v4896_v37 = vor.u32 %v5494_v8, %v4895_v28  ;;  %v5332_v24 = vld [vmem:[#allocation8 + $0x4f4] sm:$0xf]  ;;  %v4273_v25 = vld [vmem:[#allocation8 + $0x520] sm:$0xf0] }
 0x18e   : > { %2961 = vmatmul.bf16.vlgmr.msrb.gmra.mxu2 %v6173_v18  ;;  %2974 = vmatmul.bf16.vlgmr.msrb.gmra.mxu3 %v6175_v19  ;;  %v5428_v26 = vld [vmem:[#allocation8 + $0x7f4] sm:$0xf]  ;;  %v4657_v27 = vld [vmem:[#allocation8 + $0x820] sm:$0xf0] }
 0x18f   : > { %v5524_v28 = vld [vmem:[#allocation8 + $0xaf4] sm:$0xf]  ;;  %v5041_v8 = vld [vmem:[#allocation8 + $0xb20] sm:$0xf0] }
 0x190   : > { %2980 = vmatpush.bf16.msra.mxu0 %v3936_v42  ;;  %2993 = vmatpush.bf16.msra.mxu1 %v4320_v43  ;;  %v3647_v42 = vld [vmem:[#allocation8 + $0x10] sm:$0xf]  ;;  %v3696_v43 = vor.u32 %v5194_v32, %v3695_v31  ;;  %v5224_v31 = vld [vmem:[#allocation8 + $0x194] sm:$0xf]  ;;  %v3841_v32 = vld [vmem:[#allocation8 + $0x1c0] sm:$0xf0] }
 0x191   : > { %3006 = vmatpush.bf16.msra.mxu2 %v4704_v45  ;;  %3019 = vmatpush.bf16.msra.mxu3 %v5088_v46  ;;  %v4031_v45 = vld [vmem:[#allocation8 + $0x310] sm:$0xf]  ;;  %v5278_v46 = vld [vmem:[#allocation8 + $0x33c] sm:$0xf0] }
 0x192   : > { %v4032_v58 = vor.u32 %v5278_v46, %v4031_v45  ;;  %v4612_v45 = vor.u32 %v5416_v41, %v4609_v0  ;;  %v4996_v46 = vor.u32 %v5512_v1, %v4993_v2  ;;  %v5143_v41 = vld [vmem:[#allocation8 + $0xbb8] sm:$0xf]  ;;  %v5555_v0 = vld [vmem:[#allocation8 + $0xbe4] sm:$0xf0] }
 0x194   : > { %2981 = vmatpush.bf16.msra.mxu0 %v3888_v15  ;;  %2994 = vmatpush.bf16.msra.mxu1 %v4272_v53  ;;  %v5260_v15 = vld [vmem:[#allocation8 + $0x2b4] sm:$0xf]  ;;  %v3985_v53 = vld [vmem:[#allocation8 + $0x2e0] sm:$0xf0] }
 0x195   : > { %3007 = vmatpush.bf16.msra.mxu2 %v4656_v56  ;;  %3020 = vmatpush.bf16.msra.mxu3 %v5040_v57  ;;  %v5452_v56 = vld [vmem:[#allocation8 + $0x8b4] sm:$0xf]  ;;  %v3648_v57 = vor.u32 %v5182_v4, %v3647_v42  ;;  %v3844_v42 = vor.u32 %v5224_v31, %v3841_v32  ;;  %v3793_v4 = vld [vmem:[#allocation8 + $0x160] sm:$0xf0]  ;;  %v4375_v31 = vld [vmem:[#allocation8 + $0x5b8] sm:$0xf] }
 0x196   : > { %v5363_v32 = vld [vmem:[#allocation8 + $0x5e4] sm:$0xf0] }
 0x198   : > { %2982 = vmatpush.bf16.msra.mxu0 %v3840_v3  ;;  %2995 = vmatpush.bf16.msra.mxu1 %v4224_v5  ;;  %v3988_v3 = vor.u32 %v5260_v15, %v3985_v53  ;;  %v4372_v5 = vor.u32 %v5356_v54, %v4369_v55  ;;  %v5200_v54 = vld [vmem:[#allocation8 + $0xd4] sm:$0xf]  ;;  %v3745_v55 = vld [vmem:[#allocation8 + $0x100] sm:$0xf0] }
 0x199   : > { %3008 = vmatpush.bf16.msra.mxu2 %v4608_v9  ;;  %3021 = vmatpush.bf16.msra.mxu3 %v4992_v10  ;;  %v4756_v9 = vor.u32 %v5452_v56, %v4753_v59  ;;  %v5140_v10 = vor.u32 %v5548_v60, %v5137_v61  ;;  %v4564_v56 = vor.u32 %v5404_v49, %v4561_v50  ;;  %v4129_v59 = vld [vmem:[#allocation8 + $0x400] sm:$0xf0]  ;;  %v5392_v60 = vld [vmem:[#allocation8 + $0x6d4] sm:$0xf]  ;;  %v4711_v49 = vld [vmem:[#allocation8 + $0x858] sm:$0xf] }
 0x19a   : > { %v4513_v61 = vld [vmem:[#allocation8 + $0x700] sm:$0xf0]  ;;  %v5447_v50 = vld [vmem:[#allocation8 + $0x884] sm:$0xf0] }
 0x19c   : > { %2983 = vmatpush.bf16.msra.mxu0 %v3792_v16  ;;  %2996 = vmatpush.bf16.msra.mxu1 %v4176_v35  ;;  %v3940_v16 = vor.u32 %v5248_v6, %v3937_v7  ;;  %v4324_v35 = vor.u32 %v5344_v11, %v4321_v12  ;;  %v5188_v6 = vld [vmem:[#allocation8 + $0x74] sm:$0xf]  ;;  %v3697_v7 = vld [vmem:[#allocation8 + $0xa0] sm:$0xf0] }
 0x19d   : > { %3009 = vmatpush.bf16.msra.mxu2 %v4560_v22  ;;  %3022 = vmatpush.bf16.msra.mxu3 %v4944_v23  ;;  %v4708_v22 = vor.u32 %v5440_v13, %v4705_v33  ;;  %v5092_v23 = vor.u32 %v5536_v14, %v5089_v34  ;;  %v5284_v11 = vld [vmem:[#allocation8 + $0x374] sm:$0xf]  ;;  %v4081_v12 = vld [vmem:[#allocation8 + $0x3a0] sm:$0xf0] }
 0x19e   : > { %v5380_v13 = vld [vmem:[#allocation8 + $0x674] sm:$0xf]  ;;  %v4465_v33 = vld [vmem:[#allocation8 + $0x6a0] sm:$0xf0] }
 0x19f   : > { %v5476_v14 = vld [vmem:[#allocation8 + $0x974] sm:$0xf]  ;;  %v4849_v34 = vld [vmem:[#allocation8 + $0x9a0] sm:$0xf0] }
 0x1a0   : > { %2984 = vmatpush.bf16.msra.mxu0 %v3744_v29  ;;  %2997 = vmatpush.bf16.msra.mxu1 %v4128_v30  ;;  %v3892_v29 = vor.u32 %v5236_v20, %v3889_v21  ;;  %v4276_v30 = vor.u32 %v5332_v24, %v4273_v25  ;;  %v4084_v20 = vor.u32 %v5284_v11, %v4081_v12  ;;  %v3649_v21 = vld [vmem:[#allocation8 + $0x40] sm:$0xf0] }
 0x1a1   : > { %3010 = vmatpush.bf16.msra.mxu2 %v4512_v36  ;;  %3023 = vmatpush.bf16.msra.mxu3 %v4896_v37  ;;  %v4660_v36 = vor.u32 %v5428_v26, %v4657_v27  ;;  %v5044_v37 = vor.u32 %v5524_v28, %v5041_v8  ;;  %v4468_v24 = vor.u32 %v5380_v13, %v4465_v33  ;;  %v5368_v26 = vld [vmem:[#allocation8 + $0x614] sm:$0xf]  ;;  %v4417_v27 = vld [vmem:[#allocation8 + $0x640] sm:$0xf0]  ;;  %v4231_v13 = vld [vmem:[#allocation8 + $0x498] sm:$0xf] }
 0x1a2   : > { %v4852_v25 = vor.u32 %v5476_v14, %v4849_v34  ;;  %v5464_v28 = vld [vmem:[#allocation8 + $0x914] sm:$0xf]  ;;  %v4801_v8 = vld [vmem:[#allocation8 + $0x940] sm:$0xf0]  ;;  %v4420_v1 = vor.u32 %v5368_v26, %v4417_v27  ;;  %v5327_v33 = vld [vmem:[#allocation8 + $0x4c4] sm:$0xf0] }
 0x1a3   : > { %v4804_v2 = vor.u32 %v5464_v28, %v4801_v8  ;;  %v4615_v14 = vld [vmem:[#allocation8 + $0x798] sm:$0xf]  ;;  %v5423_v34 = vld [vmem:[#allocation8 + $0x7c4] sm:$0xf0] }
 0x1a4   : > { %2985 = vmatpush.bf16.msra.mxu0 %v3696_v43  ;;  %2998 = vmatpush.bf16.msra.mxu1 %v4080_v44  ;;  %v4228_v43 = vor.u32 %v5320_v38, %v4225_v39  ;;  %v5212_v44 = vld [vmem:[#allocation8 + $0x134] sm:$0xf]  ;;  %v5459_v39 = vld [vmem:[#allocation8 + $0x8e4] sm:$0xf0]  ;;  %v4183_v27 = vld [vmem:[#allocation8 + $0x438] sm:$0xf] }
 0x1a5   : > { %3011 = vmatpush.bf16.msra.mxu2 %v4464_v47  ;;  %3024 = vmatpush.bf16.msra.mxu3 %v4848_v48  ;;  %v5308_v47 = vld [vmem:[#allocation8 + $0x434] sm:$0xf]  ;;  %v4177_v48 = vld [vmem:[#allocation8 + $0x460] sm:$0xf0]  ;;  %v3796_v15 = vor.u32 %v5212_v44, %v3793_v4  ;;  %v3943_v44 = vld [vmem:[#allocation8 + $0x258] sm:$0xf] }
 0x1a6   : > { %v4180_v53 = vor.u32 %v5308_v47, %v4177_v48  ;;  %v5255_v4 = vld [vmem:[#allocation8 + $0x284] sm:$0xf0]  ;;  %v4327_v47 = vld [vmem:[#allocation8 + $0x558] sm:$0xf] }
 0x1a7   : > { %v5351_v48 = vld [vmem:[#allocation8 + $0x584] sm:$0xf0]  ;;  %v4567_v8 = vld [vmem:[#allocation8 + $0x738] sm:$0xf] }
 0x1a8   : > { %2986 = vmatpush.bf16.msra.mxu0 %v3648_v57  ;;  %2999 = vmatpush.bf16.msra.mxu1 %v4032_v58  ;;  %v4948_v57 = vor.u32 %v5500_v51, %v4945_v52  ;;  %v5296_v58 = vld [vmem:[#allocation8 + $0x3d4] sm:$0xf]  ;;  %v5095_v51 = vld [vmem:[#allocation8 + $0xb58] sm:$0xf]  ;;  %v5543_v52 = vld [vmem:[#allocation8 + $0xb84] sm:$0xf0] }
 0x1a9   : > { %3012 = vmatpush.bf16.msra.mxu2 %v4416_v62  ;;  %3025 = vmatpush.bf16.msra.mxu3 %v4800_v63  ;;  %v5488_v62 = vld [vmem:[#allocation8 + $0x9d4] sm:$0xf]  ;;  %v4897_v63 = vld [vmem:[#allocation8 + $0xa00] sm:$0xf0]  ;;  %v5315_v28 = vld [vmem:[#allocation8 + $0x464] sm:$0xf0] }
 0x1ab   : > { %2987 = vmatmul.bf16.vlgmr.msra.gmra.mxu0 %v6169_v17  ;;  %3000 = vmatmul.bf16.vlgmr.msra.gmra.mxu1 %v6171_v40 }
 0x1ac   : > { %3031 = vmatpush.bf16.msrb.mxu0 %v3988_v3  ;;  %3044 = vmatpush.bf16.msrb.mxu1 %v4372_v5  ;;  %v3748_v3 = vor.u32 %v5200_v54, %v3745_v55  ;;  %v4132_v5 = vor.u32 %v5296_v58, %v4129_v59  ;;  %v3895_v54 = vld [vmem:[#allocation8 + $0x1f8] sm:$0xf]  ;;  %v5243_v55 = vld [vmem:[#allocation8 + $0x224] sm:$0xf0] }
 0x1ad   : > { %3057 = vmatpush.bf16.msrb.mxu2 %v4756_v9  ;;  %3070 = vmatpush.bf16.msrb.mxu3 %v5140_v10  ;;  %v4516_v9 = vor.u32 %v5392_v60, %v4513_v61  ;;  %v4900_v10 = vor.u32 %v5488_v62, %v4897_v63  ;;  %v4279_v58 = vld [vmem:[#allocation8 + $0x4f8] sm:$0xf]  ;;  %v5339_v59 = vld [vmem:[#allocation8 + $0x524] sm:$0xf0] }
 0x1ae   : > { %3013 = vmatmul.bf16.vlgmr.msra.gmra.mxu2 %v6173_v18  ;;  %3026 = vmatmul.bf16.vlgmr.msra.gmra.mxu3 %v6175_v19  ;;  %v4663_v60 = vld [vmem:[#allocation8 + $0x7f8] sm:$0xf]  ;;  %v5435_v61 = vld [vmem:[#allocation8 + $0x824] sm:$0xf0] }
 0x1af   : > { %v5047_v62 = vld [vmem:[#allocation8 + $0xaf8] sm:$0xf]  ;;  %v5531_v63 = vld [vmem:[#allocation8 + $0xb24] sm:$0xf0]  ;;  %v4664_v11 = vor.u32 %v5435_v61, %v4663_v60 }
 0x1b0   : > { %3032 = vmatpush.bf16.msrb.mxu0 %v3940_v16  ;;  %3045 = vmatpush.bf16.msrb.mxu1 %v4324_v35  ;;  %v5176_v16 = vld [vmem:[#allocation8 + $0x14] sm:$0xf]  ;;  %v3700_v35 = vor.u32 %v5188_v6, %v3697_v7  ;;  %v3896_v6 = vor.u32 %v5243_v55, %v3895_v54  ;;  %v4280_v7 = vor.u32 %v5339_v59, %v4279_v58  ;;  %v5387_v58 = vld [vmem:[#allocation8 + $0x6a4] sm:$0xf0] }
 0x1b1   : > { %3058 = vmatpush.bf16.msrb.mxu2 %v4708_v22  ;;  %3071 = vmatpush.bf16.msrb.mxu3 %v5092_v23  ;;  %v5272_v22 = vld [vmem:[#allocation8 + $0x314] sm:$0xf]  ;;  %v4033_v23 = vld [vmem:[#allocation8 + $0x340] sm:$0xf0]  ;;  %v5048_v12 = vor.u32 %v5531_v63, %v5047_v62  ;;  %v4855_v62 = vld [vmem:[#allocation8 + $0x978] sm:$0xf] }
 0x1b2   : > { %v4036_v38 = vor.u32 %v5272_v22, %v4033_v23  ;;  %v4232_v22 = vor.u32 %v5327_v33, %v4231_v13  ;;  %v3799_v23 = vld [vmem:[#allocation8 + $0x138] sm:$0xf]  ;;  %v5483_v63 = vld [vmem:[#allocation8 + $0x9a4] sm:$0xf0] }
 0x1b3   : > { %v4039_v13 = vld [vmem:[#allocation8 + $0x318] sm:$0xf]  ;;  %v5279_v33 = vld [vmem:[#allocation8 + $0x344] sm:$0xf0] }
 0x1b4   : > { %3033 = vmatpush.bf16.msrb.mxu0 %v3892_v29  ;;  %3046 = vmatpush.bf16.msrb.mxu1 %v4276_v30  ;;  %v3991_v29 = vld [vmem:[#allocation8 + $0x2b8] sm:$0xf]  ;;  %v5267_v30 = vld [vmem:[#allocation8 + $0x2e4] sm:$0xf0] }
 0x1b5   : > { %3059 = vmatpush.bf16.msrb.mxu2 %v4660_v36  ;;  %3072 = vmatpush.bf16.msrb.mxu3 %v5044_v37  ;;  %v4759_v36 = vld [vmem:[#allocation8 + $0x8b8] sm:$0xf]  ;;  %v3652_v37 = vor.u32 %v5176_v16, %v3649_v21 }
 0x1b6   : > { %v4999_v16 = vld [vmem:[#allocation8 + $0xa98] sm:$0xf] }
 0x1b8   : > { %3034 = vmatpush.bf16.msrb.mxu0 %v3844_v42  ;;  %3047 = vmatpush.bf16.msrb.mxu1 %v4228_v43  ;;  %v3992_v42 = vor.u32 %v5267_v30, %v3991_v29  ;;  %v4376_v43 = vor.u32 %v5363_v32, %v4375_v31  ;;  %v5411_v31 = vld [vmem:[#allocation8 + $0x764] sm:$0xf0]  ;;  %v4951_v32 = vld [vmem:[#allocation8 + $0xa38] sm:$0xf] }
 0x1b9   : > { %3060 = vmatpush.bf16.msrb.mxu2 %v4612_v45  ;;  %3073 = vmatpush.bf16.msrb.mxu3 %v4996_v46  ;;  %v4760_v45 = vor.u32 %v5459_v39, %v4759_v36  ;;  %v5144_v46 = vor.u32 %v5555_v0, %v5143_v41  ;;  %v5507_v36 = vld [vmem:[#allocation8 + $0xa64] sm:$0xf0]  ;;  %v4184_v0 = vor.u32 %v5315_v28, %v4183_v27  ;;  %v5357_v27 = vld [vmem:[#allocation8 + $0x5bc] sm:$0xf]  ;;  %v4377_v28 = vld [vmem:[#allocation8 + $0x5e8] sm:$0xf0] }
 0x1bc   : > { %3035 = vmatpush.bf16.msrb.mxu0 %v3796_v15  ;;  %3048 = vmatpush.bf16.msrb.mxu1 %v4180_v53  ;;  %v3944_v15 = vor.u32 %v5255_v4, %v3943_v44  ;;  %v4328_v53 = vor.u32 %v5351_v48, %v4327_v47  ;;  %v4135_v44 = vld [vmem:[#allocation8 + $0x3d8] sm:$0xf]  ;;  %v5303_v4 = vld [vmem:[#allocation8 + $0x404] sm:$0xf0] }
 0x1bd   : > { %3061 = vmatpush.bf16.msrb.mxu2 %v4564_v56  ;;  %3074 = vmatpush.bf16.msrb.mxu3 %v4948_v57  ;;  %v4712_v56 = vor.u32 %v5447_v50, %v4711_v49  ;;  %v5096_v57 = vor.u32 %v5543_v52, %v5095_v51  ;;  %v4903_v47 = vld [vmem:[#allocation8 + $0x9d8] sm:$0xf]  ;;  %v5495_v48 = vld [vmem:[#allocation8 + $0xa04] sm:$0xf0]  ;;  %v4136_v51 = vor.u32 %v5303_v4, %v4135_v44 }
 0x1be   : > { %v3703_v49 = vld [vmem:[#allocation8 + $0x78] sm:$0xf]  ;;  %v5195_v52 = vld [vmem:[#allocation8 + $0xa4] sm:$0xf0] }
 0x1c0   : > { %3036 = vmatpush.bf16.msrb.mxu0 %v3748_v3  ;;  %3049 = vmatpush.bf16.msrb.mxu1 %v4132_v5 }
 0x1c1   : > { %3062 = vmatpush.bf16.msrb.mxu2 %v4516_v9  ;;  %3075 = vmatpush.bf16.msrb.mxu3 %v4900_v10  ;;  %v3847_v9 = vld [vmem:[#allocation8 + $0x198] sm:$0xf]  ;;  %v5231_v10 = vld [vmem:[#allocation8 + $0x1c4] sm:$0xf0] }
 0x1c2   : > { %v3848_v21 = vor.u32 %v5231_v10, %v3847_v9  ;;  %v3655_v9 = vld [vmem:[#allocation8 + $0x18] sm:$0xf]  ;;  %v3704_v10 = vor.u32 %v5195_v52, %v3703_v49  ;;  %v5345_v49 = vld [vmem:[#allocation8 + $0x55c] sm:$0xf]  ;;  %v4713_v52 = vld [vmem:[#allocation8 + $0x888] sm:$0xf0] }
 0x1c4   : > { %3037 = vmatpush.bf16.msrb.mxu0 %v3700_v35  ;;  %3050 = vmatpush.bf16.msrb.mxu1 %v4084_v20  ;;  %v5519_v35 = vld [vmem:[#allocation8 + $0xac4] sm:$0xf0]  ;;  %v6205_v20 = vld [vmem:[#allocation10] sm:$0xff] }
 0x1c5   : > { %3063 = vmatpush.bf16.msrb.mxu2 %v4468_v24  ;;  %3076 = vmatpush.bf16.msrb.mxu3 %v4852_v25  ;;  %v5219_v24 = vld [vmem:[#allocation8 + $0x164] sm:$0xf0]  ;;  %v4616_v25 = vor.u32 %v5423_v34, %v4615_v14  ;;  %v5000_v26 = vor.u32 %v5519_v35, %v4999_v16  ;;  %v827_v39 = vperm.slane %v6205_v20, 0  ;;  %v828_v59 = vperm.slane %v6205_v20, 1  ;;  %v4423_v35 = vld [vmem:[#allocation8 + $0x618] sm:$0xf] }
 0x1c6   : > { %v3800_v41 = vor.u32 %v5219_v24, %v3799_v23  ;;  %v4856_v34 = vor.u32 %v5483_v63, %v4855_v62  ;;  %v5471_v23 = vld [vmem:[#allocation8 + $0x944] sm:$0xf0]  ;;  %v5261_v24 = vld [vmem:[#allocation8 + $0x2bc] sm:$0xf] }
 0x1c7   : > { %v6201_v3 = vpop.f32.mrf.mxu0  ;;  %v6203_v5 = vpop.f32.mrf.mxu1 }
 0x1c8   : > { %3038 = vmatpush.bf16.msrb.mxu0 %v3652_v37  ;;  %3051 = vmatpush.bf16.msrb.mxu1 %v4036_v38  ;;  %v2781_v54 = vadd.f32 %v6201_v3, %v827_v39 }
 0x1c9   : > { %3064 = vmatpush.bf16.msrb.mxu2 %v4420_v1  ;;  %3077 = vmatpush.bf16.msrb.mxu3 %v4804_v2  ;;  %v3751_v1 = vld [vmem:[#allocation8 + $0xd8] sm:$0xf]  ;;  %v5207_v2 = vld [vmem:[#allocation8 + $0x104] sm:$0xf0] }
 0x1ca   : > { %v3752_v50 = vor.u32 %v5207_v2, %v3751_v1  ;;  %v2794_v14 = vadd.f32 %v6203_v5, %v2781_v54  ;;  %v4040_v5 = vor.u32 %v5279_v33, %v4039_v13  ;;  %v4380_v1 = vor.u32 %v5357_v27, %v4377_v28 }
 0x1cb   : > { %3039 = vmatmul.bf16.vlgmr.msrb.gmra.mxu0 %v6169_v17  ;;  %3052 = vmatmul.bf16.vlgmr.msrb.gmra.mxu1 %v6171_v40 }
 0x1cc   : > { %3083 = vmatpush.bf16.msra.mxu0 %v3992_v42  ;;  %3096 = vmatpush.bf16.msra.mxu1 %v4376_v43  ;;  %v4568_v42 = vor.u32 %v5411_v31, %v4567_v8  ;;  %v4952_v43 = vor.u32 %v5507_v36, %v4951_v32  ;;  %v5453_v8 = vld [vmem:[#allocation8 + $0x8bc] sm:$0xf]  ;;  %v4761_v32 = vld [vmem:[#allocation8 + $0x8e8] sm:$0xf0] }
 0x1cd   : > { %3109 = vmatpush.bf16.msra.mxu2 %v4760_v45  ;;  %3122 = vmatpush.bf16.msra.mxu3 %v5144_v46  ;;  %v4519_v45 = vld [vmem:[#allocation8 + $0x6d8] sm:$0xf]  ;;  %v5399_v46 = vld [vmem:[#allocation8 + $0x704] sm:$0xf0]  ;;  %v5549_v36 = vld [vmem:[#allocation8 + $0xbbc] sm:$0xf]  ;;  %v4764_v4 = vor.u32 %v5453_v8, %v4761_v32 }
 0x1ce   : > { %3065 = vmatmul.bf16.vlgmr.msrb.gmra.mxu2 %v6173_v18  ;;  %3078 = vmatmul.bf16.vlgmr.msrb.gmra.mxu3 %v6175_v19  ;;  %v6207_v29 = vpop.f32.mrf.mxu2  ;;  %v6209_v30 = vpop.f32.mrf.mxu3  ;;  %v4520_v55 = vor.u32 %v5399_v46, %v4519_v45  ;;  %v3801_v32 = vld [vmem:[#allocation8 + $0x168] sm:$0xf0] }
 0x1cf   : > { %v2782_v37 = vpop.f32.mrf.mxu0  ;;  %v2795_v38 = vpop.f32.mrf.mxu1 }
 0x1d0   : > { %3084 = vmatpush.bf16.msra.mxu0 %v3944_v15  ;;  %3097 = vmatpush.bf16.msra.mxu1 %v4328_v53  ;;  %v4087_v15 = vld [vmem:[#allocation8 + $0x378] sm:$0xf]  ;;  %v5291_v53 = vld [vmem:[#allocation8 + $0x3a4] sm:$0xf0]  ;;  %v5145_v37 = vld [vmem:[#allocation8 + $0xbe8] sm:$0xf0] }
 0x1d1   : > { %3110 = vmatpush.bf16.msra.mxu2 %v4712_v56  ;;  %3123 = vmatpush.bf16.msra.mxu3 %v5096_v57  ;;  %v4904_v56 = vor.u32 %v5495_v48, %v4903_v47  ;;  %v4471_v57 = vld [vmem:[#allocation8 + $0x678] sm:$0xf]  ;;  %v5148_v45 = vor.u32 %v5549_v36, %v5145_v37 }
 0x1d2   : > { %v4472_v3 = vor.u32 %v5387_v58, %v4471_v57  ;;  %v3897_v57 = vld [vmem:[#allocation8 + $0x228] sm:$0xf0]  ;;  %v5333_v58 = vld [vmem:[#allocation8 + $0x4fc] sm:$0xf] }
 0x1d4   : > { %3085 = vmatpush.bf16.msra.mxu0 %v3896_v6  ;;  %3098 = vmatpush.bf16.msra.mxu1 %v4280_v7 }
 0x1d5   : > { %3111 = vmatpush.bf16.msra.mxu2 %v4664_v11  ;;  %3124 = vmatpush.bf16.msra.mxu3 %v5048_v12  ;;  %v4088_v11 = vor.u32 %v5291_v53, %v4087_v15  ;;  %v5183_v12 = vld [vmem:[#allocation8 + $0x44] sm:$0xf0]  ;;  %v5537_v15 = vld [vmem:[#allocation8 + $0xb5c] sm:$0xf]  ;;  %v5097_v53 = vld [vmem:[#allocation8 + $0xb88] sm:$0xf0] }
 0x1d6   : > { %v2808_v60 = vpop.f32.mrf.mxu2  ;;  %v2821_v61 = vpop.f32.mrf.mxu3  ;;  %v3656_v31 = vor.u32 %v5183_v12, %v3655_v9  ;;  %v5100_v63 = vor.u32 %v5537_v15, %v5097_v53  ;;  %v5525_v9 = vld [vmem:[#allocation8 + $0xafc] sm:$0xf]  ;;  %v4905_v15 = vld [vmem:[#allocation8 + $0xa08] sm:$0xf0] }
 0x1d7   : > { %v2832_v6 = vpop.f32.mrf.mxu0  ;;  %v2845_v7 = vpop.f32.mrf.mxu1 }
 0x1d8   : > { %3086 = vmatpush.bf16.msra.mxu0 %v3848_v21  ;;  %3099 = vmatpush.bf16.msra.mxu1 %v4232_v22  ;;  %v2833_v16 = vadd.f32 %v2832_v6, %v828_v59  ;;  %v5375_v21 = vld [vmem:[#allocation8 + $0x644] sm:$0xf0]  ;;  %v4807_v22 = vld [vmem:[#allocation8 + $0x918] sm:$0xf]  ;;  %v4281_v59 = vld [vmem:[#allocation8 + $0x528] sm:$0xf0] }
 0x1d9   : > { %3112 = vmatpush.bf16.msra.mxu2 %v4616_v25  ;;  %3125 = vmatpush.bf16.msra.mxu3 %v5000_v26  ;;  %v3993_v25 = vld [vmem:[#allocation8 + $0x2e8] sm:$0xf0]  ;;  %v2807_v26 = vadd.f32 %v6207_v29, %v2794_v14  ;;  %v4424_v39 = vor.u32 %v5375_v21, %v4423_v35  ;;  %v5429_v6 = vld [vmem:[#allocation8 + $0x7fc] sm:$0xf]  ;;  %v4284_v12 = vor.u32 %v5333_v58, %v4281_v59 }
 0x1da   : > { %v2846_v38 = vadd.f32 %v2845_v7, %v2833_v16  ;;  %v4665_v7 = vld [vmem:[#allocation8 + $0x828] sm:$0xf0]  ;;  %v5225_v14 = vld [vmem:[#allocation8 + $0x19c] sm:$0xf] }
 0x1db   : > { %v2820_v44 = vadd.f32 %v6209_v30, %v2807_v26  ;;  %v4668_v16 = vor.u32 %v5429_v6, %v4665_v7  ;;  %v5321_v21 = vld [vmem:[#allocation8 + $0x49c] sm:$0xf]  ;;  %v5001_v26 = vld [vmem:[#allocation8 + $0xac8] sm:$0xf0] }
 0x1dc   : > { %3087 = vmatpush.bf16.msra.mxu0 %v3800_v41  ;;  %3100 = vmatpush.bf16.msra.mxu1 %v4184_v0  ;;  %v4808_v41 = vor.u32 %v5471_v23, %v4807_v22  ;;  %v3996_v0 = vor.u32 %v5261_v24, %v3993_v25  ;;  %v4233_v22 = vld [vmem:[#allocation8 + $0x4c8] sm:$0xf0]  ;;  %v5417_v23 = vld [vmem:[#allocation8 + $0x79c] sm:$0xf] }
 0x1dd   : > { %3113 = vmatpush.bf16.msra.mxu2 %v4568_v42  ;;  %3126 = vmatpush.bf16.msra.mxu3 %v4952_v43  ;;  %v5249_v42 = vld [vmem:[#allocation8 + $0x25c] sm:$0xf]  ;;  %v3945_v43 = vld [vmem:[#allocation8 + $0x288] sm:$0xf0]  ;;  %v3395_v60 = vmul.f32 0.088388346, %v2820_v44 }
 0x1de   : > { %v2858_v2 = vpop.f32.mrf.mxu2  ;;  %v2871_v29 = vpop.f32.mrf.mxu3  ;;  %v3948_v30 = vor.u32 %v5249_v42, %v3945_v43  ;;  %v4617_v24 = vld [vmem:[#allocation8 + $0x7c8] sm:$0xf0]  ;;  %v5513_v25 = vld [vmem:[#allocation8 + $0xa9c] sm:$0xf] }
 0x1df   : > { %v2859_v46 = vadd.f32 %v2858_v2, %v2846_v38  ;;  %v2834_v47 = vpop.f32.mrf.mxu0  ;;  %v2847_v48 = vpop.f32.mrf.mxu1  ;;  %v4620_v36 = vor.u32 %v5417_v23, %v4617_v24  ;;  %v5004_v37 = vor.u32 %v5513_v25, %v5001_v26  ;;  %v5309_v38 = vld [vmem:[#allocation8 + $0x43c] sm:$0xf]  ;;  %v4953_v2 = vld [vmem:[#allocation8 + $0xa68] sm:$0xf0]  ;;  %v3999_v24 = vld [vmem:[#allocation8 + $0x2c0] sm:$0xf] }
 0x1e0   : > { %3088 = vmatpush.bf16.msra.mxu0 %v3752_v50  ;;  %3101 = vmatpush.bf16.msra.mxu1 %v4136_v51  ;;  %v4329_v50 = vld [vmem:[#allocation8 + $0x588] sm:$0xf0]  ;;  %v5441_v51 = vld [vmem:[#allocation8 + $0x85c] sm:$0xf]  ;;  %v5268_v25 = vld [vmem:[#allocation8 + $0x2ec] sm:$0xf0] }
 0x1e1   : > { %3114 = vmatpush.bf16.msra.mxu2 %v4520_v55  ;;  %3127 = vmatpush.bf16.msra.mxu3 %v4904_v56  ;;  %v2872_v54 = vadd.f32 %v2871_v29, %v2859_v46  ;;  %v5237_v55 = vld [vmem:[#allocation8 + $0x1fc] sm:$0xf]  ;;  %v4332_v56 = vor.u32 %v5345_v49, %v4329_v50  ;;  %v4716_v62 = vor.u32 %v5441_v51, %v4713_v52  ;;  %v3753_v44 = vld [vmem:[#allocation8 + $0x108] sm:$0xf0]  ;;  %v4383_v26 = vld [vmem:[#allocation8 + $0x5c0] sm:$0xf] }
 0x1e2   : > { %v5201_v43 = vld [vmem:[#allocation8 + $0xdc] sm:$0xf]  ;;  %v4137_v47 = vld [vmem:[#allocation8 + $0x408] sm:$0xf0] }
 0x1e3   : > { %v3396_v61 = vmul.f32 0.088388346, %v2872_v54  ;;  %v5297_v46 = vld [vmem:[#allocation8 + $0x3dc] sm:$0xf]  ;;  %v4521_v51 = vld [vmem:[#allocation8 + $0x708] sm:$0xf0] }
 0x1e4   : > { %3089 = vmatpush.bf16.msra.mxu0 %v3704_v10  ;;  %3102 = vmatpush.bf16.msra.mxu1 %v4088_v11  ;;  %v5049_v10 = vld [vmem:[#allocation8 + $0xb28] sm:$0xf0]  ;;  %v5393_v48 = vld [vmem:[#allocation8 + $0x6dc] sm:$0xf] }
 0x1e5   : > { %3115 = vmatpush.bf16.msra.mxu2 %v4472_v3  ;;  %3128 = vmatpush.bf16.msra.mxu3 %v4856_v34  ;;  %v3399_v11 = vpack.c.bf16 %v3396_v61, %v3395_v60  ;;  %v3900_v3 = vor.u32 %v5237_v55, %v3897_v57  ;;  %v3849_v34 = vld [vmem:[#allocation8 + $0x1c8] sm:$0xf0]  ;;  %v5052_v35 = vor.u32 %v5525_v9, %v5049_v10  ;;  %v5489_v52 = vld [vmem:[#allocation8 + $0x9dc] sm:$0xf] }
 0x1e6   : > { %v2860_v13 = vpop.f32.mrf.mxu2  ;;  %v2873_v33 = vpop.f32.mrf.mxu3  ;;  %v3852_v8 = vor.u32 %v5225_v14, %v3849_v34  ;;  %v3756_v55 = vor.u32 %v5201_v43, %v3753_v44  ;;  %v3705_v57 = vld [vmem:[#allocation8 + $0xa8] sm:$0xf0]  ;;  %v4524_v58 = vor.u32 %v5393_v48, %v4521_v51  ;;  %v4908_v59 = vor.u32 %v5489_v52, %v4905_v15  ;;  %v5285_v60 = vld [vmem:[#allocation8 + $0x37c] sm:$0xf]  ;;  %v5103_v48 = vld [vmem:[#allocation8 + $0xb60] sm:$0xf] }
 0x1e7   : > { %3401 = vst [vmem:[%s6224_s8] sm:$0xff] %v3399_v11  ;;  %v4089_v61 = vld [vmem:[#allocation8 + $0x3a8] sm:$0xf0]  ;;  %v5477_v6 = vld [vmem:[#allocation8 + $0x97c] sm:$0xf]  ;;  %v5544_v51 = vld [vmem:[#allocation8 + $0xb8c] sm:$0xf0] }
 0x1e8   : > { %3090 = vmatpush.bf16.msra.mxu0 %v3656_v31  ;;  %3103 = vmatpush.bf16.msra.mxu1 %v4040_v5  ;;  %v6227_v27 = vpop.f32.mrf.mxu0  ;;  %v6229_v28 = vpop.f32.mrf.mxu1  ;;  %v4236_v31 = vor.u32 %v5321_v21, %v4233_v22  ;;  %v5213_v5 = vld [vmem:[#allocation8 + $0x13c] sm:$0xf]  ;;  %v4857_v7 = vld [vmem:[#allocation8 + $0x9a8] sm:$0xf0]  ;;  %v4092_v11 = vor.u32 %v5285_v60, %v4089_v61  ;;  %v5436_v60 = vld [vmem:[#allocation8 + $0x82c] sm:$0xf0] }
 0x1e9   : > { %3116 = vmatpush.bf16.msra.mxu2 %v4424_v39  ;;  %3129 = vmatpush.bf16.msra.mxu3 %v4808_v41  ;;  %v4185_v39 = vld [vmem:[#allocation8 + $0x468] sm:$0xf0]  ;;  %v5405_v41 = vld [vmem:[#allocation8 + $0x73c] sm:$0xf]  ;;  %v3804_v29 = vor.u32 %v5213_v5, %v3801_v32  ;;  %v4860_v14 = vor.u32 %v5477_v6, %v4857_v7  ;;  %v5055_v61 = vld [vmem:[#allocation8 + $0xb00] sm:$0xf] }
 0x1ea   : > { %v4188_v42 = vor.u32 %v5309_v38, %v4185_v39  ;;  %v5177_v9 = vld [vmem:[#allocation8 + $0x1c] sm:$0xf]  ;;  %v4041_v13 = vld [vmem:[#allocation8 + $0x348] sm:$0xf0]  ;;  %v5556_v38 = vld [vmem:[#allocation8 + $0xbec] sm:$0xf0] }
 0x1eb   : > { %3091 = vmatmul.bf16.vlgmr.msra.gmra.mxu0 %v6169_v17  ;;  %3104 = vmatmul.bf16.vlgmr.msra.gmra.mxu1 %v6171_v40  ;;  %v5369_v34 = vld [vmem:[#allocation8 + $0x61c] sm:$0xf]  ;;  %v4809_v23 = vld [vmem:[#allocation8 + $0x948] sm:$0xf0]  ;;  %v830_v7 = vperm.slane %v6205_v20, 3 }
 0x1ec   : > { %3135 = vmatpush.bf16.msrb.mxu0 %v3996_v0  ;;  %3148 = vmatpush.bf16.msrb.mxu1 %v4380_v1  ;;  %v4569_v0 = vld [vmem:[#allocation8 + $0x768] sm:$0xf0]  ;;  %v5501_v1 = vld [vmem:[#allocation8 + $0xa3c] sm:$0xf] }
 0x1ed   : > { %3161 = vmatpush.bf16.msrb.mxu2 %v4764_v4  ;;  %3174 = vmatpush.bf16.msrb.mxu3 %v5148_v45  ;;  %v4572_v4 = vor.u32 %v5405_v41, %v4569_v0  ;;  %v4956_v45 = vor.u32 %v5501_v1, %v4953_v2  ;;  %v829_v0 = vperm.slane %v6205_v20, 2  ;;  %v4000_v1 = vor.u32 %v5268_v25, %v3999_v24  ;;  %v3807_v24 = vld [vmem:[#allocation8 + $0x140] sm:$0xf]  ;;  %v5220_v25 = vld [vmem:[#allocation8 + $0x16c] sm:$0xf0] }
 0x1ee   : > { %3117 = vmatmul.bf16.vlgmr.msra.gmra.mxu2 %v6173_v18  ;;  %3130 = vmatmul.bf16.vlgmr.msra.gmra.mxu3 %v6175_v19 }
 0x1f0   : > { %3136 = vmatpush.bf16.msrb.mxu0 %v3948_v30  ;;  %3149 = vmatpush.bf16.msrb.mxu1 %v4332_v56  ;;  %v2886_v53 = vpop.f32.mrf.mxu0  ;;  %v2899_v54 = vpop.f32.mrf.mxu1  ;;  %v4140_v30 = vor.u32 %v5297_v46, %v4137_v47  ;;  %v5189_v56 = vld [vmem:[#allocation8 + $0x7c] sm:$0xf]  ;;  %v4719_v46 = vld [vmem:[#allocation8 + $0x860] sm:$0xf]  ;;  %v5448_v47 = vld [vmem:[#allocation8 + $0x88c] sm:$0xf0] }
 0x1f1   : > { %3162 = vmatpush.bf16.msrb.mxu2 %v4716_v62  ;;  %3175 = vmatpush.bf16.msrb.mxu3 %v5100_v63  ;;  %v6231_v49 = vpop.f32.mrf.mxu2  ;;  %v6233_v50 = vpop.f32.mrf.mxu3  ;;  %v5381_v62 = vld [vmem:[#allocation8 + $0x67c] sm:$0xf]  ;;  %v4473_v63 = vld [vmem:[#allocation8 + $0x6a8] sm:$0xf0]  ;;  %v3708_v10 = vor.u32 %v5189_v56, %v3705_v57  ;;  %v3903_v53 = vld [vmem:[#allocation8 + $0x200] sm:$0xf] }
 0x1f2   : > { %v4476_v33 = vor.u32 %v5381_v62, %v4473_v63  ;;  %v5244_v54 = vld [vmem:[#allocation8 + $0x22c] sm:$0xf0]  ;;  %v4287_v56 = vld [vmem:[#allocation8 + $0x500] sm:$0xf] }
 0x1f3   : > { %v5340_v57 = vld [vmem:[#allocation8 + $0x52c] sm:$0xf0]  ;;  %v3904_v63 = vor.u32 %v5244_v54, %v3903_v53 }
 0x1f4   : > { %3137 = vmatpush.bf16.msrb.mxu0 %v3900_v3  ;;  %3150 = vmatpush.bf16.msrb.mxu1 %v4284_v12  ;;  %v3657_v3 = vld [vmem:[#allocation8 + $0x48] sm:$0xf0]  ;;  %v5273_v12 = vld [vmem:[#allocation8 + $0x31c] sm:$0xf]  ;;  %v5532_v62 = vld [vmem:[#allocation8 + $0xb2c] sm:$0xf0]  ;;  %v4288_v6 = vor.u32 %v5340_v57, %v4287_v56 }
 0x1f5   : > { %3163 = vmatpush.bf16.msrb.mxu2 %v4668_v16  ;;  %3176 = vmatpush.bf16.msrb.mxu3 %v5052_v35  ;;  %v4425_v16 = vld [vmem:[#allocation8 + $0x648] sm:$0xf0]  ;;  %v5465_v35 = vld [vmem:[#allocation8 + $0x91c] sm:$0xf]  ;;  %v3660_v5 = vor.u32 %v5177_v9, %v3657_v3  ;;  %v4044_v32 = vor.u32 %v5273_v12, %v4041_v13  ;;  %v3855_v9 = vld [vmem:[#allocation8 + $0x1a0] sm:$0xf] }
 0x1f6   : > { %v4428_v39 = vor.u32 %v5369_v34, %v4425_v16  ;;  %v4812_v41 = vor.u32 %v5465_v35, %v4809_v23  ;;  %v4239_v3 = vld [vmem:[#allocation8 + $0x4a0] sm:$0xf]  ;;  %v5328_v12 = vld [vmem:[#allocation8 + $0x4cc] sm:$0xf0] }
 0x1f7   : > { %v4623_v13 = vld [vmem:[#allocation8 + $0x7a0] sm:$0xf]  ;;  %v5520_v16 = vld [vmem:[#allocation8 + $0xacc] sm:$0xf0]  ;;  %v4240_v23 = vor.u32 %v5328_v12, %v4239_v3 }
 0x1f8   : > { %3138 = vmatpush.bf16.msrb.mxu0 %v3852_v8  ;;  %3151 = vmatpush.bf16.msrb.mxu1 %v4236_v31  ;;  %v5364_v8 = vld [vmem:[#allocation8 + $0x5ec] sm:$0xf0]  ;;  %v4767_v31 = vld [vmem:[#allocation8 + $0x8c0] sm:$0xf] }
 0x1f9   : > { %3164 = vmatpush.bf16.msrb.mxu2 %v4620_v36  ;;  %3177 = vmatpush.bf16.msrb.mxu3 %v5004_v37  ;;  %v2912_v21 = vpop.f32.mrf.mxu2  ;;  %v2925_v22 = vpop.f32.mrf.mxu3  ;;  %v5460_v36 = vld [vmem:[#allocation8 + $0x8ec] sm:$0xf0]  ;;  %v5151_v37 = vld [vmem:[#allocation8 + $0xbc0] sm:$0xf]  ;;  %v4384_v2 = vor.u32 %v5364_v8, %v4383_v26 }
 0x1fa   : > { %v4768_v43 = vor.u32 %v5460_v36, %v4767_v31  ;;  %v5152_v44 = vor.u32 %v5556_v38, %v5151_v37  ;;  %v5007_v34 = vld [vmem:[#allocation8 + $0xaa0] sm:$0xf]  ;;  %v5412_v36 = vld [vmem:[#allocation8 + $0x76c] sm:$0xf0] }
 0x1fb   : > { %v5008_v31 = vor.u32 %v5520_v16, %v5007_v34  ;;  %v4959_v37 = vld [vmem:[#allocation8 + $0xa40] sm:$0xf]  ;;  %v5508_v38 = vld [vmem:[#allocation8 + $0xa6c] sm:$0xf0] }
 0x1fc   : > { %3139 = vmatpush.bf16.msrb.mxu0 %v3804_v29  ;;  %3152 = vmatpush.bf16.msrb.mxu1 %v4188_v42  ;;  %v3951_v29 = vld [vmem:[#allocation8 + $0x260] sm:$0xf]  ;;  %v5256_v42 = vld [vmem:[#allocation8 + $0x28c] sm:$0xf0] }
 0x1fd   : > { %3165 = vmatpush.bf16.msrb.mxu2 %v4572_v4  ;;  %3178 = vmatpush.bf16.msrb.mxu3 %v4956_v45  ;;  %v4335_v4 = vld [vmem:[#allocation8 + $0x560] sm:$0xf]  ;;  %v5352_v45 = vld [vmem:[#allocation8 + $0x58c] sm:$0xf0]  ;;  %v3952_v52 = vor.u32 %v5256_v42, %v3951_v29  ;;  %v4960_v42 = vor.u32 %v5508_v38, %v4959_v37  ;;  %v5153_v37 = vld [vmem:[#allocation8 + $0xbf0] sm:$0xf0] }
 0x1fe   : > { %v4336_v15 = vor.u32 %v5352_v45, %v4335_v4  ;;  %v4527_v4 = vld [vmem:[#allocation8 + $0x6e0] sm:$0xf]  ;;  %v5196_v56 = vld [vmem:[#allocation8 + $0xac] sm:$0xf0] }
 0x1ff   : > { %v4047_v12 = vld [vmem:[#allocation8 + $0x320] sm:$0xf] }
 0x200   : > { %3140 = vmatpush.bf16.msrb.mxu0 %v3756_v55  ;;  %3153 = vmatpush.bf16.msrb.mxu1 %v4140_v30  ;;  %v4720_v55 = vor.u32 %v5448_v47, %v4719_v46  ;;  %v5104_v30 = vor.u32 %v5544_v51, %v5103_v48  ;;  %v5400_v47 = vld [vmem:[#allocation8 + $0x70c] sm:$0xf0]  ;;  %v4911_v48 = vld [vmem:[#allocation8 + $0x9e0] sm:$0xf] }
 0x201   : > { %3166 = vmatpush.bf16.msrb.mxu2 %v4524_v58  ;;  %3179 = vmatpush.bf16.msrb.mxu3 %v4908_v59  ;;  %v4671_v58 = vld [vmem:[#allocation8 + $0x800] sm:$0xf]  ;;  %v2885_v59 = vadd.f32 %v6227_v27, %v829_v0  ;;  %v5496_v51 = vld [vmem:[#allocation8 + $0xa0c] sm:$0xf0] }
 0x202   : > { %v4672_v27 = vor.u32 %v5436_v60, %v4671_v58  ;;  %v3759_v0 = vld [vmem:[#allocation8 + $0xe0] sm:$0xf]  ;;  %v4528_v58 = vor.u32 %v5400_v47, %v4527_v4  ;;  %v4721_v4 = vld [vmem:[#allocation8 + $0x890] sm:$0xf0] }
 0x203   : > { %v4095_v60 = vld [vmem:[#allocation8 + $0x380] sm:$0xf] }
 0x204   : > { %3141 = vmatpush.bf16.msrb.mxu0 %v3708_v10  ;;  %3154 = vmatpush.bf16.msrb.mxu1 %v4092_v11  ;;  %v5232_v10 = vld [vmem:[#allocation8 + $0x1cc] sm:$0xf0]  ;;  %v5056_v11 = vor.u32 %v5532_v62, %v5055_v61  ;;  %v4479_v62 = vld [vmem:[#allocation8 + $0x680] sm:$0xf] }
 0x205   : > { %3167 = vmatpush.bf16.msrb.mxu2 %v4476_v33  ;;  %3180 = vmatpush.bf16.msrb.mxu3 %v4860_v14  ;;  %v2898_v33 = vadd.f32 %v6229_v28, %v2885_v59  ;;  %v5424_v14 = vld [vmem:[#allocation8 + $0x7cc] sm:$0xf0]  ;;  %v3856_v20 = vor.u32 %v5232_v10, %v3855_v9  ;;  %v4912_v59 = vor.u32 %v5496_v51, %v4911_v48  ;;  %v3663_v10 = vld [vmem:[#allocation8 + $0x20] sm:$0xf]  ;;  %v5238_v51 = vld [vmem:[#allocation8 + $0x204] sm:$0xf] }
 0x206   : > { %v4624_v8 = vor.u32 %v5424_v14, %v4623_v13  ;;  %v5316_v28 = vld [vmem:[#allocation8 + $0x46c] sm:$0xf0] }
 0x207   : > { %v2911_v22 = vadd.f32 %v6231_v49, %v2898_v33  ;;  %v3808_v49 = vor.u32 %v5220_v25, %v3807_v24  ;;  %v5292_v61 = vld [vmem:[#allocation8 + $0x3ac] sm:$0xf0]  ;;  %v4431_v33 = vld [vmem:[#allocation8 + $0x620] sm:$0xf]  ;;  %v5262_v24 = vld [vmem:[#allocation8 + $0x2c4] sm:$0xf] }
 0x208   : > { %3142 = vmatpush.bf16.msrb.mxu0 %v3660_v5  ;;  %3155 = vmatpush.bf16.msrb.mxu1 %v4044_v32  ;;  %v2936_v35 = vpop.f32.mrf.mxu0  ;;  %v2949_v21 = vpop.f32.mrf.mxu1  ;;  %v4191_v5 = vld [vmem:[#allocation8 + $0x440] sm:$0xf]  ;;  %v4096_v3 = vor.u32 %v5292_v61, %v4095_v60  ;;  %v5280_v13 = vld [vmem:[#allocation8 + $0x34c] sm:$0xf0]  ;;  %v4001_v25 = vld [vmem:[#allocation8 + $0x2f0] sm:$0xf0] }
 0x209   : > { %3168 = vmatpush.bf16.msrb.mxu2 %v4428_v39  ;;  %3181 = vmatpush.bf16.msrb.mxu3 %v4812_v41  ;;  %v2937_v26 = vadd.f32 %v2936_v35, %v830_v7  ;;  %v4575_v32 = vld [vmem:[#allocation8 + $0x740] sm:$0xf]  ;;  %v2924_v39 = vadd.f32 %v6233_v50, %v2911_v22  ;;  %v4192_v41 = vor.u32 %v5316_v28, %v4191_v5  ;;  %v5484_v7 = vld [vmem:[#allocation8 + $0x9ac] sm:$0xf0]  ;;  %v5226_v60 = vld [vmem:[#allocation8 + $0x1a4] sm:$0xf] }
 0x20a   : > { %v4576_v29 = vor.u32 %v5412_v36, %v4575_v32  ;;  %v5376_v35 = vld [vmem:[#allocation8 + $0x64c] sm:$0xf0]  ;;  %v4048_v28 = vor.u32 %v5280_v13, %v4047_v12  ;;  %v4769_v32 = vld [vmem:[#allocation8 + $0x8f0] sm:$0xf0]  ;;  %v5550_v36 = vld [vmem:[#allocation8 + $0xbc4] sm:$0xf] }
 0x20b   : > { %3143 = vmatmul.bf16.vlgmr.msrb.gmra.mxu0 %v6169_v17  ;;  %3156 = vmatmul.bf16.vlgmr.msrb.gmra.mxu1 %v6171_v40  ;;  %v3397_v53 = vmul.f32 0.088388346, %v2924_v39  ;;  %v5472_v22 = vld [vmem:[#allocation8 + $0x94c] sm:$0xf0]  ;;  %v4432_v38 = vor.u32 %v5376_v35, %v4431_v33  ;;  %v3857_v61 = vld [vmem:[#allocation8 + $0x1d0] sm:$0xf0] }
 0x20c   : > { %3187 = vmatpush.bf16.msra.mxu0 %v4000_v1  ;;  %3200 = vmatpush.bf16.msra.mxu1 %v4384_v2  ;;  %v5208_v1 = vld [vmem:[#allocation8 + $0x10c] sm:$0xf0]  ;;  %v2950_v2 = vadd.f32 %v2949_v21, %v2937_v26  ;;  %v4815_v21 = vld [vmem:[#allocation8 + $0x920] sm:$0xf]  ;;  %v5358_v26 = vld [vmem:[#allocation8 + $0x5c4] sm:$0xf]  ;;  %v3860_v13 = vor.u32 %v5226_v60, %v3857_v61 }
 0x20d   : > { %3213 = vmatpush.bf16.msra.mxu2 %v4768_v43  ;;  %3226 = vmatpush.bf16.msra.mxu3 %v5152_v44  ;;  %v4143_v43 = vld [vmem:[#allocation8 + $0x3e0] sm:$0xf]  ;;  %v5304_v44 = vld [vmem:[#allocation8 + $0x40c] sm:$0xf0]  ;;  %v3760_v54 = vor.u32 %v5208_v1, %v3759_v0  ;;  %v4816_v39 = vor.u32 %v5472_v22, %v4815_v21  ;;  %v5250_v0 = vld [vmem:[#allocation8 + $0x264] sm:$0xf] }
 0x20e   : > { %3169 = vmatmul.bf16.vlgmr.msrb.gmra.mxu2 %v6173_v18  ;;  %3182 = vmatmul.bf16.vlgmr.msrb.gmra.mxu3 %v6175_v19  ;;  %v3953_v1 = vld [vmem:[#allocation8 + $0x290] sm:$0xf0]  ;;  %v5310_v21 = vld [vmem:[#allocation8 + $0x444] sm:$0xf] }
 0x20f   : > { %v3956_v47 = vor.u32 %v5250_v0, %v3953_v1  ;;  %v4193_v22 = vld [vmem:[#allocation8 + $0x470] sm:$0xf0]  ;;  %v5490_v0 = vld [vmem:[#allocation8 + $0x9e4] sm:$0xf] }
 0x210   : > { %3188 = vmatpush.bf16.msra.mxu0 %v3952_v52  ;;  %3201 = vmatpush.bf16.msra.mxu1 %v4336_v15  ;;  %v2938_v52 = vpop.f32.mrf.mxu0  ;;  %v2951_v15 = vpop.f32.mrf.mxu1  ;;  %v4913_v1 = vld [vmem:[#allocation8 + $0xa10] sm:$0xf0]  ;;  %v5370_v60 = vld [vmem:[#allocation8 + $0x624] sm:$0xf] }
 0x211   : > { %3214 = vmatpush.bf16.msra.mxu2 %v4720_v55  ;;  %3227 = vmatpush.bf16.msra.mxu3 %v5104_v30  ;;  %v2962_v45 = vpop.f32.mrf.mxu2  ;;  %v2975_v46 = vpop.f32.mrf.mxu3  ;;  %v4144_v55 = vor.u32 %v5304_v44, %v4143_v43  ;;  %v3711_v30 = vld [vmem:[#allocation8 + $0x80] sm:$0xf]  ;;  %v4337_v43 = vld [vmem:[#allocation8 + $0x590] sm:$0xf0]  ;;  %v5442_v44 = vld [vmem:[#allocation8 + $0x864] sm:$0xf] }
 0x212   : > { %v2963_v50 = vadd.f32 %v2962_v45, %v2950_v2  ;;  %v5538_v45 = vld [vmem:[#allocation8 + $0xb64] sm:$0xf]  ;;  %v4724_v52 = vor.u32 %v5442_v44, %v4721_v4  ;;  %v3713_v4 = vld [vmem:[#allocation8 + $0xb0] sm:$0xf0] }
 0x213   : > { %v5190_v44 = vld [vmem:[#allocation8 + $0x84] sm:$0xf]  ;;  %v4433_v61 = vld [vmem:[#allocation8 + $0x650] sm:$0xf0] }
 0x214   : > { %3189 = vmatpush.bf16.msra.mxu0 %v3904_v63  ;;  %3202 = vmatpush.bf16.msra.mxu1 %v4288_v6  ;;  %v2976_v57 = vadd.f32 %v2975_v46, %v2963_v50  ;;  %v5388_v63 = vld [vmem:[#allocation8 + $0x6ac] sm:$0xf0]  ;;  %v4863_v6 = vld [vmem:[#allocation8 + $0x980] sm:$0xf]  ;;  %v5105_v46 = vld [vmem:[#allocation8 + $0xb90] sm:$0xf0] }
 0x215   : > { %3215 = vmatpush.bf16.msra.mxu2 %v4672_v27  ;;  %3228 = vmatpush.bf16.msra.mxu3 %v5056_v11  ;;  %v5184_v27 = vld [vmem:[#allocation8 + $0x4c] sm:$0xf0]  ;;  %v3712_v11 = vor.u32 %v5196_v56, %v3711_v30  ;;  %v4480_v34 = vor.u32 %v5388_v63, %v4479_v62  ;;  %v4864_v16 = vor.u32 %v5484_v7, %v4863_v6  ;;  %v3905_v50 = vld [vmem:[#allocation8 + $0x230] sm:$0xf0]  ;;  %v5526_v56 = vld [vmem:[#allocation8 + $0xb04] sm:$0xf] }
 0x216   : > { %v3398_v9 = vmul.f32 0.088388346, %v2976_v57  ;;  %v3664_v5 = vor.u32 %v5184_v27, %v3663_v10  ;;  %v5108_v15 = vor.u32 %v5538_v45, %v5105_v46  ;;  %v4673_v30 = vld [vmem:[#allocation8 + $0x830] sm:$0xf0]  ;;  %v5322_v6 = vld [vmem:[#allocation8 + $0x4a4] sm:$0xf]  ;;  %v4916_v46 = vor.u32 %v5490_v0, %v4913_v1 }
 0x217   : > { %v5057_v57 = vld [vmem:[#allocation8 + $0xb30] sm:$0xf0]  ;;  %v5514_v27 = vld [vmem:[#allocation8 + $0xaa4] sm:$0xf] }
 0x218   : > { %3190 = vmatpush.bf16.msra.mxu0 %v3856_v20  ;;  %3203 = vmatpush.bf16.msra.mxu1 %v4240_v23  ;;  %v3400_v14 = vpack.c.bf16 %v3398_v9, %v3397_v53  ;;  %v5334_v53 = vld [vmem:[#allocation8 + $0x504] sm:$0xf]  ;;  %v5060_v63 = vor.u32 %v5526_v56, %v5057_v57  ;;  %v4241_v7 = vld [vmem:[#allocation8 + $0x4d0] sm:$0xf0] }
 0x219   : > { %3216 = vmatpush.bf16.msra.mxu2 %v4624_v8  ;;  %3229 = vmatpush.bf16.msra.mxu3 %v5008_v31  ;;  %v2964_v20 = vpop.f32.mrf.mxu2  ;;  %v2977_v23 = vpop.f32.mrf.mxu3  ;;  %v4385_v8 = vld [vmem:[#allocation8 + $0x5f0] sm:$0xf0]  ;;  %v5454_v31 = vld [vmem:[#allocation8 + $0x8c4] sm:$0xf]  ;;  %v4244_v33 = vor.u32 %v5322_v6, %v4241_v7 }
 0x21a   : > { %3402 = vst [vmem:[%s6224_s8 + $0x8] sm:$0xff] %v3400_v14  ;;  %v4772_v2 = vor.u32 %v5454_v31, %v4769_v32  ;;  %v5418_v9 = vld [vmem:[#allocation8 + $0x7a4] sm:$0xf]  ;;  %v4625_v10 = vld [vmem:[#allocation8 + $0x7d0] sm:$0xf0]  ;;  %s5846_s8 = scalar_lea.hbm %s6360_s5, 32 }
 0x21b   : > { %v5214_v14 = vld [vmem:[#allocation8 + $0x144] sm:$0xf]  ;;  %v4577_v23 = vld [vmem:[#allocation8 + $0x770] sm:$0xf0]  ;;  %p5848_p10 = scmp.lt.s32.totalorder %s5846_s8, %s5842_s27 }
 0x21c   : > { %3191 = vmatpush.bf16.msra.mxu0 %v3808_v49  ;;  %3204 = vmatpush.bf16.msra.mxu1 %v4192_v41  ;;  %v4004_v49 = vor.u32 %v5262_v24, %v4001_v25  ;;  %v4388_v41 = vor.u32 %v5358_v26, %v4385_v8  ;;  %v5406_v20 = vld [vmem:[#allocation8 + $0x744] sm:$0xf]  ;;  %v4961_v25 = vld [vmem:[#allocation8 + $0xa70] sm:$0xf0]  ;;  %v4196_v8 = vor.u32 %v5310_v21, %v4193_v22 }
 0x21d   : > { %3217 = vmatpush.bf16.msra.mxu2 %v4576_v29  ;;  %3230 = vmatpush.bf16.msra.mxu3 %v4960_v42  ;;  %v5156_v29 = vor.u32 %v5550_v36, %v5153_v37  ;;  %v5346_v42 = vld [vmem:[#allocation8 + $0x564] sm:$0xf]  ;;  %v4145_v37 = vld [vmem:[#allocation8 + $0x410] sm:$0xf0]  ;;  %v4436_v21 = vor.u32 %v5370_v60, %v4433_v61  ;;  %v5015_v60 = vld [vmem:[#allocation8 + $0xaa8] sm:$0xf]  ;;  %p5849_p12 = por %p5848_p10, %p5847_p9 }
 0x21e   : > { %v4340_v48 = vor.u32 %v5346_v42, %v4337_v43  ;;  %v5502_v24 = vld [vmem:[#allocation8 + $0xa44] sm:$0xf]  ;;  %v4049_v57 = vld [vmem:[#allocation8 + $0x350] sm:$0xf0]  ;;  %v5521_v61 = vld [vmem:[#allocation8 + $0xad4] sm:$0xf0] }
 0x21f   : > { %v5202_v31 = vld [vmem:[#allocation8 + $0xe4] sm:$0xf]  ;;  %v4964_v32 = vor.u32 %v5502_v24, %v4961_v25  ;;  %v4817_v7 = vld [vmem:[#allocation8 + $0x950] sm:$0xf0]  ;;  %v3959_v24 = vld [vmem:[#allocation8 + $0x268] sm:$0xf]  ;;  %p5850_p13 = pnand %p5849_p12, %p5845_p8 }
 0x220   : > { %3192 = vmatpush.bf16.msra.mxu0 %v3760_v54  ;;  %3205 = vmatpush.bf16.msra.mxu1 %v4144_v55  ;;  %v4289_v54 = vld [vmem:[#allocation8 + $0x530] sm:$0xf0]  ;;  %v5430_v55 = vld [vmem:[#allocation8 + $0x804] sm:$0xf]  ;;  %v5257_v25 = vld [vmem:[#allocation8 + $0x294] sm:$0xf0] }
 0x221   : > { %3218 = vmatpush.bf16.msra.mxu2 %v4528_v58  ;;  %3231 = vmatpush.bf16.msra.mxu3 %v4912_v59  ;;  %v3908_v58 = vor.u32 %v5238_v51, %v3905_v50  ;;  %v4292_v59 = vor.u32 %v5334_v53, %v4289_v54  ;;  %v4676_v62 = vor.u32 %v5430_v55, %v4673_v30  ;;  %v5298_v36 = vld [vmem:[#allocation8 + $0x3e4] sm:$0xf]  ;;  %v4481_v50 = vld [vmem:[#allocation8 + $0x6b0] sm:$0xf0] }
 0x222   : > { %v4148_v43 = vor.u32 %v5298_v36, %v4145_v37  ;;  %v5382_v51 = vld [vmem:[#allocation8 + $0x684] sm:$0xf]  ;;  %v3716_v54 = vor.u32 %v5190_v44, %v3713_v4  ;;  %v3665_v30 = vld [vmem:[#allocation8 + $0x50] sm:$0xf0]  ;;  %v5111_v36 = vld [vmem:[#allocation8 + $0xb68] sm:$0xf]  ;;  %v3960_v0 = vor.u32 %v5257_v25, %v3959_v24 }
 0x223   : > { %v5178_v53 = vld [vmem:[#allocation8 + $0x24] sm:$0xf]  ;;  %v5545_v37 = vld [vmem:[#allocation8 + $0xb94] sm:$0xf0]  ;;  %v4295_v44 = vld [vmem:[#allocation8 + $0x508] sm:$0xf] }
 0x224   : > { %3193 = vmatpush.bf16.msra.mxu0 %v3712_v11  ;;  %3206 = vmatpush.bf16.msra.mxu1 %v4096_v3  ;;  %v5009_v11 = vld [vmem:[#allocation8 + $0xad0] sm:$0xf0]  ;;  %v5274_v56 = vld [vmem:[#allocation8 + $0x324] sm:$0xf]  ;;  %v5341_v4 = vld [vmem:[#allocation8 + $0x534] sm:$0xf0] }
 0x225   : > { %3219 = vmatpush.bf16.msra.mxu2 %v4480_v34  ;;  %3232 = vmatpush.bf16.msra.mxu3 %v4864_v16  ;;  %v3809_v34 = vld [vmem:[#allocation8 + $0x170] sm:$0xf0]  ;;  %v4628_v16 = vor.u32 %v5418_v9, %v4625_v10  ;;  %v5012_v35 = vor.u32 %v5514_v27, %v5009_v11  ;;  %v4007_v9 = vld [vmem:[#allocation8 + $0x2c8] sm:$0xf]  ;;  %v5269_v10 = vld [vmem:[#allocation8 + $0x2f4] sm:$0xf0] }
 0x226   : > { %v3812_v26 = vor.u32 %v5214_v14, %v3809_v34  ;;  %v4391_v27 = vld [vmem:[#allocation8 + $0x5c8] sm:$0xf]  ;;  %v5365_v11 = vld [vmem:[#allocation8 + $0x5f4] sm:$0xf0]  ;;  %v4052_v14 = vor.u32 %v5274_v56, %v4049_v57 }
 0x227   : > { %v5461_v34 = vld [vmem:[#allocation8 + $0x8f4] sm:$0xf0]  ;;  %v4631_v57 = vld [vmem:[#allocation8 + $0x7a8] sm:$0xf] }
 0x228   : > { %3194 = vmatpush.bf16.msra.mxu0 %v3664_v5  ;;  %3207 = vmatpush.bf16.msra.mxu1 %v4048_v28  ;;  %v6250_v3 = vpop.f32.mrf.mxu0  ;;  %v6252_v12 = vpop.f32.mrf.mxu1  ;;  %v3761_v5 = vld [vmem:[#allocation8 + $0x110] sm:$0xf0]  ;;  %v4580_v28 = vor.u32 %v5406_v20, %v4577_v23  ;;  %v4008_v20 = vor.u32 %v5269_v10, %v4007_v9  ;;  %v4392_v23 = vor.u32 %v5365_v11, %v4391_v27  ;;  %v5329_v56 = vld [vmem:[#allocation8 + $0x4d4] sm:$0xf0]  ;;  %v3815_v9 = vld [vmem:[#allocation8 + $0x148] sm:$0xf] }
 0x229   : > { %3220 = vmatpush.bf16.msra.mxu2 %v4432_v38  ;;  %3233 = vmatpush.bf16.msra.mxu3 %v4816_v39  ;;  %v5394_v38 = vld [vmem:[#allocation8 + $0x6e4] sm:$0xf]  ;;  %v3764_v42 = vor.u32 %v5202_v31, %v3761_v5  ;;  %v4343_v31 = vld [vmem:[#allocation8 + $0x568] sm:$0xf]  ;;  %v5353_v5 = vld [vmem:[#allocation8 + $0x594] sm:$0xf0] }
 0x22a   : > { %v4344_v1 = vor.u32 %v5353_v5, %v4343_v31  ;;  %v5221_v10 = vld [vmem:[#allocation8 + $0x174] sm:$0xf0]  ;;  %v3767_v24 = vld [vmem:[#allocation8 + $0xe8] sm:$0xf] }
 0x22b   : > { %3195 = vmatmul.bf16.vlgmr.msra.gmra.mxu0 %v6169_v17  ;;  %3208 = vmatmul.bf16.vlgmr.msra.gmra.mxu1 %v6171_v40  ;;  %v5209_v25 = vld [vmem:[#allocation8 + $0x114] sm:$0xf0]  ;;  %v4151_v5 = vld [vmem:[#allocation8 + $0x3e8] sm:$0xf] }
 0x22c   : > { %3239 = vmatpush.bf16.msrb.mxu0 %v4004_v49  ;;  %3252 = vmatpush.bf16.msrb.mxu1 %v4388_v41  ;;  %v4529_v41 = vld [vmem:[#allocation8 + $0x710] sm:$0xf0] }
 0x22d   : > { %3265 = vmatpush.bf16.msrb.mxu2 %v4772_v2  ;;  %3278 = vmatpush.bf16.msrb.mxu3 %v5156_v29  ;;  %v4532_v45 = vor.u32 %v5394_v38, %v4529_v41  ;;  %v6258_v38 = vld [vmem:[#allocation10] sm:$0xff] }
 0x22e   : > { %3221 = vmatmul.bf16.vlgmr.msra.gmra.mxu2 %v6173_v18  ;;  %3234 = vmatmul.bf16.vlgmr.msra.gmra.mxu3 %v6175_v19  ;;  %v831_v41 = vperm.slane %v6258_v38, 4 }
 0x230   : > { %3240 = vmatpush.bf16.msrb.mxu0 %v3956_v47  ;;  %3253 = vmatpush.bf16.msrb.mxu1 %v4340_v48  ;;  %v2990_v2 = vpop.f32.mrf.mxu0  ;;  %v3003_v29 = vpop.f32.mrf.mxu1  ;;  %v5286_v47 = vld [vmem:[#allocation8 + $0x384] sm:$0xf]  ;;  %v4097_v48 = vld [vmem:[#allocation8 + $0x3b0] sm:$0xf0] }
 0x231   : > { %3266 = vmatpush.bf16.msrb.mxu2 %v4724_v52  ;;  %3279 = vmatpush.bf16.msrb.mxu3 %v5108_v15  ;;  %v6254_v39 = vpop.f32.mrf.mxu2  ;;  %v6256_v49 = vpop.f32.mrf.mxu3  ;;  %v5478_v52 = vld [vmem:[#allocation8 + $0x984] sm:$0xf]  ;;  %v4865_v15 = vld [vmem:[#allocation8 + $0x9b0] sm:$0xf0]  ;;  %v4100_v55 = vor.u32 %v5286_v47, %v4097_v48  ;;  %v3911_v2 = vld [vmem:[#allocation8 + $0x208] sm:$0xf] }
 0x232   : > { %v5245_v29 = vld [vmem:[#allocation8 + $0x234] sm:$0xf0]  ;;  %v5063_v47 = vld [vmem:[#allocation8 + $0xb08] sm:$0xf] }
 0x233   : > { %v5533_v48 = vld [vmem:[#allocation8 + $0xb34] sm:$0xf0] }
 0x234   : > { %3241 = vmatpush.bf16.msrb.mxu0 %v3908_v58  ;;  %3254 = vmatpush.bf16.msrb.mxu1 %v4292_v59  ;;  %v4484_v58 = vor.u32 %v5382_v51, %v4481_v50  ;;  %v4868_v59 = vor.u32 %v5478_v52, %v4865_v15  ;;  %v3912_v51 = vor.u32 %v5245_v29, %v3911_v2  ;;  %v832_v52 = vperm.slane %v6258_v38, 5  ;;  %v3863_v15 = vld [vmem:[#allocation8 + $0x1a8] sm:$0xf] }
 0x235   : > { %3267 = vmatpush.bf16.msrb.mxu2 %v4676_v62  ;;  %3280 = vmatpush.bf16.msrb.mxu3 %v5060_v63  ;;  %v5466_v62 = vld [vmem:[#allocation8 + $0x924] sm:$0xf]  ;;  %v4296_v50 = vor.u32 %v5341_v4, %v4295_v44  ;;  %v3719_v44 = vld [vmem:[#allocation8 + $0x88] sm:$0xf]  ;;  %v5197_v4 = vld [vmem:[#allocation8 + $0xb4] sm:$0xf0] }
 0x236   : > { %v4820_v22 = vor.u32 %v5466_v62, %v4817_v7 }
 0x238   : > { %3242 = vmatpush.bf16.msrb.mxu0 %v3860_v13  ;;  %3255 = vmatpush.bf16.msrb.mxu1 %v4244_v33  ;;  %v4775_v13 = vld [vmem:[#allocation8 + $0x8c8] sm:$0xf]  ;;  %v3668_v33 = vor.u32 %v5178_v53, %v3665_v30  ;;  %v5233_v53 = vld [vmem:[#allocation8 + $0x1d4] sm:$0xf0] }
 0x239   : > { %3268 = vmatpush.bf16.msrb.mxu2 %v4628_v16  ;;  %3281 = vmatpush.bf16.msrb.mxu3 %v5012_v35  ;;  %v3016_v63 = vpop.f32.mrf.mxu2  ;;  %v3029_v6 = vpop.f32.mrf.mxu3  ;;  %v5159_v16 = vld [vmem:[#allocation8 + $0xbc8] sm:$0xf]  ;;  %v5557_v35 = vld [vmem:[#allocation8 + $0xbf4] sm:$0xf0] }
 0x23a   : > { %v4247_v30 = vld [vmem:[#allocation8 + $0x4a8] sm:$0xf]  ;;  %v3864_v6 = vor.u32 %v5233_v53, %v3863_v15  ;;  %v5485_v53 = vld [vmem:[#allocation8 + $0x9b4] sm:$0xf0] }
 0x23b   : > { %v4248_v7 = vor.u32 %v5329_v56, %v4247_v30  ;;  %v4871_v15 = vld [vmem:[#allocation8 + $0x988] sm:$0xf]  ;;  %v5185_v56 = vld [vmem:[#allocation8 + $0x54] sm:$0xf0] }
 0x23c   : > { %3243 = vmatpush.bf16.msrb.mxu0 %v3812_v26  ;;  %3256 = vmatpush.bf16.msrb.mxu1 %v4196_v8  ;;  %v4776_v26 = vor.u32 %v5461_v34, %v4775_v13  ;;  %v5160_v8 = vor.u32 %v5557_v35, %v5159_v16  ;;  %v5016_v13 = vor.u32 %v5521_v61, %v5015_v60  ;;  %v4583_v34 = vld [vmem:[#allocation8 + $0x748] sm:$0xf]  ;;  %v5413_v16 = vld [vmem:[#allocation8 + $0x774] sm:$0xf0] }
 0x23d   : > { %3269 = vmatpush.bf16.msrb.mxu2 %v4580_v28  ;;  %3282 = vmatpush.bf16.msrb.mxu3 %v4964_v32  ;;  %v4727_v28 = vld [vmem:[#allocation8 + $0x868] sm:$0xf]  ;;  %v5449_v32 = vld [vmem:[#allocation8 + $0x894] sm:$0xf0]  ;;  %v4872_v60 = vor.u32 %v5485_v53, %v4871_v15  ;;  %v5323_v15 = vld [vmem:[#allocation8 + $0x4ac] sm:$0xf] }
 0x23e   : > { %v4967_v35 = vld [vmem:[#allocation8 + $0xa48] sm:$0xf]  ;;  %v4249_v53 = vld [vmem:[#allocation8 + $0x4d8] sm:$0xf0] }
 0x23f   : > { %v4439_v61 = vld [vmem:[#allocation8 + $0x628] sm:$0xf] }
 0x240   : > { %3244 = vmatpush.bf16.msrb.mxu0 %v3764_v42  ;;  %3257 = vmatpush.bf16.msrb.mxu1 %v4148_v43  ;;  %v4728_v42 = vor.u32 %v5449_v32, %v4727_v28  ;;  %v5112_v43 = vor.u32 %v5545_v37, %v5111_v36  ;;  %v5305_v28 = vld [vmem:[#allocation8 + $0x414] sm:$0xf0]  ;;  %v4535_v32 = vld [vmem:[#allocation8 + $0x6e8] sm:$0xf] }
 0x241   : > { %3270 = vmatpush.bf16.msrb.mxu2 %v4532_v45  ;;  %3283 = vmatpush.bf16.msrb.mxu3 %v4916_v46  ;;  %v4679_v45 = vld [vmem:[#allocation8 + $0x808] sm:$0xf]  ;;  %v5437_v46 = vld [vmem:[#allocation8 + $0x834] sm:$0xf0] }
 0x242   : > { %v5401_v37 = vld [vmem:[#allocation8 + $0x714] sm:$0xf0] }
 0x244   : > { %3245 = vmatpush.bf16.msrb.mxu0 %v3716_v54  ;;  %3258 = vmatpush.bf16.msrb.mxu1 %v4100_v55  ;;  %v4680_v54 = vor.u32 %v5437_v46, %v4679_v45  ;;  %v5064_v55 = vor.u32 %v5533_v48, %v5063_v47  ;;  %v4536_v46 = vor.u32 %v5401_v37, %v4535_v32  ;;  %v4103_v48 = vld [vmem:[#allocation8 + $0x388] sm:$0xf]  ;;  %v4729_v32 = vld [vmem:[#allocation8 + $0x898] sm:$0xf0] }
 0x245   : > { %3271 = vmatpush.bf16.msrb.mxu2 %v4484_v58  ;;  %3284 = vmatpush.bf16.msrb.mxu3 %v4868_v59  ;;  %v2989_v58 = vadd.f32 %v6250_v3, %v831_v41  ;;  %v5425_v59 = vld [vmem:[#allocation8 + $0x7d4] sm:$0xf0]  ;;  %v4919_v41 = vld [vmem:[#allocation8 + $0x9e8] sm:$0xf] }
 0x246   : > { %v4632_v11 = vor.u32 %v5425_v59, %v4631_v57  ;;  %v4055_v57 = vld [vmem:[#allocation8 + $0x328] sm:$0xf] }
 0x247   : > { %v3002_v3 = vadd.f32 %v6252_v12, %v2989_v58  ;;  %v5281_v58 = vld [vmem:[#allocation8 + $0x354] sm:$0xf0] }
 0x248   : > { %3246 = vmatpush.bf16.msrb.mxu0 %v3668_v33  ;;  %3259 = vmatpush.bf16.msrb.mxu1 %v4052_v14  ;;  %v3040_v62 = vpop.f32.mrf.mxu0  ;;  %v3053_v63 = vpop.f32.mrf.mxu1  ;;  %v4199_v33 = vld [vmem:[#allocation8 + $0x448] sm:$0xf]  ;;  %v5317_v14 = vld [vmem:[#allocation8 + $0x474] sm:$0xf0] }
 0x249   : > { %3272 = vmatpush.bf16.msrb.mxu2 %v4436_v21  ;;  %3285 = vmatpush.bf16.msrb.mxu3 %v4820_v22  ;;  %v3041_v27 = vadd.f32 %v3040_v62, %v832_v52  ;;  %v5509_v21 = vld [vmem:[#allocation8 + $0xa74] sm:$0xf0]  ;;  %v3015_v22 = vadd.f32 %v6254_v39, %v3002_v3  ;;  %v4777_v3 = vld [vmem:[#allocation8 + $0x8f8] sm:$0xf0] }
 0x24a   : > { %v4968_v31 = vor.u32 %v5509_v21, %v4967_v35  ;;  %v5389_v52 = vld [vmem:[#allocation8 + $0x6b4] sm:$0xf0]  ;;  %v5161_v35 = vld [vmem:[#allocation8 + $0xbf8] sm:$0xf0] }
 0x24b   : > { %3247 = vmatmul.bf16.vlgmr.msrb.gmra.mxu0 %v6169_v17  ;;  %3260 = vmatmul.bf16.vlgmr.msrb.gmra.mxu1 %v6171_v40  ;;  %v3028_v29 = vadd.f32 %v6256_v49, %v3015_v22  ;;  %v3671_v49 = vld [vmem:[#allocation8 + $0x28] sm:$0xf]  ;;  %v5377_v62 = vld [vmem:[#allocation8 + $0x654] sm:$0xf0] }
 0x24c   : > { %3291 = vmatpush.bf16.msra.mxu0 %v4008_v20  ;;  %3304 = vmatpush.bf16.msra.mxu1 %v4392_v23  ;;  %v3816_v20 = vor.u32 %v5221_v10, %v3815_v9  ;;  %v4200_v23 = vor.u32 %v5317_v14, %v4199_v33  ;;  %v5473_v9 = vld [vmem:[#allocation8 + $0x954] sm:$0xf0]  ;;  %v5263_v10 = vld [vmem:[#allocation8 + $0x2cc] sm:$0xf]  ;;  %v3672_v14 = vor.u32 %v5185_v56, %v3671_v49  ;;  %v4633_v49 = vld [vmem:[#allocation8 + $0x7d8] sm:$0xf0] }
 0x24d   : > { %3317 = vmatpush.bf16.msra.mxu2 %v4776_v26  ;;  %3330 = vmatpush.bf16.msra.mxu3 %v5160_v8  ;;  %v3054_v26 = vadd.f32 %v3053_v63, %v3041_v27  ;;  %v4584_v8 = vor.u32 %v5413_v16, %v4583_v34  ;;  %v4823_v63 = vld [vmem:[#allocation8 + $0x928] sm:$0xf]  ;;  %v4009_v27 = vld [vmem:[#allocation8 + $0x2f8] sm:$0xf0]  ;;  %v5455_v33 = vld [vmem:[#allocation8 + $0x8cc] sm:$0xf]  ;;  %v4056_v34 = vor.u32 %v5281_v58, %v4055_v57 }
 0x24e   : > { %3273 = vmatmul.bf16.vlgmr.msrb.gmra.mxu2 %v6173_v18  ;;  %3286 = vmatmul.bf16.vlgmr.msrb.gmra.mxu3 %v6175_v19  ;;  %v5551_v16 = vld [vmem:[#allocation8 + $0xbcc] sm:$0xf]  ;;  %v4440_v21 = vor.u32 %v5377_v62, %v4439_v61  ;;  %v4824_v22 = vor.u32 %v5473_v9, %v4823_v63  ;;  %v3817_v61 = vld [vmem:[#allocation8 + $0x178] sm:$0xf0] }
 0x24f   : > { %v5407_v9 = vld [vmem:[#allocation8 + $0x74c] sm:$0xf] }
 0x250   : > { %3292 = vmatpush.bf16.msra.mxu0 %v3960_v0  ;;  %3305 = vmatpush.bf16.msra.mxu1 %v4344_v1  ;;  %v5497_v0 = vld [vmem:[#allocation8 + $0xa14] sm:$0xf0]  ;;  %v3042_v1 = vpop.f32.mrf.mxu0  ;;  %v3055_v2 = vpop.f32.mrf.mxu1 }
 0x251   : > { %3318 = vmatpush.bf16.msra.mxu2 %v4728_v42  ;;  %3331 = vmatpush.bf16.msra.mxu3 %v5112_v43  ;;  %v3066_v12 = vpop.f32.mrf.mxu2  ;;  %v3079_v36 = vpop.f32.mrf.mxu3  ;;  %v3768_v42 = vor.u32 %v5209_v25, %v3767_v24  ;;  %v4152_v43 = vor.u32 %v5305_v28, %v4151_v5  ;;  %v4920_v47 = vor.u32 %v5497_v0, %v4919_v41  ;;  %v5251_v24 = vld [vmem:[#allocation8 + $0x26c] sm:$0xf]  ;;  %v3961_v25 = vld [vmem:[#allocation8 + $0x298] sm:$0xf0] }
 0x252   : > { %v3067_v39 = vadd.f32 %v3066_v12, %v3054_v26  ;;  %v4780_v26 = vor.u32 %v5455_v33, %v4777_v3  ;;  %v4345_v5 = vld [vmem:[#allocation8 + $0x598] sm:$0xf0]  ;;  %v5443_v28 = vld [vmem:[#allocation8 + $0x86c] sm:$0xf]  ;;  %v3964_v37 = vor.u32 %v5251_v24, %v3961_v25 }
 0x253   : > { %v5539_v12 = vld [vmem:[#allocation8 + $0xb6c] sm:$0xf]  ;;  %v4732_v1 = vor.u32 %v5443_v28, %v4729_v32  ;;  %v4537_v24 = vld [vmem:[#allocation8 + $0x718] sm:$0xf0] }
 0x254   : > { %3293 = vmatpush.bf16.msra.mxu0 %v3912_v51  ;;  %3306 = vmatpush.bf16.msra.mxu1 %v4296_v50  ;;  %v3080_v45 = vadd.f32 %v3079_v36, %v3067_v39  ;;  %v5293_v51 = vld [vmem:[#allocation8 + $0x3b4] sm:$0xf0]  ;;  %v4487_v50 = vld [vmem:[#allocation8 + $0x688] sm:$0xf]  ;;  %v5113_v36 = vld [vmem:[#allocation8 + $0xb98] sm:$0xf0] }
 0x255   : > { %3319 = vmatpush.bf16.msra.mxu2 %v4680_v54  ;;  %3332 = vmatpush.bf16.msra.mxu3 %v5064_v55  ;;  %v3720_v55 = vor.u32 %v5197_v4, %v3719_v44  ;;  %v4104_v30 = vor.u32 %v5293_v51, %v4103_v48  ;;  %v4488_v59 = vor.u32 %v5389_v52, %v4487_v50  ;;  %v5239_v0 = vld [vmem:[#allocation8 + $0x20c] sm:$0xf]  ;;  %v3913_v39 = vld [vmem:[#allocation8 + $0x238] sm:$0xf0] }
 0x256   : > { %v3403_v54 = vpack.c.bf16 %v3080_v45, %v3028_v29  ;;  %v5116_v2 = vor.u32 %v5539_v12, %v5113_v36  ;;  %v5335_v29 = vld [vmem:[#allocation8 + $0x50c] sm:$0xf]  ;;  %v4681_v44 = vld [vmem:[#allocation8 + $0x838] sm:$0xf0] }
 0x257   : > { %v5527_v4 = vld [vmem:[#allocation8 + $0xb0c] sm:$0xf]  ;;  %v5065_v45 = vld [vmem:[#allocation8 + $0xb38] sm:$0xf0] }
 0x258   : > { %3294 = vmatpush.bf16.msra.mxu0 %v3864_v6  ;;  %3307 = vmatpush.bf16.msra.mxu1 %v4248_v7  ;;  %3407 = vst [vmem:[%s6272_s14] sm:$0xff] %v3403_v54  ;;  %v5227_v48 = vld [vmem:[#allocation8 + $0x1ac] sm:$0xf]  ;;  %v3865_v51 = vld [vmem:[#allocation8 + $0x1d8] sm:$0xf0]  ;;  %v5068_v52 = vor.u32 %v5527_v4, %v5065_v45 }
 0x259   : > { %3320 = vmatpush.bf16.msra.mxu2 %v4632_v11  ;;  %3333 = vmatpush.bf16.msra.mxu3 %v5016_v13  ;;  %v3068_v6 = vpop.f32.mrf.mxu2  ;;  %v3081_v7 = vpop.f32.mrf.mxu3  ;;  %v5359_v11 = vld [vmem:[#allocation8 + $0x5cc] sm:$0xf]  ;;  %v4393_v13 = vld [vmem:[#allocation8 + $0x5f8] sm:$0xf0]  ;;  %v3868_v58 = vor.u32 %v5227_v48, %v3865_v51 }
 0x25a   : > { %v5419_v54 = vld [vmem:[#allocation8 + $0x7ac] sm:$0xf]  ;;  %v4201_v7 = vld [vmem:[#allocation8 + $0x478] sm:$0xf0] }
 0x25b   : > { %v4636_v62 = vor.u32 %v5419_v54, %v4633_v49  ;;  %v5311_v6 = vld [vmem:[#allocation8 + $0x44c] sm:$0xf]  ;;  %v3721_v12 = vld [vmem:[#allocation8 + $0xb8] sm:$0xf0] }
 0x25c   : > { %3295 = vmatpush.bf16.msra.mxu0 %v3816_v20  ;;  %3308 = vmatpush.bf16.msra.mxu1 %v4200_v23  ;;  %v4012_v20 = vor.u32 %v5263_v10, %v4009_v27  ;;  %v4396_v23 = vor.u32 %v5359_v11, %v4393_v13  ;;  %v4585_v10 = vld [vmem:[#allocation8 + $0x778] sm:$0xf0]  ;;  %v5503_v27 = vld [vmem:[#allocation8 + $0xa4c] sm:$0xf]  ;;  %v4204_v33 = vor.u32 %v5311_v6, %v4201_v7 }
 0x25d   : > { %3321 = vmatpush.bf16.msra.mxu2 %v4584_v8  ;;  %3334 = vmatpush.bf16.msra.mxu3 %v4968_v31  ;;  %v5164_v8 = vor.u32 %v5551_v16, %v5161_v35  ;;  %v5347_v31 = vld [vmem:[#allocation8 + $0x56c] sm:$0xf]  ;;  %v4969_v11 = vld [vmem:[#allocation8 + $0xa78] sm:$0xf0]  ;;  %v4588_v3 = vor.u32 %v5407_v9, %v4585_v10 }
 0x25e   : > { %v4348_v41 = vor.u32 %v5347_v31, %v4345_v5  ;;  %v4972_v16 = vor.u32 %v5503_v27, %v4969_v11  ;;  %v5299_v35 = vld [vmem:[#allocation8 + $0x3ec] sm:$0xf]  ;;  %v3673_v4 = vld [vmem:[#allocation8 + $0x58] sm:$0xf0] }
 0x25f   : > { %v5491_v25 = vld [vmem:[#allocation8 + $0x9ec] sm:$0xf]  ;;  %v4057_v48 = vld [vmem:[#allocation8 + $0x358] sm:$0xf0] }
 0x260   : > { %3296 = vmatpush.bf16.msra.mxu0 %v3768_v42  ;;  %3309 = vmatpush.bf16.msra.mxu1 %v4152_v43  ;;  %v4297_v42 = vld [vmem:[#allocation8 + $0x538] sm:$0xf0]  ;;  %v5431_v43 = vld [vmem:[#allocation8 + $0x80c] sm:$0xf] }
 0x261   : > { %3322 = vmatpush.bf16.msra.mxu2 %v4536_v46  ;;  %3335 = vmatpush.bf16.msra.mxu3 %v4920_v47  ;;  %v3916_v46 = vor.u32 %v5239_v0, %v3913_v39  ;;  %v4300_v47 = vor.u32 %v5335_v29, %v4297_v42  ;;  %v4684_v50 = vor.u32 %v5431_v43, %v4681_v44  ;;  %v5191_v32 = vld [vmem:[#allocation8 + $0x8c] sm:$0xf]  ;;  %v4105_v0 = vld [vmem:[#allocation8 + $0x3b8] sm:$0xf0] }
 0x262   : > { %v5383_v39 = vld [vmem:[#allocation8 + $0x68c] sm:$0xf]  ;;  %v4873_v29 = vld [vmem:[#allocation8 + $0x9b8] sm:$0xf0]  ;;  %v3724_v42 = vor.u32 %v5191_v32, %v3721_v12 }
 0x263   : > { %v5179_v44 = vld [vmem:[#allocation8 + $0x2c] sm:$0xf]  ;;  %v4825_v54 = vld [vmem:[#allocation8 + $0x958] sm:$0xf0] }
 0x264   : > { %3297 = vmatpush.bf16.msra.mxu0 %v3720_v55  ;;  %3310 = vmatpush.bf16.msra.mxu1 %v4104_v30  ;;  %v5515_v55 = vld [vmem:[#allocation8 + $0xaac] sm:$0xf]  ;;  %v5017_v30 = vld [vmem:[#allocation8 + $0xad8] sm:$0xf0]  ;;  %v3676_v49 = vor.u32 %v5179_v44, %v3673_v4 }
 0x265   : > { %3323 = vmatpush.bf16.msra.mxu2 %v4488_v59  ;;  %3336 = vmatpush.bf16.msra.mxu3 %v4872_v60  ;;  %v4252_v59 = vor.u32 %v5323_v15, %v4249_v53  ;;  %v5215_v60 = vld [vmem:[#allocation8 + $0x14c] sm:$0xf]  ;;  %v5020_v63 = vor.u32 %v5515_v55, %v5017_v30  ;;  %v4441_v15 = vld [vmem:[#allocation8 + $0x658] sm:$0xf0] }
 0x266   : > { %v3820_v13 = vor.u32 %v5215_v60, %v3817_v61  ;;  %v5371_v51 = vld [vmem:[#allocation8 + $0x62c] sm:$0xf]  ;;  %v834_v60 = vperm.slane %v6258_v38, 7 }
 0x267   : > { %v5467_v53 = vld [vmem:[#allocation8 + $0x92c] sm:$0xf]  ;;  %v4444_v30 = vor.u32 %v5371_v51, %v4441_v15 }
 0x268   : > { %3298 = vmatpush.bf16.msra.mxu0 %v3672_v14  ;;  %3311 = vmatpush.bf16.msra.mxu1 %v4056_v34  ;;  %v6279_v56 = vpop.f32.mrf.mxu0  ;;  %v6281_v57 = vpop.f32.mrf.mxu1  ;;  %v5203_v14 = vld [vmem:[#allocation8 + $0xec] sm:$0xf]  ;;  %v3769_v34 = vld [vmem:[#allocation8 + $0x118] sm:$0xf0] }
 0x269   : > { %3324 = vmatpush.bf16.msra.mxu2 %v4440_v21  ;;  %3337 = vmatpush.bf16.msra.mxu3 %v4824_v22  ;;  %v4153_v21 = vld [vmem:[#allocation8 + $0x418] sm:$0xf0]  ;;  %v5395_v22 = vld [vmem:[#allocation8 + $0x6ec] sm:$0xf]  ;;  %v3772_v5 = vor.u32 %v5203_v14, %v3769_v34 }
 0x26a   : > { %v4156_v28 = vor.u32 %v5299_v35, %v4153_v21  ;;  %v4540_v36 = vor.u32 %v5395_v22, %v4537_v24 }
 0x26b   : > { %3299 = vmatmul.bf16.vlgmr.msra.gmra.mxu0 %v6169_v17  ;;  %3312 = vmatmul.bf16.vlgmr.msra.gmra.mxu1 %v6171_v40 }
 0x26c   : > { %3343 = vmatpush.bf16.msrb.mxu0 %v4012_v20  ;;  %3356 = vmatpush.bf16.msrb.mxu1 %v4396_v23 }
 0x26d   : > { %3369 = vmatpush.bf16.msrb.mxu2 %v4780_v26  ;;  %3382 = vmatpush.bf16.msrb.mxu3 %v5164_v8  ;;  %v4921_v26 = vld [vmem:[#allocation8 + $0xa18] sm:$0xf0] }
 0x26e   : > { %3325 = vmatmul.bf16.vlgmr.msra.gmra.mxu2 %v6173_v18  ;;  %3338 = vmatmul.bf16.vlgmr.msra.gmra.mxu3 %v6175_v19 }
 0x270   : > { %3344 = vmatpush.bf16.msrb.mxu0 %v3964_v37  ;;  %3357 = vmatpush.bf16.msrb.mxu1 %v4348_v41  ;;  %v3094_v8 = vpop.f32.mrf.mxu0  ;;  %v3107_v31 = vpop.f32.mrf.mxu1  ;;  %v4924_v37 = vor.u32 %v5491_v25, %v4921_v26  ;;  %v5287_v41 = vld [vmem:[#allocation8 + $0x38c] sm:$0xf] }
 0x271   : > { %3370 = vmatpush.bf16.msrb.mxu2 %v4732_v1  ;;  %3383 = vmatpush.bf16.msrb.mxu3 %v5116_v2  ;;  %v6283_v20 = vpop.f32.mrf.mxu2  ;;  %v6285_v23 = vpop.f32.mrf.mxu3  ;;  %v4489_v1 = vld [vmem:[#allocation8 + $0x6b8] sm:$0xf0]  ;;  %v5479_v2 = vld [vmem:[#allocation8 + $0x98c] sm:$0xf]  ;;  %v4108_v43 = vor.u32 %v5287_v41, %v4105_v0 }
 0x272   : > { %v4492_v45 = vor.u32 %v5383_v39, %v4489_v1 }
 0x274   : > { %3345 = vmatpush.bf16.msrb.mxu0 %v3916_v46  ;;  %3358 = vmatpush.bf16.msrb.mxu1 %v4300_v47  ;;  %v4876_v46 = vor.u32 %v5479_v2, %v4873_v29  ;;  %v5275_v47 = vld [vmem:[#allocation8 + $0x32c] sm:$0xf] }
 0x275   : > { %3371 = vmatpush.bf16.msrb.mxu2 %v4684_v50  ;;  %3384 = vmatpush.bf16.msrb.mxu3 %v5068_v52  ;;  %v4060_v55 = vor.u32 %v5275_v47, %v4057_v48 }
 0x278   : > { %3346 = vmatpush.bf16.msrb.mxu0 %v3868_v58  ;;  %3359 = vmatpush.bf16.msrb.mxu1 %v4252_v59  ;;  %v4828_v58 = vor.u32 %v5467_v53, %v4825_v54  ;;  %v833_v59 = vperm.slane %v6258_v38, 6 }
 0x279   : > { %3372 = vmatpush.bf16.msrb.mxu2 %v4636_v62  ;;  %3385 = vmatpush.bf16.msrb.mxu3 %v5020_v63  ;;  %v3120_v50 = vpop.f32.mrf.mxu2  ;;  %v3133_v52 = vpop.f32.mrf.mxu3 }
 0x27a   : > { %v3093_v61 = vadd.f32 %v6279_v56, %v833_v59 }
 0x27c   : > { %3347 = vmatpush.bf16.msrb.mxu0 %v3820_v13  ;;  %3360 = vmatpush.bf16.msrb.mxu1 %v4204_v33 }
 0x27d   : > { %3373 = vmatpush.bf16.msrb.mxu2 %v4588_v3  ;;  %3386 = vmatpush.bf16.msrb.mxu3 %v4972_v16 }
 0x280   : > { %3348 = vmatpush.bf16.msrb.mxu0 %v3772_v5  ;;  %3361 = vmatpush.bf16.msrb.mxu1 %v4156_v28 }
 0x281   : > { %3374 = vmatpush.bf16.msrb.mxu2 %v4540_v36  ;;  %3387 = vmatpush.bf16.msrb.mxu3 %v4924_v37 }
 0x284   : > { %3349 = vmatpush.bf16.msrb.mxu0 %v3724_v42  ;;  %3362 = vmatpush.bf16.msrb.mxu1 %v4108_v43 }
 0x285   : > { %3375 = vmatpush.bf16.msrb.mxu2 %v4492_v45  ;;  %3388 = vmatpush.bf16.msrb.mxu3 %v4876_v46 }
 0x288   : > { %3350 = vmatpush.bf16.msrb.mxu0 %v3676_v49  ;;  %3363 = vmatpush.bf16.msrb.mxu1 %v4060_v55  ;;  %v3144_v62 = vpop.f32.mrf.mxu0  ;;  %v3157_v63 = vpop.f32.mrf.mxu1 }
 0x289   : > { %3376 = vmatpush.bf16.msrb.mxu2 %v4444_v30  ;;  %3389 = vmatpush.bf16.msrb.mxu3 %v4828_v58  ;;  %v3145_v6 = vadd.f32 %v3144_v62, %v834_v60 }
 0x28b   : > { %3351 = vmatmul.bf16.vlgmr.msrb.gmra.mxu0 %v6169_v17  ;;  %3364 = vmatmul.bf16.vlgmr.msrb.gmra.mxu1 %v6171_v40  ;;  %v3106_v17 = vadd.f32 %v6281_v57, %v3093_v61 }
 0x28c   : > { %3377 = vmatmul.bf16.vlgmr.msrb.gmra.mxu2 %v6173_v18  ;;  %3390 = vmatmul.bf16.vlgmr.msrb.gmra.mxu3 %v6175_v19  ;;  %v3158_v18 = vadd.f32 %v3157_v63, %v3145_v6 }
 0x28d   : > { %v3119_v40 = vadd.f32 %v6283_v20, %v3106_v17 }
 0x291   : > { %v3170_v19 = vpop.f32.mrf.mxu2  ;;  %v3183_v38 = vpop.f32.mrf.mxu3 }
 0x292   : > { %5853 = shalt.err (!%p5850_p13)
}
 0x293   : > { %5578 = dma.vmem_to_hbm [thread:$0]  (%p6084_p0), %s3433_s13, 256, %s3435_s18, %s3412_s16   ;;  %v3171_v56 = vadd.f32 %v3170_v19, %v3158_v18  ;;  %v3146_v57 = vpop.f32.mrf.mxu0  ;;  %v3159_v7 = vpop.f32.mrf.mxu1  ;;  %v3132_v9 = vadd.f32 %v6285_v23, %v3119_v40  ;;  %v824_v20 = vld [vmem:[#allocation10 + $0x8] sm:$0xf] }
 0x294   : > { %v835_v24 = vperm.slane %v824_v20, 0  ;;  %v836_v25 = vperm.slane %v824_v20, 1  ;;  %v837_v50 = vperm.slane %v824_v20, 2  ;;  %v838_v52 = vperm.slane %v824_v20, 3  ;;  %s5559_s11 = sshll.u32 %s5940_s24, 5  ;;  %s3449_s16 = sshll.u32 %s6272_s14, 4  ;;  %s3450_s16 = int_to_ptr.vmem [resolvable:$true] %s3449_s16 }
 0x295   : > { %v3184_v10 = vadd.f32 %v3183_v38, %v3171_v56  ;;  %s3447_s18 = scalar_lea.hbm %s6361_s6, %s5559_s11  ;;  %s3417_s24 = scalar_lea.sflag [#allocation13], %s6104_s17 }
 0x296   : > { %s3451_s7 = sshll.u32 %s3447_s18, 4  ;;  %s5874_s30 = scalar_lea.hbm %s6361_s6, 64  ;;  %s3452_s7 = int_to_ptr.hbm [resolvable:$true] %s3451_s7 }
 0x297   : > { %v3404_v27 = vpack.c.bf16 %v3184_v10, %v3132_v9  ;;  %s5868_s27 = sshra.s32 %s3452_s7, 4  ;;  %s5869_s27 = int_to_ptr.hbm [resolvable:$true] %s5868_s27 }
 0x298   : > { %s5870_s9 = scalar_lea.hbm %s5869_s27, 32  ;;  %p5875_p11 = scmp.lt.s32.totalorder %s5869_s27, %s6361_s6 }
 0x299   : > { %3408 = vst [vmem:[%s6272_s14 + $0x8] sm:$0xff] %v3404_v27  ;;  %v3172_v11 = vpop.f32.mrf.mxu2  ;;  %v3185_v13 = vpop.f32.mrf.mxu3  ;;  %p5871_p2 = scmp.ne.s32.totalorder %s5869_s27, %s5870_s9  ;;  %p5876_p1 = scmp.lt.s32.totalorder %s5874_s30, %s5870_s9 }
 0x29b   : > { %p5872_p5 = pnand %p5871_p2, %p6084_p0  ;;  %p5877_p3 = por %p5876_p1, %p5875_p11 }
 0x29d   : > { %p5873_p7 = pneg %p5872_p5 }
 0x29f   : > { %p5878_p8 = pnand %p5877_p3, %p5873_p7 }
 0x2a8   : > { %v3196_v33 = vpop.f32.mrf.mxu0  ;;  %v3209_v14 = vpop.f32.mrf.mxu1 }
 0x2a9   : > { %v3197_v26 = vadd.f32 %v3196_v33, %v835_v24 }
 0x2ab   : > { %v3210_v5 = vadd.f32 %v3209_v14, %v3197_v26 }
 0x2b0   : > { %v3198_v16 = vpop.f32.mrf.mxu0  ;;  %v3211_v35 = vpop.f32.mrf.mxu1 }
 0x2b1   : > { %v3222_v34 = vpop.f32.mrf.mxu2  ;;  %v3235_v3 = vpop.f32.mrf.mxu3 }
 0x2b2   : > { %v3223_v28 = vadd.f32 %v3222_v34, %v3210_v5 }
 0x2b4   : > { %v3236_v39 = vadd.f32 %v3235_v3, %v3223_v28 }
 0x2b9   : > { %v3224_v21 = vpop.f32.mrf.mxu2  ;;  %v3237_v22 = vpop.f32.mrf.mxu3 }
 0x2c8   : > { %v3248_v8 = vpop.f32.mrf.mxu0  ;;  %v3261_v23 = vpop.f32.mrf.mxu1 }
 0x2c9   : > { %v3249_v31 = vadd.f32 %v3248_v8, %v836_v25 }
 0x2cb   : > { %v3262_v32 = vadd.f32 %v3261_v23, %v3249_v31 }
 0x2d0   : > { %v3250_v41 = vpop.f32.mrf.mxu0  ;;  %v3263_v0 = vpop.f32.mrf.mxu1 }
 0x2d1   : > { %v3274_v12 = vpop.f32.mrf.mxu2  ;;  %v3287_v36 = vpop.f32.mrf.mxu3 }
 0x2d2   : > { %v3275_v37 = vadd.f32 %v3274_v12, %v3262_v32 }
 0x2d4   : > { %v3288_v1 = vadd.f32 %v3287_v36, %v3275_v37 }
 0x2d6   : > { %v3405_v2 = vpack.c.bf16 %v3288_v1, %v3236_v39 }
 0x2d8   : > { %3409 = vst [vmem:[%s6272_s14 + $0x10] sm:$0xff] %v3405_v2 }
 0x2d9   : > { %v3276_v29 = vpop.f32.mrf.mxu2  ;;  %v3289_v42 = vpop.f32.mrf.mxu3 }
 0x2e8   : > { %v3300_v43 = vpop.f32.mrf.mxu0  ;;  %v3313_v44 = vpop.f32.mrf.mxu1 }
 0x2e9   : > { %v3301_v15 = vadd.f32 %v3300_v43, %v837_v50 }
 0x2eb   : > { %v3314_v55 = vadd.f32 %v3313_v44, %v3301_v15 }
 0x2f0   : > { %v3302_v46 = vpop.f32.mrf.mxu0  ;;  %v3315_v47 = vpop.f32.mrf.mxu1 }
 0x2f1   : > { %v3326_v4 = vpop.f32.mrf.mxu2  ;;  %v3339_v45 = vpop.f32.mrf.mxu3 }
 0x2f2   : > { %v3327_v30 = vadd.f32 %v3326_v4, %v3314_v55 }
 0x2f4   : > { %v3340_v6 = vadd.f32 %v3339_v45, %v3327_v30 }
 0x2f9   : > { %v3328_v48 = vpop.f32.mrf.mxu2  ;;  %v3341_v51 = vpop.f32.mrf.mxu3 }
 0x308   : > { %v3352_v53 = vpop.f32.mrf.mxu0  ;;  %v3365_v54 = vpop.f32.mrf.mxu1 }
 0x309   : > { %v3353_v49 = vadd.f32 %v3352_v53, %v838_v52 }
 0x30b   : > { %v3366_v58 = vadd.f32 %v3365_v54, %v3353_v49 }
 0x30f   : > { %v3378_v59 = vpop.f32.mrf.mxu2  ;;  %v3391_v60 = vpop.f32.mrf.mxu3 }
 0x310   : > { %v3379_v61 = vadd.f32 %v3378_v59, %v3366_v58  ;;  %v3354_v62 = vpop.f32.mrf.mxu0  ;;  %v3367_v63 = vpop.f32.mrf.mxu1 }
 0x312   : > { %v3392_v17 = vadd.f32 %v3391_v60, %v3379_v61 }
 0x314   : > { %v3406_v40 = vpack.c.bf16 %v3392_v17, %v3340_v6 }
 0x316   : > { %3410 = vst [vmem:[%s6272_s14 + $0x18] sm:$0xff] %v3406_v40 }
 0x317   : > { %v3380_v18 = vpop.f32.mrf.mxu2  ;;  %v3393_v19 = vpop.f32.mrf.mxu3 }
 0x318   : > { %5881 = shalt.err (!%p5878_p8)
}
 0x319   : > { %5579 = dma.vmem_to_hbm [thread:$0]  (%p6084_p0), %s3450_s16, 512, %s3452_s7, %s3417_s24  }
 0x31a PF: > { %s3463_s17 = sand.u32 1, %s5928_s21   ;;  %p5600_p9 = pnand %p3617_p4, %p6091_p6 }
 0x31b   : > { %s3464_s14 = scalar_lea.sflag [#allocation4], %s3463_s17 }
 0x31c   : > { %p5601_p10 = pneg %p5600_p9 }
 0x31e   : > { %5919 = dma.done.wait (%p5601_p10), %s3464_s14, 256  }
 0x31f   : > { %5921 = vsyncadd (%p5601_p10), %s3464_s14, 4294967040  ;;  %s3474_s12 = scalar_lea.sflag [#allocation13], %s3463_s17 }
 0x320   : > { %5923 = dma.done.wait (%p5601_p10), %s3474_s12, 512  }
 0x321   : > { %5925 = vsyncadd (%p5601_p10), %s3474_s12, 4294966784  ;;  %s28_s26 = sadd.s32 1, %s5948_s26   ;;  %s6368_s21 = smov %s5932_s22 }
 0x322   : > { %p25_p12 = scmp.ge.s32.totalorder %s28_s26, 4   ;;  %s6369_s22 = smov %s5936_s23 }
 0x323   : > { %s6370_s23 = smov %s6089_s20  ;;  %s6371_s24 = smov %s5944_s25 }
 0x324   : > { %s6372_s25 = smov %s6374_s15  ;;  %27 = sbr.rel (!%p25_p12) target bundleno = 10 (0xa), region = 118 }
 0x329   :  { %3480 = vsyncpa [#allocation3], 1 }
 0x32a   :  { %3482 = vsyncpa [#allocation3 + $0x1], 1 }
 0x32b   :  { %3483 = vsyncpa [#allocation6], 1 }
 0x32c   :  { %3484 = vsyncpa [#allocation9], 1 }
 0x32d   :  { %3485 = vsyncpa [#allocation4], 1 }
 0x32e   :  { %3487 = vsyncpa [#allocation4 + $0x1], 1 }
 0x32f   :  { %3488 = vsyncpa [#allocation13], 1 }
 0x330   :  { %3490 = vsyncpa [#allocation13 + $0x1], 1 }

// kernel: tpu_custom_call.1
= control target key start
LH: loop header
LB: loop body
LE: loop exit
PB: predicated region body
PF: predicated region fallthrough
CT: control target
= control target key end

     0   :  { %12 = vsyncpa [#allocation3], 0  ;;  %s6355_s0 = inlined_call_operand.hbm [shape: f32[2,8,512], index: 0, kind: input, shape index: {}]   ;;  %s6356_s1 = inlined_call_operand.hbm [shape: f32[1,512], index: 1, kind: input, shape index: {}]   ;;  %s6357_s2 = inlined_call_operand.hbm [shape: f32[1,512], index: 2, kind: input, shape index: {}]   ;;  %s6358_s3 = inlined_call_operand.hbm [shape: bf16[512,1536], index: 3, kind: input, shape index: {}]   ;;  %s6359_s4 = inlined_call_operand.hbm [shape: f32[1,1536], index: 4, kind: input, shape index: {}]   ;;  %s6360_s5 = inlined_call_operand.hbm [shape: bf16[2,8,512], index: 5, kind: output, shape index: {0}]   ;;  %s6361_s6 = inlined_call_operand.hbm [shape: bf16[2,8,1024], index: 6, kind: output, shape index: {1}]  }
   0x1   :  { %14 = vsyncpa [#allocation3 + $0x1], 0 }
   0x2   :  { %15 = vsyncpa [#allocation6], 0 }
   0x3   :  { %16 = vsyncpa [#allocation9], 0 }
   0x4   :  { %17 = vsyncpa [#allocation4], 0 }
   0x5   :  { %19 = vsyncpa [#allocation4 + $0x1], 0 }
   0x6   :  { %20 = vsyncpa [#allocation13], 0 }
   0x7   :  { %22 = vsyncpa [#allocation13 + $0x1], 0  ;;  %s5992_s21 = smov 0   ;;  %s5994_s22 = smov 0  }
   0x8   :  { %s5996_s23 = smov 0   ;;  %s5998_s24 = smov 0  }
   0x9   :  { %s6000_s25 = smov 0   ;;  %s6002_s26 = smov 0  }
   0xa LB: > { %s3610_s27 = sadd.s32 4294967295, %s5948_s26   ;;  %p3612_p0 = scmp.ge.s32.totalorder %s5948_s26, 1  ;;  %s5948_s26 = sphi %s6002_s26, %s28_s26   ;;  %s5944_s25 = sphi %s6000_s25, %s6372_s25   ;;  %s5940_s24 = sphi %s5998_s24, %s6371_s24   ;;  %s5936_s23 = sphi %s5996_s23, %s6370_s23   ;;  %s5932_s22 = sphi %s5994_s22, %s6369_s22   ;;  %s5928_s21 = sphi %s5992_s21, %s6368_s21  }
   0xb   : > { %p6026_p1 = scmp.eq.s32.totalorder %s3610_s27, 0  ;;  %p213_p2 = scmp.lt.s32.totalorder %s5948_s26, 3 }
   0xc   : > { %s225_s7 = sshll.u32 %s6356_s1, 4  ;;  %p3617_p4 = scmp.ge.s32.totalorder %s5948_s26, 2  ;;  %s226_s7 = int_to_ptr.hbm [resolvable:$true] %s225_s7 }
   0xd   : > { %p6034_p3 = pnand %p3612_p0, %p213_p2  ;;  %s5950_s9 = smov [#allocation5]  }
   0xe   : > { %s227_s10 = sshll.u32 %s5950_s9, 4  ;;  %s248_s13 = sshll.u32 %s6358_s3, 4  ;;  %s228_s10 = int_to_ptr.vmem [resolvable:$true] %s227_s10  ;;  %s249_s13 = int_to_ptr.hbm [resolvable:$true] %s248_s13 }
   0xf   : > { %p5582_p5 = pneg %p6034_p3  ;;  %s5951_s15 = smov [#allocation8]  }
  0x10   : > { %s250_s16 = sshll.u32 %s5951_s15, 4  ;;  %s5952_s17 = smov 768   ;;  %s251_s16 = int_to_ptr.vmem [resolvable:$true] %s250_s16 }
  0x11   : > { %p6046_p6 = pnand %p5582_p5, %p6026_p1  ;;  %s5953_s18 = smov 48  }
  0x12   : > { %s237_s29 = sshll.u32 %s6357_s2, 4  ;;  %s5954_s30 = smov [#allocation7]   ;;  %s238_s29 = int_to_ptr.hbm [resolvable:$true] %s237_s29 }
  0x13   : > { %5585 = dma.hbm_to_vmem [thread:$0]  (!%p6046_p6), %s226_s7, 64, %s228_s10, [#allocation6]  }
  0x14   : > { %5591 = dma.hbm_to_vmem [thread:$0]  (!%p6046_p6), %s249_s13, 49152, %s251_s16, [#allocation9], %s5952_s17, %s5952_s17, %s5953_s18  }
  0x15   : > { %s239_s9 = sshll.u32 %s5954_s30, 4  ;;  %s263_s11 = sshll.u32 %s6359_s4, 4  ;;  %s240_s9 = int_to_ptr.vmem [resolvable:$true] %s239_s9  ;;  %s264_s11 = int_to_ptr.hbm [resolvable:$true] %s263_s11 }
  0x16   : > { %5588 = dma.hbm_to_vmem [thread:$0]  (!%p6046_p6), %s238_s29, 64, %s240_s9, [#allocation6]  }
  0x17   : > { %s5955_s12 = smov [#allocation10]   ;;  %s40_s15 = sadd.s32 1, %s5944_s25 }
  0x18   : > { %s265_s13 = sshll.u32 %s5955_s12, 4  ;;  %s3611_s16 = sadd.s32 4294967294, %s5948_s26   ;;  %s266_s13 = int_to_ptr.vmem [resolvable:$true] %s265_s13 }
  0x19   : > { %5594 = dma.hbm_to_vmem [thread:$0]  (!%p6046_p6), %s264_s11, 192, %s266_s13, [#allocation9]  }
  0x1a   : > { %p42_p7 = scmp.ge.s32.totalorder %s40_s15, 2  ;;  %s49_s17 = sadd.s32 1, %s5936_s23 }
  0x1b   : > { %p56_p8 = scmp.ne.s32.totalorder %s5936_s23, %s5932_s22  ;;  %p57_p9 = scmp.eq.s32.totalorder %s5948_s26, 0 }
  0x1c   : > { %s6374_s15 = smov (%p42_p7, %s40_s15), 0  ;;  %p62_p10 = scmp.ne.s32.totalorder %s5932_s22, %s5928_s21 }
  0x1d   : > { %s44_s18 = ssub.s32 %s5944_s25, %s6374_s15  ;;  %p172_p11 = scmp.eq.s32.totalorder %s3610_s27, 1 }
  0x1e   : > { %p47_p12 = scmp.eq.s32.totalorder %s44_s18, 0  ;;  %p6080_p13 = por %p6026_p1, %p62_p10 }
  0x1f   : > { %p6084_p0 = por %p172_p11, %p56_p8  ;;  %p178_p2 = scmp.eq.s32.totalorder %s3611_s16, 1 }
  0x20   : > { %s6089_s20 = scalar_select %p47_p12, %s5936_s23, %s49_s17  }
  0x21   : > { %p58_p5 = por %p57_p9, %p56_p8  ;;  %p6091_p6 = por %p178_p2, %p62_p10 }
  0x22   : > { %s276_s30 = sand.u32 1, %s5936_s23   ;;  %s5173_s27 = sshll.u32 %s5944_s25, 5 }
  0x23   : > { %p5610_p7 = scmp.lt.s32.totalorder %s5948_s26, 2  ;;  %s3618_s9 = sshll.u32 %s276_s30, 5 }
  0x24   : > { %s287_s11 = scalar_lea.hbm %s6355_s0, %s5173_s27  ;;  %s280_s13 = scalar_lea.vmem [#allocation2], %s3618_s9 }
  0x25   : > { %s289_s12 = sshll.u32 %s287_s11, 4  ;;  %s291_s18 = sshll.u32 %s280_s13, 4  ;;  %s290_s12 = int_to_ptr.hbm [resolvable:$true] %s289_s12  ;;  %s292_s18 = int_to_ptr.vmem [resolvable:$true] %s291_s18 }
  0x26   : > { %p5596_p11 = pnand %p5610_p7, %p58_p5  ;;  %s277_s16 = scalar_lea.sflag [#allocation3], %s276_s30 }
  0x27   : > { %300 = sbr.rel (%p6034_p3) target bundleno = 794 (0x31a), region = 40  ;;  %s6104_s17 = sand.u32 (!%p6034_p3), 1, %s5932_s22  }
  0x28   : > { %5598 = dma.hbm_to_vmem [thread:$0]  (!%p5596_p11), %s290_s12, 512, %s292_s18, %s277_s16  }
  0x29   : > { %s3622_s7 = sshll.u32 (!%p6034_p3), %s6104_s17, 5  ;;  %s303_s27 = scalar_lea.sflag (!%p6034_p3), [#allocation3], %s6104_s17 }
  0x2a   : > { %s306_s9 = scalar_lea.vmem (!%p6034_p3), [#allocation2], %s3622_s7 }
  0x2c   : > { %5907 = dma.done.wait (%p6080_p13), %s303_s27, 512  }
  0x2d   : > { %5909 = vsyncadd (%p6080_p13), %s303_s27, 4294966784 }
  0x2e   : > { %5911 = dma.done.wait (%p6026_p1), [#allocation6], 128  }
  0x2f   : > { %5913 = vsyncadd (%p6026_p1), [#allocation6], 4294967168 }
  0x30   : > { %5915 = dma.done.wait (%p6026_p1), [#allocation9], 49344  }
  0x31   : > { %5917 = vsyncadd (%p6026_p1), [#allocation9], 4294917952  ;;  %v6122_v0 = vld [vmem:[%s306_s9] sm:$0xff]  ;;  %v6124_v1 = vld [vmem:[%s306_s9 + $0x8] sm:$0xff]  ;;  %v5956_v7 = vmov 512.0   ;;  %s3627_s28 = sshll.u32 %s6104_s17, 4 }
  0x32   : > { %v6126_v2 = vld [vmem:[%s306_s9 + $0x10] sm:$0xff]  ;;  %v367_v3 = vadd.f32 %v6124_v1, %v6122_v0  ;;  %v6130_v4 = vld [vmem:[%s306_s9 + $0x18] sm:$0xff]  ;;  %5671 = vrcp.f32 %v5956_v7  ;;  %v3967_v11 = vld [vmem:[#allocation8 + $0x2a0] sm:$0xf]  ;;  %s6224_s8 = scalar_lea.vmem [#allocation11], %s3627_s28  ;;  %s6272_s14 = scalar_lea.vmem [#allocation12], %s3622_s7 }
  0x33   : > { %v5264_v12 = vld [vmem:[#allocation8 + $0x2cc] sm:$0xf0]  ;;  %v4351_v13 = vld [vmem:[#allocation8 + $0x5a0] sm:$0xf]  ;;  %s5558_s30 = sshll.u32 %s5940_s24, 4  ;;  %s3432_s13 = sshll.u32 %s6224_s8, 4  ;;  %s3433_s13 = int_to_ptr.vmem [resolvable:$true] %s3432_s13 }
  0x34   : > { %v368_v5 = vadd.f32 %v367_v3, %v6126_v2  ;;  %v3968_v14 = vor.u32 %v5264_v12, %v3967_v11  ;;  %v5360_v15 = vld [vmem:[#allocation8 + $0x5cc] sm:$0xf0]  ;;  %v4735_v16 = vld [vmem:[#allocation8 + $0x8a0] sm:$0xf]  ;;  %s3430_s12 = scalar_lea.hbm %s6360_s5, %s5558_s30  ;;  %s3412_s16 = scalar_lea.sflag [#allocation4], %s6104_s17 }
  0x35   : > { %v5456_v17 = vld [vmem:[#allocation8 + $0x8cc] sm:$0xf0]  ;;  %v4352_v18 = vor.u32 %v5360_v15, %v4351_v13  ;;  %v5119_v20 = vld [vmem:[#allocation8 + $0xba0] sm:$0xf]  ;;  %s3434_s18 = sshll.u32 %s3430_s12, 4  ;;  %s3435_s18 = int_to_ptr.hbm [resolvable:$true] %s3434_s18 }
  0x36   : > { %v369_v6 = vadd.f32 %v368_v5, %v6130_v4  ;;  %v4736_v19 = vor.u32 %v5456_v17, %v4735_v16  ;;  %v5552_v21 = vld [vmem:[#allocation8 + $0xbcc] sm:$0xf0]  ;;  %v3919_v22 = vld [vmem:[#allocation8 + $0x240] sm:$0xf]  ;;  %2771 = vmatpush.bf16.msra.mxu0 %v3968_v14  ;;  %s5840_s7 = sshra.s32 %s3435_s18, 4  ;;  %s5841_s7 = int_to_ptr.hbm [resolvable:$true] %s5840_s7 }
  0x37   : > { %v5120_v23 = vor.u32 %v5552_v21, %v5119_v20  ;;  %v5252_v24 = vld [vmem:[#allocation8 + $0x26c] sm:$0xf0]  ;;  %v4303_v25 = vld [vmem:[#allocation8 + $0x540] sm:$0xf]  ;;  %2784 = vmatpush.bf16.msra.mxu1 %v4352_v18  ;;  %s5842_s27 = scalar_lea.hbm %s5841_s7, 16  ;;  %p5847_p9 = scmp.lt.s32.totalorder %s5841_s7, %s6360_s5 }
  0x38   : > { %370 = vadd.xlane.f32.xlu0 %v369_v6  ;;  %v6134_v8 = vpop.eup %5671  ;;  %v5348_v26 = vld [vmem:[#allocation8 + $0x56c] sm:$0xf0]  ;;  %2797 = vmatpush.bf16.msra.mxu2 %v4736_v19  ;;  %v3920_v27 = vor.u32 %v5252_v24, %v3919_v22  ;;  %v4687_v29 = vld [vmem:[#allocation8 + $0x840] sm:$0xf]  ;;  %p5843_p1 = scmp.ne.s32.totalorder %s5841_s7, %s5842_s27 }
  0x39   : > { %v373_v9 = vmul.f32 512.0, %v6134_v8  ;;  %v4304_v28 = vor.u32 %v5348_v26, %v4303_v25  ;;  %v5444_v30 = vld [vmem:[#allocation8 + $0x86c] sm:$0xf0]  ;;  %v5071_v31 = vld [vmem:[#allocation8 + $0xb40] sm:$0xf]  ;;  %2810 = vmatpush.bf16.msra.mxu3 %v5120_v23  ;;  %vm377_vm0 = vweird.f32 %v6134_v8 }
  0x3a   : > { %v4688_v32 = vor.u32 %v5444_v30, %v4687_v29  ;;  %v5540_v33 = vld [vmem:[#allocation8 + $0xb6c] sm:$0xf0]  ;;  %v3871_v34 = vld [vmem:[#allocation8 + $0x1e0] sm:$0xf]  ;;  %2772 = vmatpush.bf16.msra.mxu0 %v3920_v27  ;;  %p5844_p3 = pnand %p5843_p1, %p6084_p0 }
  0x3b   : > { %v374_v10 = vsub.f32 1.0, %v373_v9  ;;  %v5240_v35 = vld [vmem:[#allocation8 + $0x20c] sm:$0xf0]  ;;  %v5072_v36 = vor.u32 %v5540_v33, %v5071_v31  ;;  %v4255_v37 = vld [vmem:[#allocation8 + $0x4e0] sm:$0xf]  ;;  %2785 = vmatpush.bf16.msra.mxu1 %v4304_v28 }
  0x3c   : > { %v5336_v38 = vld [vmem:[#allocation8 + $0x50c] sm:$0xf0]  ;;  %v4639_v39 = vld [vmem:[#allocation8 + $0x7e0] sm:$0xf]  ;;  %v3872_v40 = vor.u32 %v5240_v35, %v3871_v34  ;;  %2798 = vmatpush.bf16.msra.mxu2 %v4688_v32  ;;  %p5845_p8 = pneg %p5844_p3 }
  0x3d   : > { %v5432_v41 = vld [vmem:[#allocation8 + $0x80c] sm:$0xf0]  ;;  %v5023_v42 = vld [vmem:[#allocation8 + $0xae0] sm:$0xf]  ;;  %v4256_v44 = vor.u32 %v5336_v38, %v4255_v37  ;;  %v375_v49 = vmul.f32 %v6134_v8, %v374_v10  ;;  %2811 = vmatpush.bf16.msra.mxu3 %v5072_v36 }
  0x3e   : > { %v5528_v43 = vld [vmem:[#allocation8 + $0xb0c] sm:$0xf0]  ;;  %v4640_v45 = vor.u32 %v5432_v41, %v4639_v39  ;;  %v3823_v46 = vld [vmem:[#allocation8 + $0x180] sm:$0xf]  ;;  %2773 = vmatpush.bf16.msra.mxu0 %v3872_v40 }
  0x3f   : > { %v5228_v47 = vld [vmem:[#allocation8 + $0x1ac] sm:$0xf0]  ;;  %v4207_v48 = vld [vmem:[#allocation8 + $0x480] sm:$0xf]  ;;  %v5024_v50 = vor.u32 %v5528_v43, %v5023_v42  ;;  %2786 = vmatpush.bf16.msra.mxu1 %v4256_v44  ;;  %v376_v62 = vadd.f32 %v6134_v8, %v375_v49 }
  0x40   : > { %v5324_v51 = vld [vmem:[#allocation8 + $0x4ac] sm:$0xf0]  ;;  %v4591_v52 = vld [vmem:[#allocation8 + $0x780] sm:$0xf]  ;;  %v3824_v56 = vor.u32 %v5228_v47, %v3823_v46  ;;  %2799 = vmatpush.bf16.msra.mxu2 %v4640_v45 }
  0x41   : > { %v5420_v53 = vld [vmem:[#allocation8 + $0x7ac] sm:$0xf0]  ;;  %v4975_v54 = vld [vmem:[#allocation8 + $0xa80] sm:$0xf]  ;;  %v4208_v57 = vor.u32 %v5324_v51, %v4207_v48  ;;  %2812 = vmatpush.bf16.msra.mxu3 %v5024_v50  ;;  %v6141_v15 = vsel %vm377_vm0, %v6134_v8, %v376_v62  ;;  %v4353_v62 = vld [vmem:[#allocation8 + $0x5d0] sm:$0xf0] }
  0x42   : > { %v5516_v55 = vld [vmem:[#allocation8 + $0xaac] sm:$0xf0]  ;;  %v4592_v58 = vor.u32 %v5420_v53, %v4591_v52  ;;  %v3775_v59 = vld [vmem:[#allocation8 + $0x120] sm:$0xf]  ;;  %2774 = vmatpush.bf16.msra.mxu0 %v3824_v56 }
  0x43   : > { %v5216_v60 = vld [vmem:[#allocation8 + $0x14c] sm:$0xf0]  ;;  %v4159_v61 = vld [vmem:[#allocation8 + $0x420] sm:$0xf]  ;;  %v4976_v63 = vor.u32 %v5516_v55, %v4975_v54  ;;  %2787 = vmatpush.bf16.msra.mxu1 %v4208_v57 }
  0x44   : > { %v5312_v3 = vld [vmem:[#allocation8 + $0x44c] sm:$0xf0]  ;;  %v4543_v5 = vld [vmem:[#allocation8 + $0x720] sm:$0xf]  ;;  %v3776_v10 = vor.u32 %v5216_v60, %v3775_v59  ;;  %2800 = vmatpush.bf16.msra.mxu2 %v4592_v58  ;;  %v5258_v58 = vld [vmem:[#allocation8 + $0x2a4] sm:$0xf] }
  0x45   : > { %v5408_v6 = vld [vmem:[#allocation8 + $0x74c] sm:$0xf0]  ;;  %v4927_v7 = vld [vmem:[#allocation8 + $0xa20] sm:$0xf]  ;;  %v4160_v11 = vor.u32 %v5312_v3, %v4159_v61  ;;  %2813 = vmatpush.bf16.msra.mxu3 %v4976_v63  ;;  %v3969_v60 = vld [vmem:[#allocation8 + $0x2d0] sm:$0xf0] }
  0x46   : > { %v5504_v9 = vld [vmem:[#allocation8 + $0xa4c] sm:$0xf0]  ;;  %v4544_v12 = vor.u32 %v5408_v6, %v4543_v5  ;;  %v3727_v13 = vld [vmem:[#allocation8 + $0xc0] sm:$0xf]  ;;  %2775 = vmatpush.bf16.msra.mxu0 %v3776_v10  ;;  %v5354_v61 = vld [vmem:[#allocation8 + $0x5a4] sm:$0xf]  ;;  %v3972_v63 = vor.u32 %v5258_v58, %v3969_v60 }
  0x47   : > { %v5204_v14 = vld [vmem:[#allocation8 + $0xec] sm:$0xf0]  ;;  %v4928_v16 = vor.u32 %v5504_v9, %v4927_v7  ;;  %v4111_v17 = vld [vmem:[#allocation8 + $0x3c0] sm:$0xf]  ;;  %2788 = vmatpush.bf16.msra.mxu1 %v4160_v11  ;;  %v4356_v3 = vor.u32 %v5354_v61, %v4353_v62  ;;  %v5450_v5 = vld [vmem:[#allocation8 + $0x8a4] sm:$0xf] }
  0x48   : > { %v5300_v18 = vld [vmem:[#allocation8 + $0x3ec] sm:$0xf0]  ;;  %v4495_v19 = vld [vmem:[#allocation8 + $0x6c0] sm:$0xf]  ;;  %v3728_v24 = vor.u32 %v5204_v14, %v3727_v13  ;;  %2801 = vmatpush.bf16.msra.mxu2 %v4544_v12  ;;  %v4737_v6 = vld [vmem:[#allocation8 + $0x8d0] sm:$0xf0] }
  0x49   : > { %v5396_v20 = vld [vmem:[#allocation8 + $0x6ec] sm:$0xf0]  ;;  %v4879_v21 = vld [vmem:[#allocation8 + $0x9c0] sm:$0xf]  ;;  %v4112_v26 = vor.u32 %v5300_v18, %v4111_v17  ;;  %2814 = vmatpush.bf16.msra.mxu3 %v4928_v16  ;;  %v5546_v7 = vld [vmem:[#allocation8 + $0xba4] sm:$0xf]  ;;  %v4740_v9 = vor.u32 %v5450_v5, %v4737_v6 }
  0x4a   : > { %v5492_v22 = vld [vmem:[#allocation8 + $0x9ec] sm:$0xf0]  ;;  %v3679_v27 = vld [vmem:[#allocation8 + $0x60] sm:$0xf]  ;;  %v4496_v8 = vor.u32 %v5396_v20, %v4495_v19  ;;  %2776 = vmatpush.bf16.msra.mxu0 %v3728_v24  ;;  %v5121_v10 = vld [vmem:[#allocation8 + $0xbd0] sm:$0xf0] }
  0x4b   : > { %v5192_v28 = vld [vmem:[#allocation8 + $0x8c] sm:$0xf0]  ;;  %v4880_v29 = vor.u32 %v5492_v22, %v4879_v21  ;;  %v4063_v30 = vld [vmem:[#allocation8 + $0x360] sm:$0xf]  ;;  %2789 = vmatpush.bf16.msra.mxu1 %v4112_v26  ;;  %v5246_v11 = vld [vmem:[#allocation8 + $0x244] sm:$0xf]  ;;  %v5124_v13 = vor.u32 %v5546_v7, %v5121_v10 }
  0x4c   : > { %v5288_v31 = vld [vmem:[#allocation8 + $0x38c] sm:$0xf0]  ;;  %v4447_v32 = vld [vmem:[#allocation8 + $0x660] sm:$0xf]  ;;  %v3680_v39 = vor.u32 %v5192_v28, %v3679_v27  ;;  %2802 = vmatpush.bf16.msra.mxu2 %v4496_v8  ;;  %v3921_v12 = vld [vmem:[#allocation8 + $0x270] sm:$0xf0] }
  0x4d   : > { %v5384_v36 = vld [vmem:[#allocation8 + $0x68c] sm:$0xf0]  ;;  %v4831_v37 = vld [vmem:[#allocation8 + $0x960] sm:$0xf]  ;;  %2815 = vmatpush.bf16.msra.mxu3 %v4880_v29  ;;  %v3924_v14 = vor.u32 %v5246_v11, %v3921_v12  ;;  %v5342_v16 = vld [vmem:[#allocation8 + $0x544] sm:$0xf] }
  0x4e   : > { %v5480_v38 = vld [vmem:[#allocation8 + $0x98c] sm:$0xf0]  ;;  %2777 = vmatpush.bf16.msra.mxu0 %v3680_v39  ;;  %v3631_v47 = vld [vmem:[#allocation8] sm:$0xf]  ;;  %v4305_v17 = vld [vmem:[#allocation8 + $0x570] sm:$0xf0] }
  0x4f   : > { %v4832_v42 = vor.u32 %v5480_v38, %v4831_v37  ;;  %v5180_v48 = vld [vmem:[#allocation8 + $0x2c] sm:$0xf0]  ;;  %v4015_v49 = vld [vmem:[#allocation8 + $0x300] sm:$0xf]  ;;  %v5438_v18 = vld [vmem:[#allocation8 + $0x844] sm:$0xf]  ;;  %v4308_v19 = vor.u32 %v5342_v16, %v4305_v17 }
  0x50   : > { %v3632_v50 = vor.u32 %v5180_v48, %v3631_v47  ;;  %v5276_v51 = vld [vmem:[#allocation8 + $0x32c] sm:$0xf0]  ;;  %v4399_v52 = vld [vmem:[#allocation8 + $0x600] sm:$0xf]  ;;  %v4689_v20 = vld [vmem:[#allocation8 + $0x870] sm:$0xf0] }
  0x51   : > { %2816 = vmatpush.bf16.msra.mxu3 %v4832_v42  ;;  %v5372_v53 = vld [vmem:[#allocation8 + $0x62c] sm:$0xf0]  ;;  %v4016_v54 = vor.u32 %v5276_v51, %v4015_v49  ;;  %v4783_v56 = vld [vmem:[#allocation8 + $0x900] sm:$0xf]  ;;  %v5534_v21 = vld [vmem:[#allocation8 + $0xb44] sm:$0xf] }
  0x52   : > { %v4400_v55 = vor.u32 %v5372_v53, %v4399_v52  ;;  %v5468_v57 = vld [vmem:[#allocation8 + $0x92c] sm:$0xf0]  ;;  %2778 = vmatpush.bf16.msra.mxu0 %v3632_v50  ;;  %v5073_v22 = vld [vmem:[#allocation8 + $0xb70] sm:$0xf0]  ;;  %v5330_v27 = vld [vmem:[#allocation8 + $0x4e4] sm:$0xf] }
  0x53   : > { %v4784_v59 = vor.u32 %v5468_v57, %v4783_v56  ;;  %v5076_v24 = vor.u32 %v5534_v21, %v5073_v22  ;;  %v3873_v26 = vld [vmem:[#allocation8 + $0x210] sm:$0xf0]  ;;  %v5426_v29 = vld [vmem:[#allocation8 + $0x7e4] sm:$0xf] }
  0x54   : > { %v4257_v8 = vld [vmem:[#allocation8 + $0x510] sm:$0xf0]  ;;  %v5222_v39 = vld [vmem:[#allocation8 + $0x184] sm:$0xf] }
  0x55   : > { %2817 = vmatpush.bf16.msra.mxu3 %v4784_v59  ;;  %v5025_v37 = vld [vmem:[#allocation8 + $0xb10] sm:$0xf0]  ;;  %v5414_v42 = vld [vmem:[#allocation8 + $0x784] sm:$0xf] }
  0x56   : > { %2823 = vmatpush.bf16.msrb.mxu0 %v3972_v63  ;;  %v5210_v48 = vld [vmem:[#allocation8 + $0x124] sm:$0xf]  ;;  %v3777_v49 = vld [vmem:[#allocation8 + $0x150] sm:$0xf0] }
  0x57   : > { %v5306_v50 = vld [vmem:[#allocation8 + $0x424] sm:$0xf]  ;;  %v3780_v51 = vor.u32 %v5210_v48, %v3777_v49  ;;  %v4161_v52 = vld [vmem:[#allocation8 + $0x450] sm:$0xf0] }
  0x58   : > { %v5402_v53 = vld [vmem:[#allocation8 + $0x724] sm:$0xf]  ;;  %v4929_v58 = vld [vmem:[#allocation8 + $0xa50] sm:$0xf0] }
  0x59   : > { %2862 = vmatpush.bf16.msrb.mxu3 %v5124_v13  ;;  %v5498_v57 = vld [vmem:[#allocation8 + $0xa24] sm:$0xf]  ;;  %v3729_v61 = vld [vmem:[#allocation8 + $0xf0] sm:$0xf0] }
  0x5a   : > { %2824 = vmatpush.bf16.msrb.mxu0 %v3924_v14  ;;  %v4932_v59 = vor.u32 %v5498_v57, %v4929_v58  ;;  %v5198_v60 = vld [vmem:[#allocation8 + $0xc4] sm:$0xf]  ;;  %v4497_v6 = vld [vmem:[#allocation8 + $0x6f0] sm:$0xf0] }
  0x5b   : > { %v5294_v62 = vld [vmem:[#allocation8 + $0x3c4] sm:$0xf]  ;;  %v3732_v63 = vor.u32 %v5198_v60, %v3729_v61  ;;  %v4881_v11 = vld [vmem:[#allocation8 + $0x9f0] sm:$0xf0]  ;;  %v3975_v60 = vld [vmem:[#allocation8 + $0x2a8] sm:$0xf] }
  0x5c   : > { %v5390_v5 = vld [vmem:[#allocation8 + $0x6c4] sm:$0xf]  ;;  %v3681_v14 = vld [vmem:[#allocation8 + $0x90] sm:$0xf0] }
  0x5d   : > { %2863 = vmatpush.bf16.msrb.mxu3 %v5076_v24  ;;  %v5486_v10 = vld [vmem:[#allocation8 + $0x9c4] sm:$0xf]  ;;  %v4833_v24 = vld [vmem:[#allocation8 + $0x990] sm:$0xf0] }
  0x5e   : > { %v4884_v12 = vor.u32 %v5486_v10, %v4881_v11  ;;  %v5186_v13 = vld [vmem:[#allocation8 + $0x64] sm:$0xf] }
  0x5f   : > { %v5282_v16 = vld [vmem:[#allocation8 + $0x364] sm:$0xf]  ;;  %v3684_v17 = vor.u32 %v5186_v13, %v3681_v14  ;;  %v5127_v14 = vld [vmem:[#allocation8 + $0xba8] sm:$0xf] }
  0xab   : > { %v371_v23 = vpop.xlane.xlu0 %370 }
  0xac   : > { %v379_v25 = vmul.f32 %v6141_v15, %v371_v23  ;;  %v4692_v23 = vor.u32 %v5438_v18, %v4689_v20  ;;  %v4065_v18 = vld [vmem:[#allocation8 + $0x390] sm:$0xf0] }
  0xad   : > { %v4449_v20 = vld [vmem:[#allocation8 + $0x690] sm:$0xf0]  ;;  %v4068_v21 = vor.u32 %v5282_v16, %v4065_v18 }
  0xae   : > { %v6145_v33 = vsub.f32 %v6122_v0, %v379_v25  ;;  %v6148_v34 = vsub.f32 %v6124_v1, %v379_v25  ;;  %v6151_v35 = vsub.f32 %v6126_v2, %v379_v25  ;;  %v6154_v40 = vsub.f32 %v6130_v4, %v379_v25  ;;  %v5234_v25 = vld [vmem:[#allocation8 + $0x1e4] sm:$0xf] }
  0xaf   : > { %v4064_v1 = vor.u32 %v5288_v31, %v4063_v30  ;;  %v4448_v2 = vor.u32 %v5384_v36, %v4447_v32  ;;  %v3876_v28 = vor.u32 %v5234_v25, %v3873_v26  ;;  %v4641_v30 = vld [vmem:[#allocation8 + $0x810] sm:$0xf0]  ;;  %v4260_v31 = vor.u32 %v5330_v27, %v4257_v8  ;;  %v5522_v36 = vld [vmem:[#allocation8 + $0xae4] sm:$0xf] }
  0xb0   : > { %v384_v41 = vmul.f32 %v6145_v33, %v6145_v33  ;;  %v385_v0 = vmul.f32 %v6148_v34, %v6148_v34  ;;  %v386_v43 = vmul.f32 %v6151_v35, %v6151_v35  ;;  %v387_v4 = vmul.f32 %v6154_v40, %v6154_v40  ;;  %v5174_v26 = vld [vmem:[#allocation8 + $0x4] sm:$0xf]  ;;  %v3633_v27 = vld [vmem:[#allocation8 + $0x30] sm:$0xf0] }
  0xb1   : > { %2790 = vmatpush.bf16.msra.mxu1 %v4064_v1  ;;  %2803 = vmatpush.bf16.msra.mxu2 %v4448_v2  ;;  %v4644_v32 = vor.u32 %v5426_v29, %v4641_v30  ;;  %v5028_v38 = vor.u32 %v5522_v36, %v5025_v37  ;;  %v4209_v2 = vld [vmem:[#allocation8 + $0x4b0] sm:$0xf0]  ;;  %v3636_v8 = vor.u32 %v5174_v26, %v3633_v27  ;;  %v5366_v30 = vld [vmem:[#allocation8 + $0x604] sm:$0xf]  ;;  %v4695_v26 = vld [vmem:[#allocation8 + $0x848] sm:$0xf] }
  0xb2   : > { %v388_v44 = vadd.f32 %v385_v0, %v384_v41  ;;  %v3825_v41 = vld [vmem:[#allocation8 + $0x1b0] sm:$0xf0]  ;;  %v5318_v0 = vld [vmem:[#allocation8 + $0x484] sm:$0xf]  ;;  %2825 = vmatpush.bf16.msrb.mxu0 %v3876_v28  ;;  %v5445_v27 = vld [vmem:[#allocation8 + $0x874] sm:$0xf0] }
  0xb3   : > { %v3828_v1 = vor.u32 %v5222_v39, %v3825_v41  ;;  %2864 = vmatpush.bf16.msrb.mxu3 %v5028_v38  ;;  %v5270_v28 = vld [vmem:[#allocation8 + $0x304] sm:$0xf]  ;;  %v4017_v29 = vld [vmem:[#allocation8 + $0x330] sm:$0xf0] }
  0xb4   : > { %v389_v45 = vadd.f32 %v388_v44, %v386_v43  ;;  %v4593_v43 = vld [vmem:[#allocation8 + $0x7b0] sm:$0xf0]  ;;  %v4212_v44 = vor.u32 %v5318_v0, %v4209_v2  ;;  %v5462_v37 = vld [vmem:[#allocation8 + $0x904] sm:$0xf] }
  0xb5   : > { %2791 = vmatpush.bf16.msra.mxu1 %v4016_v54  ;;  %2804 = vmatpush.bf16.msra.mxu2 %v4400_v55  ;;  %v4545_v54 = vld [vmem:[#allocation8 + $0x750] sm:$0xf0]  ;;  %v4164_v55 = vor.u32 %v5306_v50, %v4161_v52 }
  0xb6   : > { %v390_v46 = vadd.f32 %v389_v45, %v387_v4  ;;  %v4596_v4 = vor.u32 %v5414_v42, %v4593_v43  ;;  %v5510_v45 = vld [vmem:[#allocation8 + $0xa84] sm:$0xf]  ;;  %2826 = vmatpush.bf16.msrb.mxu0 %v3828_v1  ;;  %v4548_v56 = vor.u32 %v5402_v53, %v4545_v54  ;;  %v4785_v38 = vld [vmem:[#allocation8 + $0x930] sm:$0xf0] }
  0xb7   : > { %v4788_v39 = vor.u32 %v5462_v37, %v4785_v38  ;;  %v4263_v38 = vld [vmem:[#allocation8 + $0x4e8] sm:$0xf] }
  0xb8   : > { %391 = vadd.xlane.f32.xlu0 %v390_v46  ;;  %v4977_v46 = vld [vmem:[#allocation8 + $0xab0] sm:$0xf0] }
  0xb9   : > { %2836 = vmatpush.bf16.msrb.mxu1 %v4356_v3  ;;  %2849 = vmatpush.bf16.msrb.mxu2 %v4740_v9  ;;  %v4980_v47 = vor.u32 %v5510_v45, %v4977_v46  ;;  %v4113_v3 = vld [vmem:[#allocation8 + $0x3f0] sm:$0xf0]  ;;  %v4500_v9 = vor.u32 %v5390_v5, %v4497_v6  ;;  %v366_v45 = vld [vmem:[#allocation7] sm:$0xf]  ;;  %v5265_v5 = vld [vmem:[#allocation8 + $0x2d4] sm:$0xf0] }
  0xba   : > { %2827 = vmatpush.bf16.msrb.mxu0 %v3780_v51  ;;  %v4116_v7 = vor.u32 %v5294_v62, %v4113_v3  ;;  %v423_v52 = vperm.slane %v366_v45, 0  ;;  %v425_v53 = vperm.slane %v366_v45, 2  ;;  %v426_v54 = vperm.slane %v366_v45, 3  ;;  %v4359_v6 = vld [vmem:[#allocation8 + $0x5a8] sm:$0xf] }
  0xbb   : > { %2865 = vmatpush.bf16.msrb.mxu3 %v4980_v47  ;;  %v3976_v16 = vor.u32 %v5265_v5, %v3975_v60  ;;  %v4551_v60 = vld [vmem:[#allocation8 + $0x728] sm:$0xf] }
  0xbd   : > { %2837 = vmatpush.bf16.msrb.mxu1 %v4308_v19  ;;  %2850 = vmatpush.bf16.msrb.mxu2 %v4692_v23  ;;  %v5378_v19 = vld [vmem:[#allocation8 + $0x664] sm:$0xf] }
  0xbe   : > { %2828 = vmatpush.bf16.msrb.mxu0 %v3732_v63  ;;  %v4452_v22 = vor.u32 %v5378_v19, %v4449_v20  ;;  %v5474_v23 = vld [vmem:[#allocation8 + $0x964] sm:$0xf]  ;;  %v3927_v20 = vld [vmem:[#allocation8 + $0x248] sm:$0xf] }
  0xbf   : > { %2866 = vmatpush.bf16.msrb.mxu3 %v4932_v59  ;;  %v4836_v25 = vor.u32 %v5474_v23, %v4833_v24  ;;  %v4311_v24 = vld [vmem:[#allocation8 + $0x548] sm:$0xf] }
  0xc1   : > { %2838 = vmatpush.bf16.msrb.mxu1 %v4260_v31  ;;  %2851 = vmatpush.bf16.msrb.mxu2 %v4644_v32  ;;  %v4401_v31 = vld [vmem:[#allocation8 + $0x630] sm:$0xf0]  ;;  %v4020_v32 = vor.u32 %v5270_v28, %v4017_v29  ;;  %v5079_v28 = vld [vmem:[#allocation8 + $0xb48] sm:$0xf] }
  0xc2   : > { %2829 = vmatpush.bf16.msrb.mxu0 %v3684_v17  ;;  %v4404_v36 = vor.u32 %v5366_v30, %v4401_v31  ;;  %v3879_v31 = vld [vmem:[#allocation8 + $0x1e8] sm:$0xf] }
  0xc3   : > { %2867 = vmatpush.bf16.msrb.mxu3 %v4884_v12 }
  0xc5   : > { %2839 = vmatpush.bf16.msrb.mxu1 %v4212_v44  ;;  %2852 = vmatpush.bf16.msrb.mxu2 %v4596_v4  ;;  %v365_v4 = vld [vmem:[#allocation5] sm:$0xf] }
  0xc6   : > { %2830 = vmatpush.bf16.msrb.mxu0 %v3636_v8  ;;  %v410_v47 = vperm.slane %v365_v4, 0  ;;  %v411_v49 = vperm.slane %v365_v4, 1  ;;  %v412_v50 = vperm.slane %v365_v4, 2  ;;  %v413_v51 = vperm.slane %v365_v4, 3  ;;  %v5541_v8 = vld [vmem:[#allocation8 + $0xb74] sm:$0xf0] }
  0xc7   : > { %2868 = vmatpush.bf16.msrb.mxu3 %v4836_v25  ;;  %v5349_v25 = vld [vmem:[#allocation8 + $0x574] sm:$0xf0]  ;;  %v5080_v37 = vor.u32 %v5541_v8, %v5079_v28  ;;  %v4839_v28 = vld [vmem:[#allocation8 + $0x968] sm:$0xf] }
  0xc8   : > { %v4312_v30 = vor.u32 %v5349_v25, %v4311_v24  ;;  %v5229_v4 = vld [vmem:[#allocation8 + $0x1b4] sm:$0xf0]  ;;  %v4071_v24 = vld [vmem:[#allocation8 + $0x368] sm:$0xf] }
  0xc9   : > { %2840 = vmatpush.bf16.msrb.mxu1 %v4164_v55  ;;  %2853 = vmatpush.bf16.msrb.mxu2 %v4548_v56  ;;  %v5289_v25 = vld [vmem:[#allocation8 + $0x394] sm:$0xf0] }
  0xca   : > { %v5481_v8 = vld [vmem:[#allocation8 + $0x994] sm:$0xf0] }
  0xcb   : > { %2869 = vmatpush.bf16.msrb.mxu3 %v4788_v39  ;;  %v5337_v39 = vld [vmem:[#allocation8 + $0x514] sm:$0xf0] }
  0xcd   : > { %2841 = vmatpush.bf16.msrb.mxu1 %v4116_v7  ;;  %2854 = vmatpush.bf16.msrb.mxu2 %v4500_v9  ;;  %v5361_v7 = vld [vmem:[#allocation8 + $0x5d4] sm:$0xf0]  ;;  %v4743_v9 = vld [vmem:[#allocation8 + $0x8a8] sm:$0xf] }
  0xd1   : > { %2842 = vmatpush.bf16.msrb.mxu1 %v4068_v21  ;;  %2855 = vmatpush.bf16.msrb.mxu2 %v4452_v22  ;;  %v5253_v21 = vld [vmem:[#allocation8 + $0x274] sm:$0xf0] }
  0xd2   : > { %v3928_v29 = vor.u32 %v5253_v21, %v3927_v20  ;;  %v3687_v20 = vld [vmem:[#allocation8 + $0x68] sm:$0xf]  ;;  %v5193_v21 = vld [vmem:[#allocation8 + $0x94] sm:$0xf0] }
  0xd5   : > { %2843 = vmatpush.bf16.msrb.mxu1 %v4020_v32  ;;  %2856 = vmatpush.bf16.msrb.mxu2 %v4404_v36  ;;  %v5241_v32 = vld [vmem:[#allocation8 + $0x214] sm:$0xf0]  ;;  %v4696_v36 = vor.u32 %v5445_v27, %v4695_v26  ;;  %v4455_v26 = vld [vmem:[#allocation8 + $0x668] sm:$0xf] }
  0xd6   : > { %v5385_v27 = vld [vmem:[#allocation8 + $0x694] sm:$0xf0] }
 0x12b   : > { %v392_v41 = vpop.xlane.xlu0 %391 }
 0x12c   : > { %v393_v0 = vmul.f32 %v392_v41, %v6141_v15  ;;  %v424_v15 = vperm.slane %v366_v45, 1  ;;  %v4647_v41 = vld [vmem:[#allocation8 + $0x7e8] sm:$0xf] }
 0x12e   : > { %v394_v1 = vadd.f32 1e-06, %v393_v0  ;;  %v5433_v0 = vld [vmem:[#allocation8 + $0x814] sm:$0xf0] }
 0x12f   : > { %v4648_v45 = vor.u32 %v5433_v0, %v4647_v41  ;;  %v4407_v41 = vld [vmem:[#allocation8 + $0x608] sm:$0xf]  ;;  %v5373_v0 = vld [vmem:[#allocation8 + $0x634] sm:$0xf0] }
 0x130   : > { %5673 = vrsqrt.f32 %v394_v1  ;;  %vm401_vm2 = vweird.f32 %v394_v1 }
 0x136   : > { %v5674_v2 = vpop.eup %5673 }
 0x137   : > { %v396_v42 = vmul.f32 %v5674_v2, %v394_v1  ;;  %vm402_vm1 = vweird.f32 %v5674_v2  ;;  %v5031_v1 = vld [vmem:[#allocation8 + $0xae8] sm:$0xf] }
 0x138   : > { %vm403_vm3 = vmor %vm401_vm2, %vm402_vm1 }
 0x139   : > { %v397_v43 = vmul.f32 %v5674_v2, %v396_v42  ;;  %v3880_v42 = vor.u32 %v5241_v32, %v3879_v31  ;;  %v4072_v31 = vor.u32 %v5289_v25, %v4071_v24  ;;  %v5181_v32 = vld [vmem:[#allocation8 + $0x34] sm:$0xf0]  ;;  %v5319_v24 = vld [vmem:[#allocation8 + $0x48c] sm:$0xf]  ;;  %v4217_v25 = vld [vmem:[#allocation8 + $0x4b8] sm:$0xf0] }
 0x13b   : > { %v398_v44 = vmul.f32 0.5, %v397_v43  ;;  %v4264_v43 = vor.u32 %v5337_v39, %v4263_v38  ;;  %v4456_v38 = vor.u32 %v5385_v27, %v4455_v26  ;;  %v4840_v39 = vor.u32 %v5481_v8, %v4839_v28  ;;  %v5415_v26 = vld [vmem:[#allocation8 + $0x78c] sm:$0xf]  ;;  %v4601_v27 = vld [vmem:[#allocation8 + $0x7b8] sm:$0xf0] }
 0x13c   : > { %v5511_v28 = vld [vmem:[#allocation8 + $0xa8c] sm:$0xf]  ;;  %v4985_v8 = vld [vmem:[#allocation8 + $0xab8] sm:$0xf0] }
 0x13d   : > { %v399_v46 = vsub.f32 1.5, %v398_v44  ;;  %v3831_v44 = vld [vmem:[#allocation8 + $0x188] sm:$0xf] }
 0x13f   : > { %v400_v48 = vmul.f32 %v5674_v2, %v399_v46 }
 0x141   : > { %v404_v55 = vsel %vm403_vm3, %v5674_v2, %v400_v48  ;;  %v5529_v2 = vld [vmem:[#allocation8 + $0xb14] sm:$0xf0] }
 0x142   : > { %v405_v56 = vmul.f32 %v404_v55, %v6145_v33  ;;  %v406_v57 = vmul.f32 %v404_v55, %v6148_v34  ;;  %v407_v58 = vmul.f32 %v404_v55, %v6151_v35  ;;  %v408_v59 = vmul.f32 %v404_v55, %v6154_v40  ;;  %v5457_v33 = vld [vmem:[#allocation8 + $0x8d4] sm:$0xf0] }
 0x143   : > { %v5553_v34 = vld [vmem:[#allocation8 + $0xbd4] sm:$0xf0]  ;;  %v4360_v35 = vor.u32 %v5361_v7, %v4359_v6  ;;  %v4744_v22 = vor.u32 %v5457_v33, %v4743_v9  ;;  %v5032_v46 = vor.u32 %v5529_v2, %v5031_v1  ;;  %v3735_v6 = vld [vmem:[#allocation8 + $0xc8] sm:$0xf] }
 0x144   : > { %v418_v61 = vmul.f32 %v410_v47, %v405_v56  ;;  %v419_v62 = vmul.f32 %v411_v49, %v406_v57  ;;  %v420_v63 = vmul.f32 %v412_v50, %v407_v58  ;;  %v421_v3 = vmul.f32 %v413_v51, %v408_v59  ;;  %v4215_v47 = vld [vmem:[#allocation8 + $0x488] sm:$0xf]  ;;  %v5325_v48 = vld [vmem:[#allocation8 + $0x4b4] sm:$0xf0] }
 0x145   : > { %v5128_v23 = vor.u32 %v5553_v34, %v5127_v14  ;;  %v4599_v49 = vld [vmem:[#allocation8 + $0x788] sm:$0xf]  ;;  %v5421_v50 = vld [vmem:[#allocation8 + $0x7b4] sm:$0xf0] }
 0x146   : > { %v431_v10 = vadd.f32 %v423_v52, %v418_v61  ;;  %v432_v11 = vadd.f32 %v424_v15, %v419_v62  ;;  %v433_v12 = vadd.f32 %v425_v53, %v420_v63  ;;  %v434_v13 = vadd.f32 %v426_v54, %v421_v3  ;;  %v4983_v51 = vld [vmem:[#allocation8 + $0xa88] sm:$0xf]  ;;  %v5517_v52 = vld [vmem:[#allocation8 + $0xab4] sm:$0xf0] }
 0x147   : > { %v3832_v15 = vor.u32 %v5229_v4, %v3831_v44  ;;  %v4216_v53 = vor.u32 %v5325_v48, %v4215_v47  ;;  %v3783_v54 = vld [vmem:[#allocation8 + $0x128] sm:$0xf]  ;;  %v5217_v55 = vld [vmem:[#allocation8 + $0x154] sm:$0xf0]  ;;  %v4600_v56 = vor.u32 %v5421_v50, %v4599_v49  ;;  %v4984_v57 = vor.u32 %v5517_v52, %v4983_v51  ;;  %v5355_v44 = vld [vmem:[#allocation8 + $0x5ac] sm:$0xf] }
 0x148   : > { %v6169_v17 = vpack.c.bf16 %v431_v10, %v431_v10  ;;  %v6171_v40 = vpack.c.bf16 %v432_v11, %v432_v11  ;;  %v6173_v18 = vpack.c.bf16 %v433_v12, %v433_v12  ;;  %v6175_v19 = vpack.c.bf16 %v434_v13, %v434_v13  ;;  %v4167_v58 = vld [vmem:[#allocation8 + $0x428] sm:$0xf]  ;;  %v5313_v59 = vld [vmem:[#allocation8 + $0x454] sm:$0xf0]  ;;  %v4361_v4 = vld [vmem:[#allocation8 + $0x5d8] sm:$0xf0] }
 0x149   : > { %v5409_v61 = vld [vmem:[#allocation8 + $0x754] sm:$0xf0]  ;;  %v4935_v62 = vld [vmem:[#allocation8 + $0xa28] sm:$0xf]  ;;  %v3784_v3 = vor.u32 %v5217_v55, %v3783_v54  ;;  %v4168_v5 = vor.u32 %v5313_v59, %v4167_v58  ;;  %v4745_v48 = vld [vmem:[#allocation8 + $0x8d8] sm:$0xf0]  ;;  %v4408_v51 = vor.u32 %v5373_v0, %v4407_v41 }
 0x14a   : > { %2779 = vmatmul.bf16.vlgmr.msra.gmra.mxu0 %v6169_v17  ;;  %2792 = vmatmul.bf16.vlgmr.msra.gmra.mxu1 %v6171_v40  ;;  %v5505_v63 = vld [vmem:[#allocation8 + $0xa54] sm:$0xf0]  ;;  %v4552_v9 = vor.u32 %v5409_v61, %v4551_v60  ;;  %v4119_v11 = vld [vmem:[#allocation8 + $0x3c8] sm:$0xf]  ;;  %v5547_v49 = vld [vmem:[#allocation8 + $0xbac] sm:$0xf] }
 0x14b   : > { %2805 = vmatmul.bf16.vlgmr.msra.gmra.mxu2 %v6173_v18  ;;  %2818 = vmatmul.bf16.vlgmr.msra.gmra.mxu3 %v6175_v19  ;;  %v5205_v7 = vld [vmem:[#allocation8 + $0xf4] sm:$0xf0]  ;;  %v4936_v10 = vor.u32 %v5505_v63, %v4935_v62  ;;  %v4503_v13 = vld [vmem:[#allocation8 + $0x6c8] sm:$0xf]  ;;  %v5129_v50 = vld [vmem:[#allocation8 + $0xbd8] sm:$0xf0] }
 0x14c   : > { %2875 = vmatpush.bf16.msra.mxu0 %v3976_v16  ;;  %2888 = vmatpush.bf16.msra.mxu1 %v4360_v35  ;;  %v5301_v12 = vld [vmem:[#allocation8 + $0x3f4] sm:$0xf0]  ;;  %v4887_v14 = vld [vmem:[#allocation8 + $0x9c8] sm:$0xf]  ;;  %v3736_v16 = vor.u32 %v5205_v7, %v3735_v6  ;;  %v5247_v54 = vld [vmem:[#allocation8 + $0x24c] sm:$0xf] }
 0x14d   : > { %2901 = vmatpush.bf16.msra.mxu2 %v4744_v22  ;;  %2914 = vmatpush.bf16.msra.mxu3 %v5128_v23  ;;  %v5397_v33 = vld [vmem:[#allocation8 + $0x6f4] sm:$0xf0]  ;;  %v4120_v35 = vor.u32 %v5301_v12, %v4119_v11  ;;  %v4791_v1 = vld [vmem:[#allocation8 + $0x908] sm:$0xf]  ;;  %v3929_v55 = vld [vmem:[#allocation8 + $0x278] sm:$0xf0] }
 0x14e   : > { %v5493_v34 = vld [vmem:[#allocation8 + $0x9f4] sm:$0xf0]  ;;  %v4504_v22 = vor.u32 %v5397_v33, %v4503_v13  ;;  %v5343_v58 = vld [vmem:[#allocation8 + $0x54c] sm:$0xf]  ;;  %v4313_v59 = vld [vmem:[#allocation8 + $0x578] sm:$0xf0] }
 0x14f   : > { %v4888_v23 = vor.u32 %v5493_v34, %v4887_v14  ;;  %v5469_v2 = vld [vmem:[#allocation8 + $0x934] sm:$0xf0]  ;;  %v5439_v60 = vld [vmem:[#allocation8 + $0x84c] sm:$0xf]  ;;  %v4697_v61 = vld [vmem:[#allocation8 + $0x878] sm:$0xf0] }
 0x150   : > { %2876 = vmatpush.bf16.msra.mxu0 %v3928_v29  ;;  %2889 = vmatpush.bf16.msra.mxu1 %v4312_v30  ;;  %v3639_v29 = vld [vmem:[#allocation8 + $0x8] sm:$0xf]  ;;  %v3688_v30 = vor.u32 %v5193_v21, %v3687_v20  ;;  %v4792_v52 = vor.u32 %v5469_v2, %v4791_v1  ;;  %v5535_v62 = vld [vmem:[#allocation8 + $0xb4c] sm:$0xf]  ;;  %v5081_v63 = vld [vmem:[#allocation8 + $0xb78] sm:$0xf0] }
 0x151   : > { %2902 = vmatpush.bf16.msra.mxu2 %v4696_v36  ;;  %2915 = vmatpush.bf16.msra.mxu3 %v5080_v37  ;;  %v4023_v36 = vld [vmem:[#allocation8 + $0x308] sm:$0xf]  ;;  %v5277_v37 = vld [vmem:[#allocation8 + $0x334] sm:$0xf0]  ;;  %v5235_v6 = vld [vmem:[#allocation8 + $0x1ec] sm:$0xf] }
 0x152   : > { %v4024_v47 = vor.u32 %v5277_v37, %v4023_v36  ;;  %v3881_v7 = vld [vmem:[#allocation8 + $0x218] sm:$0xf0]  ;;  %v5331_v11 = vld [vmem:[#allocation8 + $0x4ec] sm:$0xf]  ;;  %v4604_v36 = vor.u32 %v5415_v26, %v4601_v27  ;;  %v4988_v37 = vor.u32 %v5511_v28, %v4985_v8  ;;  %v5135_v26 = vld [vmem:[#allocation8 + $0xbb0] sm:$0xf] }
 0x153   : > { %v4265_v12 = vld [vmem:[#allocation8 + $0x518] sm:$0xf0]  ;;  %v5427_v13 = vld [vmem:[#allocation8 + $0x7ec] sm:$0xf]  ;;  %v5554_v27 = vld [vmem:[#allocation8 + $0xbdc] sm:$0xf0] }
 0x154   : > { %2877 = vmatpush.bf16.msra.mxu0 %v3880_v42  ;;  %2890 = vmatpush.bf16.msra.mxu1 %v4264_v43  ;;  %v5259_v42 = vld [vmem:[#allocation8 + $0x2ac] sm:$0xf]  ;;  %v3977_v43 = vld [vmem:[#allocation8 + $0x2d8] sm:$0xf0] }
 0x155   : > { %2903 = vmatpush.bf16.msra.mxu2 %v4648_v45  ;;  %2916 = vmatpush.bf16.msra.mxu3 %v5032_v46  ;;  %v5451_v45 = vld [vmem:[#allocation8 + $0x8ac] sm:$0xf]  ;;  %v3640_v46 = vor.u32 %v5181_v32, %v3639_v29  ;;  %v4649_v33 = vld [vmem:[#allocation8 + $0x818] sm:$0xf0] }
 0x156   : > { %v5523_v14 = vld [vmem:[#allocation8 + $0xaec] sm:$0xf]  ;;  %v5033_v34 = vld [vmem:[#allocation8 + $0xb18] sm:$0xf0] }
 0x157   : > { %v5223_v20 = vld [vmem:[#allocation8 + $0x18c] sm:$0xf]  ;;  %v3833_v21 = vld [vmem:[#allocation8 + $0x1b8] sm:$0xf0] }
 0x158   : > { %2878 = vmatpush.bf16.msra.mxu0 %v3832_v15  ;;  %2891 = vmatpush.bf16.msra.mxu1 %v4216_v53  ;;  %v3980_v15 = vor.u32 %v5259_v42, %v3977_v43  ;;  %v4364_v53 = vor.u32 %v5355_v44, %v4361_v4  ;;  %v3836_v29 = vor.u32 %v5223_v20, %v3833_v21  ;;  %v3785_v32 = vld [vmem:[#allocation8 + $0x158] sm:$0xf0]  ;;  %v5403_v41 = vld [vmem:[#allocation8 + $0x72c] sm:$0xf]  ;;  %v4367_v20 = vld [vmem:[#allocation8 + $0x5b0] sm:$0xf] }
 0x159   : > { %2904 = vmatpush.bf16.msra.mxu2 %v4600_v56  ;;  %2917 = vmatpush.bf16.msra.mxu3 %v4984_v57  ;;  %v4748_v56 = vor.u32 %v5451_v45, %v4745_v48  ;;  %v5132_v57 = vor.u32 %v5547_v49, %v5129_v50  ;;  %v4553_v0 = vld [vmem:[#allocation8 + $0x758] sm:$0xf0]  ;;  %v5499_v1 = vld [vmem:[#allocation8 + $0xa2c] sm:$0xf]  ;;  %v5362_v21 = vld [vmem:[#allocation8 + $0x5dc] sm:$0xf0] }
 0x15a   : > { %2831 = vmatmul.bf16.vlgmr.msrb.gmra.mxu0 %v6169_v17  ;;  %2844 = vmatmul.bf16.vlgmr.msrb.gmra.mxu1 %v6171_v40  ;;  %v4937_v2 = vld [vmem:[#allocation8 + $0xa58] sm:$0xf0]  ;;  %v5199_v44 = vld [vmem:[#allocation8 + $0xcc] sm:$0xf]  ;;  %v4556_v45 = vor.u32 %v5403_v41, %v4553_v0  ;;  %v4703_v41 = vld [vmem:[#allocation8 + $0x850] sm:$0xf] }
 0x15b   : > { %2857 = vmatmul.bf16.vlgmr.msrb.gmra.mxu2 %v6173_v18  ;;  %2870 = vmatmul.bf16.vlgmr.msrb.gmra.mxu3 %v6175_v19  ;;  %v3737_v4 = vld [vmem:[#allocation8 + $0xf8] sm:$0xf0]  ;;  %v5391_v49 = vld [vmem:[#allocation8 + $0x6cc] sm:$0xf]  ;;  %v5446_v0 = vld [vmem:[#allocation8 + $0x87c] sm:$0xf0] }
 0x15c   : > { %2879 = vmatpush.bf16.msra.mxu0 %v3784_v3  ;;  %2892 = vmatpush.bf16.msra.mxu1 %v4168_v5  ;;  %v3932_v3 = vor.u32 %v5247_v54, %v3929_v55  ;;  %v4316_v5 = vor.u32 %v5343_v58, %v4313_v59  ;;  %v4121_v48 = vld [vmem:[#allocation8 + $0x3f8] sm:$0xf0]  ;;  %v5187_v54 = vld [vmem:[#allocation8 + $0x6c] sm:$0xf] }
 0x15d   : > { %2905 = vmatpush.bf16.msra.mxu2 %v4552_v9  ;;  %2918 = vmatpush.bf16.msra.mxu3 %v4936_v10  ;;  %v4700_v9 = vor.u32 %v5439_v60, %v4697_v61  ;;  %v5084_v10 = vor.u32 %v5535_v62, %v5081_v63  ;;  %v4505_v50 = vld [vmem:[#allocation8 + $0x6f8] sm:$0xf0]  ;;  %v5283_v58 = vld [vmem:[#allocation8 + $0x36c] sm:$0xf] }
 0x15e   : > { %v3689_v55 = vld [vmem:[#allocation8 + $0x98] sm:$0xf0]  ;;  %v5379_v60 = vld [vmem:[#allocation8 + $0x66c] sm:$0xf] }
 0x15f   : > { %v4073_v59 = vld [vmem:[#allocation8 + $0x398] sm:$0xf0]  ;;  %v5475_v62 = vld [vmem:[#allocation8 + $0x96c] sm:$0xf] }
 0x160   : > { %2880 = vmatpush.bf16.msra.mxu0 %v3736_v16  ;;  %2893 = vmatpush.bf16.msra.mxu1 %v4120_v35  ;;  %v3884_v16 = vor.u32 %v5235_v6, %v3881_v7  ;;  %v4268_v35 = vor.u32 %v5331_v11, %v4265_v12  ;;  %v4457_v61 = vld [vmem:[#allocation8 + $0x698] sm:$0xf0]  ;;  %v4076_v6 = vor.u32 %v5283_v58, %v4073_v59  ;;  %v4223_v58 = vld [vmem:[#allocation8 + $0x490] sm:$0xf]  ;;  %v5326_v59 = vld [vmem:[#allocation8 + $0x4bc] sm:$0xf0] }
 0x161   : > { %2906 = vmatpush.bf16.msra.mxu2 %v4504_v22  ;;  %2919 = vmatpush.bf16.msra.mxu3 %v4888_v23  ;;  %v4652_v22 = vor.u32 %v5427_v13, %v4649_v33  ;;  %v5036_v23 = vor.u32 %v5523_v14, %v5033_v34  ;;  %v4841_v63 = vld [vmem:[#allocation8 + $0x998] sm:$0xf0]  ;;  %v4460_v11 = vor.u32 %v5379_v60, %v4457_v61  ;;  %v5367_v13 = vld [vmem:[#allocation8 + $0x60c] sm:$0xf]  ;;  %v4607_v60 = vld [vmem:[#allocation8 + $0x790] sm:$0xf] }
 0x162   : > { %v3641_v7 = vld [vmem:[#allocation8 + $0x38] sm:$0xf0]  ;;  %v4844_v12 = vor.u32 %v5475_v62, %v4841_v63  ;;  %v5463_v14 = vld [vmem:[#allocation8 + $0x90c] sm:$0xf]  ;;  %v5422_v61 = vld [vmem:[#allocation8 + $0x7bc] sm:$0xf0] }
 0x163   : > { %v4409_v33 = vld [vmem:[#allocation8 + $0x638] sm:$0xf0]  ;;  %v4991_v62 = vld [vmem:[#allocation8 + $0xa90] sm:$0xf]  ;;  %v5518_v63 = vld [vmem:[#allocation8 + $0xabc] sm:$0xf0] }
 0x164   : > { %2881 = vmatpush.bf16.msra.mxu0 %v3688_v30  ;;  %2894 = vmatpush.bf16.msra.mxu1 %v4072_v31  ;;  %v4220_v30 = vor.u32 %v5319_v24, %v4217_v25  ;;  %v5211_v31 = vld [vmem:[#allocation8 + $0x12c] sm:$0xf]  ;;  %v4793_v34 = vld [vmem:[#allocation8 + $0x938] sm:$0xf0]  ;;  %v5458_v25 = vld [vmem:[#allocation8 + $0x8dc] sm:$0xf0]  ;;  %v4412_v28 = vor.u32 %v5367_v13, %v4409_v33 }
 0x165   : > { %2907 = vmatpush.bf16.msra.mxu2 %v4456_v38  ;;  %2920 = vmatpush.bf16.msra.mxu3 %v4840_v39  ;;  %v5307_v38 = vld [vmem:[#allocation8 + $0x42c] sm:$0xf]  ;;  %v4169_v39 = vld [vmem:[#allocation8 + $0x458] sm:$0xf0]  ;;  %v3788_v42 = vor.u32 %v5211_v31, %v3785_v32  ;;  %v4796_v8 = vor.u32 %v5463_v14, %v4793_v34  ;;  %v3935_v31 = vld [vmem:[#allocation8 + $0x250] sm:$0xf] }
 0x166   : > { %v4172_v43 = vor.u32 %v5307_v38, %v4169_v39  ;;  %v5254_v32 = vld [vmem:[#allocation8 + $0x27c] sm:$0xf0]  ;;  %v4319_v38 = vld [vmem:[#allocation8 + $0x550] sm:$0xf] }
 0x167   : > { %v5350_v39 = vld [vmem:[#allocation8 + $0x57c] sm:$0xf0]  ;;  %v4559_v13 = vld [vmem:[#allocation8 + $0x730] sm:$0xf] }
 0x168   : > { %2882 = vmatpush.bf16.msra.mxu0 %v3640_v46  ;;  %2895 = vmatpush.bf16.msra.mxu1 %v4024_v47  ;;  %v4940_v46 = vor.u32 %v5499_v1, %v4937_v2  ;;  %v5295_v47 = vld [vmem:[#allocation8 + $0x3cc] sm:$0xf]  ;;  %v5087_v1 = vld [vmem:[#allocation8 + $0xb50] sm:$0xf]  ;;  %v5542_v2 = vld [vmem:[#allocation8 + $0xb7c] sm:$0xf0] }
 0x169   : > { %2908 = vmatpush.bf16.msra.mxu2 %v4408_v51  ;;  %2921 = vmatpush.bf16.msra.mxu3 %v4792_v52  ;;  %v5487_v51 = vld [vmem:[#allocation8 + $0x9cc] sm:$0xf]  ;;  %v4889_v52 = vld [vmem:[#allocation8 + $0x9f8] sm:$0xf0]  ;;  %v5410_v33 = vld [vmem:[#allocation8 + $0x75c] sm:$0xf0] }
 0x16a   : > { %v4943_v14 = vld [vmem:[#allocation8 + $0xa30] sm:$0xf]  ;;  %v5506_v34 = vld [vmem:[#allocation8 + $0xa5c] sm:$0xf0] }
 0x16b   : > { %2883 = vmatmul.bf16.vlgmr.msra.gmra.mxu0 %v6169_v17  ;;  %2896 = vmatmul.bf16.vlgmr.msra.gmra.mxu1 %v6171_v40 }
 0x16c   : > { %2927 = vmatpush.bf16.msrb.mxu0 %v3980_v15  ;;  %2940 = vmatpush.bf16.msrb.mxu1 %v4364_v53  ;;  %v3740_v15 = vor.u32 %v5199_v44, %v3737_v4  ;;  %v4124_v53 = vor.u32 %v5295_v47, %v4121_v48  ;;  %v3887_v44 = vld [vmem:[#allocation8 + $0x1f0] sm:$0xf]  ;;  %v5242_v4 = vld [vmem:[#allocation8 + $0x21c] sm:$0xf0] }
 0x16d   : > { %2953 = vmatpush.bf16.msrb.mxu2 %v4748_v56  ;;  %2966 = vmatpush.bf16.msrb.mxu3 %v5132_v57  ;;  %v4508_v56 = vor.u32 %v5391_v49, %v4505_v50  ;;  %v4892_v57 = vor.u32 %v5487_v51, %v4889_v52  ;;  %v4271_v47 = vld [vmem:[#allocation8 + $0x4f0] sm:$0xf]  ;;  %v5338_v48 = vld [vmem:[#allocation8 + $0x51c] sm:$0xf0] }
 0x16e   : > { %2909 = vmatmul.bf16.vlgmr.msra.gmra.mxu2 %v6173_v18  ;;  %2922 = vmatmul.bf16.vlgmr.msra.gmra.mxu3 %v6175_v19  ;;  %v4655_v49 = vld [vmem:[#allocation8 + $0x7f0] sm:$0xf]  ;;  %v5434_v50 = vld [vmem:[#allocation8 + $0x81c] sm:$0xf0] }
 0x16f   : > { %v5039_v51 = vld [vmem:[#allocation8 + $0xaf0] sm:$0xf]  ;;  %v5530_v52 = vld [vmem:[#allocation8 + $0xb1c] sm:$0xf0] }
 0x170   : > { %2928 = vmatpush.bf16.msrb.mxu0 %v3932_v3  ;;  %2941 = vmatpush.bf16.msrb.mxu1 %v4316_v5  ;;  %v5175_v3 = vld [vmem:[#allocation8 + $0xc] sm:$0xf]  ;;  %v3692_v5 = vor.u32 %v5187_v54, %v3689_v55  ;;  %v3839_v54 = vld [vmem:[#allocation8 + $0x190] sm:$0xf]  ;;  %v5230_v55 = vld [vmem:[#allocation8 + $0x1bc] sm:$0xf0] }
 0x171   : > { %2954 = vmatpush.bf16.msrb.mxu2 %v4700_v9  ;;  %2967 = vmatpush.bf16.msrb.mxu3 %v5084_v10  ;;  %v5271_v9 = vld [vmem:[#allocation8 + $0x30c] sm:$0xf]  ;;  %v4025_v10 = vld [vmem:[#allocation8 + $0x338] sm:$0xf0] }
 0x172   : > { %v4028_v24 = vor.u32 %v5271_v9, %v4025_v10  ;;  %v4608_v9 = vor.u32 %v5422_v61, %v4607_v60  ;;  %v4992_v10 = vor.u32 %v5518_v63, %v4991_v62  ;;  %v5548_v60 = vld [vmem:[#allocation8 + $0xbb4] sm:$0xf]  ;;  %v5137_v61 = vld [vmem:[#allocation8 + $0xbe0] sm:$0xf0] }
 0x174   : > { %2929 = vmatpush.bf16.msrb.mxu0 %v3884_v16  ;;  %2942 = vmatpush.bf16.msrb.mxu1 %v4268_v35  ;;  %v3983_v16 = vld [vmem:[#allocation8 + $0x2b0] sm:$0xf]  ;;  %v5266_v35 = vld [vmem:[#allocation8 + $0x2dc] sm:$0xf0] }
 0x175   : > { %2955 = vmatpush.bf16.msrb.mxu2 %v4652_v22  ;;  %2968 = vmatpush.bf16.msrb.mxu3 %v5036_v23  ;;  %v4751_v22 = vld [vmem:[#allocation8 + $0x8b0] sm:$0xf]  ;;  %v3644_v23 = vor.u32 %v5175_v3, %v3641_v7  ;;  %v3840_v3 = vor.u32 %v5230_v55, %v3839_v54  ;;  %v5218_v7 = vld [vmem:[#allocation8 + $0x15c] sm:$0xf0]  ;;  %v5356_v54 = vld [vmem:[#allocation8 + $0x5b4] sm:$0xf] }
 0x176   : > { %v4369_v55 = vld [vmem:[#allocation8 + $0x5e0] sm:$0xf0] }
 0x178   : > { %2930 = vmatpush.bf16.msrb.mxu0 %v3836_v29  ;;  %2943 = vmatpush.bf16.msrb.mxu1 %v4220_v30  ;;  %v3984_v29 = vor.u32 %v5266_v35, %v3983_v16  ;;  %v4368_v30 = vor.u32 %v5362_v21, %v4367_v20  ;;  %v3743_v20 = vld [vmem:[#allocation8 + $0xd0] sm:$0xf]  ;;  %v5206_v21 = vld [vmem:[#allocation8 + $0xfc] sm:$0xf0] }
 0x179   : > { %2956 = vmatpush.bf16.msrb.mxu2 %v4604_v36  ;;  %2969 = vmatpush.bf16.msrb.mxu3 %v4988_v37  ;;  %v4752_v36 = vor.u32 %v5458_v25, %v4751_v22  ;;  %v5136_v37 = vor.u32 %v5554_v27, %v5135_v26  ;;  %v4560_v22 = vor.u32 %v5410_v33, %v4559_v13  ;;  %v5302_v25 = vld [vmem:[#allocation8 + $0x3fc] sm:$0xf0]  ;;  %v4511_v26 = vld [vmem:[#allocation8 + $0x6d0] sm:$0xf]  ;;  %v5440_v13 = vld [vmem:[#allocation8 + $0x854] sm:$0xf] }
 0x17a   : > { %v5398_v27 = vld [vmem:[#allocation8 + $0x6fc] sm:$0xf0]  ;;  %v4705_v33 = vld [vmem:[#allocation8 + $0x880] sm:$0xf0] }
 0x17c   : > { %2931 = vmatpush.bf16.msrb.mxu0 %v3788_v42  ;;  %2944 = vmatpush.bf16.msrb.mxu1 %v4172_v43  ;;  %v3936_v42 = vor.u32 %v5254_v32, %v3935_v31  ;;  %v4320_v43 = vor.u32 %v5350_v39, %v4319_v38  ;;  %v3695_v31 = vld [vmem:[#allocation8 + $0x70] sm:$0xf]  ;;  %v5194_v32 = vld [vmem:[#allocation8 + $0x9c] sm:$0xf0] }
 0x17d   : > { %2957 = vmatpush.bf16.msrb.mxu2 %v4556_v45  ;;  %2970 = vmatpush.bf16.msrb.mxu3 %v4940_v46  ;;  %v4704_v45 = vor.u32 %v5446_v0, %v4703_v41  ;;  %v5088_v46 = vor.u32 %v5542_v2, %v5087_v1  ;;  %v4079_v38 = vld [vmem:[#allocation8 + $0x370] sm:$0xf]  ;;  %v5290_v39 = vld [vmem:[#allocation8 + $0x39c] sm:$0xf0] }
 0x17e   : > { %v4463_v41 = vld [vmem:[#allocation8 + $0x670] sm:$0xf]  ;;  %v5386_v0 = vld [vmem:[#allocation8 + $0x69c] sm:$0xf0] }
 0x17f   : > { %v4847_v1 = vld [vmem:[#allocation8 + $0x970] sm:$0xf]  ;;  %v5482_v2 = vld [vmem:[#allocation8 + $0x99c] sm:$0xf0] }
 0x180   : > { %2932 = vmatpush.bf16.msrb.mxu0 %v3740_v15  ;;  %2945 = vmatpush.bf16.msrb.mxu1 %v4124_v53  ;;  %v3888_v15 = vor.u32 %v5242_v4, %v3887_v44  ;;  %v4272_v53 = vor.u32 %v5338_v48, %v4271_v47  ;;  %v4080_v44 = vor.u32 %v5290_v39, %v4079_v38  ;;  %v5182_v4 = vld [vmem:[#allocation8 + $0x3c] sm:$0xf0]  ;;  %v5320_v38 = vld [vmem:[#allocation8 + $0x494] sm:$0xf]  ;;  %v4225_v39 = vld [vmem:[#allocation8 + $0x4c0] sm:$0xf0] }
 0x181   : > { %2958 = vmatpush.bf16.msrb.mxu2 %v4508_v56  ;;  %2971 = vmatpush.bf16.msrb.mxu3 %v4892_v57  ;;  %v4656_v56 = vor.u32 %v5434_v50, %v4655_v49  ;;  %v5040_v57 = vor.u32 %v5530_v52, %v5039_v51  ;;  %v4464_v47 = vor.u32 %v5386_v0, %v4463_v41  ;;  %v4415_v49 = vld [vmem:[#allocation8 + $0x610] sm:$0xf]  ;;  %v5374_v50 = vld [vmem:[#allocation8 + $0x63c] sm:$0xf0]  ;;  %v5416_v41 = vld [vmem:[#allocation8 + $0x794] sm:$0xf] }
 0x182   : > { %v4848_v48 = vor.u32 %v5482_v2, %v4847_v1  ;;  %v4799_v51 = vld [vmem:[#allocation8 + $0x910] sm:$0xf]  ;;  %v5470_v52 = vld [vmem:[#allocation8 + $0x93c] sm:$0xf0]  ;;  %v4416_v62 = vor.u32 %v5374_v50, %v4415_v49  ;;  %v4609_v0 = vld [vmem:[#allocation8 + $0x7c0] sm:$0xf0] }
 0x183   : > { %v4800_v63 = vor.u32 %v5470_v52, %v4799_v51  ;;  %v5512_v1 = vld [vmem:[#allocation8 + $0xa94] sm:$0xf]  ;;  %v4993_v2 = vld [vmem:[#allocation8 + $0xac0] sm:$0xf0] }
 0x184   : > { %2933 = vmatpush.bf16.msrb.mxu0 %v3692_v5  ;;  %2946 = vmatpush.bf16.msrb.mxu1 %v4076_v6  ;;  %v4224_v5 = vor.u32 %v5326_v59, %v4223_v58  ;;  %v3791_v6 = vld [vmem:[#allocation8 + $0x130] sm:$0xf]  ;;  %v4753_v59 = vld [vmem:[#allocation8 + $0x8e0] sm:$0xf0]  ;;  %v5404_v49 = vld [vmem:[#allocation8 + $0x734] sm:$0xf] }
 0x185   : > { %2959 = vmatpush.bf16.msrb.mxu2 %v4460_v11  ;;  %2972 = vmatpush.bf16.msrb.mxu3 %v4844_v12  ;;  %v4175_v11 = vld [vmem:[#allocation8 + $0x430] sm:$0xf]  ;;  %v5314_v12 = vld [vmem:[#allocation8 + $0x45c] sm:$0xf0]  ;;  %v3792_v16 = vor.u32 %v5218_v7, %v3791_v6  ;;  %v5248_v6 = vld [vmem:[#allocation8 + $0x254] sm:$0xf] }
 0x186   : > { %v4176_v35 = vor.u32 %v5314_v12, %v4175_v11  ;;  %v3937_v7 = vld [vmem:[#allocation8 + $0x280] sm:$0xf0]  ;;  %v5344_v11 = vld [vmem:[#allocation8 + $0x554] sm:$0xf] }
 0x187   : > { %v4321_v12 = vld [vmem:[#allocation8 + $0x580] sm:$0xf0]  ;;  %v5500_v51 = vld [vmem:[#allocation8 + $0xa34] sm:$0xf] }
 0x188   : > { %2934 = vmatpush.bf16.msrb.mxu0 %v3644_v23  ;;  %2947 = vmatpush.bf16.msrb.mxu1 %v4028_v24  ;;  %v4944_v23 = vor.u32 %v5506_v34, %v4943_v14  ;;  %v4127_v24 = vld [vmem:[#allocation8 + $0x3d0] sm:$0xf]  ;;  %v5536_v14 = vld [vmem:[#allocation8 + $0xb54] sm:$0xf]  ;;  %v5089_v34 = vld [vmem:[#allocation8 + $0xb80] sm:$0xf0] }
 0x189   : > { %2960 = vmatpush.bf16.msrb.mxu2 %v4412_v28  ;;  %2973 = vmatpush.bf16.msrb.mxu3 %v4796_v8  ;;  %v4895_v28 = vld [vmem:[#allocation8 + $0x9d0] sm:$0xf]  ;;  %v5494_v8 = vld [vmem:[#allocation8 + $0x9fc] sm:$0xf0]  ;;  %v4561_v50 = vld [vmem:[#allocation8 + $0x760] sm:$0xf0] }
 0x18a   : > { %v4945_v52 = vld [vmem:[#allocation8 + $0xa60] sm:$0xf0] }
 0x18b   : > { %2935 = vmatmul.bf16.vlgmr.msrb.gmra.mxu0 %v6169_v17  ;;  %2948 = vmatmul.bf16.vlgmr.msrb.gmra.mxu1 %v6171_v40 }
 0x18c   : > { %2979 = vmatpush.bf16.msra.mxu0 %v3984_v29  ;;  %2992 = vmatpush.bf16.msra.mxu1 %v4368_v30  ;;  %v3744_v29 = vor.u32 %v5206_v21, %v3743_v20  ;;  %v4128_v30 = vor.u32 %v5302_v25, %v4127_v24  ;;  %v5236_v20 = vld [vmem:[#allocation8 + $0x1f4] sm:$0xf]  ;;  %v3889_v21 = vld [vmem:[#allocation8 + $0x220] sm:$0xf0] }
 0x18d   : > { %3005 = vmatpush.bf16.msra.mxu2 %v4752_v36  ;;  %3018 = vmatpush.bf16.msra.mxu3 %v5136_v37  ;;  %v4512_v36 = vor.u32 %v5398_v27, %v4511_v26  ;;  %v4896_v37 = vor.u32 %v5494_v8, %v4895_v28  ;;  %v5332_v24 = vld [vmem:[#allocation8 + $0x4f4] sm:$0xf]  ;;  %v4273_v25 = vld [vmem:[#allocation8 + $0x520] sm:$0xf0] }
 0x18e   : > { %2961 = vmatmul.bf16.vlgmr.msrb.gmra.mxu2 %v6173_v18  ;;  %2974 = vmatmul.bf16.vlgmr.msrb.gmra.mxu3 %v6175_v19  ;;  %v5428_v26 = vld [vmem:[#allocation8 + $0x7f4] sm:$0xf]  ;;  %v4657_v27 = vld [vmem:[#allocation8 + $0x820] sm:$0xf0] }
 0x18f   : > { %v5524_v28 = vld [vmem:[#allocation8 + $0xaf4] sm:$0xf]  ;;  %v5041_v8 = vld [vmem:[#allocation8 + $0xb20] sm:$0xf0] }
 0x190   : > { %2980 = vmatpush.bf16.msra.mxu0 %v3936_v42  ;;  %2993 = vmatpush.bf16.msra.mxu1 %v4320_v43  ;;  %v3647_v42 = vld [vmem:[#allocation8 + $0x10] sm:$0xf]  ;;  %v3696_v43 = vor.u32 %v5194_v32, %v3695_v31  ;;  %v5224_v31 = vld [vmem:[#allocation8 + $0x194] sm:$0xf]  ;;  %v3841_v32 = vld [vmem:[#allocation8 + $0x1c0] sm:$0xf0] }
 0x191   : > { %3006 = vmatpush.bf16.msra.mxu2 %v4704_v45  ;;  %3019 = vmatpush.bf16.msra.mxu3 %v5088_v46  ;;  %v4031_v45 = vld [vmem:[#allocation8 + $0x310] sm:$0xf]  ;;  %v5278_v46 = vld [vmem:[#allocation8 + $0x33c] sm:$0xf0] }
 0x192   : > { %v4032_v58 = vor.u32 %v5278_v46, %v4031_v45  ;;  %v4612_v45 = vor.u32 %v5416_v41, %v4609_v0  ;;  %v4996_v46 = vor.u32 %v5512_v1, %v4993_v2  ;;  %v5143_v41 = vld [vmem:[#allocation8 + $0xbb8] sm:$0xf]  ;;  %v5555_v0 = vld [vmem:[#allocation8 + $0xbe4] sm:$0xf0] }
 0x194   : > { %2981 = vmatpush.bf16.msra.mxu0 %v3888_v15  ;;  %2994 = vmatpush.bf16.msra.mxu1 %v4272_v53  ;;  %v5260_v15 = vld [vmem:[#allocation8 + $0x2b4] sm:$0xf]  ;;  %v3985_v53 = vld [vmem:[#allocation8 + $0x2e0] sm:$0xf0] }
 0x195   : > { %3007 = vmatpush.bf16.msra.mxu2 %v4656_v56  ;;  %3020 = vmatpush.bf16.msra.mxu3 %v5040_v57  ;;  %v5452_v56 = vld [vmem:[#allocation8 + $0x8b4] sm:$0xf]  ;;  %v3648_v57 = vor.u32 %v5182_v4, %v3647_v42  ;;  %v3844_v42 = vor.u32 %v5224_v31, %v3841_v32  ;;  %v3793_v4 = vld [vmem:[#allocation8 + $0x160] sm:$0xf0]  ;;  %v4375_v31 = vld [vmem:[#allocation8 + $0x5b8] sm:$0xf] }
 0x196   : > { %v5363_v32 = vld [vmem:[#allocation8 + $0x5e4] sm:$0xf0] }
 0x198   : > { %2982 = vmatpush.bf16.msra.mxu0 %v3840_v3  ;;  %2995 = vmatpush.bf16.msra.mxu1 %v4224_v5  ;;  %v3988_v3 = vor.u32 %v5260_v15, %v3985_v53  ;;  %v4372_v5 = vor.u32 %v5356_v54, %v4369_v55  ;;  %v5200_v54 = vld [vmem:[#allocation8 + $0xd4] sm:$0xf]  ;;  %v3745_v55 = vld [vmem:[#allocation8 + $0x100] sm:$0xf0] }
 0x199   : > { %3008 = vmatpush.bf16.msra.mxu2 %v4608_v9  ;;  %3021 = vmatpush.bf16.msra.mxu3 %v4992_v10  ;;  %v4756_v9 = vor.u32 %v5452_v56, %v4753_v59  ;;  %v5140_v10 = vor.u32 %v5548_v60, %v5137_v61  ;;  %v4564_v56 = vor.u32 %v5404_v49, %v4561_v50  ;;  %v4129_v59 = vld [vmem:[#allocation8 + $0x400] sm:$0xf0]  ;;  %v5392_v60 = vld [vmem:[#allocation8 + $0x6d4] sm:$0xf]  ;;  %v4711_v49 = vld [vmem:[#allocation8 + $0x858] sm:$0xf] }
 0x19a   : > { %v4513_v61 = vld [vmem:[#allocation8 + $0x700] sm:$0xf0]  ;;  %v5447_v50 = vld [vmem:[#allocation8 + $0x884] sm:$0xf0] }
 0x19c   : > { %2983 = vmatpush.bf16.msra.mxu0 %v3792_v16  ;;  %2996 = vmatpush.bf16.msra.mxu1 %v4176_v35  ;;  %v3940_v16 = vor.u32 %v5248_v6, %v3937_v7  ;;  %v4324_v35 = vor.u32 %v5344_v11, %v4321_v12  ;;  %v5188_v6 = vld [vmem:[#allocation8 + $0x74] sm:$0xf]  ;;  %v3697_v7 = vld [vmem:[#allocation8 + $0xa0] sm:$0xf0] }
 0x19d   : > { %3009 = vmatpush.bf16.msra.mxu2 %v4560_v22  ;;  %3022 = vmatpush.bf16.msra.mxu3 %v4944_v23  ;;  %v4708_v22 = vor.u32 %v5440_v13, %v4705_v33  ;;  %v5092_v23 = vor.u32 %v5536_v14, %v5089_v34  ;;  %v5284_v11 = vld [vmem:[#allocation8 + $0x374] sm:$0xf]  ;;  %v4081_v12 = vld [vmem:[#allocation8 + $0x3a0] sm:$0xf0] }
 0x19e   : > { %v5380_v13 = vld [vmem:[#allocation8 + $0x674] sm:$0xf]  ;;  %v4465_v33 = vld [vmem:[#allocation8 + $0x6a0] sm:$0xf0] }
 0x19f   : > { %v5476_v14 = vld [vmem:[#allocation8 + $0x974] sm:$0xf]  ;;  %v4849_v34 = vld [vmem:[#allocation8 + $0x9a0] sm:$0xf0] }
 0x1a0   : > { %2984 = vmatpush.bf16.msra.mxu0 %v3744_v29  ;;  %2997 = vmatpush.bf16.msra.mxu1 %v4128_v30  ;;  %v3892_v29 = vor.u32 %v5236_v20, %v3889_v21  ;;  %v4276_v30 = vor.u32 %v5332_v24, %v4273_v25  ;;  %v4084_v20 = vor.u32 %v5284_v11, %v4081_v12  ;;  %v3649_v21 = vld [vmem:[#allocation8 + $0x40] sm:$0xf0] }
 0x1a1   : > { %3010 = vmatpush.bf16.msra.mxu2 %v4512_v36  ;;  %3023 = vmatpush.bf16.msra.mxu3 %v4896_v37  ;;  %v4660_v36 = vor.u32 %v5428_v26, %v4657_v27  ;;  %v5044_v37 = vor.u32 %v5524_v28, %v5041_v8  ;;  %v4468_v24 = vor.u32 %v5380_v13, %v4465_v33  ;;  %v5368_v26 = vld [vmem:[#allocation8 + $0x614] sm:$0xf]  ;;  %v4417_v27 = vld [vmem:[#allocation8 + $0x640] sm:$0xf0]  ;;  %v4231_v13 = vld [vmem:[#allocation8 + $0x498] sm:$0xf] }
 0x1a2   : > { %v4852_v25 = vor.u32 %v5476_v14, %v4849_v34  ;;  %v5464_v28 = vld [vmem:[#allocation8 + $0x914] sm:$0xf]  ;;  %v4801_v8 = vld [vmem:[#allocation8 + $0x940] sm:$0xf0]  ;;  %v4420_v1 = vor.u32 %v5368_v26, %v4417_v27  ;;  %v5327_v33 = vld [vmem:[#allocation8 + $0x4c4] sm:$0xf0] }
 0x1a3   : > { %v4804_v2 = vor.u32 %v5464_v28, %v4801_v8  ;;  %v4615_v14 = vld [vmem:[#allocation8 + $0x798] sm:$0xf]  ;;  %v5423_v34 = vld [vmem:[#allocation8 + $0x7c4] sm:$0xf0] }
 0x1a4   : > { %2985 = vmatpush.bf16.msra.mxu0 %v3696_v43  ;;  %2998 = vmatpush.bf16.msra.mxu1 %v4080_v44  ;;  %v4228_v43 = vor.u32 %v5320_v38, %v4225_v39  ;;  %v5212_v44 = vld [vmem:[#allocation8 + $0x134] sm:$0xf]  ;;  %v5459_v39 = vld [vmem:[#allocation8 + $0x8e4] sm:$0xf0]  ;;  %v4183_v27 = vld [vmem:[#allocation8 + $0x438] sm:$0xf] }
 0x1a5   : > { %3011 = vmatpush.bf16.msra.mxu2 %v4464_v47  ;;  %3024 = vmatpush.bf16.msra.mxu3 %v4848_v48  ;;  %v5308_v47 = vld [vmem:[#allocation8 + $0x434] sm:$0xf]  ;;  %v4177_v48 = vld [vmem:[#allocation8 + $0x460] sm:$0xf0]  ;;  %v3796_v15 = vor.u32 %v5212_v44, %v3793_v4  ;;  %v3943_v44 = vld [vmem:[#allocation8 + $0x258] sm:$0xf] }
 0x1a6   : > { %v4180_v53 = vor.u32 %v5308_v47, %v4177_v48  ;;  %v5255_v4 = vld [vmem:[#allocation8 + $0x284] sm:$0xf0]  ;;  %v4327_v47 = vld [vmem:[#allocation8 + $0x558] sm:$0xf] }
 0x1a7   : > { %v5351_v48 = vld [vmem:[#allocation8 + $0x584] sm:$0xf0]  ;;  %v4567_v8 = vld [vmem:[#allocation8 + $0x738] sm:$0xf] }
 0x1a8   : > { %2986 = vmatpush.bf16.msra.mxu0 %v3648_v57  ;;  %2999 = vmatpush.bf16.msra.mxu1 %v4032_v58  ;;  %v4948_v57 = vor.u32 %v5500_v51, %v4945_v52  ;;  %v5296_v58 = vld [vmem:[#allocation8 + $0x3d4] sm:$0xf]  ;;  %v5095_v51 = vld [vmem:[#allocation8 + $0xb58] sm:$0xf]  ;;  %v5543_v52 = vld [vmem:[#allocation8 + $0xb84] sm:$0xf0] }
 0x1a9   : > { %3012 = vmatpush.bf16.msra.mxu2 %v4416_v62  ;;  %3025 = vmatpush.bf16.msra.mxu3 %v4800_v63  ;;  %v5488_v62 = vld [vmem:[#allocation8 + $0x9d4] sm:$0xf]  ;;  %v4897_v63 = vld [vmem:[#allocation8 + $0xa00] sm:$0xf0]  ;;  %v5315_v28 = vld [vmem:[#allocation8 + $0x464] sm:$0xf0] }
 0x1ab   : > { %2987 = vmatmul.bf16.vlgmr.msra.gmra.mxu0 %v6169_v17  ;;  %3000 = vmatmul.bf16.vlgmr.msra.gmra.mxu1 %v6171_v40 }
 0x1ac   : > { %3031 = vmatpush.bf16.msrb.mxu0 %v3988_v3  ;;  %3044 = vmatpush.bf16.msrb.mxu1 %v4372_v5  ;;  %v3748_v3 = vor.u32 %v5200_v54, %v3745_v55  ;;  %v4132_v5 = vor.u32 %v5296_v58, %v4129_v59  ;;  %v3895_v54 = vld [vmem:[#allocation8 + $0x1f8] sm:$0xf]  ;;  %v5243_v55 = vld [vmem:[#allocation8 + $0x224] sm:$0xf0] }
 0x1ad   : > { %3057 = vmatpush.bf16.msrb.mxu2 %v4756_v9  ;;  %3070 = vmatpush.bf16.msrb.mxu3 %v5140_v10  ;;  %v4516_v9 = vor.u32 %v5392_v60, %v4513_v61  ;;  %v4900_v10 = vor.u32 %v5488_v62, %v4897_v63  ;;  %v4279_v58 = vld [vmem:[#allocation8 + $0x4f8] sm:$0xf]  ;;  %v5339_v59 = vld [vmem:[#allocation8 + $0x524] sm:$0xf0] }
 0x1ae   : > { %3013 = vmatmul.bf16.vlgmr.msra.gmra.mxu2 %v6173_v18  ;;  %3026 = vmatmul.bf16.vlgmr.msra.gmra.mxu3 %v6175_v19  ;;  %v4663_v60 = vld [vmem:[#allocation8 + $0x7f8] sm:$0xf]  ;;  %v5435_v61 = vld [vmem:[#allocation8 + $0x824] sm:$0xf0] }
 0x1af   : > { %v5047_v62 = vld [vmem:[#allocation8 + $0xaf8] sm:$0xf]  ;;  %v5531_v63 = vld [vmem:[#allocation8 + $0xb24] sm:$0xf0]  ;;  %v4664_v11 = vor.u32 %v5435_v61, %v4663_v60 }
 0x1b0   : > { %3032 = vmatpush.bf16.msrb.mxu0 %v3940_v16  ;;  %3045 = vmatpush.bf16.msrb.mxu1 %v4324_v35  ;;  %v5176_v16 = vld [vmem:[#allocation8 + $0x14] sm:$0xf]  ;;  %v3700_v35 = vor.u32 %v5188_v6, %v3697_v7  ;;  %v3896_v6 = vor.u32 %v5243_v55, %v3895_v54  ;;  %v4280_v7 = vor.u32 %v5339_v59, %v4279_v58  ;;  %v5387_v58 = vld [vmem:[#allocation8 + $0x6a4] sm:$0xf0] }
 0x1b1   : > { %3058 = vmatpush.bf16.msrb.mxu2 %v4708_v22  ;;  %3071 = vmatpush.bf16.msrb.mxu3 %v5092_v23  ;;  %v5272_v22 = vld [vmem:[#allocation8 + $0x314] sm:$0xf]  ;;  %v4033_v23 = vld [vmem:[#allocation8 + $0x340] sm:$0xf0]  ;;  %v5048_v12 = vor.u32 %v5531_v63, %v5047_v62  ;;  %v4855_v62 = vld [vmem:[#allocation8 + $0x978] sm:$0xf] }
 0x1b2   : > { %v4036_v38 = vor.u32 %v5272_v22, %v4033_v23  ;;  %v4232_v22 = vor.u32 %v5327_v33, %v4231_v13  ;;  %v3799_v23 = vld [vmem:[#allocation8 + $0x138] sm:$0xf]  ;;  %v5483_v63 = vld [vmem:[#allocation8 + $0x9a4] sm:$0xf0] }
 0x1b3   : > { %v4039_v13 = vld [vmem:[#allocation8 + $0x318] sm:$0xf]  ;;  %v5279_v33 = vld [vmem:[#allocation8 + $0x344] sm:$0xf0] }
 0x1b4   : > { %3033 = vmatpush.bf16.msrb.mxu0 %v3892_v29  ;;  %3046 = vmatpush.bf16.msrb.mxu1 %v4276_v30  ;;  %v3991_v29 = vld [vmem:[#allocation8 + $0x2b8] sm:$0xf]  ;;  %v5267_v30 = vld [vmem:[#allocation8 + $0x2e4] sm:$0xf0] }
 0x1b5   : > { %3059 = vmatpush.bf16.msrb.mxu2 %v4660_v36  ;;  %3072 = vmatpush.bf16.msrb.mxu3 %v5044_v37  ;;  %v4759_v36 = vld [vmem:[#allocation8 + $0x8b8] sm:$0xf]  ;;  %v3652_v37 = vor.u32 %v5176_v16, %v3649_v21 }
 0x1b6   : > { %v4999_v16 = vld [vmem:[#allocation8 + $0xa98] sm:$0xf] }
 0x1b8   : > { %3034 = vmatpush.bf16.msrb.mxu0 %v3844_v42  ;;  %3047 = vmatpush.bf16.msrb.mxu1 %v4228_v43  ;;  %v3992_v42 = vor.u32 %v5267_v30, %v3991_v29  ;;  %v4376_v43 = vor.u32 %v5363_v32, %v4375_v31  ;;  %v5411_v31 = vld [vmem:[#allocation8 + $0x764] sm:$0xf0]  ;;  %v4951_v32 = vld [vmem:[#allocation8 + $0xa38] sm:$0xf] }
 0x1b9   : > { %3060 = vmatpush.bf16.msrb.mxu2 %v4612_v45  ;;  %3073 = vmatpush.bf16.msrb.mxu3 %v4996_v46  ;;  %v4760_v45 = vor.u32 %v5459_v39, %v4759_v36  ;;  %v5144_v46 = vor.u32 %v5555_v0, %v5143_v41  ;;  %v5507_v36 = vld [vmem:[#allocation8 + $0xa64] sm:$0xf0]  ;;  %v4184_v0 = vor.u32 %v5315_v28, %v4183_v27  ;;  %v5357_v27 = vld [vmem:[#allocation8 + $0x5bc] sm:$0xf]  ;;  %v4377_v28 = vld [vmem:[#allocation8 + $0x5e8] sm:$0xf0] }
 0x1bc   : > { %3035 = vmatpush.bf16.msrb.mxu0 %v3796_v15  ;;  %3048 = vmatpush.bf16.msrb.mxu1 %v4180_v53  ;;  %v3944_v15 = vor.u32 %v5255_v4, %v3943_v44  ;;  %v4328_v53 = vor.u32 %v5351_v48, %v4327_v47  ;;  %v4135_v44 = vld [vmem:[#allocation8 + $0x3d8] sm:$0xf]  ;;  %v5303_v4 = vld [vmem:[#allocation8 + $0x404] sm:$0xf0] }
 0x1bd   : > { %3061 = vmatpush.bf16.msrb.mxu2 %v4564_v56  ;;  %3074 = vmatpush.bf16.msrb.mxu3 %v4948_v57  ;;  %v4712_v56 = vor.u32 %v5447_v50, %v4711_v49  ;;  %v5096_v57 = vor.u32 %v5543_v52, %v5095_v51  ;;  %v4903_v47 = vld [vmem:[#allocation8 + $0x9d8] sm:$0xf]  ;;  %v5495_v48 = vld [vmem:[#allocation8 + $0xa04] sm:$0xf0]  ;;  %v4136_v51 = vor.u32 %v5303_v4, %v4135_v44 }
 0x1be   : > { %v3703_v49 = vld [vmem:[#allocation8 + $0x78] sm:$0xf]  ;;  %v5195_v52 = vld [vmem:[#allocation8 + $0xa4] sm:$0xf0] }
 0x1c0   : > { %3036 = vmatpush.bf16.msrb.mxu0 %v3748_v3  ;;  %3049 = vmatpush.bf16.msrb.mxu1 %v4132_v5 }
 0x1c1   : > { %3062 = vmatpush.bf16.msrb.mxu2 %v4516_v9  ;;  %3075 = vmatpush.bf16.msrb.mxu3 %v4900_v10  ;;  %v3847_v9 = vld [vmem:[#allocation8 + $0x198] sm:$0xf]  ;;  %v5231_v10 = vld [vmem:[#allocation8 + $0x1c4] sm:$0xf0] }
 0x1c2   : > { %v3848_v21 = vor.u32 %v5231_v10, %v3847_v9  ;;  %v3655_v9 = vld [vmem:[#allocation8 + $0x18] sm:$0xf]  ;;  %v3704_v10 = vor.u32 %v5195_v52, %v3703_v49  ;;  %v5345_v49 = vld [vmem:[#allocation8 + $0x55c] sm:$0xf]  ;;  %v4713_v52 = vld [vmem:[#allocation8 + $0x888] sm:$0xf0] }
 0x1c4   : > { %3037 = vmatpush.bf16.msrb.mxu0 %v3700_v35  ;;  %3050 = vmatpush.bf16.msrb.mxu1 %v4084_v20  ;;  %v5519_v35 = vld [vmem:[#allocation8 + $0xac4] sm:$0xf0]  ;;  %v6205_v20 = vld [vmem:[#allocation10] sm:$0xff] }
 0x1c5   : > { %3063 = vmatpush.bf16.msrb.mxu2 %v4468_v24  ;;  %3076 = vmatpush.bf16.msrb.mxu3 %v4852_v25  ;;  %v5219_v24 = vld [vmem:[#allocation8 + $0x164] sm:$0xf0]  ;;  %v4616_v25 = vor.u32 %v5423_v34, %v4615_v14  ;;  %v5000_v26 = vor.u32 %v5519_v35, %v4999_v16  ;;  %v827_v39 = vperm.slane %v6205_v20, 0  ;;  %v828_v59 = vperm.slane %v6205_v20, 1  ;;  %v4423_v35 = vld [vmem:[#allocation8 + $0x618] sm:$0xf] }
 0x1c6   : > { %v3800_v41 = vor.u32 %v5219_v24, %v3799_v23  ;;  %v4856_v34 = vor.u32 %v5483_v63, %v4855_v62  ;;  %v5471_v23 = vld [vmem:[#allocation8 + $0x944] sm:$0xf0]  ;;  %v5261_v24 = vld [vmem:[#allocation8 + $0x2bc] sm:$0xf] }
 0x1c7   : > { %v6201_v3 = vpop.f32.mrf.mxu0  ;;  %v6203_v5 = vpop.f32.mrf.mxu1 }
 0x1c8   : > { %3038 = vmatpush.bf16.msrb.mxu0 %v3652_v37  ;;  %3051 = vmatpush.bf16.msrb.mxu1 %v4036_v38  ;;  %v2781_v54 = vadd.f32 %v6201_v3, %v827_v39 }
 0x1c9   : > { %3064 = vmatpush.bf16.msrb.mxu2 %v4420_v1  ;;  %3077 = vmatpush.bf16.msrb.mxu3 %v4804_v2  ;;  %v3751_v1 = vld [vmem:[#allocation8 + $0xd8] sm:$0xf]  ;;  %v5207_v2 = vld [vmem:[#allocation8 + $0x104] sm:$0xf0] }
 0x1ca   : > { %v3752_v50 = vor.u32 %v5207_v2, %v3751_v1  ;;  %v2794_v14 = vadd.f32 %v6203_v5, %v2781_v54  ;;  %v4040_v5 = vor.u32 %v5279_v33, %v4039_v13  ;;  %v4380_v1 = vor.u32 %v5357_v27, %v4377_v28 }
 0x1cb   : > { %3039 = vmatmul.bf16.vlgmr.msrb.gmra.mxu0 %v6169_v17  ;;  %3052 = vmatmul.bf16.vlgmr.msrb.gmra.mxu1 %v6171_v40 }
 0x1cc   : > { %3083 = vmatpush.bf16.msra.mxu0 %v3992_v42  ;;  %3096 = vmatpush.bf16.msra.mxu1 %v4376_v43  ;;  %v4568_v42 = vor.u32 %v5411_v31, %v4567_v8  ;;  %v4952_v43 = vor.u32 %v5507_v36, %v4951_v32  ;;  %v5453_v8 = vld [vmem:[#allocation8 + $0x8bc] sm:$0xf]  ;;  %v4761_v32 = vld [vmem:[#allocation8 + $0x8e8] sm:$0xf0] }
 0x1cd   : > { %3109 = vmatpush.bf16.msra.mxu2 %v4760_v45  ;;  %3122 = vmatpush.bf16.msra.mxu3 %v5144_v46  ;;  %v4519_v45 = vld [vmem:[#allocation8 + $0x6d8] sm:$0xf]  ;;  %v5399_v46 = vld [vmem:[#allocation8 + $0x704] sm:$0xf0]  ;;  %v5549_v36 = vld [vmem:[#allocation8 + $0xbbc] sm:$0xf]  ;;  %v4764_v4 = vor.u32 %v5453_v8, %v4761_v32 }
 0x1ce   : > { %3065 = vmatmul.bf16.vlgmr.msrb.gmra.mxu2 %v6173_v18  ;;  %3078 = vmatmul.bf16.vlgmr.msrb.gmra.mxu3 %v6175_v19  ;;  %v6207_v29 = vpop.f32.mrf.mxu2  ;;  %v6209_v30 = vpop.f32.mrf.mxu3  ;;  %v4520_v55 = vor.u32 %v5399_v46, %v4519_v45  ;;  %v3801_v32 = vld [vmem:[#allocation8 + $0x168] sm:$0xf0] }
 0x1cf   : > { %v2782_v37 = vpop.f32.mrf.mxu0  ;;  %v2795_v38 = vpop.f32.mrf.mxu1 }
 0x1d0   : > { %3084 = vmatpush.bf16.msra.mxu0 %v3944_v15  ;;  %3097 = vmatpush.bf16.msra.mxu1 %v4328_v53  ;;  %v4087_v15 = vld [vmem:[#allocation8 + $0x378] sm:$0xf]  ;;  %v5291_v53 = vld [vmem:[#allocation8 + $0x3a4] sm:$0xf0]  ;;  %v5145_v37 = vld [vmem:[#allocation8 + $0xbe8] sm:$0xf0] }
 0x1d1   : > { %3110 = vmatpush.bf16.msra.mxu2 %v4712_v56  ;;  %3123 = vmatpush.bf16.msra.mxu3 %v5096_v57  ;;  %v4904_v56 = vor.u32 %v5495_v48, %v4903_v47  ;;  %v4471_v57 = vld [vmem:[#allocation8 + $0x678] sm:$0xf]  ;;  %v5148_v45 = vor.u32 %v5549_v36, %v5145_v37 }
 0x1d2   : > { %v4472_v3 = vor.u32 %v5387_v58, %v4471_v57  ;;  %v3897_v57 = vld [vmem:[#allocation8 + $0x228] sm:$0xf0]  ;;  %v5333_v58 = vld [vmem:[#allocation8 + $0x4fc] sm:$0xf] }
 0x1d4   : > { %3085 = vmatpush.bf16.msra.mxu0 %v3896_v6  ;;  %3098 = vmatpush.bf16.msra.mxu1 %v4280_v7 }
 0x1d5   : > { %3111 = vmatpush.bf16.msra.mxu2 %v4664_v11  ;;  %3124 = vmatpush.bf16.msra.mxu3 %v5048_v12  ;;  %v4088_v11 = vor.u32 %v5291_v53, %v4087_v15  ;;  %v5183_v12 = vld [vmem:[#allocation8 + $0x44] sm:$0xf0]  ;;  %v5537_v15 = vld [vmem:[#allocation8 + $0xb5c] sm:$0xf]  ;;  %v5097_v53 = vld [vmem:[#allocation8 + $0xb88] sm:$0xf0] }
 0x1d6   : > { %v2808_v60 = vpop.f32.mrf.mxu2  ;;  %v2821_v61 = vpop.f32.mrf.mxu3  ;;  %v3656_v31 = vor.u32 %v5183_v12, %v3655_v9  ;;  %v5100_v63 = vor.u32 %v5537_v15, %v5097_v53  ;;  %v5525_v9 = vld [vmem:[#allocation8 + $0xafc] sm:$0xf]  ;;  %v4905_v15 = vld [vmem:[#allocation8 + $0xa08] sm:$0xf0] }
 0x1d7   : > { %v2832_v6 = vpop.f32.mrf.mxu0  ;;  %v2845_v7 = vpop.f32.mrf.mxu1 }
 0x1d8   : > { %3086 = vmatpush.bf16.msra.mxu0 %v3848_v21  ;;  %3099 = vmatpush.bf16.msra.mxu1 %v4232_v22  ;;  %v2833_v16 = vadd.f32 %v2832_v6, %v828_v59  ;;  %v5375_v21 = vld [vmem:[#allocation8 + $0x644] sm:$0xf0]  ;;  %v4807_v22 = vld [vmem:[#allocation8 + $0x918] sm:$0xf]  ;;  %v4281_v59 = vld [vmem:[#allocation8 + $0x528] sm:$0xf0] }
 0x1d9   : > { %3112 = vmatpush.bf16.msra.mxu2 %v4616_v25  ;;  %3125 = vmatpush.bf16.msra.mxu3 %v5000_v26  ;;  %v3993_v25 = vld [vmem:[#allocation8 + $0x2e8] sm:$0xf0]  ;;  %v2807_v26 = vadd.f32 %v6207_v29, %v2794_v14  ;;  %v4424_v39 = vor.u32 %v5375_v21, %v4423_v35  ;;  %v5429_v6 = vld [vmem:[#allocation8 + $0x7fc] sm:$0xf]  ;;  %v4284_v12 = vor.u32 %v5333_v58, %v4281_v59 }
 0x1da   : > { %v2846_v38 = vadd.f32 %v2845_v7, %v2833_v16  ;;  %v4665_v7 = vld [vmem:[#allocation8 + $0x828] sm:$0xf0]  ;;  %v5225_v14 = vld [vmem:[#allocation8 + $0x19c] sm:$0xf] }
 0x1db   : > { %v2820_v44 = vadd.f32 %v6209_v30, %v2807_v26  ;;  %v4668_v16 = vor.u32 %v5429_v6, %v4665_v7  ;;  %v5321_v21 = vld [vmem:[#allocation8 + $0x49c] sm:$0xf]  ;;  %v5001_v26 = vld [vmem:[#allocation8 + $0xac8] sm:$0xf0] }
 0x1dc   : > { %3087 = vmatpush.bf16.msra.mxu0 %v3800_v41  ;;  %3100 = vmatpush.bf16.msra.mxu1 %v4184_v0  ;;  %v4808_v41 = vor.u32 %v5471_v23, %v4807_v22  ;;  %v3996_v0 = vor.u32 %v5261_v24, %v3993_v25  ;;  %v4233_v22 = vld [vmem:[#allocation8 + $0x4c8] sm:$0xf0]  ;;  %v5417_v23 = vld [vmem:[#allocation8 + $0x79c] sm:$0xf] }
 0x1dd   : > { %3113 = vmatpush.bf16.msra.mxu2 %v4568_v42  ;;  %3126 = vmatpush.bf16.msra.mxu3 %v4952_v43  ;;  %v5249_v42 = vld [vmem:[#allocation8 + $0x25c] sm:$0xf]  ;;  %v3945_v43 = vld [vmem:[#allocation8 + $0x288] sm:$0xf0]  ;;  %v3395_v60 = vmul.f32 0.088388346, %v2820_v44 }
 0x1de   : > { %v2858_v2 = vpop.f32.mrf.mxu2  ;;  %v2871_v29 = vpop.f32.mrf.mxu3  ;;  %v3948_v30 = vor.u32 %v5249_v42, %v3945_v43  ;;  %v4617_v24 = vld [vmem:[#allocation8 + $0x7c8] sm:$0xf0]  ;;  %v5513_v25 = vld [vmem:[#allocation8 + $0xa9c] sm:$0xf] }
 0x1df   : > { %v2859_v46 = vadd.f32 %v2858_v2, %v2846_v38  ;;  %v2834_v47 = vpop.f32.mrf.mxu0  ;;  %v2847_v48 = vpop.f32.mrf.mxu1  ;;  %v4620_v36 = vor.u32 %v5417_v23, %v4617_v24  ;;  %v5004_v37 = vor.u32 %v5513_v25, %v5001_v26  ;;  %v5309_v38 = vld [vmem:[#allocation8 + $0x43c] sm:$0xf]  ;;  %v4953_v2 = vld [vmem:[#allocation8 + $0xa68] sm:$0xf0]  ;;  %v3999_v24 = vld [vmem:[#allocation8 + $0x2c0] sm:$0xf] }
 0x1e0   : > { %3088 = vmatpush.bf16.msra.mxu0 %v3752_v50  ;;  %3101 = vmatpush.bf16.msra.mxu1 %v4136_v51  ;;  %v4329_v50 = vld [vmem:[#allocation8 + $0x588] sm:$0xf0]  ;;  %v5441_v51 = vld [vmem:[#allocation8 + $0x85c] sm:$0xf]  ;;  %v5268_v25 = vld [vmem:[#allocation8 + $0x2ec] sm:$0xf0] }
 0x1e1   : > { %3114 = vmatpush.bf16.msra.mxu2 %v4520_v55  ;;  %3127 = vmatpush.bf16.msra.mxu3 %v4904_v56  ;;  %v2872_v54 = vadd.f32 %v2871_v29, %v2859_v46  ;;  %v5237_v55 = vld [vmem:[#allocation8 + $0x1fc] sm:$0xf]  ;;  %v4332_v56 = vor.u32 %v5345_v49, %v4329_v50  ;;  %v4716_v62 = vor.u32 %v5441_v51, %v4713_v52  ;;  %v3753_v44 = vld [vmem:[#allocation8 + $0x108] sm:$0xf0]  ;;  %v4383_v26 = vld [vmem:[#allocation8 + $0x5c0] sm:$0xf] }
 0x1e2   : > { %v5201_v43 = vld [vmem:[#allocation8 + $0xdc] sm:$0xf]  ;;  %v4137_v47 = vld [vmem:[#allocation8 + $0x408] sm:$0xf0] }
 0x1e3   : > { %v3396_v61 = vmul.f32 0.088388346, %v2872_v54  ;;  %v5297_v46 = vld [vmem:[#allocation8 + $0x3dc] sm:$0xf]  ;;  %v4521_v51 = vld [vmem:[#allocation8 + $0x708] sm:$0xf0] }
 0x1e4   : > { %3089 = vmatpush.bf16.msra.mxu0 %v3704_v10  ;;  %3102 = vmatpush.bf16.msra.mxu1 %v4088_v11  ;;  %v5049_v10 = vld [vmem:[#allocation8 + $0xb28] sm:$0xf0]  ;;  %v5393_v48 = vld [vmem:[#allocation8 + $0x6dc] sm:$0xf] }
 0x1e5   : > { %3115 = vmatpush.bf16.msra.mxu2 %v4472_v3  ;;  %3128 = vmatpush.bf16.msra.mxu3 %v4856_v34  ;;  %v3399_v11 = vpack.c.bf16 %v3396_v61, %v3395_v60  ;;  %v3900_v3 = vor.u32 %v5237_v55, %v3897_v57  ;;  %v3849_v34 = vld [vmem:[#allocation8 + $0x1c8] sm:$0xf0]  ;;  %v5052_v35 = vor.u32 %v5525_v9, %v5049_v10  ;;  %v5489_v52 = vld [vmem:[#allocation8 + $0x9dc] sm:$0xf] }
 0x1e6   : > { %v2860_v13 = vpop.f32.mrf.mxu2  ;;  %v2873_v33 = vpop.f32.mrf.mxu3  ;;  %v3852_v8 = vor.u32 %v5225_v14, %v3849_v34  ;;  %v3756_v55 = vor.u32 %v5201_v43, %v3753_v44  ;;  %v3705_v57 = vld [vmem:[#allocation8 + $0xa8] sm:$0xf0]  ;;  %v4524_v58 = vor.u32 %v5393_v48, %v4521_v51  ;;  %v4908_v59 = vor.u32 %v5489_v52, %v4905_v15  ;;  %v5285_v60 = vld [vmem:[#allocation8 + $0x37c] sm:$0xf]  ;;  %v5103_v48 = vld [vmem:[#allocation8 + $0xb60] sm:$0xf] }
 0x1e7   : > { %3401 = vst [vmem:[%s6224_s8] sm:$0xff] %v3399_v11  ;;  %v4089_v61 = vld [vmem:[#allocation8 + $0x3a8] sm:$0xf0]  ;;  %v5477_v6 = vld [vmem:[#allocation8 + $0x97c] sm:$0xf]  ;;  %v5544_v51 = vld [vmem:[#allocation8 + $0xb8c] sm:$0xf0] }
 0x1e8   : > { %3090 = vmatpush.bf16.msra.mxu0 %v3656_v31  ;;  %3103 = vmatpush.bf16.msra.mxu1 %v4040_v5  ;;  %v6227_v27 = vpop.f32.mrf.mxu0  ;;  %v6229_v28 = vpop.f32.mrf.mxu1  ;;  %v4236_v31 = vor.u32 %v5321_v21, %v4233_v22  ;;  %v5213_v5 = vld [vmem:[#allocation8 + $0x13c] sm:$0xf]  ;;  %v4857_v7 = vld [vmem:[#allocation8 + $0x9a8] sm:$0xf0]  ;;  %v4092_v11 = vor.u32 %v5285_v60, %v4089_v61  ;;  %v5436_v60 = vld [vmem:[#allocation8 + $0x82c] sm:$0xf0] }
 0x1e9   : > { %3116 = vmatpush.bf16.msra.mxu2 %v4424_v39  ;;  %3129 = vmatpush.bf16.msra.mxu3 %v4808_v41  ;;  %v4185_v39 = vld [vmem:[#allocation8 + $0x468] sm:$0xf0]  ;;  %v5405_v41 = vld [vmem:[#allocation8 + $0x73c] sm:$0xf]  ;;  %v3804_v29 = vor.u32 %v5213_v5, %v3801_v32  ;;  %v4860_v14 = vor.u32 %v5477_v6, %v4857_v7  ;;  %v5055_v61 = vld [vmem:[#allocation8 + $0xb00] sm:$0xf] }
 0x1ea   : > { %v4188_v42 = vor.u32 %v5309_v38, %v4185_v39  ;;  %v5177_v9 = vld [vmem:[#allocation8 + $0x1c] sm:$0xf]  ;;  %v4041_v13 = vld [vmem:[#allocation8 + $0x348] sm:$0xf0]  ;;  %v5556_v38 = vld [vmem:[#allocation8 + $0xbec] sm:$0xf0] }
 0x1eb   : > { %3091 = vmatmul.bf16.vlgmr.msra.gmra.mxu0 %v6169_v17  ;;  %3104 = vmatmul.bf16.vlgmr.msra.gmra.mxu1 %v6171_v40  ;;  %v5369_v34 = vld [vmem:[#allocation8 + $0x61c] sm:$0xf]  ;;  %v4809_v23 = vld [vmem:[#allocation8 + $0x948] sm:$0xf0]  ;;  %v830_v7 = vperm.slane %v6205_v20, 3 }
 0x1ec   : > { %3135 = vmatpush.bf16.msrb.mxu0 %v3996_v0  ;;  %3148 = vmatpush.bf16.msrb.mxu1 %v4380_v1  ;;  %v4569_v0 = vld [vmem:[#allocation8 + $0x768] sm:$0xf0]  ;;  %v5501_v1 = vld [vmem:[#allocation8 + $0xa3c] sm:$0xf] }
 0x1ed   : > { %3161 = vmatpush.bf16.msrb.mxu2 %v4764_v4  ;;  %3174 = vmatpush.bf16.msrb.mxu3 %v5148_v45  ;;  %v4572_v4 = vor.u32 %v5405_v41, %v4569_v0  ;;  %v4956_v45 = vor.u32 %v5501_v1, %v4953_v2  ;;  %v829_v0 = vperm.slane %v6205_v20, 2  ;;  %v4000_v1 = vor.u32 %v5268_v25, %v3999_v24  ;;  %v3807_v24 = vld [vmem:[#allocation8 + $0x140] sm:$0xf]  ;;  %v5220_v25 = vld [vmem:[#allocation8 + $0x16c] sm:$0xf0] }
 0x1ee   : > { %3117 = vmatmul.bf16.vlgmr.msra.gmra.mxu2 %v6173_v18  ;;  %3130 = vmatmul.bf16.vlgmr.msra.gmra.mxu3 %v6175_v19 }
 0x1f0   : > { %3136 = vmatpush.bf16.msrb.mxu0 %v3948_v30  ;;  %3149 = vmatpush.bf16.msrb.mxu1 %v4332_v56  ;;  %v2886_v53 = vpop.f32.mrf.mxu0  ;;  %v2899_v54 = vpop.f32.mrf.mxu1  ;;  %v4140_v30 = vor.u32 %v5297_v46, %v4137_v47  ;;  %v5189_v56 = vld [vmem:[#allocation8 + $0x7c] sm:$0xf]  ;;  %v4719_v46 = vld [vmem:[#allocation8 + $0x860] sm:$0xf]  ;;  %v5448_v47 = vld [vmem:[#allocation8 + $0x88c] sm:$0xf0] }
 0x1f1   : > { %3162 = vmatpush.bf16.msrb.mxu2 %v4716_v62  ;;  %3175 = vmatpush.bf16.msrb.mxu3 %v5100_v63  ;;  %v6231_v49 = vpop.f32.mrf.mxu2  ;;  %v6233_v50 = vpop.f32.mrf.mxu3  ;;  %v5381_v62 = vld [vmem:[#allocation8 + $0x67c] sm:$0xf]  ;;  %v4473_v63 = vld [vmem:[#allocation8 + $0x6a8] sm:$0xf0]  ;;  %v3708_v10 = vor.u32 %v5189_v56, %v3705_v57  ;;  %v3903_v53 = vld [vmem:[#allocation8 + $0x200] sm:$0xf] }
 0x1f2   : > { %v4476_v33 = vor.u32 %v5381_v62, %v4473_v63  ;;  %v5244_v54 = vld [vmem:[#allocation8 + $0x22c] sm:$0xf0]  ;;  %v4287_v56 = vld [vmem:[#allocation8 + $0x500] sm:$0xf] }
 0x1f3   : > { %v5340_v57 = vld [vmem:[#allocation8 + $0x52c] sm:$0xf0]  ;;  %v3904_v63 = vor.u32 %v5244_v54, %v3903_v53 }
 0x1f4   : > { %3137 = vmatpush.bf16.msrb.mxu0 %v3900_v3  ;;  %3150 = vmatpush.bf16.msrb.mxu1 %v4284_v12  ;;  %v3657_v3 = vld [vmem:[#allocation8 + $0x48] sm:$0xf0]  ;;  %v5273_v12 = vld [vmem:[#allocation8 + $0x31c] sm:$0xf]  ;;  %v5532_v62 = vld [vmem:[#allocation8 + $0xb2c] sm:$0xf0]  ;;  %v4288_v6 = vor.u32 %v5340_v57, %v4287_v56 }
 0x1f5   : > { %3163 = vmatpush.bf16.msrb.mxu2 %v4668_v16  ;;  %3176 = vmatpush.bf16.msrb.mxu3 %v5052_v35  ;;  %v4425_v16 = vld [vmem:[#allocation8 + $0x648] sm:$0xf0]  ;;  %v5465_v35 = vld [vmem:[#allocation8 + $0x91c] sm:$0xf]  ;;  %v3660_v5 = vor.u32 %v5177_v9, %v3657_v3  ;;  %v4044_v32 = vor.u32 %v5273_v12, %v4041_v13  ;;  %v3855_v9 = vld [vmem:[#allocation8 + $0x1a0] sm:$0xf] }
 0x1f6   : > { %v4428_v39 = vor.u32 %v5369_v34, %v4425_v16  ;;  %v4812_v41 = vor.u32 %v5465_v35, %v4809_v23  ;;  %v4239_v3 = vld [vmem:[#allocation8 + $0x4a0] sm:$0xf]  ;;  %v5328_v12 = vld [vmem:[#allocation8 + $0x4cc] sm:$0xf0] }
 0x1f7   : > { %v4623_v13 = vld [vmem:[#allocation8 + $0x7a0] sm:$0xf]  ;;  %v5520_v16 = vld [vmem:[#allocation8 + $0xacc] sm:$0xf0]  ;;  %v4240_v23 = vor.u32 %v5328_v12, %v4239_v3 }
 0x1f8   : > { %3138 = vmatpush.bf16.msrb.mxu0 %v3852_v8  ;;  %3151 = vmatpush.bf16.msrb.mxu1 %v4236_v31  ;;  %v5364_v8 = vld [vmem:[#allocation8 + $0x5ec] sm:$0xf0]  ;;  %v4767_v31 = vld [vmem:[#allocation8 + $0x8c0] sm:$0xf] }
 0x1f9   : > { %3164 = vmatpush.bf16.msrb.mxu2 %v4620_v36  ;;  %3177 = vmatpush.bf16.msrb.mxu3 %v5004_v37  ;;  %v2912_v21 = vpop.f32.mrf.mxu2  ;;  %v2925_v22 = vpop.f32.mrf.mxu3  ;;  %v5460_v36 = vld [vmem:[#allocation8 + $0x8ec] sm:$0xf0]  ;;  %v5151_v37 = vld [vmem:[#allocation8 + $0xbc0] sm:$0xf]  ;;  %v4384_v2 = vor.u32 %v5364_v8, %v4383_v26 }
 0x1fa   : > { %v4768_v43 = vor.u32 %v5460_v36, %v4767_v31  ;;  %v5152_v44 = vor.u32 %v5556_v38, %v5151_v37  ;;  %v5007_v34 = vld [vmem:[#allocation8 + $0xaa0] sm:$0xf]  ;;  %v5412_v36 = vld [vmem:[#allocation8 + $0x76c] sm:$0xf0] }
 0x1fb   : > { %v5008_v31 = vor.u32 %v5520_v16, %v5007_v34  ;;  %v4959_v37 = vld [vmem:[#allocation8 + $0xa40] sm:$0xf]  ;;  %v5508_v38 = vld [vmem:[#allocation8 + $0xa6c] sm:$0xf0] }
 0x1fc   : > { %3139 = vmatpush.bf16.msrb.mxu0 %v3804_v29  ;;  %3152 = vmatpush.bf16.msrb.mxu1 %v4188_v42  ;;  %v3951_v29 = vld [vmem:[#allocation8 + $0x260] sm:$0xf]  ;;  %v5256_v42 = vld [vmem:[#allocation8 + $0x28c] sm:$0xf0] }
 0x1fd   : > { %3165 = vmatpush.bf16.msrb.mxu2 %v4572_v4  ;;  %3178 = vmatpush.bf16.msrb.mxu3 %v4956_v45  ;;  %v4335_v4 = vld [vmem:[#allocation8 + $0x560] sm:$0xf]  ;;  %v5352_v45 = vld [vmem:[#allocation8 + $0x58c] sm:$0xf0]  ;;  %v3952_v52 = vor.u32 %v5256_v42, %v3951_v29  ;;  %v4960_v42 = vor.u32 %v5508_v38, %v4959_v37  ;;  %v5153_v37 = vld [vmem:[#allocation8 + $0xbf0] sm:$0xf0] }
 0x1fe   : > { %v4336_v15 = vor.u32 %v5352_v45, %v4335_v4  ;;  %v4527_v4 = vld [vmem:[#allocation8 + $0x6e0] sm:$0xf]  ;;  %v5196_v56 = vld [vmem:[#allocation8 + $0xac] sm:$0xf0] }
 0x1ff   : > { %v4047_v12 = vld [vmem:[#allocation8 + $0x320] sm:$0xf] }
 0x200   : > { %3140 = vmatpush.bf16.msrb.mxu0 %v3756_v55  ;;  %3153 = vmatpush.bf16.msrb.mxu1 %v4140_v30  ;;  %v4720_v55 = vor.u32 %v5448_v47, %v4719_v46  ;;  %v5104_v30 = vor.u32 %v5544_v51, %v5103_v48  ;;  %v5400_v47 = vld [vmem:[#allocation8 + $0x70c] sm:$0xf0]  ;;  %v4911_v48 = vld [vmem:[#allocation8 + $0x9e0] sm:$0xf] }
 0x201   : > { %3166 = vmatpush.bf16.msrb.mxu2 %v4524_v58  ;;  %3179 = vmatpush.bf16.msrb.mxu3 %v4908_v59  ;;  %v4671_v58 = vld [vmem:[#allocation8 + $0x800] sm:$0xf]  ;;  %v2885_v59 = vadd.f32 %v6227_v27, %v829_v0  ;;  %v5496_v51 = vld [vmem:[#allocation8 + $0xa0c] sm:$0xf0] }
 0x202   : > { %v4672_v27 = vor.u32 %v5436_v60, %v4671_v58  ;;  %v3759_v0 = vld [vmem:[#allocation8 + $0xe0] sm:$0xf]  ;;  %v4528_v58 = vor.u32 %v5400_v47, %v4527_v4  ;;  %v4721_v4 = vld [vmem:[#allocation8 + $0x890] sm:$0xf0] }
 0x203   : > { %v4095_v60 = vld [vmem:[#allocation8 + $0x380] sm:$0xf] }
 0x204   : > { %3141 = vmatpush.bf16.msrb.mxu0 %v3708_v10  ;;  %3154 = vmatpush.bf16.msrb.mxu1 %v4092_v11  ;;  %v5232_v10 = vld [vmem:[#allocation8 + $0x1cc] sm:$0xf0]  ;;  %v5056_v11 = vor.u32 %v5532_v62, %v5055_v61  ;;  %v4479_v62 = vld [vmem:[#allocation8 + $0x680] sm:$0xf] }
 0x205   : > { %3167 = vmatpush.bf16.msrb.mxu2 %v4476_v33  ;;  %3180 = vmatpush.bf16.msrb.mxu3 %v4860_v14  ;;  %v2898_v33 = vadd.f32 %v6229_v28, %v2885_v59  ;;  %v5424_v14 = vld [vmem:[#allocation8 + $0x7cc] sm:$0xf0]  ;;  %v3856_v20 = vor.u32 %v5232_v10, %v3855_v9  ;;  %v4912_v59 = vor.u32 %v5496_v51, %v4911_v48  ;;  %v3663_v10 = vld [vmem:[#allocation8 + $0x20] sm:$0xf]  ;;  %v5238_v51 = vld [vmem:[#allocation8 + $0x204] sm:$0xf] }
 0x206   : > { %v4624_v8 = vor.u32 %v5424_v14, %v4623_v13  ;;  %v5316_v28 = vld [vmem:[#allocation8 + $0x46c] sm:$0xf0] }
 0x207   : > { %v2911_v22 = vadd.f32 %v6231_v49, %v2898_v33  ;;  %v3808_v49 = vor.u32 %v5220_v25, %v3807_v24  ;;  %v5292_v61 = vld [vmem:[#allocation8 + $0x3ac] sm:$0xf0]  ;;  %v4431_v33 = vld [vmem:[#allocation8 + $0x620] sm:$0xf]  ;;  %v5262_v24 = vld [vmem:[#allocation8 + $0x2c4] sm:$0xf] }
 0x208   : > { %3142 = vmatpush.bf16.msrb.mxu0 %v3660_v5  ;;  %3155 = vmatpush.bf16.msrb.mxu1 %v4044_v32  ;;  %v2936_v35 = vpop.f32.mrf.mxu0  ;;  %v2949_v21 = vpop.f32.mrf.mxu1  ;;  %v4191_v5 = vld [vmem:[#allocation8 + $0x440] sm:$0xf]  ;;  %v4096_v3 = vor.u32 %v5292_v61, %v4095_v60  ;;  %v5280_v13 = vld [vmem:[#allocation8 + $0x34c] sm:$0xf0]  ;;  %v4001_v25 = vld [vmem:[#allocation8 + $0x2f0] sm:$0xf0] }
 0x209   : > { %3168 = vmatpush.bf16.msrb.mxu2 %v4428_v39  ;;  %3181 = vmatpush.bf16.msrb.mxu3 %v4812_v41  ;;  %v2937_v26 = vadd.f32 %v2936_v35, %v830_v7  ;;  %v4575_v32 = vld [vmem:[#allocation8 + $0x740] sm:$0xf]  ;;  %v2924_v39 = vadd.f32 %v6233_v50, %v2911_v22  ;;  %v4192_v41 = vor.u32 %v5316_v28, %v4191_v5  ;;  %v5484_v7 = vld [vmem:[#allocation8 + $0x9ac] sm:$0xf0]  ;;  %v5226_v60 = vld [vmem:[#allocation8 + $0x1a4] sm:$0xf] }
 0x20a   : > { %v4576_v29 = vor.u32 %v5412_v36, %v4575_v32  ;;  %v5376_v35 = vld [vmem:[#allocation8 + $0x64c] sm:$0xf0]  ;;  %v4048_v28 = vor.u32 %v5280_v13, %v4047_v12  ;;  %v4769_v32 = vld [vmem:[#allocation8 + $0x8f0] sm:$0xf0]  ;;  %v5550_v36 = vld [vmem:[#allocation8 + $0xbc4] sm:$0xf] }
 0x20b   : > { %3143 = vmatmul.bf16.vlgmr.msrb.gmra.mxu0 %v6169_v17  ;;  %3156 = vmatmul.bf16.vlgmr.msrb.gmra.mxu1 %v6171_v40  ;;  %v3397_v53 = vmul.f32 0.088388346, %v2924_v39  ;;  %v5472_v22 = vld [vmem:[#allocation8 + $0x94c] sm:$0xf0]  ;;  %v4432_v38 = vor.u32 %v5376_v35, %v4431_v33  ;;  %v3857_v61 = vld [vmem:[#allocation8 + $0x1d0] sm:$0xf0] }
 0x20c   : > { %3187 = vmatpush.bf16.msra.mxu0 %v4000_v1  ;;  %3200 = vmatpush.bf16.msra.mxu1 %v4384_v2  ;;  %v5208_v1 = vld [vmem:[#allocation8 + $0x10c] sm:$0xf0]  ;;  %v2950_v2 = vadd.f32 %v2949_v21, %v2937_v26  ;;  %v4815_v21 = vld [vmem:[#allocation8 + $0x920] sm:$0xf]  ;;  %v5358_v26 = vld [vmem:[#allocation8 + $0x5c4] sm:$0xf]  ;;  %v3860_v13 = vor.u32 %v5226_v60, %v3857_v61 }
 0x20d   : > { %3213 = vmatpush.bf16.msra.mxu2 %v4768_v43  ;;  %3226 = vmatpush.bf16.msra.mxu3 %v5152_v44  ;;  %v4143_v43 = vld [vmem:[#allocation8 + $0x3e0] sm:$0xf]  ;;  %v5304_v44 = vld [vmem:[#allocation8 + $0x40c] sm:$0xf0]  ;;  %v3760_v54 = vor.u32 %v5208_v1, %v3759_v0  ;;  %v4816_v39 = vor.u32 %v5472_v22, %v4815_v21  ;;  %v5250_v0 = vld [vmem:[#allocation8 + $0x264] sm:$0xf] }
 0x20e   : > { %3169 = vmatmul.bf16.vlgmr.msrb.gmra.mxu2 %v6173_v18  ;;  %3182 = vmatmul.bf16.vlgmr.msrb.gmra.mxu3 %v6175_v19  ;;  %v3953_v1 = vld [vmem:[#allocation8 + $0x290] sm:$0xf0]  ;;  %v5310_v21 = vld [vmem:[#allocation8 + $0x444] sm:$0xf] }
 0x20f   : > { %v3956_v47 = vor.u32 %v5250_v0, %v3953_v1  ;;  %v4193_v22 = vld [vmem:[#allocation8 + $0x470] sm:$0xf0]  ;;  %v5490_v0 = vld [vmem:[#allocation8 + $0x9e4] sm:$0xf] }
 0x210   : > { %3188 = vmatpush.bf16.msra.mxu0 %v3952_v52  ;;  %3201 = vmatpush.bf16.msra.mxu1 %v4336_v15  ;;  %v2938_v52 = vpop.f32.mrf.mxu0  ;;  %v2951_v15 = vpop.f32.mrf.mxu1  ;;  %v4913_v1 = vld [vmem:[#allocation8 + $0xa10] sm:$0xf0]  ;;  %v5370_v60 = vld [vmem:[#allocation8 + $0x624] sm:$0xf] }
 0x211   : > { %3214 = vmatpush.bf16.msra.mxu2 %v4720_v55  ;;  %3227 = vmatpush.bf16.msra.mxu3 %v5104_v30  ;;  %v2962_v45 = vpop.f32.mrf.mxu2  ;;  %v2975_v46 = vpop.f32.mrf.mxu3  ;;  %v4144_v55 = vor.u32 %v5304_v44, %v4143_v43  ;;  %v3711_v30 = vld [vmem:[#allocation8 + $0x80] sm:$0xf]  ;;  %v4337_v43 = vld [vmem:[#allocation8 + $0x590] sm:$0xf0]  ;;  %v5442_v44 = vld [vmem:[#allocation8 + $0x864] sm:$0xf] }
 0x212   : > { %v2963_v50 = vadd.f32 %v2962_v45, %v2950_v2  ;;  %v5538_v45 = vld [vmem:[#allocation8 + $0xb64] sm:$0xf]  ;;  %v4724_v52 = vor.u32 %v5442_v44, %v4721_v4  ;;  %v3713_v4 = vld [vmem:[#allocation8 + $0xb0] sm:$0xf0] }
 0x213   : > { %v5190_v44 = vld [vmem:[#allocation8 + $0x84] sm:$0xf]  ;;  %v4433_v61 = vld [vmem:[#allocation8 + $0x650] sm:$0xf0] }
 0x214   : > { %3189 = vmatpush.bf16.msra.mxu0 %v3904_v63  ;;  %3202 = vmatpush.bf16.msra.mxu1 %v4288_v6  ;;  %v2976_v57 = vadd.f32 %v2975_v46, %v2963_v50  ;;  %v5388_v63 = vld [vmem:[#allocation8 + $0x6ac] sm:$0xf0]  ;;  %v4863_v6 = vld [vmem:[#allocation8 + $0x980] sm:$0xf]  ;;  %v5105_v46 = vld [vmem:[#allocation8 + $0xb90] sm:$0xf0] }
 0x215   : > { %3215 = vmatpush.bf16.msra.mxu2 %v4672_v27  ;;  %3228 = vmatpush.bf16.msra.mxu3 %v5056_v11  ;;  %v5184_v27 = vld [vmem:[#allocation8 + $0x4c] sm:$0xf0]  ;;  %v3712_v11 = vor.u32 %v5196_v56, %v3711_v30  ;;  %v4480_v34 = vor.u32 %v5388_v63, %v4479_v62  ;;  %v4864_v16 = vor.u32 %v5484_v7, %v4863_v6  ;;  %v3905_v50 = vld [vmem:[#allocation8 + $0x230] sm:$0xf0]  ;;  %v5526_v56 = vld [vmem:[#allocation8 + $0xb04] sm:$0xf] }
 0x216   : > { %v3398_v9 = vmul.f32 0.088388346, %v2976_v57  ;;  %v3664_v5 = vor.u32 %v5184_v27, %v3663_v10  ;;  %v5108_v15 = vor.u32 %v5538_v45, %v5105_v46  ;;  %v4673_v30 = vld [vmem:[#allocation8 + $0x830] sm:$0xf0]  ;;  %v5322_v6 = vld [vmem:[#allocation8 + $0x4a4] sm:$0xf]  ;;  %v4916_v46 = vor.u32 %v5490_v0, %v4913_v1 }
 0x217   : > { %v5057_v57 = vld [vmem:[#allocation8 + $0xb30] sm:$0xf0]  ;;  %v5514_v27 = vld [vmem:[#allocation8 + $0xaa4] sm:$0xf] }
 0x218   : > { %3190 = vmatpush.bf16.msra.mxu0 %v3856_v20  ;;  %3203 = vmatpush.bf16.msra.mxu1 %v4240_v23  ;;  %v3400_v14 = vpack.c.bf16 %v3398_v9, %v3397_v53  ;;  %v5334_v53 = vld [vmem:[#allocation8 + $0x504] sm:$0xf]  ;;  %v5060_v63 = vor.u32 %v5526_v56, %v5057_v57  ;;  %v4241_v7 = vld [vmem:[#allocation8 + $0x4d0] sm:$0xf0] }
 0x219   : > { %3216 = vmatpush.bf16.msra.mxu2 %v4624_v8  ;;  %3229 = vmatpush.bf16.msra.mxu3 %v5008_v31  ;;  %v2964_v20 = vpop.f32.mrf.mxu2  ;;  %v2977_v23 = vpop.f32.mrf.mxu3  ;;  %v4385_v8 = vld [vmem:[#allocation8 + $0x5f0] sm:$0xf0]  ;;  %v5454_v31 = vld [vmem:[#allocation8 + $0x8c4] sm:$0xf]  ;;  %v4244_v33 = vor.u32 %v5322_v6, %v4241_v7 }
 0x21a   : > { %3402 = vst [vmem:[%s6224_s8 + $0x8] sm:$0xff] %v3400_v14  ;;  %v4772_v2 = vor.u32 %v5454_v31, %v4769_v32  ;;  %v5418_v9 = vld [vmem:[#allocation8 + $0x7a4] sm:$0xf]  ;;  %v4625_v10 = vld [vmem:[#allocation8 + $0x7d0] sm:$0xf0]  ;;  %s5846_s8 = scalar_lea.hbm %s6360_s5, 32 }
 0x21b   : > { %v5214_v14 = vld [vmem:[#allocation8 + $0x144] sm:$0xf]  ;;  %v4577_v23 = vld [vmem:[#allocation8 + $0x770] sm:$0xf0]  ;;  %p5848_p10 = scmp.lt.s32.totalorder %s5846_s8, %s5842_s27 }
 0x21c   : > { %3191 = vmatpush.bf16.msra.mxu0 %v3808_v49  ;;  %3204 = vmatpush.bf16.msra.mxu1 %v4192_v41  ;;  %v4004_v49 = vor.u32 %v5262_v24, %v4001_v25  ;;  %v4388_v41 = vor.u32 %v5358_v26, %v4385_v8  ;;  %v5406_v20 = vld [vmem:[#allocation8 + $0x744] sm:$0xf]  ;;  %v4961_v25 = vld [vmem:[#allocation8 + $0xa70] sm:$0xf0]  ;;  %v4196_v8 = vor.u32 %v5310_v21, %v4193_v22 }
 0x21d   : > { %3217 = vmatpush.bf16.msra.mxu2 %v4576_v29  ;;  %3230 = vmatpush.bf16.msra.mxu3 %v4960_v42  ;;  %v5156_v29 = vor.u32 %v5550_v36, %v5153_v37  ;;  %v5346_v42 = vld [vmem:[#allocation8 + $0x564] sm:$0xf]  ;;  %v4145_v37 = vld [vmem:[#allocation8 + $0x410] sm:$0xf0]  ;;  %v4436_v21 = vor.u32 %v5370_v60, %v4433_v61  ;;  %v5015_v60 = vld [vmem:[#allocation8 + $0xaa8] sm:$0xf]  ;;  %p5849_p12 = por %p5848_p10, %p5847_p9 }
 0x21e   : > { %v4340_v48 = vor.u32 %v5346_v42, %v4337_v43  ;;  %v5502_v24 = vld [vmem:[#allocation8 + $0xa44] sm:$0xf]  ;;  %v4049_v57 = vld [vmem:[#allocation8 + $0x350] sm:$0xf0]  ;;  %v5521_v61 = vld [vmem:[#allocation8 + $0xad4] sm:$0xf0] }
 0x21f   : > { %v5202_v31 = vld [vmem:[#allocation8 + $0xe4] sm:$0xf]  ;;  %v4964_v32 = vor.u32 %v5502_v24, %v4961_v25  ;;  %v4817_v7 = vld [vmem:[#allocation8 + $0x950] sm:$0xf0]  ;;  %v3959_v24 = vld [vmem:[#allocation8 + $0x268] sm:$0xf]  ;;  %p5850_p13 = pnand %p5849_p12, %p5845_p8 }
 0x220   : > { %3192 = vmatpush.bf16.msra.mxu0 %v3760_v54  ;;  %3205 = vmatpush.bf16.msra.mxu1 %v4144_v55  ;;  %v4289_v54 = vld [vmem:[#allocation8 + $0x530] sm:$0xf0]  ;;  %v5430_v55 = vld [vmem:[#allocation8 + $0x804] sm:$0xf]  ;;  %v5257_v25 = vld [vmem:[#allocation8 + $0x294] sm:$0xf0] }
 0x221   : > { %3218 = vmatpush.bf16.msra.mxu2 %v4528_v58  ;;  %3231 = vmatpush.bf16.msra.mxu3 %v4912_v59  ;;  %v3908_v58 = vor.u32 %v5238_v51, %v3905_v50  ;;  %v4292_v59 = vor.u32 %v5334_v53, %v4289_v54  ;;  %v4676_v62 = vor.u32 %v5430_v55, %v4673_v30  ;;  %v5298_v36 = vld [vmem:[#allocation8 + $0x3e4] sm:$0xf]  ;;  %v4481_v50 = vld [vmem:[#allocation8 + $0x6b0] sm:$0xf0] }
 0x222   : > { %v4148_v43 = vor.u32 %v5298_v36, %v4145_v37  ;;  %v5382_v51 = vld [vmem:[#allocation8 + $0x684] sm:$0xf]  ;;  %v3716_v54 = vor.u32 %v5190_v44, %v3713_v4  ;;  %v3665_v30 = vld [vmem:[#allocation8 + $0x50] sm:$0xf0]  ;;  %v5111_v36 = vld [vmem:[#allocation8 + $0xb68] sm:$0xf]  ;;  %v3960_v0 = vor.u32 %v5257_v25, %v3959_v24 }
 0x223   : > { %v5178_v53 = vld [vmem:[#allocation8 + $0x24] sm:$0xf]  ;;  %v5545_v37 = vld [vmem:[#allocation8 + $0xb94] sm:$0xf0]  ;;  %v4295_v44 = vld [vmem:[#allocation8 + $0x508] sm:$0xf] }
 0x224   : > { %3193 = vmatpush.bf16.msra.mxu0 %v3712_v11  ;;  %3206 = vmatpush.bf16.msra.mxu1 %v4096_v3  ;;  %v5009_v11 = vld [vmem:[#allocation8 + $0xad0] sm:$0xf0]  ;;  %v5274_v56 = vld [vmem:[#allocation8 + $0x324] sm:$0xf]  ;;  %v5341_v4 = vld [vmem:[#allocation8 + $0x534] sm:$0xf0] }
 0x225   : > { %3219 = vmatpush.bf16.msra.mxu2 %v4480_v34  ;;  %3232 = vmatpush.bf16.msra.mxu3 %v4864_v16  ;;  %v3809_v34 = vld [vmem:[#allocation8 + $0x170] sm:$0xf0]  ;;  %v4628_v16 = vor.u32 %v5418_v9, %v4625_v10  ;;  %v5012_v35 = vor.u32 %v5514_v27, %v5009_v11  ;;  %v4007_v9 = vld [vmem:[#allocation8 + $0x2c8] sm:$0xf]  ;;  %v5269_v10 = vld [vmem:[#allocation8 + $0x2f4] sm:$0xf0] }
 0x226   : > { %v3812_v26 = vor.u32 %v5214_v14, %v3809_v34  ;;  %v4391_v27 = vld [vmem:[#allocation8 + $0x5c8] sm:$0xf]  ;;  %v5365_v11 = vld [vmem:[#allocation8 + $0x5f4] sm:$0xf0]  ;;  %v4052_v14 = vor.u32 %v5274_v56, %v4049_v57 }
 0x227   : > { %v5461_v34 = vld [vmem:[#allocation8 + $0x8f4] sm:$0xf0]  ;;  %v4631_v57 = vld [vmem:[#allocation8 + $0x7a8] sm:$0xf] }
 0x228   : > { %3194 = vmatpush.bf16.msra.mxu0 %v3664_v5  ;;  %3207 = vmatpush.bf16.msra.mxu1 %v4048_v28  ;;  %v6250_v3 = vpop.f32.mrf.mxu0  ;;  %v6252_v12 = vpop.f32.mrf.mxu1  ;;  %v3761_v5 = vld [vmem:[#allocation8 + $0x110] sm:$0xf0]  ;;  %v4580_v28 = vor.u32 %v5406_v20, %v4577_v23  ;;  %v4008_v20 = vor.u32 %v5269_v10, %v4007_v9  ;;  %v4392_v23 = vor.u32 %v5365_v11, %v4391_v27  ;;  %v5329_v56 = vld [vmem:[#allocation8 + $0x4d4] sm:$0xf0]  ;;  %v3815_v9 = vld [vmem:[#allocation8 + $0x148] sm:$0xf] }
 0x229   : > { %3220 = vmatpush.bf16.msra.mxu2 %v4432_v38  ;;  %3233 = vmatpush.bf16.msra.mxu3 %v4816_v39  ;;  %v5394_v38 = vld [vmem:[#allocation8 + $0x6e4] sm:$0xf]  ;;  %v3764_v42 = vor.u32 %v5202_v31, %v3761_v5  ;;  %v4343_v31 = vld [vmem:[#allocation8 + $0x568] sm:$0xf]  ;;  %v5353_v5 = vld [vmem:[#allocation8 + $0x594] sm:$0xf0] }
 0x22a   : > { %v4344_v1 = vor.u32 %v5353_v5, %v4343_v31  ;;  %v5221_v10 = vld [vmem:[#allocation8 + $0x174] sm:$0xf0]  ;;  %v3767_v24 = vld [vmem:[#allocation8 + $0xe8] sm:$0xf] }
 0x22b   : > { %3195 = vmatmul.bf16.vlgmr.msra.gmra.mxu0 %v6169_v17  ;;  %3208 = vmatmul.bf16.vlgmr.msra.gmra.mxu1 %v6171_v40  ;;  %v5209_v25 = vld [vmem:[#allocation8 + $0x114] sm:$0xf0]  ;;  %v4151_v5 = vld [vmem:[#allocation8 + $0x3e8] sm:$0xf] }
 0x22c   : > { %3239 = vmatpush.bf16.msrb.mxu0 %v4004_v49  ;;  %3252 = vmatpush.bf16.msrb.mxu1 %v4388_v41  ;;  %v4529_v41 = vld [vmem:[#allocation8 + $0x710] sm:$0xf0] }
 0x22d   : > { %3265 = vmatpush.bf16.msrb.mxu2 %v4772_v2  ;;  %3278 = vmatpush.bf16.msrb.mxu3 %v5156_v29  ;;  %v4532_v45 = vor.u32 %v5394_v38, %v4529_v41  ;;  %v6258_v38 = vld [vmem:[#allocation10] sm:$0xff] }
 0x22e   : > { %3221 = vmatmul.bf16.vlgmr.msra.gmra.mxu2 %v6173_v18  ;;  %3234 = vmatmul.bf16.vlgmr.msra.gmra.mxu3 %v6175_v19  ;;  %v831_v41 = vperm.slane %v6258_v38, 4 }
 0x230   : > { %3240 = vmatpush.bf16.msrb.mxu0 %v3956_v47  ;;  %3253 = vmatpush.bf16.msrb.mxu1 %v4340_v48  ;;  %v2990_v2 = vpop.f32.mrf.mxu0  ;;  %v3003_v29 = vpop.f32.mrf.mxu1  ;;  %v5286_v47 = vld [vmem:[#allocation8 + $0x384] sm:$0xf]  ;;  %v4097_v48 = vld [vmem:[#allocation8 + $0x3b0] sm:$0xf0] }
 0x231   : > { %3266 = vmatpush.bf16.msrb.mxu2 %v4724_v52  ;;  %3279 = vmatpush.bf16.msrb.mxu3 %v5108_v15  ;;  %v6254_v39 = vpop.f32.mrf.mxu2  ;;  %v6256_v49 = vpop.f32.mrf.mxu3  ;;  %v5478_v52 = vld [vmem:[#allocation8 + $0x984] sm:$0xf]  ;;  %v4865_v15 = vld [vmem:[#allocation8 + $0x9b0] sm:$0xf0]  ;;  %v4100_v55 = vor.u32 %v5286_v47, %v4097_v48  ;;  %v3911_v2 = vld [vmem:[#allocation8 + $0x208] sm:$0xf] }
 0x232   : > { %v5245_v29 = vld [vmem:[#allocation8 + $0x234] sm:$0xf0]  ;;  %v5063_v47 = vld [vmem:[#allocation8 + $0xb08] sm:$0xf] }
 0x233   : > { %v5533_v48 = vld [vmem:[#allocation8 + $0xb34] sm:$0xf0] }
 0x234   : > { %3241 = vmatpush.bf16.msrb.mxu0 %v3908_v58  ;;  %3254 = vmatpush.bf16.msrb.mxu1 %v4292_v59  ;;  %v4484_v58 = vor.u32 %v5382_v51, %v4481_v50  ;;  %v4868_v59 = vor.u32 %v5478_v52, %v4865_v15  ;;  %v3912_v51 = vor.u32 %v5245_v29, %v3911_v2  ;;  %v832_v52 = vperm.slane %v6258_v38, 5  ;;  %v3863_v15 = vld [vmem:[#allocation8 + $0x1a8] sm:$0xf] }
 0x235   : > { %3267 = vmatpush.bf16.msrb.mxu2 %v4676_v62  ;;  %3280 = vmatpush.bf16.msrb.mxu3 %v5060_v63  ;;  %v5466_v62 = vld [vmem:[#allocation8 + $0x924] sm:$0xf]  ;;  %v4296_v50 = vor.u32 %v5341_v4, %v4295_v44  ;;  %v3719_v44 = vld [vmem:[#allocation8 + $0x88] sm:$0xf]  ;;  %v5197_v4 = vld [vmem:[#allocation8 + $0xb4] sm:$0xf0] }
 0x236   : > { %v4820_v22 = vor.u32 %v5466_v62, %v4817_v7 }
 0x238   : > { %3242 = vmatpush.bf16.msrb.mxu0 %v3860_v13  ;;  %3255 = vmatpush.bf16.msrb.mxu1 %v4244_v33  ;;  %v4775_v13 = vld [vmem:[#allocation8 + $0x8c8] sm:$0xf]  ;;  %v3668_v33 = vor.u32 %v5178_v53, %v3665_v30  ;;  %v5233_v53 = vld [vmem:[#allocation8 + $0x1d4] sm:$0xf0] }
 0x239   : > { %3268 = vmatpush.bf16.msrb.mxu2 %v4628_v16  ;;  %3281 = vmatpush.bf16.msrb.mxu3 %v5012_v35  ;;  %v3016_v63 = vpop.f32.mrf.mxu2  ;;  %v3029_v6 = vpop.f32.mrf.mxu3  ;;  %v5159_v16 = vld [vmem:[#allocation8 + $0xbc8] sm:$0xf]  ;;  %v5557_v35 = vld [vmem:[#allocation8 + $0xbf4] sm:$0xf0] }
 0x23a   : > { %v4247_v30 = vld [vmem:[#allocation8 + $0x4a8] sm:$0xf]  ;;  %v3864_v6 = vor.u32 %v5233_v53, %v3863_v15  ;;  %v5485_v53 = vld [vmem:[#allocation8 + $0x9b4] sm:$0xf0] }
 0x23b   : > { %v4248_v7 = vor.u32 %v5329_v56, %v4247_v30  ;;  %v4871_v15 = vld [vmem:[#allocation8 + $0x988] sm:$0xf]  ;;  %v5185_v56 = vld [vmem:[#allocation8 + $0x54] sm:$0xf0] }
 0x23c   : > { %3243 = vmatpush.bf16.msrb.mxu0 %v3812_v26  ;;  %3256 = vmatpush.bf16.msrb.mxu1 %v4196_v8  ;;  %v4776_v26 = vor.u32 %v5461_v34, %v4775_v13  ;;  %v5160_v8 = vor.u32 %v5557_v35, %v5159_v16  ;;  %v5016_v13 = vor.u32 %v5521_v61, %v5015_v60  ;;  %v4583_v34 = vld [vmem:[#allocation8 + $0x748] sm:$0xf]  ;;  %v5413_v16 = vld [vmem:[#allocation8 + $0x774] sm:$0xf0] }
 0x23d   : > { %3269 = vmatpush.bf16.msrb.mxu2 %v4580_v28  ;;  %3282 = vmatpush.bf16.msrb.mxu3 %v4964_v32  ;;  %v4727_v28 = vld [vmem:[#allocation8 + $0x868] sm:$0xf]  ;;  %v5449_v32 = vld [vmem:[#allocation8 + $0x894] sm:$0xf0]  ;;  %v4872_v60 = vor.u32 %v5485_v53, %v4871_v15  ;;  %v5323_v15 = vld [vmem:[#allocation8 + $0x4ac] sm:$0xf] }
 0x23e   : > { %v4967_v35 = vld [vmem:[#allocation8 + $0xa48] sm:$0xf]  ;;  %v4249_v53 = vld [vmem:[#allocation8 + $0x4d8] sm:$0xf0] }
 0x23f   : > { %v4439_v61 = vld [vmem:[#allocation8 + $0x628] sm:$0xf] }
 0x240   : > { %3244 = vmatpush.bf16.msrb.mxu0 %v3764_v42  ;;  %3257 = vmatpush.bf16.msrb.mxu1 %v4148_v43  ;;  %v4728_v42 = vor.u32 %v5449_v32, %v4727_v28  ;;  %v5112_v43 = vor.u32 %v5545_v37, %v5111_v36  ;;  %v5305_v28 = vld [vmem:[#allocation8 + $0x414] sm:$0xf0]  ;;  %v4535_v32 = vld [vmem:[#allocation8 + $0x6e8] sm:$0xf] }
 0x241   : > { %3270 = vmatpush.bf16.msrb.mxu2 %v4532_v45  ;;  %3283 = vmatpush.bf16.msrb.mxu3 %v4916_v46  ;;  %v4679_v45 = vld [vmem:[#allocation8 + $0x808] sm:$0xf]  ;;  %v5437_v46 = vld [vmem:[#allocation8 + $0x834] sm:$0xf0] }
 0x242   : > { %v5401_v37 = vld [vmem:[#allocation8 + $0x714] sm:$0xf0] }
 0x244   : > { %3245 = vmatpush.bf16.msrb.mxu0 %v3716_v54  ;;  %3258 = vmatpush.bf16.msrb.mxu1 %v4100_v55  ;;  %v4680_v54 = vor.u32 %v5437_v46, %v4679_v45  ;;  %v5064_v55 = vor.u32 %v5533_v48, %v5063_v47  ;;  %v4536_v46 = vor.u32 %v5401_v37, %v4535_v32  ;;  %v4103_v48 = vld [vmem:[#allocation8 + $0x388] sm:$0xf]  ;;  %v4729_v32 = vld [vmem:[#allocation8 + $0x898] sm:$0xf0] }
 0x245   : > { %3271 = vmatpush.bf16.msrb.mxu2 %v4484_v58  ;;  %3284 = vmatpush.bf16.msrb.mxu3 %v4868_v59  ;;  %v2989_v58 = vadd.f32 %v6250_v3, %v831_v41  ;;  %v5425_v59 = vld [vmem:[#allocation8 + $0x7d4] sm:$0xf0]  ;;  %v4919_v41 = vld [vmem:[#allocation8 + $0x9e8] sm:$0xf] }
 0x246   : > { %v4632_v11 = vor.u32 %v5425_v59, %v4631_v57  ;;  %v4055_v57 = vld [vmem:[#allocation8 + $0x328] sm:$0xf] }
 0x247   : > { %v3002_v3 = vadd.f32 %v6252_v12, %v2989_v58  ;;  %v5281_v58 = vld [vmem:[#allocation8 + $0x354] sm:$0xf0] }
 0x248   : > { %3246 = vmatpush.bf16.msrb.mxu0 %v3668_v33  ;;  %3259 = vmatpush.bf16.msrb.mxu1 %v4052_v14  ;;  %v3040_v62 = vpop.f32.mrf.mxu0  ;;  %v3053_v63 = vpop.f32.mrf.mxu1  ;;  %v4199_v33 = vld [vmem:[#allocation8 + $0x448] sm:$0xf]  ;;  %v5317_v14 = vld [vmem:[#allocation8 + $0x474] sm:$0xf0] }
 0x249   : > { %3272 = vmatpush.bf16.msrb.mxu2 %v4436_v21  ;;  %3285 = vmatpush.bf16.msrb.mxu3 %v4820_v22  ;;  %v3041_v27 = vadd.f32 %v3040_v62, %v832_v52  ;;  %v5509_v21 = vld [vmem:[#allocation8 + $0xa74] sm:$0xf0]  ;;  %v3015_v22 = vadd.f32 %v6254_v39, %v3002_v3  ;;  %v4777_v3 = vld [vmem:[#allocation8 + $0x8f8] sm:$0xf0] }
 0x24a   : > { %v4968_v31 = vor.u32 %v5509_v21, %v4967_v35  ;;  %v5389_v52 = vld [vmem:[#allocation8 + $0x6b4] sm:$0xf0]  ;;  %v5161_v35 = vld [vmem:[#allocation8 + $0xbf8] sm:$0xf0] }
 0x24b   : > { %3247 = vmatmul.bf16.vlgmr.msrb.gmra.mxu0 %v6169_v17  ;;  %3260 = vmatmul.bf16.vlgmr.msrb.gmra.mxu1 %v6171_v40  ;;  %v3028_v29 = vadd.f32 %v6256_v49, %v3015_v22  ;;  %v3671_v49 = vld [vmem:[#allocation8 + $0x28] sm:$0xf]  ;;  %v5377_v62 = vld [vmem:[#allocation8 + $0x654] sm:$0xf0] }
 0x24c   : > { %3291 = vmatpush.bf16.msra.mxu0 %v4008_v20  ;;  %3304 = vmatpush.bf16.msra.mxu1 %v4392_v23  ;;  %v3816_v20 = vor.u32 %v5221_v10, %v3815_v9  ;;  %v4200_v23 = vor.u32 %v5317_v14, %v4199_v33  ;;  %v5473_v9 = vld [vmem:[#allocation8 + $0x954] sm:$0xf0]  ;;  %v5263_v10 = vld [vmem:[#allocation8 + $0x2cc] sm:$0xf]  ;;  %v3672_v14 = vor.u32 %v5185_v56, %v3671_v49  ;;  %v4633_v49 = vld [vmem:[#allocation8 + $0x7d8] sm:$0xf0] }
 0x24d   : > { %3317 = vmatpush.bf16.msra.mxu2 %v4776_v26  ;;  %3330 = vmatpush.bf16.msra.mxu3 %v5160_v8  ;;  %v3054_v26 = vadd.f32 %v3053_v63, %v3041_v27  ;;  %v4584_v8 = vor.u32 %v5413_v16, %v4583_v34  ;;  %v4823_v63 = vld [vmem:[#allocation8 + $0x928] sm:$0xf]  ;;  %v4009_v27 = vld [vmem:[#allocation8 + $0x2f8] sm:$0xf0]  ;;  %v5455_v33 = vld [vmem:[#allocation8 + $0x8cc] sm:$0xf]  ;;  %v4056_v34 = vor.u32 %v5281_v58, %v4055_v57 }
 0x24e   : > { %3273 = vmatmul.bf16.vlgmr.msrb.gmra.mxu2 %v6173_v18  ;;  %3286 = vmatmul.bf16.vlgmr.msrb.gmra.mxu3 %v6175_v19  ;;  %v5551_v16 = vld [vmem:[#allocation8 + $0xbcc] sm:$0xf]  ;;  %v4440_v21 = vor.u32 %v5377_v62, %v4439_v61  ;;  %v4824_v22 = vor.u32 %v5473_v9, %v4823_v63  ;;  %v3817_v61 = vld [vmem:[#allocation8 + $0x178] sm:$0xf0] }
 0x24f   : > { %v5407_v9 = vld [vmem:[#allocation8 + $0x74c] sm:$0xf] }
 0x250   : > { %3292 = vmatpush.bf16.msra.mxu0 %v3960_v0  ;;  %3305 = vmatpush.bf16.msra.mxu1 %v4344_v1  ;;  %v5497_v0 = vld [vmem:[#allocation8 + $0xa14] sm:$0xf0]  ;;  %v3042_v1 = vpop.f32.mrf.mxu0  ;;  %v3055_v2 = vpop.f32.mrf.mxu1 }
 0x251   : > { %3318 = vmatpush.bf16.msra.mxu2 %v4728_v42  ;;  %3331 = vmatpush.bf16.msra.mxu3 %v5112_v43  ;;  %v3066_v12 = vpop.f32.mrf.mxu2  ;;  %v3079_v36 = vpop.f32.mrf.mxu3  ;;  %v3768_v42 = vor.u32 %v5209_v25, %v3767_v24  ;;  %v4152_v43 = vor.u32 %v5305_v28, %v4151_v5  ;;  %v4920_v47 = vor.u32 %v5497_v0, %v4919_v41  ;;  %v5251_v24 = vld [vmem:[#allocation8 + $0x26c] sm:$0xf]  ;;  %v3961_v25 = vld [vmem:[#allocation8 + $0x298] sm:$0xf0] }
 0x252   : > { %v3067_v39 = vadd.f32 %v3066_v12, %v3054_v26  ;;  %v4780_v26 = vor.u32 %v5455_v33, %v4777_v3  ;;  %v4345_v5 = vld [vmem:[#allocation8 + $0x598] sm:$0xf0]  ;;  %v5443_v28 = vld [vmem:[#allocation8 + $0x86c] sm:$0xf]  ;;  %v3964_v37 = vor.u32 %v5251_v24, %v3961_v25 }
 0x253   : > { %v5539_v12 = vld [vmem:[#allocation8 + $0xb6c] sm:$0xf]  ;;  %v4732_v1 = vor.u32 %v5443_v28, %v4729_v32  ;;  %v4537_v24 = vld [vmem:[#allocation8 + $0x718] sm:$0xf0] }
 0x254   : > { %3293 = vmatpush.bf16.msra.mxu0 %v3912_v51  ;;  %3306 = vmatpush.bf16.msra.mxu1 %v4296_v50  ;;  %v3080_v45 = vadd.f32 %v3079_v36, %v3067_v39  ;;  %v5293_v51 = vld [vmem:[#allocation8 + $0x3b4] sm:$0xf0]  ;;  %v4487_v50 = vld [vmem:[#allocation8 + $0x688] sm:$0xf]  ;;  %v5113_v36 = vld [vmem:[#allocation8 + $0xb98] sm:$0xf0] }
 0x255   : > { %3319 = vmatpush.bf16.msra.mxu2 %v4680_v54  ;;  %3332 = vmatpush.bf16.msra.mxu3 %v5064_v55  ;;  %v3720_v55 = vor.u32 %v5197_v4, %v3719_v44  ;;  %v4104_v30 = vor.u32 %v5293_v51, %v4103_v48  ;;  %v4488_v59 = vor.u32 %v5389_v52, %v4487_v50  ;;  %v5239_v0 = vld [vmem:[#allocation8 + $0x20c] sm:$0xf]  ;;  %v3913_v39 = vld [vmem:[#allocation8 + $0x238] sm:$0xf0] }
 0x256   : > { %v3403_v54 = vpack.c.bf16 %v3080_v45, %v3028_v29  ;;  %v5116_v2 = vor.u32 %v5539_v12, %v5113_v36  ;;  %v5335_v29 = vld [vmem:[#allocation8 + $0x50c] sm:$0xf]  ;;  %v4681_v44 = vld [vmem:[#allocation8 + $0x838] sm:$0xf0] }
 0x257   : > { %v5527_v4 = vld [vmem:[#allocation8 + $0xb0c] sm:$0xf]  ;;  %v5065_v45 = vld [vmem:[#allocation8 + $0xb38] sm:$0xf0] }
 0x258   : > { %3294 = vmatpush.bf16.msra.mxu0 %v3864_v6  ;;  %3307 = vmatpush.bf16.msra.mxu1 %v4248_v7  ;;  %3407 = vst [vmem:[%s6272_s14] sm:$0xff] %v3403_v54  ;;  %v5227_v48 = vld [vmem:[#allocation8 + $0x1ac] sm:$0xf]  ;;  %v3865_v51 = vld [vmem:[#allocation8 + $0x1d8] sm:$0xf0]  ;;  %v5068_v52 = vor.u32 %v5527_v4, %v5065_v45 }
 0x259   : > { %3320 = vmatpush.bf16.msra.mxu2 %v4632_v11  ;;  %3333 = vmatpush.bf16.msra.mxu3 %v5016_v13  ;;  %v3068_v6 = vpop.f32.mrf.mxu2  ;;  %v3081_v7 = vpop.f32.mrf.mxu3  ;;  %v5359_v11 = vld [vmem:[#allocation8 + $0x5cc] sm:$0xf]  ;;  %v4393_v13 = vld [vmem:[#allocation8 + $0x5f8] sm:$0xf0]  ;;  %v3868_v58 = vor.u32 %v5227_v48, %v3865_v51 }
 0x25a   : > { %v5419_v54 = vld [vmem:[#allocation8 + $0x7ac] sm:$0xf]  ;;  %v4201_v7 = vld [vmem:[#allocation8 + $0x478] sm:$0xf0] }
 0x25b   : > { %v4636_v62 = vor.u32 %v5419_v54, %v4633_v49  ;;  %v5311_v6 = vld [vmem:[#allocation8 + $0x44c] sm:$0xf]  ;;  %v3721_v12 = vld [vmem:[#allocation8 + $0xb8] sm:$0xf0] }
 0x25c   : > { %3295 = vmatpush.bf16.msra.mxu0 %v3816_v20  ;;  %3308 = vmatpush.bf16.msra.mxu1 %v4200_v23  ;;  %v4012_v20 = vor.u32 %v5263_v10, %v4009_v27  ;;  %v4396_v23 = vor.u32 %v5359_v11, %v4393_v13  ;;  %v4585_v10 = vld [vmem:[#allocation8 + $0x778] sm:$0xf0]  ;;  %v5503_v27 = vld [vmem:[#allocation8 + $0xa4c] sm:$0xf]  ;;  %v4204_v33 = vor.u32 %v5311_v6, %v4201_v7 }
 0x25d   : > { %3321 = vmatpush.bf16.msra.mxu2 %v4584_v8  ;;  %3334 = vmatpush.bf16.msra.mxu3 %v4968_v31  ;;  %v5164_v8 = vor.u32 %v5551_v16, %v5161_v35  ;;  %v5347_v31 = vld [vmem:[#allocation8 + $0x56c] sm:$0xf]  ;;  %v4969_v11 = vld [vmem:[#allocation8 + $0xa78] sm:$0xf0]  ;;  %v4588_v3 = vor.u32 %v5407_v9, %v4585_v10 }
 0x25e   : > { %v4348_v41 = vor.u32 %v5347_v31, %v4345_v5  ;;  %v4972_v16 = vor.u32 %v5503_v27, %v4969_v11  ;;  %v5299_v35 = vld [vmem:[#allocation8 + $0x3ec] sm:$0xf]  ;;  %v3673_v4 = vld [vmem:[#allocation8 + $0x58] sm:$0xf0] }
 0x25f   : > { %v5491_v25 = vld [vmem:[#allocation8 + $0x9ec] sm:$0xf]  ;;  %v4057_v48 = vld [vmem:[#allocation8 + $0x358] sm:$0xf0] }
 0x260   : > { %3296 = vmatpush.bf16.msra.mxu0 %v3768_v42  ;;  %3309 = vmatpush.bf16.msra.mxu1 %v4152_v43  ;;  %v4297_v42 = vld [vmem:[#allocation8 + $0x538] sm:$0xf0]  ;;  %v5431_v43 = vld [vmem:[#allocation8 + $0x80c] sm:$0xf] }
 0x261   : > { %3322 = vmatpush.bf16.msra.mxu2 %v4536_v46  ;;  %3335 = vmatpush.bf16.msra.mxu3 %v4920_v47  ;;  %v3916_v46 = vor.u32 %v5239_v0, %v3913_v39  ;;  %v4300_v47 = vor.u32 %v5335_v29, %v4297_v42  ;;  %v4684_v50 = vor.u32 %v5431_v43, %v4681_v44  ;;  %v5191_v32 = vld [vmem:[#allocation8 + $0x8c] sm:$0xf]  ;;  %v4105_v0 = vld [vmem:[#allocation8 + $0x3b8] sm:$0xf0] }
 0x262   : > { %v5383_v39 = vld [vmem:[#allocation8 + $0x68c] sm:$0xf]  ;;  %v4873_v29 = vld [vmem:[#allocation8 + $0x9b8] sm:$0xf0]  ;;  %v3724_v42 = vor.u32 %v5191_v32, %v3721_v12 }
 0x263   : > { %v5179_v44 = vld [vmem:[#allocation8 + $0x2c] sm:$0xf]  ;;  %v4825_v54 = vld [vmem:[#allocation8 + $0x958] sm:$0xf0] }
 0x264   : > { %3297 = vmatpush.bf16.msra.mxu0 %v3720_v55  ;;  %3310 = vmatpush.bf16.msra.mxu1 %v4104_v30  ;;  %v5515_v55 = vld [vmem:[#allocation8 + $0xaac] sm:$0xf]  ;;  %v5017_v30 = vld [vmem:[#allocation8 + $0xad8] sm:$0xf0]  ;;  %v3676_v49 = vor.u32 %v5179_v44, %v3673_v4 }
 0x265   : > { %3323 = vmatpush.bf16.msra.mxu2 %v4488_v59  ;;  %3336 = vmatpush.bf16.msra.mxu3 %v4872_v60  ;;  %v4252_v59 = vor.u32 %v5323_v15, %v4249_v53  ;;  %v5215_v60 = vld [vmem:[#allocation8 + $0x14c] sm:$0xf]  ;;  %v5020_v63 = vor.u32 %v5515_v55, %v5017_v30  ;;  %v4441_v15 = vld [vmem:[#allocation8 + $0x658] sm:$0xf0] }
 0x266   : > { %v3820_v13 = vor.u32 %v5215_v60, %v3817_v61  ;;  %v5371_v51 = vld [vmem:[#allocation8 + $0x62c] sm:$0xf]  ;;  %v834_v60 = vperm.slane %v6258_v38, 7 }
 0x267   : > { %v5467_v53 = vld [vmem:[#allocation8 + $0x92c] sm:$0xf]  ;;  %v4444_v30 = vor.u32 %v5371_v51, %v4441_v15 }
 0x268   : > { %3298 = vmatpush.bf16.msra.mxu0 %v3672_v14  ;;  %3311 = vmatpush.bf16.msra.mxu1 %v4056_v34  ;;  %v6279_v56 = vpop.f32.mrf.mxu0  ;;  %v6281_v57 = vpop.f32.mrf.mxu1  ;;  %v5203_v14 = vld [vmem:[#allocation8 + $0xec] sm:$0xf]  ;;  %v3769_v34 = vld [vmem:[#allocation8 + $0x118] sm:$0xf0] }
 0x269   : > { %3324 = vmatpush.bf16.msra.mxu2 %v4440_v21  ;;  %3337 = vmatpush.bf16.msra.mxu3 %v4824_v22  ;;  %v4153_v21 = vld [vmem:[#allocation8 + $0x418] sm:$0xf0]  ;;  %v5395_v22 = vld [vmem:[#allocation8 + $0x6ec] sm:$0xf]  ;;  %v3772_v5 = vor.u32 %v5203_v14, %v3769_v34 }
 0x26a   : > { %v4156_v28 = vor.u32 %v5299_v35, %v4153_v21  ;;  %v4540_v36 = vor.u32 %v5395_v22, %v4537_v24 }
 0x26b   : > { %3299 = vmatmul.bf16.vlgmr.msra.gmra.mxu0 %v6169_v17  ;;  %3312 = vmatmul.bf16.vlgmr.msra.gmra.mxu1 %v6171_v40 }
 0x26c   : > { %3343 = vmatpush.bf16.msrb.mxu0 %v4012_v20  ;;  %3356 = vmatpush.bf16.msrb.mxu1 %v4396_v23 }
 0x26d   : > { %3369 = vmatpush.bf16.msrb.mxu2 %v4780_v26  ;;  %3382 = vmatpush.bf16.msrb.mxu3 %v5164_v8  ;;  %v4921_v26 = vld [vmem:[#allocation8 + $0xa18] sm:$0xf0] }
 0x26e   : > { %3325 = vmatmul.bf16.vlgmr.msra.gmra.mxu2 %v6173_v18  ;;  %3338 = vmatmul.bf16.vlgmr.msra.gmra.mxu3 %v6175_v19 }
 0x270   : > { %3344 = vmatpush.bf16.msrb.mxu0 %v3964_v37  ;;  %3357 = vmatpush.bf16.msrb.mxu1 %v4348_v41  ;;  %v3094_v8 = vpop.f32.mrf.mxu0  ;;  %v3107_v31 = vpop.f32.mrf.mxu1  ;;  %v4924_v37 = vor.u32 %v5491_v25, %v4921_v26  ;;  %v5287_v41 = vld [vmem:[#allocation8 + $0x38c] sm:$0xf] }
 0x271   : > { %3370 = vmatpush.bf16.msrb.mxu2 %v4732_v1  ;;  %3383 = vmatpush.bf16.msrb.mxu3 %v5116_v2  ;;  %v6283_v20 = vpop.f32.mrf.mxu2  ;;  %v6285_v23 = vpop.f32.mrf.mxu3  ;;  %v4489_v1 = vld [vmem:[#allocation8 + $0x6b8] sm:$0xf0]  ;;  %v5479_v2 = vld [vmem:[#allocation8 + $0x98c] sm:$0xf]  ;;  %v4108_v43 = vor.u32 %v5287_v41, %v4105_v0 }
 0x272   : > { %v4492_v45 = vor.u32 %v5383_v39, %v4489_v1 }
 0x274   : > { %3345 = vmatpush.bf16.msrb.mxu0 %v3916_v46  ;;  %3358 = vmatpush.bf16.msrb.mxu1 %v4300_v47  ;;  %v4876_v46 = vor.u32 %v5479_v2, %v4873_v29  ;;  %v5275_v47 = vld [vmem:[#allocation8 + $0x32c] sm:$0xf] }
 0x275   : > { %3371 = vmatpush.bf16.msrb.mxu2 %v4684_v50  ;;  %3384 = vmatpush.bf16.msrb.mxu3 %v5068_v52  ;;  %v4060_v55 = vor.u32 %v5275_v47, %v4057_v48 }
 0x278   : > { %3346 = vmatpush.bf16.msrb.mxu0 %v3868_v58  ;;  %3359 = vmatpush.bf16.msrb.mxu1 %v4252_v59  ;;  %v4828_v58 = vor.u32 %v5467_v53, %v4825_v54  ;;  %v833_v59 = vperm.slane %v6258_v38, 6 }
 0x279   : > { %3372 = vmatpush.bf16.msrb.mxu2 %v4636_v62  ;;  %3385 = vmatpush.bf16.msrb.mxu3 %v5020_v63  ;;  %v3120_v50 = vpop.f32.mrf.mxu2  ;;  %v3133_v52 = vpop.f32.mrf.mxu3 }
 0x27a   : > { %v3093_v61 = vadd.f32 %v6279_v56, %v833_v59 }
 0x27c   : > { %3347 = vmatpush.bf16.msrb.mxu0 %v3820_v13  ;;  %3360 = vmatpush.bf16.msrb.mxu1 %v4204_v33 }
 0x27d   : > { %3373 = vmatpush.bf16.msrb.mxu2 %v4588_v3  ;;  %3386 = vmatpush.bf16.msrb.mxu3 %v4972_v16 }
 0x280   : > { %3348 = vmatpush.bf16.msrb.mxu0 %v3772_v5  ;;  %3361 = vmatpush.bf16.msrb.mxu1 %v4156_v28 }
 0x281   : > { %3374 = vmatpush.bf16.msrb.mxu2 %v4540_v36  ;;  %3387 = vmatpush.bf16.msrb.mxu3 %v4924_v37 }
 0x284   : > { %3349 = vmatpush.bf16.msrb.mxu0 %v3724_v42  ;;  %3362 = vmatpush.bf16.msrb.mxu1 %v4108_v43 }
 0x285   : > { %3375 = vmatpush.bf16.msrb.mxu2 %v4492_v45  ;;  %3388 = vmatpush.bf16.msrb.mxu3 %v4876_v46 }
 0x288   : > { %3350 = vmatpush.bf16.msrb.mxu0 %v3676_v49  ;;  %3363 = vmatpush.bf16.msrb.mxu1 %v4060_v55  ;;  %v3144_v62 = vpop.f32.mrf.mxu0  ;;  %v3157_v63 = vpop.f32.mrf.mxu1 }
 0x289   : > { %3376 = vmatpush.bf16.msrb.mxu2 %v4444_v30  ;;  %3389 = vmatpush.bf16.msrb.mxu3 %v4828_v58  ;;  %v3145_v6 = vadd.f32 %v3144_v62, %v834_v60 }
 0x28b   : > { %3351 = vmatmul.bf16.vlgmr.msrb.gmra.mxu0 %v6169_v17  ;;  %3364 = vmatmul.bf16.vlgmr.msrb.gmra.mxu1 %v6171_v40  ;;  %v3106_v17 = vadd.f32 %v6281_v57, %v3093_v61 }
 0x28c   : > { %3377 = vmatmul.bf16.vlgmr.msrb.gmra.mxu2 %v6173_v18  ;;  %3390 = vmatmul.bf16.vlgmr.msrb.gmra.mxu3 %v6175_v19  ;;  %v3158_v18 = vadd.f32 %v3157_v63, %v3145_v6 }
 0x28d   : > { %v3119_v40 = vadd.f32 %v6283_v20, %v3106_v17 }
 0x291   : > { %v3170_v19 = vpop.f32.mrf.mxu2  ;;  %v3183_v38 = vpop.f32.mrf.mxu3 }
 0x292   : > { %5853 = shalt.err (!%p5850_p13)
}
 0x293   : > { %5578 = dma.vmem_to_hbm [thread:$0]  (%p6084_p0), %s3433_s13, 256, %s3435_s18, %s3412_s16   ;;  %v3171_v56 = vadd.f32 %v3170_v19, %v3158_v18  ;;  %v3146_v57 = vpop.f32.mrf.mxu0  ;;  %v3159_v7 = vpop.f32.mrf.mxu1  ;;  %v3132_v9 = vadd.f32 %v6285_v23, %v3119_v40  ;;  %v824_v20 = vld [vmem:[#allocation10 + $0x8] sm:$0xf] }
 0x294   : > { %v835_v24 = vperm.slane %v824_v20, 0  ;;  %v836_v25 = vperm.slane %v824_v20, 1  ;;  %v837_v50 = vperm.slane %v824_v20, 2  ;;  %v838_v52 = vperm.slane %v824_v20, 3  ;;  %s5559_s11 = sshll.u32 %s5940_s24, 5  ;;  %s3449_s16 = sshll.u32 %s6272_s14, 4  ;;  %s3450_s16 = int_to_ptr.vmem [resolvable:$true] %s3449_s16 }
 0x295   : > { %v3184_v10 = vadd.f32 %v3183_v38, %v3171_v56  ;;  %s3447_s18 = scalar_lea.hbm %s6361_s6, %s5559_s11  ;;  %s3417_s24 = scalar_lea.sflag [#allocation13], %s6104_s17 }
 0x296   : > { %s3451_s7 = sshll.u32 %s3447_s18, 4  ;;  %s5874_s30 = scalar_lea.hbm %s6361_s6, 64  ;;  %s3452_s7 = int_to_ptr.hbm [resolvable:$true] %s3451_s7 }
 0x297   : > { %v3404_v27 = vpack.c.bf16 %v3184_v10, %v3132_v9  ;;  %s5868_s27 = sshra.s32 %s3452_s7, 4  ;;  %s5869_s27 = int_to_ptr.hbm [resolvable:$true] %s5868_s27 }
 0x298   : > { %s5870_s9 = scalar_lea.hbm %s5869_s27, 32  ;;  %p5875_p11 = scmp.lt.s32.totalorder %s5869_s27, %s6361_s6 }
 0x299   : > { %3408 = vst [vmem:[%s6272_s14 + $0x8] sm:$0xff] %v3404_v27  ;;  %v3172_v11 = vpop.f32.mrf.mxu2  ;;  %v3185_v13 = vpop.f32.mrf.mxu3  ;;  %p5871_p2 = scmp.ne.s32.totalorder %s5869_s27, %s5870_s9  ;;  %p5876_p1 = scmp.lt.s32.totalorder %s5874_s30, %s5870_s9 }
 0x29b   : > { %p5872_p5 = pnand %p5871_p2, %p6084_p0  ;;  %p5877_p3 = por %p5876_p1, %p5875_p11 }
 0x29d   : > { %p5873_p7 = pneg %p5872_p5 }
 0x29f   : > { %p5878_p8 = pnand %p5877_p3, %p5873_p7 }
 0x2a8   : > { %v3196_v33 = vpop.f32.mrf.mxu0  ;;  %v3209_v14 = vpop.f32.mrf.mxu1 }
 0x2a9   : > { %v3197_v26 = vadd.f32 %v3196_v33, %v835_v24 }
 0x2ab   : > { %v3210_v5 = vadd.f32 %v3209_v14, %v3197_v26 }
 0x2b0   : > { %v3198_v16 = vpop.f32.mrf.mxu0  ;;  %v3211_v35 = vpop.f32.mrf.mxu1 }
 0x2b1   : > { %v3222_v34 = vpop.f32.mrf.mxu2  ;;  %v3235_v3 = vpop.f32.mrf.mxu3 }
 0x2b2   : > { %v3223_v28 = vadd.f32 %v3222_v34, %v3210_v5 }
 0x2b4   : > { %v3236_v39 = vadd.f32 %v3235_v3, %v3223_v28 }
 0x2b9   : > { %v3224_v21 = vpop.f32.mrf.mxu2  ;;  %v3237_v22 = vpop.f32.mrf.mxu3 }
 0x2c8   : > { %v3248_v8 = vpop.f32.mrf.mxu0  ;;  %v3261_v23 = vpop.f32.mrf.mxu1 }
 0x2c9   : > { %v3249_v31 = vadd.f32 %v3248_v8, %v836_v25 }
 0x2cb   : > { %v3262_v32 = vadd.f32 %v3261_v23, %v3249_v31 }
 0x2d0   : > { %v3250_v41 = vpop.f32.mrf.mxu0  ;;  %v3263_v0 = vpop.f32.mrf.mxu1 }
 0x2d1   : > { %v3274_v12 = vpop.f32.mrf.mxu2  ;;  %v3287_v36 = vpop.f32.mrf.mxu3 }
 0x2d2   : > { %v3275_v37 = vadd.f32 %v3274_v12, %v3262_v32 }
 0x2d4   : > { %v3288_v1 = vadd.f32 %v3287_v36, %v3275_v37 }
 0x2d6   : > { %v3405_v2 = vpack.c.bf16 %v3288_v1, %v3236_v39 }
 0x2d8   : > { %3409 = vst [vmem:[%s6272_s14 + $0x10] sm:$0xff] %v3405_v2 }
 0x2d9   : > { %v3276_v29 = vpop.f32.mrf.mxu2  ;;  %v3289_v42 = vpop.f32.mrf.mxu3 }
 0x2e8   : > { %v3300_v43 = vpop.f32.mrf.mxu0  ;;  %v3313_v44 = vpop.f32.mrf.mxu1 }
 0x2e9   : > { %v3301_v15 = vadd.f32 %v3300_v43, %v837_v50 }
 0x2eb   : > { %v3314_v55 = vadd.f32 %v3313_v44, %v3301_v15 }
 0x2f0   : > { %v3302_v46 = vpop.f32.mrf.mxu0  ;;  %v3315_v47 = vpop.f32.mrf.mxu1 }
 0x2f1   : > { %v3326_v4 = vpop.f32.mrf.mxu2  ;;  %v3339_v45 = vpop.f32.mrf.mxu3 }
 0x2f2   : > { %v3327_v30 = vadd.f32 %v3326_v4, %v3314_v55 }
 0x2f4   : > { %v3340_v6 = vadd.f32 %v3339_v45, %v3327_v30 }
 0x2f9   : > { %v3328_v48 = vpop.f32.mrf.mxu2  ;;  %v3341_v51 = vpop.f32.mrf.mxu3 }
 0x308   : > { %v3352_v53 = vpop.f32.mrf.mxu0  ;;  %v3365_v54 = vpop.f32.mrf.mxu1 }
 0x309   : > { %v3353_v49 = vadd.f32 %v3352_v53, %v838_v52 }
 0x30b   : > { %v3366_v58 = vadd.f32 %v3365_v54, %v3353_v49 }
 0x30f   : > { %v3378_v59 = vpop.f32.mrf.mxu2  ;;  %v3391_v60 = vpop.f32.mrf.mxu3 }
 0x310   : > { %v3379_v61 = vadd.f32 %v3378_v59, %v3366_v58  ;;  %v3354_v62 = vpop.f32.mrf.mxu0  ;;  %v3367_v63 = vpop.f32.mrf.mxu1 }
 0x312   : > { %v3392_v17 = vadd.f32 %v3391_v60, %v3379_v61 }
 0x314   : > { %v3406_v40 = vpack.c.bf16 %v3392_v17, %v3340_v6 }
 0x316   : > { %3410 = vst [vmem:[%s6272_s14 + $0x18] sm:$0xff] %v3406_v40 }
 0x317   : > { %v3380_v18 = vpop.f32.mrf.mxu2  ;;  %v3393_v19 = vpop.f32.mrf.mxu3 }
 0x318   : > { %5881 = shalt.err (!%p5878_p8)
}
 0x319   : > { %5579 = dma.vmem_to_hbm [thread:$0]  (%p6084_p0), %s3450_s16, 512, %s3452_s7, %s3417_s24  }
 0x31a PF: > { %s3463_s17 = sand.u32 1, %s5928_s21   ;;  %p5600_p9 = pnand %p3617_p4, %p6091_p6 }
 0x31b   : > { %s3464_s14 = scalar_lea.sflag [#allocation4], %s3463_s17 }
 0x31c   : > { %p5601_p10 = pneg %p5600_p9 }
 0x31e   : > { %5919 = dma.done.wait (%p5601_p10), %s3464_s14, 256  }
 0x31f   : > { %5921 = vsyncadd (%p5601_p10), %s3464_s14, 4294967040  ;;  %s3474_s12 = scalar_lea.sflag [#allocation13], %s3463_s17 }
 0x320   : > { %5923 = dma.done.wait (%p5601_p10), %s3474_s12, 512  }
 0x321   : > { %5925 = vsyncadd (%p5601_p10), %s3474_s12, 4294966784  ;;  %s28_s26 = sadd.s32 1, %s5948_s26   ;;  %s6368_s21 = smov %s5932_s22 }
 0x322   : > { %p25_p12 = scmp.ge.s32.totalorder %s28_s26, 4   ;;  %s6369_s22 = smov %s5936_s23 }
 0x323   : > { %s6370_s23 = smov %s6089_s20  ;;  %s6371_s24 = smov %s5944_s25 }
 0x324   : > { %s6372_s25 = smov %s6374_s15  ;;  %27 = sbr.rel (!%p25_p12) target bundleno = 10 (0xa), region = 118 }
 0x329   :  { %3480 = vsyncpa [#allocation3], 1 }
 0x32a   :  { %3482 = vsyncpa [#allocation3 + $0x1], 1 }
 0x32b   :  { %3483 = vsyncpa [#allocation6], 1 }
 0x32c   :  { %3484 = vsyncpa [#allocation9], 1 }
 0x32d   :  { %3485 = vsyncpa [#allocation4], 1 }
 0x32e   :  { %3487 = vsyncpa [#allocation4 + $0x1], 1 }
 0x32f   :  { %3488 = vsyncpa [#allocation13], 1 }
 0x330   :  { %3490 = vsyncpa [#allocation13 + $0x1], 1 }

</bundles_post_ra>
